<compile_context>
chip_gen: v6e
topology: v6e:2x2x1
jax: 0.10.0
libtpu: 0.0.40
codegen_flags: <defaults>
</compile_context>

<pallas_src>
import math
import functools

import jax
import jax.numpy as jnp
from jax import lax
from jax.experimental import pallas as pl
from jax.experimental.pallas import tpu as pltpu


# ----------------------------------------------------------------------------
# Wrapper-side mask construction (tiny, XLA, computed once).
# ----------------------------------------------------------------------------

def _build_self_fill(attn_mask, B, h, S):
    """(B*h*S, B*h*S) fill for the flat-order Gram scores of self-attention.

    0.0      -> keep the raw score (same batch & head, attn_mask == 1)
    -1e9     -> masked position inside a (batch, head) block (masked_fill value)
    -inf     -> cross-(batch, head) position (contributes exactly 0 to softmax)
    """
    n = B * h * S
    idx = jnp.arange(n)
    b = idx // (h * S)
    hh = (idx % (h * S)) // S
    i = idx % S
    same = (b[:, None] == b[None, :]) & (hh[:, None] == hh[None, :])
    keep = attn_mask[i[:, None], i[None, :]] != 0
    return jnp.where(same, jnp.where(keep, 0.0, -1e9), -jnp.inf).astype(jnp.float32)


def _build_cross_fill(attn_mask, B, h, Sq, Skv):
    """(B*h*Sq, h*B*Skv) fill; query rows in flat order, kv columns chunk-major."""
    nq = B * h * Sq
    qi = jnp.arange(nq)
    bq = qi // (h * Sq)
    hq = (qi % (h * Sq)) // Sq
    iq = qi % Sq

    nk = h * B * Skv
    ki = jnp.arange(nk)
    ck = ki // (B * Skv)                 # feature chunk of the source row
    bk = (ki % (B * Skv)) // Skv         # batch of the source row
    rk = ki % Skv                        # source row within the batch
    fk = rk * h + ck                     # within-batch flat row index
    hk = fk // Skv                       # head of that flat row
    pk = fk % Skv                        # key position of that flat row

    same = (bq[:, None] == bk[None, :]) & (hq[:, None] == hk[None, :])
    keep = attn_mask[iq[:, None], pk[None, :]] != 0
    return jnp.where(same, jnp.where(keep, 0.0, -1e9), -jnp.inf).astype(jnp.float32)


# ----------------------------------------------------------------------------
# In-kernel helpers.
# ----------------------------------------------------------------------------

def _interleave_heads(mat, scr, h, d_k):
    """Faithful row-major reshape (N, h*d_k) -> (N*h, d_k).

    Row g of the result = mat[g // h, (g % h)*d_k : (g % h + 1)*d_k], which is
    exactly the module's `reshape(n_batches, h, -1, d_k)` head view laid out
    batch-major, head-major, position-major.  Only lane-aligned column slices
    and a trailing-dim-preserving collapse reshape are used (robust Mosaic
    lowering path).
    # TODO(synk): a 2-D scratch with stride-h pl.ds stores would avoid the
    # padded-sublane staging layout entirely; kept on the proven path here.
    """
    n = mat.shape[0]
    for c in range(h):
        scr[:, c, :] = mat[:, c * d_k:(c + 1) * d_k]
    return scr[...].reshape(n * h, d_k)


def _chunk_major(mat, h, d_k):
    """(N, h*d_k) -> (h*N, d_k) by stacking lane chunks along sublanes (free)."""
    return jnp.concatenate([mat[:, c * d_k:(c + 1) * d_k] for c in range(h)], axis=0)


def _masked_attention(q_flat, kv_flat, fill, d_k):
    """Block-diagonal masked softmax attention over all (batch, head) pairs.

    key == value (as in the module).  `fill` encodes both the cross-block mask
    (-inf) and the attention mask (-1e9); 0.0 entries keep the raw score.  The
    approximate EUP reciprocal in the softmax denominator is a documented
    precision tradeoff; the denominator is always >= 1 (the row max contributes
    exp(0) = 1), so it is well conditioned even for fully masked rows.
    # TODO(synk): the source einsum 'bhqk,bhvd->bhqd' literally sums k and v
    # independently; this implements the intended standard contraction over k.
    """
    s = lax.dot_general(q_flat, kv_flat, (((1,), (1,)), ((), ())),
                        preferred_element_type=jnp.float32)
    s = s * (1.0 / math.sqrt(d_k))
    s = jnp.where(fill == 0.0, s, fill)
    m = jnp.max(s, axis=-1, keepdims=True)
    e = jnp.exp(s - m)
    p = e * pl.reciprocal(jnp.sum(e, axis=-1, keepdims=True), approx=True)
    return jnp.dot(p, kv_flat, preferred_element_type=jnp.float32)


def _merge_heads(ctx_flat, B, h, S, d_k):
    """(B*h*S, d_k) flat-order contexts -> (B*S, h*d_k) head-merged matrix.

    Equals x.transpose(1, 2).contiguous().view(B, -1, h*d_k); uses only static
    sublane-aligned row slices and concatenation.
    """
    cols = []
    for hh in range(h):
        rows = [ctx_flat[b * h * S + hh * S: b * h * S + (hh + 1) * S, :]
                for b in range(B)]
        cols.append(jnp.concatenate(rows, axis=0))
    return jnp.concatenate(cols, axis=-1)


# ----------------------------------------------------------------------------
# Fused Decoder kernel: grid over layers, activations resident in VMEM.
# ----------------------------------------------------------------------------

def _decoder_kernel(x_emb_ref, enc_ref, self_fill_ref, cross_fill_ref,
                    w_qkv_ref, w_out_ref, gamma_ref, beta_ref,
                    w_fc_ref, b_fc_ref, o_ref, x_scr, q_scr,
                    *, B, S, Skv, h, d_k):
    l = pl.program_id(0)

    @pl.when(l == 0)
    def _init():
        x_scr[...] = x_emb_ref[...]

    x = x_scr[...]                                          # (B*S, D) f32
    # bf16 weights in HBM (halved DMA); upcast once per layer, f32 matmuls.
    w_qkv = w_qkv_ref[0].astype(jnp.float32)                # (D, D)
    w_out = w_out_ref[0].astype(jnp.float32)                # (D, D)

    # ---- MHA #1: self-attention, q = k = v = x (one shared projection) ----
    qkv1 = jnp.dot(x, w_qkv, preferred_element_type=jnp.float32)      # (B*S, D)
    f1 = _interleave_heads(qkv1, q_scr, h, d_k)                        # (B*h*S, d_k)
    ctx1 = _masked_attention(f1, f1, self_fill_ref[...], d_k)          # (B*h*S, d_k)
    attn1 = jnp.dot(_merge_heads(ctx1, B, h, S, d_k), w_out,
                    preferred_element_type=jnp.float32)                # (B*S, D)

    # ---- query = LayerNorm(x + attention)  (dropout = identity) ----
    z = x + attn1
    mu = jnp.mean(z, axis=-1, keepdims=True)
    zc = z - mu
    var = jnp.mean(zc * zc, axis=-1, keepdims=True)                    # biased var
    query = zc * lax.rsqrt(var + 1e-5) * gamma_ref[0] + beta_ref[0]

    # ---- MHA #2: cross-attention, q = query, k = v = enc (same weights) ----
    q2 = jnp.dot(query, w_qkv, preferred_element_type=jnp.float32)     # (B*S, D)
    kv2 = jnp.dot(enc_ref[...], w_qkv, preferred_element_type=jnp.float32)
    fq = _interleave_heads(q2, q_scr, h, d_k)                          # (B*h*S, d_k)
    fkv = _chunk_major(kv2, h, d_k)                                    # (h*B*Skv, d_k)
    ctx2 = _masked_attention(fq, fkv, cross_fill_ref[...], d_k)
    out = jnp.dot(_merge_heads(ctx2, B, h, S, d_k), w_out,
                  preferred_element_type=jnp.float32)                  # (B*S, D)

    x_scr[...] = out                                        # residual-stream carry

    # ---- fc_out fused into the last layer step (lane-dense (B*S, V) store) ----
    @pl.when(l == pl.num_programs(0) - 1)
    def _final():
        logits = jnp.dot(out, w_fc_ref[...].astype(jnp.float32),
                         preferred_element_type=jnp.float32) + b_fc_ref[...]
        o_ref[...] = logits.astype(o_ref.dtype)


def decoder_forward(tokens, enc_out, src_mask, trg_mask, params, h):
    """Decoder.forward: embedding + PE (XLA), then one fused Pallas call."""
    B, S = tokens.shape
    Skv = enc_out.shape[1]
    D = params['emb'].shape[1]
    V = params['w_fc'].shape[1]
    L = params['w_qkv'].shape[0]
    d_k = D // h

    # TODO(synk): embedding gather + positional-encoding add are left to XLA; a
    # data-dependent single-row gather of a tiny table has no useful Pallas tiling.
    x = params['emb'][tokens] + params['pe'][None, :S, :]
    x_flat = x.reshape(B * S, D).astype(jnp.float32)
    enc_flat = enc_out.reshape(B * Skv, D).astype(jnp.float32)

    self_fill = _build_self_fill(trg_mask, B, h, S)
    cross_fill = _build_cross_fill(src_mask, B, h, S, Skv)

    kern = functools.partial(_decoder_kernel, B=B, S=S, Skv=Skv, h=h, d_k=d_k)
    logits = pl.pallas_call(
        kern,
        out_shape=jax.ShapeDtypeStruct((B * S, V), jnp.float32),
        grid=(L,),
        in_specs=[
            pl.BlockSpec((B * S, D), lambda l: (0, 0)),                # x (emb+PE)
            pl.BlockSpec((B * Skv, D), lambda l: (0, 0)),              # encoder out
            pl.BlockSpec((B * h * S, B * h * S), lambda l: (0, 0)),    # self fill
            pl.BlockSpec((B * h * S, h * B * Skv), lambda l: (0, 0)),  # cross fill
            pl.BlockSpec((1, D, D), lambda l: (l, 0, 0)),              # W_qkv[l] bf16
            pl.BlockSpec((1, D, D), lambda l: (l, 0, 0)),              # W_out[l] bf16
            pl.BlockSpec((1, 1, D), lambda l: (l, 0, 0)),              # gamma[l]
            pl.BlockSpec((1, 1, D), lambda l: (l, 0, 0)),              # beta[l]
            pl.BlockSpec((D, V), lambda l: (0, 0)),                    # w_fc bf16
            pl.BlockSpec((1, V), lambda l: (0, 0)),                    # b_fc
        ],
        out_specs=pl.BlockSpec((B * S, V), lambda l: (0, 0)),
        scratch_shapes=[
            pltpu.VMEM((B * S, D), jnp.float32),       # residual-stream carry
            pltpu.VMEM((B * S, h, d_k), jnp.float32),  # head-interleave staging
        ],
        compiler_params=pltpu.CompilerParams(
            dimension_semantics=("arbitrary",),         # sequential layer chain
            vmem_limit_bytes=32 * 1024 * 1024),
    )(x_flat, enc_flat, self_fill, cross_fill,
      params['w_qkv'], params['w_out'], params['gamma'], params['beta'],
      params['w_fc'], params['b_fc'].reshape(1, V))
    return logits.reshape(B, S, V)


# ----------------------------------------------------------------------------
# Pure-JAX reference (faithful per-batch reshape head split).
# ----------------------------------------------------------------------------

def _mha_ref(q_in, k_in, v_in, mask, w_qkv, w_out, h):
    B, Sq, D = q_in.shape
    d_k = D // h
    q = q_in @ w_qkv
    k = k_in @ w_qkv
    v = v_in @ w_qkv
    qh = q.reshape(B, h, -1, d_k)        # plain reshape (not a head transpose)
    kh = k.reshape(B, h, -1, d_k)
    vh = v.reshape(B, h, -1, d_k)
    s = jnp.einsum('bhqd,bhkd->bhqk', qh, kh) / math.sqrt(d_k)
    s = jnp.where(mask[None, None] == 0, -1e9, s)
    p = jax.nn.softmax(s, axis=-1)
    o = jnp.einsum('bhqk,bhkd->bhqd', p, vh)
    o = o.transpose(0, 2, 1, 3).reshape(B, Sq, D)
    return o @ w_out


def _decoder_block_ref(x, enc, src_mask, trg_mask, w_qkv, w_out, gamma, beta, h):
    a1 = _mha_ref(x, x, x, trg_mask, w_qkv, w_out, h)
    z = x + a1
    mu = z.mean(-1, keepdims=True)
    var = ((z - mu) ** 2).mean(-1, keepdims=True)
    query = (z - mu) / jnp.sqrt(var + 1e-5) * gamma + beta
    return _mha_ref(query, enc, enc, src_mask, w_qkv, w_out, h)


def _decoder_ref(tokens, enc_out, src_mask, trg_mask, params, h):
    S = tokens.shape[1]
    x = params['emb'][tokens] + params['pe'][None, :S, :]
    L = params['w_qkv'].shape[0]
    for l in range(L):
        wq = params['w_qkv'][l].astype(jnp.float32)
        wo = params['w_out'][l].astype(jnp.float32)
        x = _decoder_block_ref(x, enc_out, src_mask, trg_mask, wq, wo,
                               params['gamma'][l, 0], params['beta'][l, 0], h)
    return x @ params['w_fc'].astype(jnp.float32) + params['b_fc']


# ----------------------------------------------------------------------------
# main
# ----------------------------------------------------------------------------

if __name__ == "__main__":
    # Small but lane-friendly sizes (d_model, d_k, vocab are multiples of 128).
    B, S, S_SRC = 2, 8, 8
    D_MODEL, HEADS, N_LAYERS = 512, 4, 2        # d_k = 128
    VOCAB = 256
    MAX_LEN = 64
    # d_ff / dropout exist in the module but DecoderBlock.forward never uses the
    # TransformerBlock (FFN / norm2), and dropout is identity at inference.

    root = jax.random.PRNGKey(0)
    k_tok, k_enc, k_emb, k_fc, k_b, k_layers = jax.random.split(root, 6)

    tokens = jax.random.randint(k_tok, (B, S), 0, VOCAB)
    enc_out = jax.random.normal(k_enc, (B, S_SRC, D_MODEL), jnp.float32)

    # positional-encoding table (same formula as the module)
    pos = jnp.arange(MAX_LEN, dtype=jnp.float32)[:, None]
    div = jnp.exp(jnp.arange(0, D_MODEL, 2, dtype=jnp.float32)
                  * (-math.log(10000.0) / D_MODEL))
    pe = jnp.zeros((MAX_LEN, D_MODEL), jnp.float32)
    pe = pe.at[:, 0::2].set(jnp.sin(pos * div))
    pe = pe.at[:, 1::2].set(jnp.cos(pos * div))

    layer_keys = jax.random.split(k_layers, 2 * N_LAYERS)
    # nn.Linear weights (bias=False), pre-transposed (y = x @ W); stacked over
    # layers and stored in bf16 (the reference uses the same bf16-rounded values).
    w_qkv = jnp.stack([jax.random.normal(layer_keys[2 * l], (D_MODEL, D_MODEL),
                                         jnp.float32) / math.sqrt(D_MODEL)
                       for l in range(N_LAYERS)]).astype(jnp.bfloat16)
    w_out = jnp.stack([jax.random.normal(layer_keys[2 * l + 1], (D_MODEL, D_MODEL),
                                         jnp.float32) / math.sqrt(D_MODEL)
                       for l in range(N_LAYERS)]).astype(jnp.bfloat16)

    params = dict(
        emb=jax.random.normal(k_emb, (VOCAB, D_MODEL), jnp.float32),
        pe=pe,
        w_qkv=w_qkv,
        w_out=w_out,
        gamma=jnp.ones((N_LAYERS, 1, D_MODEL), jnp.float32),   # LayerNorm defaults
        beta=jnp.zeros((N_LAYERS, 1, D_MODEL), jnp.float32),
        w_fc=(jax.random.normal(k_fc, (D_MODEL, VOCAB), jnp.float32)
              / math.sqrt(D_MODEL)).astype(jnp.bfloat16),
        b_fc=0.1 * jax.random.normal(k_b, (VOCAB,), jnp.float32),
    )

    trg_mask = jnp.tril(jnp.ones((S, S), jnp.float32))       # causal
    src_mask = jnp.ones((S, S_SRC), jnp.float32)             # no masking

    fwd = jax.jit(functools.partial(decoder_forward, h=HEADS))
    out = jax.block_until_ready(fwd(tokens, enc_out, src_mask, trg_mask, params))

    ref = _decoder_ref(tokens, enc_out, src_mask, trg_mask, params, HEADS)

    assert out.shape == (B, S, VOCAB), out.shape
    err = float(jnp.max(jnp.abs(out - ref)))
    assert jnp.allclose(out, ref, atol=3e-2, rtol=3e-2), err
    print("KERNEL_OK")
</pallas_src>

<mosaic_0001>
module attributes {stable_mosaic.version = 11 : i64} {
  func.func @_decoder_kernel(%arg0: i32, %arg1: memref<16x512xf32, #tpu.memory_space<vmem>>, %arg2: memref<16x512xf32, #tpu.memory_space<vmem>>, %arg3: memref<64x64xf32, #tpu.memory_space<vmem>>, %arg4: memref<64x64xf32, #tpu.memory_space<vmem>>, %arg5: memref<1x512x512xbf16, #tpu.memory_space<vmem>>, %arg6: memref<1x512x512xbf16, #tpu.memory_space<vmem>>, %arg7: memref<1x1x512xf32, #tpu.memory_space<vmem>>, %arg8: memref<1x1x512xf32, #tpu.memory_space<vmem>>, %arg9: memref<512x256xbf16, #tpu.memory_space<vmem>>, %arg10: memref<1x256xf32, #tpu.memory_space<vmem>>, %arg11: memref<16x256xf32, #tpu.memory_space<vmem>>, %arg12: memref<16x512xf32, #tpu.memory_space<vmem>>, %arg13: memref<16x4x128xf32, #tpu.memory_space<vmem>>) attributes {dimension_semantics = [#tpu.dimension_semantics<arbitrary>], iteration_bounds = array<i64: 2>, scalar_prefetch = 0 : i64, scratch_operands = 2 : i64, tpu.core_type = #tpu.core_type<tc>, window_params = [{pipeline_mode = #tpu.pipeline_mode<synchronous>, transform_indices = @transform_0, window_bounds = array<i64: 16, 512>}, {pipeline_mode = #tpu.pipeline_mode<synchronous>, transform_indices = @transform_1, window_bounds = array<i64: 16, 512>}, {pipeline_mode = #tpu.pipeline_mode<synchronous>, transform_indices = @transform_2, window_bounds = array<i64: 64, 64>}, {pipeline_mode = #tpu.pipeline_mode<synchronous>, transform_indices = @transform_3, window_bounds = array<i64: 64, 64>}, {transform_indices = @transform_4, window_bounds = array<i64: 1, 512, 512>}, {transform_indices = @transform_5, window_bounds = array<i64: 1, 512, 512>}, {transform_indices = @transform_6, window_bounds = array<i64: 1, 1, 512>}, {transform_indices = @transform_7, window_bounds = array<i64: 1, 1, 512>}, {pipeline_mode = #tpu.pipeline_mode<synchronous>, transform_indices = @transform_8, window_bounds = array<i64: 512, 256>}, {pipeline_mode = #tpu.pipeline_mode<synchronous>, transform_indices = @transform_9, window_bounds = array<i64: 1, 256>}, {pipeline_mode = #tpu.pipeline_mode<synchronous>, transform_indices = @transform_10, window_bounds = array<i64: 16, 256>}]} {
    %c0_i32 = arith.constant 0 : i32
    %0 = arith.cmpi eq, %arg0, %c0_i32 : i32
    %1 = arith.extui %0 : i1 to i32
    %c0_i32_0 = arith.constant 0 : i32
    %2 = arith.cmpi ne, %1, %c0_i32_0 : i32
    scf.if %2 {
      %c0_71 = arith.constant 0 : index
      %c0_72 = arith.constant 0 : index
      %148 = vector.load %arg1[%c0_71, %c0_72] : memref<16x512xf32, #tpu.memory_space<vmem>>, vector<16x512xf32>
      %c0_73 = arith.constant 0 : index
      %c0_74 = arith.constant 0 : index
      %149 = vector.load %arg12[%c0_73, %c0_74] : memref<16x512xf32, #tpu.memory_space<vmem>>, vector<16x512xf32>
      tpu.vector_store %arg12[%c0_73, %c0_74], %148 {strides = array<i32>} : memref<16x512xf32, #tpu.memory_space<vmem>>, vector<16x512xf32>,
    } else {
    }
    %c0 = arith.constant 0 : index
    %c0_1 = arith.constant 0 : index
    %3 = vector.load %arg12[%c0, %c0_1] : memref<16x512xf32, #tpu.memory_space<vmem>>, vector<16x512xf32>
    %c0_2 = arith.constant 0 : index
    %c0_3 = arith.constant 0 : index
    %c0_4 = arith.constant 0 : index
    %4 = vector.load %arg5[%c0_2, %c0_3, %c0_4] : memref<1x512x512xbf16, #tpu.memory_space<vmem>>, vector<1x512x512xbf16>
    %5 = vector.shape_cast %4 : vector<1x512x512xbf16> to vector<512x512xbf16>
    %6 = arith.extf %5 : vector<512x512xbf16> to vector<512x512xf32>
    %c0_5 = arith.constant 0 : index
    %c0_6 = arith.constant 0 : index
    %c0_7 = arith.constant 0 : index
    %7 = vector.load %arg6[%c0_5, %c0_6, %c0_7] : memref<1x512x512xbf16, #tpu.memory_space<vmem>>, vector<1x512x512xbf16>
    %8 = vector.shape_cast %7 : vector<1x512x512xbf16> to vector<512x512xbf16>
    %9 = arith.extf %8 : vector<512x512xbf16> to vector<512x512xf32>
    %cst = arith.constant dense<0.000000e+00> : vector<16x512xf32>
    %10 = tpu.matmul %3, %6, %cst {dimension_numbers = #tpu.dot_dimension_numbers<[1], [0], [0], [1], [0, 0, 1, 1], [], []>} : vector<16x512xf32>, vector<512x512xf32>, vector<16x512xf32> -> vector<16x512xf32>
    %11 = vector.extract_strided_slice %10 {offsets = [0, 0], sizes = [16, 128], strides = [1, 1]} : vector<16x512xf32> to vector<16x128xf32>
    %c0_8 = arith.constant 0 : index
    %c0_9 = arith.constant 0 : index
    %c0_10 = arith.constant 0 : index
    %12 = vector.load %arg13[%c0_8, %c0_9, %c0_10] : memref<16x4x128xf32, #tpu.memory_space<vmem>>, vector<16x1x128xf32>
    %13 = vector.shape_cast %12 : vector<16x1x128xf32> to vector<16x128xf32>
    %14 = vector.shape_cast %11 : vector<16x128xf32> to vector<16x1x128xf32>
    tpu.vector_store %arg13[%c0_8, %c0_9, %c0_10], %14 {strides = array<i32>} : memref<16x4x128xf32, #tpu.memory_space<vmem>>, vector<16x1x128xf32>,
    %15 = vector.extract_strided_slice %10 {offsets = [0, 128], sizes = [16, 128], strides = [1, 1]} : vector<16x512xf32> to vector<16x128xf32>
    %c0_11 = arith.constant 0 : index
    %c1 = arith.constant 1 : index
    %c0_12 = arith.constant 0 : index
    %16 = vector.load %arg13[%c0_11, %c1, %c0_12] : memref<16x4x128xf32, #tpu.memory_space<vmem>>, vector<16x1x128xf32>
    %17 = vector.shape_cast %16 : vector<16x1x128xf32> to vector<16x128xf32>
    %18 = vector.shape_cast %15 : vector<16x128xf32> to vector<16x1x128xf32>
    tpu.vector_store %arg13[%c0_11, %c1, %c0_12], %18 {strides = array<i32>} : memref<16x4x128xf32, #tpu.memory_space<vmem>>, vector<16x1x128xf32>,
    %19 = vector.extract_strided_slice %10 {offsets = [0, 256], sizes = [16, 128], strides = [1, 1]} : vector<16x512xf32> to vector<16x128xf32>
    %c0_13 = arith.constant 0 : index
    %c2 = arith.constant 2 : index
    %c0_14 = arith.constant 0 : index
    %20 = vector.load %arg13[%c0_13, %c2, %c0_14] : memref<16x4x128xf32, #tpu.memory_space<vmem>>, vector<16x1x128xf32>
    %21 = vector.shape_cast %20 : vector<16x1x128xf32> to vector<16x128xf32>
    %22 = vector.shape_cast %19 : vector<16x128xf32> to vector<16x1x128xf32>
    tpu.vector_store %arg13[%c0_13, %c2, %c0_14], %22 {strides = array<i32>} : memref<16x4x128xf32, #tpu.memory_space<vmem>>, vector<16x1x128xf32>,
    %23 = vector.extract_strided_slice %10 {offsets = [0, 384], sizes = [16, 128], strides = [1, 1]} : vector<16x512xf32> to vector<16x128xf32>
    %c0_15 = arith.constant 0 : index
    %c3 = arith.constant 3 : index
    %c0_16 = arith.constant 0 : index
    %24 = vector.load %arg13[%c0_15, %c3, %c0_16] : memref<16x4x128xf32, #tpu.memory_space<vmem>>, vector<16x1x128xf32>
    %25 = vector.shape_cast %24 : vector<16x1x128xf32> to vector<16x128xf32>
    %26 = vector.shape_cast %23 : vector<16x128xf32> to vector<16x1x128xf32>
    tpu.vector_store %arg13[%c0_15, %c3, %c0_16], %26 {strides = array<i32>} : memref<16x4x128xf32, #tpu.memory_space<vmem>>, vector<16x1x128xf32>,
    %c0_17 = arith.constant 0 : index
    %c0_18 = arith.constant 0 : index
    %c0_19 = arith.constant 0 : index
    %27 = vector.load %arg13[%c0_17, %c0_18, %c0_19] : memref<16x4x128xf32, #tpu.memory_space<vmem>>, vector<16x4x128xf32>
    %28 = vector.shape_cast %27 : vector<16x4x128xf32> to vector<64x128xf32>
    %c0_20 = arith.constant 0 : index
    %c0_21 = arith.constant 0 : index
    %29 = vector.load %arg3[%c0_20, %c0_21] : memref<64x64xf32, #tpu.memory_space<vmem>>, vector<64x64xf32>
    %cst_22 = arith.constant dense<0.000000e+00> : vector<64x64xf32>
    %30 = tpu.matmul %28, %28, %cst_22 {dimension_numbers = #tpu.dot_dimension_numbers<[1], [1], [0], [0], [0, 0, 1, 0], [], []>} : vector<64x128xf32>, vector<64x128xf32>, vector<64x64xf32> -> vector<64x64xf32>
    %cst_23 = arith.constant 0.0883883461 : f32
    %31 = vector.broadcast %cst_23 : f32 to vector<64x64xf32>
    %32 = arith.mulf %30, %31 : vector<64x64xf32>
    %cst_24 = arith.constant 0.000000e+00 : f32
    %33 = vector.broadcast %cst_24 : f32 to vector<64x64xf32>
    %34 = arith.cmpf oeq, %29, %33 : vector<64x64xf32>
    %35 = arith.select %34, %32, %29 : vector<64x64xi1>, vector<64x64xf32>
    %cst_25 = arith.constant dense<0xFF800000> : vector<64xf32>
    %36 = vector.multi_reduction <maximumf>, %35, %cst_25 [1] : vector<64x64xf32> to vector<64xf32>
    %37 = vector.shape_cast %36 : vector<64xf32> to vector<64x1xf32>
    %38 = vector.broadcast %37 : vector<64x1xf32> to vector<64x64xf32>
    %39 = arith.subf %35, %38 : vector<64x64xf32>
    %40 = math.exp %39 : vector<64x64xf32>
    %cst_26 = arith.constant dense<0.000000e+00> : vector<64xf32>
    %41 = vector.multi_reduction <add>, %40, %cst_26 [1] : vector<64x64xf32> to vector<64xf32>
    %42 = vector.shape_cast %41 : vector<64xf32> to vector<64x1xf32>
    %43 = tpu.reciprocal %42 {approx = true} : vector<64x1xf32> -> vector<64x1xf32>
    %44 = vector.broadcast %43 : vector<64x1xf32> to vector<64x64xf32>
    %45 = arith.mulf %40, %44 : vector<64x64xf32>
    %cst_27 = arith.constant dense<0.000000e+00> : vector<64x128xf32>
    %46 = tpu.matmul %45, %28, %cst_27 {dimension_numbers = #tpu.dot_dimension_numbers<[1], [0], [0], [1], [0, 0, 1, 1], [], []>} : vector<64x64xf32>, vector<64x128xf32>, vector<64x128xf32> -> vector<64x128xf32>
    %47 = vector.extract_strided_slice %46 {offsets = [0, 0], sizes = [8, 128], strides = [1, 1]} : vector<64x128xf32> to vector<8x128xf32>
    %48 = vector.extract_strided_slice %46 {offsets = [32, 0], sizes = [8, 128], strides = [1, 1]} : vector<64x128xf32> to vector<8x128xf32>
    %49 = tpu.concatenate %47, %48 in 0 : vector<8x128xf32>, vector<8x128xf32> -> vector<16x128xf32>
    %50 = vector.extract_strided_slice %46 {offsets = [8, 0], sizes = [8, 128], strides = [1, 1]} : vector<64x128xf32> to vector<8x128xf32>
    %51 = vector.extract_strided_slice %46 {offsets = [40, 0], sizes = [8, 128], strides = [1, 1]} : vector<64x128xf32> to vector<8x128xf32>
    %52 = tpu.concatenate %50, %51 in 0 : vector<8x128xf32>, vector<8x128xf32> -> vector<16x128xf32>
    %53 = vector.extract_strided_slice %46 {offsets = [16, 0], sizes = [8, 128], strides = [1, 1]} : vector<64x128xf32> to vector<8x128xf32>
    %54 = vector.extract_strided_slice %46 {offsets = [48, 0], sizes = [8, 128], strides = [1, 1]} : vector<64x128xf32> to vector<8x128xf32>
    %55 = tpu.concatenate %53, %54 in 0 : vector<8x128xf32>, vector<8x128xf32> -> vector<16x128xf32>
    %56 = vector.extract_strided_slice %46 {offsets = [24, 0], sizes = [8, 128], strides = [1, 1]} : vector<64x128xf32> to vector<8x128xf32>
    %57 = vector.extract_strided_slice %46 {offsets = [56, 0], sizes = [8, 128], strides = [1, 1]} : vector<64x128xf32> to vector<8x128xf32>
    %58 = tpu.concatenate %56, %57 in 0 : vector<8x128xf32>, vector<8x128xf32> -> vector<16x128xf32>
    %59 = tpu.concatenate %49, %52, %55, %58 in 1 : vector<16x128xf32>, vector<16x128xf32>, vector<16x128xf32>, vector<16x128xf32> -> vector<16x512xf32>
    %cst_28 = arith.constant dense<0.000000e+00> : vector<16x512xf32>
    %60 = tpu.matmul %59, %9, %cst_28 {dimension_numbers = #tpu.dot_dimension_numbers<[1], [0], [0], [1], [0, 0, 1, 1], [], []>} : vector<16x512xf32>, vector<512x512xf32>, vector<16x512xf32> -> vector<16x512xf32>
    %61 = arith.addf %3, %60 : vector<16x512xf32>
    %cst_29 = arith.constant dense<0.000000e+00> : vector<16xf32>
    %62 = vector.multi_reduction <add>, %61, %cst_29 [1] : vector<16x512xf32> to vector<16xf32>
    %63 = vector.shape_cast %62 : vector<16xf32> to vector<16x1xf32>
    %cst_30 = arith.constant 5.120000e+02 : f32
    %64 = vector.broadcast %cst_30 : f32 to vector<16x1xf32>
    %65 = arith.divf %63, %64 : vector<16x1xf32>
    %66 = vector.broadcast %65 : vector<16x1xf32> to vector<16x512xf32>
    %67 = arith.subf %61, %66 : vector<16x512xf32>
    %68 = arith.mulf %67, %67 : vector<16x512xf32>
    %cst_31 = arith.constant dense<0.000000e+00> : vector<16xf32>
    %69 = vector.multi_reduction <add>, %68, %cst_31 [1] : vector<16x512xf32> to vector<16xf32>
    %70 = vector.shape_cast %69 : vector<16xf32> to vector<16x1xf32>
    %cst_32 = arith.constant 5.120000e+02 : f32
    %71 = vector.broadcast %cst_32 : f32 to vector<16x1xf32>
    %72 = arith.divf %70, %71 : vector<16x1xf32>
    %cst_33 = arith.constant 9.99999974E-6 : f32
    %73 = vector.broadcast %cst_33 : f32 to vector<16x1xf32>
    %74 = arith.addf %72, %73 : vector<16x1xf32>
    %75 = math.rsqrt %74 : vector<16x1xf32>
    %76 = vector.broadcast %75 : vector<16x1xf32> to vector<16x512xf32>
    %77 = arith.mulf %67, %76 : vector<16x512xf32>
    %c0_34 = arith.constant 0 : index
    %c0_35 = arith.constant 0 : index
    %c0_36 = arith.constant 0 : index
    %78 = vector.load %arg7[%c0_34, %c0_35, %c0_36] : memref<1x1x512xf32, #tpu.memory_space<vmem>>, vector<1x1x512xf32>
    %79 = vector.shape_cast %78 : vector<1x1x512xf32> to vector<1x512xf32>
    %80 = vector.broadcast %79 : vector<1x512xf32> to vector<16x512xf32>
    %81 = arith.mulf %77, %80 : vector<16x512xf32>
    %c0_37 = arith.constant 0 : index
    %c0_38 = arith.constant 0 : index
    %c0_39 = arith.constant 0 : index
    %82 = vector.load %arg8[%c0_37, %c0_38, %c0_39] : memref<1x1x512xf32, #tpu.memory_space<vmem>>, vector<1x1x512xf32>
    %83 = vector.shape_cast %82 : vector<1x1x512xf32> to vector<1x512xf32>
    %84 = vector.broadcast %83 : vector<1x512xf32> to vector<16x512xf32>
    %85 = arith.addf %81, %84 : vector<16x512xf32>
    %cst_40 = arith.constant dense<0.000000e+00> : vector<16x512xf32>
    %86 = tpu.matmul %85, %6, %cst_40 {dimension_numbers = #tpu.dot_dimension_numbers<[1], [0], [0], [1], [0, 0, 1, 1], [], []>} : vector<16x512xf32>, vector<512x512xf32>, vector<16x512xf32> -> vector<16x512xf32>
    %c0_41 = arith.constant 0 : index
    %c0_42 = arith.constant 0 : index
    %87 = vector.load %arg2[%c0_41, %c0_42] : memref<16x512xf32, #tpu.memory_space<vmem>>, vector<16x512xf32>
    %cst_43 = arith.constant dense<0.000000e+00> : vector<16x512xf32>
    %88 = tpu.matmul %87, %6, %cst_43 {dimension_numbers = #tpu.dot_dimension_numbers<[1], [0], [0], [1], [0, 0, 1, 1], [], []>} : vector<16x512xf32>, vector<512x512xf32>, vector<16x512xf32> -> vector<16x512xf32>
    %89 = vector.extract_strided_slice %86 {offsets = [0, 0], sizes = [16, 128], strides = [1, 1]} : vector<16x512xf32> to vector<16x128xf32>
    %c0_44 = arith.constant 0 : index
    %c0_45 = arith.constant 0 : index
    %c0_46 = arith.constant 0 : index
    %90 = vector.load %arg13[%c0_44, %c0_45, %c0_46] : memref<16x4x128xf32, #tpu.memory_space<vmem>>, vector<16x1x128xf32>
    %91 = vector.shape_cast %90 : vector<16x1x128xf32> to vector<16x128xf32>
    %92 = vector.shape_cast %89 : vector<16x128xf32> to vector<16x1x128xf32>
    tpu.vector_store %arg13[%c0_44, %c0_45, %c0_46], %92 {strides = array<i32>} : memref<16x4x128xf32, #tpu.memory_space<vmem>>, vector<16x1x128xf32>,
    %93 = vector.extract_strided_slice %86 {offsets = [0, 128], sizes = [16, 128], strides = [1, 1]} : vector<16x512xf32> to vector<16x128xf32>
    %c0_47 = arith.constant 0 : index
    %c1_48 = arith.constant 1 : index
    %c0_49 = arith.constant 0 : index
    %94 = vector.load %arg13[%c0_47, %c1_48, %c0_49] : memref<16x4x128xf32, #tpu.memory_space<vmem>>, vector<16x1x128xf32>
    %95 = vector.shape_cast %94 : vector<16x1x128xf32> to vector<16x128xf32>
    %96 = vector.shape_cast %93 : vector<16x128xf32> to vector<16x1x128xf32>
    tpu.vector_store %arg13[%c0_47, %c1_48, %c0_49], %96 {strides = array<i32>} : memref<16x4x128xf32, #tpu.memory_space<vmem>>, vector<16x1x128xf32>,
    %97 = vector.extract_strided_slice %86 {offsets = [0, 256], sizes = [16, 128], strides = [1, 1]} : vector<16x512xf32> to vector<16x128xf32>
    %c0_50 = arith.constant 0 : index
    %c2_51 = arith.constant 2 : index
    %c0_52 = arith.constant 0 : index
    %98 = vector.load %arg13[%c0_50, %c2_51, %c0_52] : memref<16x4x128xf32, #tpu.memory_space<vmem>>, vector<16x1x128xf32>
    %99 = vector.shape_cast %98 : vector<16x1x128xf32> to vector<16x128xf32>
    %100 = vector.shape_cast %97 : vector<16x128xf32> to vector<16x1x128xf32>
    tpu.vector_store %arg13[%c0_50, %c2_51, %c0_52], %100 {strides = array<i32>} : memref<16x4x128xf32, #tpu.memory_space<vmem>>, vector<16x1x128xf32>,
    %101 = vector.extract_strided_slice %86 {offsets = [0, 384], sizes = [16, 128], strides = [1, 1]} : vector<16x512xf32> to vector<16x128xf32>
    %c0_53 = arith.constant 0 : index
    %c3_54 = arith.constant 3 : index
    %c0_55 = arith.constant 0 : index
    %102 = vector.load %arg13[%c0_53, %c3_54, %c0_55] : memref<16x4x128xf32, #tpu.memory_space<vmem>>, vector<16x1x128xf32>
    %103 = vector.shape_cast %102 : vector<16x1x128xf32> to vector<16x128xf32>
    %104 = vector.shape_cast %101 : vector<16x128xf32> to vector<16x1x128xf32>
    tpu.vector_store %arg13[%c0_53, %c3_54, %c0_55], %104 {strides = array<i32>} : memref<16x4x128xf32, #tpu.memory_space<vmem>>, vector<16x1x128xf32>,
    %c0_56 = arith.constant 0 : index
    %c0_57 = arith.constant 0 : index
    %c0_58 = arith.constant 0 : index
    %105 = vector.load %arg13[%c0_56, %c0_57, %c0_58] : memref<16x4x128xf32, #tpu.memory_space<vmem>>, vector<16x4x128xf32>
    %106 = vector.shape_cast %105 : vector<16x4x128xf32> to vector<64x128xf32>
    %107 = vector.extract_strided_slice %88 {offsets = [0, 0], sizes = [16, 128], strides = [1, 1]} : vector<16x512xf32> to vector<16x128xf32>
    %108 = vector.extract_strided_slice %88 {offsets = [0, 128], sizes = [16, 128], strides = [1, 1]} : vector<16x512xf32> to vector<16x128xf32>
    %109 = vector.extract_strided_slice %88 {offsets = [0, 256], sizes = [16, 128], strides = [1, 1]} : vector<16x512xf32> to vector<16x128xf32>
    %110 = vector.extract_strided_slice %88 {offsets = [0, 384], sizes = [16, 128], strides = [1, 1]} : vector<16x512xf32> to vector<16x128xf32>
    %111 = tpu.concatenate %107, %108, %109, %110 in 0 : vector<16x128xf32>, vector<16x128xf32>, vector<16x128xf32>, vector<16x128xf32> -> vector<64x128xf32>
    %c0_59 = arith.constant 0 : index
    %c0_60 = arith.constant 0 : index
    %112 = vector.load %arg4[%c0_59, %c0_60] : memref<64x64xf32, #tpu.memory_space<vmem>>, vector<64x64xf32>
    %cst_61 = arith.constant dense<0.000000e+00> : vector<64x64xf32>
    %113 = tpu.matmul %106, %111, %cst_61 {dimension_numbers = #tpu.dot_dimension_numbers<[1], [1], [0], [0], [0, 0, 1, 0], [], []>} : vector<64x128xf32>, vector<64x128xf32>, vector<64x64xf32> -> vector<64x64xf32>
    %cst_62 = arith.constant 0.0883883461 : f32
    %114 = vector.broadcast %cst_62 : f32 to vector<64x64xf32>
    %115 = arith.mulf %113, %114 : vector<64x64xf32>
    %cst_63 = arith.constant 0.000000e+00 : f32
    %116 = vector.broadcast %cst_63 : f32 to vector<64x64xf32>
    %117 = arith.cmpf oeq, %112, %116 : vector<64x64xf32>
    %118 = arith.select %117, %115, %112 : vector<64x64xi1>, vector<64x64xf32>
    %cst_64 = arith.constant dense<0xFF800000> : vector<64xf32>
    %119 = vector.multi_reduction <maximumf>, %118, %cst_64 [1] : vector<64x64xf32> to vector<64xf32>
    %120 = vector.shape_cast %119 : vector<64xf32> to vector<64x1xf32>
    %121 = vector.broadcast %120 : vector<64x1xf32> to vector<64x64xf32>
    %122 = arith.subf %118, %121 : vector<64x64xf32>
    %123 = math.exp %122 : vector<64x64xf32>
    %cst_65 = arith.constant dense<0.000000e+00> : vector<64xf32>
    %124 = vector.multi_reduction <add>, %123, %cst_65 [1] : vector<64x64xf32> to vector<64xf32>
    %125 = vector.shape_cast %124 : vector<64xf32> to vector<64x1xf32>
    %126 = tpu.reciprocal %125 {approx = true} : vector<64x1xf32> -> vector<64x1xf32>
    %127 = vector.broadcast %126 : vector<64x1xf32> to vector<64x64xf32>
    %128 = arith.mulf %123, %127 : vector<64x64xf32>
    %cst_66 = arith.constant dense<0.000000e+00> : vector<64x128xf32>
    %129 = tpu.matmul %128, %111, %cst_66 {dimension_numbers = #tpu.dot_dimension_numbers<[1], [0], [0], [1], [0, 0, 1, 1], [], []>} : vector<64x64xf32>, vector<64x128xf32>, vector<64x128xf32> -> vector<64x128xf32>
    %130 = vector.extract_strided_slice %129 {offsets = [0, 0], sizes = [8, 128], strides = [1, 1]} : vector<64x128xf32> to vector<8x128xf32>
    %131 = vector.extract_strided_slice %129 {offsets = [32, 0], sizes = [8, 128], strides = [1, 1]} : vector<64x128xf32> to vector<8x128xf32>
    %132 = tpu.concatenate %130, %131 in 0 : vector<8x128xf32>, vector<8x128xf32> -> vector<16x128xf32>
    %133 = vector.extract_strided_slice %129 {offsets = [8, 0], sizes = [8, 128], strides = [1, 1]} : vector<64x128xf32> to vector<8x128xf32>
    %134 = vector.extract_strided_slice %129 {offsets = [40, 0], sizes = [8, 128], strides = [1, 1]} : vector<64x128xf32> to vector<8x128xf32>
    %135 = tpu.concatenate %133, %134 in 0 : vector<8x128xf32>, vector<8x128xf32> -> vector<16x128xf32>
    %136 = vector.extract_strided_slice %129 {offsets = [16, 0], sizes = [8, 128], strides = [1, 1]} : vector<64x128xf32> to vector<8x128xf32>
    %137 = vector.extract_strided_slice %129 {offsets = [48, 0], sizes = [8, 128], strides = [1, 1]} : vector<64x128xf32> to vector<8x128xf32>
    %138 = tpu.concatenate %136, %137 in 0 : vector<8x128xf32>, vector<8x128xf32> -> vector<16x128xf32>
    %139 = vector.extract_strided_slice %129 {offsets = [24, 0], sizes = [8, 128], strides = [1, 1]} : vector<64x128xf32> to vector<8x128xf32>
    %140 = vector.extract_strided_slice %129 {offsets = [56, 0], sizes = [8, 128], strides = [1, 1]} : vector<64x128xf32> to vector<8x128xf32>
    %141 = tpu.concatenate %139, %140 in 0 : vector<8x128xf32>, vector<8x128xf32> -> vector<16x128xf32>
    %142 = tpu.concatenate %132, %135, %138, %141 in 1 : vector<16x128xf32>, vector<16x128xf32>, vector<16x128xf32>, vector<16x128xf32> -> vector<16x512xf32>
    %cst_67 = arith.constant dense<0.000000e+00> : vector<16x512xf32>
    %143 = tpu.matmul %142, %9, %cst_67 {dimension_numbers = #tpu.dot_dimension_numbers<[1], [0], [0], [1], [0, 0, 1, 1], [], []>} : vector<16x512xf32>, vector<512x512xf32>, vector<16x512xf32> -> vector<16x512xf32>
    %c0_68 = arith.constant 0 : index
    %c0_69 = arith.constant 0 : index
    %144 = vector.load %arg12[%c0_68, %c0_69] : memref<16x512xf32, #tpu.memory_space<vmem>>, vector<16x512xf32>
    tpu.vector_store %arg12[%c0_68, %c0_69], %143 {strides = array<i32>} : memref<16x512xf32, #tpu.memory_space<vmem>>, vector<16x512xf32>,
    %c1_i32 = arith.constant 1 : i32
    %145 = arith.cmpi eq, %arg0, %c1_i32 : i32
    %146 = arith.extui %145 : i1 to i32
    %c0_i32_70 = arith.constant 0 : i32
    %147 = arith.cmpi ne, %146, %c0_i32_70 : i32
    scf.if %147 {
      %c0_71 = arith.constant 0 : index
      %c0_72 = arith.constant 0 : index
      %148 = vector.load %arg9[%c0_71, %c0_72] : memref<512x256xbf16, #tpu.memory_space<vmem>>, vector<512x256xbf16>
      %149 = arith.extf %148 : vector<512x256xbf16> to vector<512x256xf32>
      %cst_73 = arith.constant dense<0.000000e+00> : vector<16x256xf32>
      %150 = tpu.matmul %143, %149, %cst_73 {dimension_numbers = #tpu.dot_dimension_numbers<[1], [0], [0], [1], [0, 0, 1, 1], [], []>} : vector<16x512xf32>, vector<512x256xf32>, vector<16x256xf32> -> vector<16x256xf32>
      %c0_74 = arith.constant 0 : index
      %c0_75 = arith.constant 0 : index
      %151 = vector.load %arg10[%c0_74, %c0_75] : memref<1x256xf32, #tpu.memory_space<vmem>>, vector<1x256xf32>
      %152 = vector.broadcast %151 : vector<1x256xf32> to vector<16x256xf32>
      %153 = arith.addf %150, %152 : vector<16x256xf32>
      %c0_76 = arith.constant 0 : index
      %c0_77 = arith.constant 0 : index
      %154 = vector.load %arg11[%c0_76, %c0_77] : memref<16x256xf32, #tpu.memory_space<vmem>>, vector<16x256xf32>
      tpu.vector_store %arg11[%c0_76, %c0_77], %153 {strides = array<i32>} : memref<16x256xf32, #tpu.memory_space<vmem>>, vector<16x256xf32>,
    } else {
    }
    return
  }
  func.func @transform_0(%arg0: i32) -> (i32, i32) {
    %c0_i32 = arith.constant 0 : i32
    %c0_i32_0 = arith.constant 0 : i32
    %c0_i32_1 = arith.constant 0 : i32
    return %c0_i32, %c0_i32_0 : i32, i32
  }
  func.func @transform_1(%arg0: i32) -> (i32, i32) {
    %c0_i32 = arith.constant 0 : i32
    %c0_i32_0 = arith.constant 0 : i32
    %c0_i32_1 = arith.constant 0 : i32
    return %c0_i32, %c0_i32_0 : i32, i32
  }
  func.func @transform_2(%arg0: i32) -> (i32, i32) {
    %c0_i32 = arith.constant 0 : i32
    %c0_i32_0 = arith.constant 0 : i32
    %c0_i32_1 = arith.constant 0 : i32
    return %c0_i32, %c0_i32_0 : i32, i32
  }
  func.func @transform_3(%arg0: i32) -> (i32, i32) {
    %c0_i32 = arith.constant 0 : i32
    %c0_i32_0 = arith.constant 0 : i32
    %c0_i32_1 = arith.constant 0 : i32
    return %c0_i32, %c0_i32_0 : i32, i32
  }
  func.func @transform_4(%arg0: i32) -> (i32, i32, i32) {
    %c0_i32 = arith.constant 0 : i32
    %c0_i32_0 = arith.constant 0 : i32
    %c0_i32_1 = arith.constant 0 : i32
    return %arg0, %c0_i32, %c0_i32_0 : i32, i32, i32
  }
  func.func @transform_5(%arg0: i32) -> (i32, i32, i32) {
    %c0_i32 = arith.constant 0 : i32
    %c0_i32_0 = arith.constant 0 : i32
    %c0_i32_1 = arith.constant 0 : i32
    return %arg0, %c0_i32, %c0_i32_0 : i32, i32, i32
  }
  func.func @transform_6(%arg0: i32) -> (i32, i32, i32) {
    %c0_i32 = arith.constant 0 : i32
    %c0_i32_0 = arith.constant 0 : i32
    %c0_i32_1 = arith.constant 0 : i32
    return %arg0, %c0_i32, %c0_i32_0 : i32, i32, i32
  }
  func.func @transform_7(%arg0: i32) -> (i32, i32, i32) {
    %c0_i32 = arith.constant 0 : i32
    %c0_i32_0 = arith.constant 0 : i32
    %c0_i32_1 = arith.constant 0 : i32
    return %arg0, %c0_i32, %c0_i32_0 : i32, i32, i32
  }
  func.func @transform_8(%arg0: i32) -> (i32, i32) {
    %c0_i32 = arith.constant 0 : i32
    %c0_i32_0 = arith.constant 0 : i32
    %c0_i32_1 = arith.constant 0 : i32
    return %c0_i32, %c0_i32_0 : i32, i32
  }
  func.func @transform_9(%arg0: i32) -> (i32, i32) {
    %c0_i32 = arith.constant 0 : i32
    %c0_i32_0 = arith.constant 0 : i32
    %c0_i32_1 = arith.constant 0 : i32
    return %c0_i32, %c0_i32_0 : i32, i32
  }
  func.func @transform_10(%arg0: i32) -> (i32, i32) {
    %c0_i32 = arith.constant 0 : i32
    %c0_i32_0 = arith.constant 0 : i32
    %c0_i32_1 = arith.constant 0 : i32
    return %c0_i32, %c0_i32_0 : i32, i32
  }
}

</mosaic_0001>

<bundles_post_ra>
// kernel: decoder_forward.1
= control target key start
LH: loop header
LB: loop body
LE: loop exit
PB: predicated region body
PF: predicated region fallthrough
CT: control target
= control target key end

     0   :  { %15 = vsyncpa [#allocation5], 0  ;;  %s5663_s13 = smov 0   ;;  %s9420_s0 = inlined_call_operand.vmem [shape: f32[16,512], index: 0, kind: input, shape index: {}]   ;;  %s9421_s1 = inlined_call_operand.vmem [shape: f32[16,512], index: 1, kind: input, shape index: {}]   ;;  %s9422_s2 = inlined_call_operand.vmem [shape: f32[64,64], index: 2, kind: input, shape index: {}]   ;;  %s9423_s3 = inlined_call_operand.vmem [shape: f32[64,64], index: 3, kind: input, shape index: {}]   ;;  %s9424_s4 = inlined_call_operand.vmem [shape: bf16[2,512,512], index: 4, kind: input, shape index: {}]   ;;  %s9425_s5 = inlined_call_operand.vmem [shape: bf16[2,512,512], index: 5, kind: input, shape index: {}]   ;;  %s9426_s6 = inlined_call_operand.vmem [shape: f32[2,1,512], index: 6, kind: input, shape index: {}]   ;;  %s9427_s7 = inlined_call_operand.vmem [shape: f32[2,1,512], index: 7, kind: input, shape index: {}]   ;;  %s9428_s8 = inlined_call_operand.vmem [shape: bf16[512,256], index: 8, kind: input, shape index: {}]   ;;  %s9429_s9 = inlined_call_operand.vmem [shape: f32[1,256], index: 9, kind: input, shape index: {}]   ;;  %s9430_s10 = inlined_call_operand.hbm [shape: f32[16,256], index: 10, kind: output, shape index: {}]  }
   0x1 LB: > { %s5669_s14 = sadd.s32 4294967295, %s5602_s13   ;;  %p5187_p0 = scmp.ge.s32.totalorder %s5602_s13, 1  ;;  %s5602_s13 = sphi %s5663_s13, %s21_s13  }
   0x2   : > { %p336_p1 = scmp.lt.s32.totalorder %s5602_s13, 3 }
   0x4   : > { %p337_p2 = pnand %p5187_p0, %p336_p1 }
   0x6   : > { %340 = sbr.rel (%p337_p2) target bundleno = 3417 (0xd59), region = 60 }
   0xb   : > { %p382_p3 = scmp.lt.s32.totalorder %s5669_s14, 1  ;;  %p5194_p4 = scmp.ne.s32.totalorder %s5669_s14, 0 }
   0xd   : > { %s383_s15 = scalar_select %p382_p3, %s5669_s14, 1 }
   0xe   : > { %403 = sbr.rel (%p5194_p4) target bundleno = 24 (0x18), region = 64 }
   0xf   : > { %s5280_s16 = sshll.u32 %s383_s15, 10  ;;  %s5192_s17 = sshll.u32 %s383_s15, 2 }
  0x10   : > { %s5678_s20 = scalar_lea.vmem %s9424_s4, %s5280_s16  ;;  %s5683_s23 = scalar_lea.vmem %s9425_s5, %s5280_s16 }
  0x11   : > { %s5688_s26 = scalar_lea.vmem %s9426_s6, %s5192_s17  ;;  %s5693_s29 = scalar_lea.vmem %s9427_s7, %s5192_s17 }
  0x13   : > { %v404_v0 = vld [vmem:[%s9420_s0] sm:$0xff]  ;;  %v405_v1 = vld [vmem:[%s9420_s0 + $0x8] sm:$0xff]  ;;  %v406_v2 = vld [vmem:[%s9420_s0 + $0x10] sm:$0xff] }
  0x14   : > { %412 = vst [vmem:[#allocation2 + $0x30] sm:$0xff] %v404_v0  ;;  %413 = vst [vmem:[#allocation2] sm:$0xff] %v405_v1  ;;  %v407_v3 = vld [vmem:[%s9420_s0 + $0x18] sm:$0xff]  ;;  %v408_v4 = vld [vmem:[%s9420_s0 + $0x20] sm:$0xff] }
  0x15   : > { %414 = vst [vmem:[#allocation2 + $0x18] sm:$0xff] %v406_v2  ;;  %v409_v5 = vld [vmem:[%s9420_s0 + $0x28] sm:$0xff]  ;;  %415 = vst [vmem:[#allocation2 + $0x10] sm:$0xff] %v407_v3  ;;  %v410_v6 = vld [vmem:[%s9420_s0 + $0x30] sm:$0xff] }
  0x16   : > { %416 = vst [vmem:[#allocation2 + $0x8] sm:$0xff] %v408_v4  ;;  %417 = vst [vmem:[#allocation2 + $0x20] sm:$0xff] %v409_v5  ;;  %v411_v7 = vld [vmem:[%s9420_s0 + $0x38] sm:$0xff] }
  0x17   : > { %418 = vst [vmem:[#allocation2 + $0x28] sm:$0xff] %v410_v6  ;;  %419 = vst [vmem:[#allocation2 + $0x38] sm:$0xff] %v411_v7 }
  0x18 PF: > { %v458_v8 = vld [vmem:[%s5678_s20 + $0xf0] sm:$0xff]  ;;  %v456_v10 = vld [vmem:[%s5678_s20 + $0xe0] sm:$0xff]  ;;  %vm2217_vm2 = vcmask 523264   ;;  %p5275_p5 = scmp.ne.s32.totalorder %s5669_s14, 1 }
  0x19   : > { %v522_v9 = vld [vmem:[%s5678_s20 + $0x2f0] sm:$0xff]  ;;  %v5723_v11 = vunpack.c.h.bf16 %v458_v8  ;;  %v5727_v13 = vunpack.c.l.bf16 %v458_v8  ;;  %v520_v15 = vld [vmem:[%s5678_s20 + $0x2e0] sm:$0xff]  ;;  %v5734_v18 = vunpack.c.h.bf16 %v456_v10  ;;  %v5738_v20 = vunpack.c.l.bf16 %v456_v10 }
  0x1a   : > { %v5725_v12 = vunpack.c.h.bf16 %v522_v9  ;;  %v5729_v14 = vunpack.c.l.bf16 %v522_v9  ;;  %v454_v16 = vld [vmem:[%s5678_s20 + $0xd0] sm:$0xff]  ;;  %v5736_v19 = vunpack.c.h.bf16 %v520_v15  ;;  %v5740_v21 = vunpack.c.l.bf16 %v520_v15  ;;  %v452_v22 = vld [vmem:[%s5678_s20 + $0xc0] sm:$0xff] }
  0x1b   : > { %v518_v17 = vld [vmem:[%s5678_s20 + $0x2d0] sm:$0xff]  ;;  %v516_v23 = vld [vmem:[%s5678_s20 + $0x2c0] sm:$0xff]  ;;  %1196 = vmatprep.subr.mxu0 %v5723_v11  ;;  %v5746_v24 = vunpack.c.h.bf16 %v454_v16  ;;  %v5752_v26 = vunpack.c.l.bf16 %v454_v16  ;;  %v5760_v30 = vunpack.c.h.bf16 %v452_v22  ;;  %v5766_v32 = vunpack.c.l.bf16 %v452_v22 }
  0x1c   : > { %1273 = vmatprep.subr.mxu1 %v5725_v12  ;;  %v5748_v25 = vunpack.c.h.bf16 %v518_v17  ;;  %1197 = vmatpush1.msra.mxu0 %v5727_v13  ;;  %v5754_v27 = vunpack.c.l.bf16 %v518_v17  ;;  %v450_v28 = vld [vmem:[%s5678_s20 + $0xb0] sm:$0xff]  ;;  %v5762_v31 = vunpack.c.h.bf16 %v516_v23  ;;  %v5768_v33 = vunpack.c.l.bf16 %v516_v23  ;;  %v448_v34 = vld [vmem:[%s5678_s20 + $0xa0] sm:$0xff] }
  0x1d   : > { %1274 = vmatpush1.msra.mxu1 %v5729_v14  ;;  %v514_v29 = vld [vmem:[%s5678_s20 + $0x2b0] sm:$0xff]  ;;  %1198 = vmatprep.subr.mxu0 %v5734_v18  ;;  %v512_v35 = vld [vmem:[%s5678_s20 + $0x2a0] sm:$0xff]  ;;  %v5774_v36 = vunpack.c.h.bf16 %v450_v28  ;;  %v5780_v38 = vunpack.c.l.bf16 %v450_v28  ;;  %v5788_v42 = vunpack.c.h.bf16 %v448_v34  ;;  %v5794_v44 = vunpack.c.l.bf16 %v448_v34 }
  0x1e   : > { %1275 = vmatprep.subr.mxu1 %v5736_v19  ;;  %1199 = vmatpush1.msra.mxu0 %v5738_v20  ;;  %v5776_v37 = vunpack.c.h.bf16 %v514_v29  ;;  %v5782_v39 = vunpack.c.l.bf16 %v514_v29  ;;  %v446_v40 = vld [vmem:[%s5678_s20 + $0x90] sm:$0xff]  ;;  %v5790_v43 = vunpack.c.h.bf16 %v512_v35  ;;  %v5796_v45 = vunpack.c.l.bf16 %v512_v35  ;;  %v444_v46 = vld [vmem:[%s5678_s20 + $0x80] sm:$0xff] }
  0x1f   : > { %1276 = vmatpush1.msra.mxu1 %v5740_v21  ;;  %1200 = vmatprep.subr.mxu0 %v5746_v24  ;;  %v510_v41 = vld [vmem:[%s5678_s20 + $0x290] sm:$0xff]  ;;  %v508_v47 = vld [vmem:[%s5678_s20 + $0x280] sm:$0xff]  ;;  %v5802_v48 = vunpack.c.h.bf16 %v446_v40  ;;  %v5808_v50 = vunpack.c.l.bf16 %v446_v40  ;;  %v5816_v54 = vunpack.c.h.bf16 %v444_v46  ;;  %v5822_v56 = vunpack.c.l.bf16 %v444_v46 }
  0x20   : > { %1277 = vmatprep.subr.mxu1 %v5748_v25  ;;  %1201 = vmatpush1.msra.mxu0 %v5752_v26  ;;  %v5804_v49 = vunpack.c.h.bf16 %v510_v41  ;;  %v5810_v51 = vunpack.c.l.bf16 %v510_v41  ;;  %v442_v52 = vld [vmem:[%s5678_s20 + $0x70] sm:$0xff]  ;;  %v5818_v55 = vunpack.c.h.bf16 %v508_v47  ;;  %v5824_v57 = vunpack.c.l.bf16 %v508_v47  ;;  %v440_v58 = vld [vmem:[%s5678_s20 + $0x60] sm:$0xff] }
  0x21   : > { %1278 = vmatpush1.msra.mxu1 %v5754_v27  ;;  %1202 = vmatprep.subr.mxu0 %v5760_v30  ;;  %v506_v53 = vld [vmem:[%s5678_s20 + $0x270] sm:$0xff]  ;;  %10202 = vst [vmem:[#allocation7_spill] sm:$0xff] %v5816_v54  ;;  %10204 = vst [vmem:[#allocation9_spill] sm:$0xff] %v5822_v56  ;;  %v504_v59 = vld [vmem:[%s5678_s20 + $0x260] sm:$0xff]  ;;  %v5830_v60 = vunpack.c.h.bf16 %v442_v52  ;;  %v5836_v62 = vunpack.c.l.bf16 %v442_v52  ;;  %v5844_v2 = vunpack.c.h.bf16 %v440_v58  ;;  %v5850_v4 = vunpack.c.l.bf16 %v440_v58 }
  0x22   : > { %1279 = vmatprep.subr.mxu1 %v5762_v31  ;;  %1203 = vmatpush1.msra.mxu0 %v5766_v32  ;;  %10203 = vst [vmem:[#allocation8_spill] sm:$0xff] %v5818_v55  ;;  %10205 = vst [vmem:[#allocation10_spill] sm:$0xff] %v5824_v57  ;;  %v5832_v61 = vunpack.c.h.bf16 %v506_v53  ;;  %v5838_v63 = vunpack.c.l.bf16 %v506_v53  ;;  %v438_v0 = vld [vmem:[%s5678_s20 + $0x50] sm:$0xff]  ;;  %v5846_v3 = vunpack.c.h.bf16 %v504_v59  ;;  %v5852_v5 = vunpack.c.l.bf16 %v504_v59  ;;  %v436_v6 = vld [vmem:[%s5678_s20 + $0x40] sm:$0xff] }
  0x23   : > { %1280 = vmatpush1.msra.mxu1 %v5768_v33  ;;  %1204 = vmatprep.subr.mxu0 %v5774_v36  ;;  %10206 = vst [vmem:[#allocation11_spill] sm:$0xff] %v5830_v60  ;;  %10208 = vst [vmem:[#allocation13_spill] sm:$0xff] %v5836_v62  ;;  %v502_v1 = vld [vmem:[%s5678_s20 + $0x250] sm:$0xff]  ;;  %v500_v7 = vld [vmem:[%s5678_s20 + $0x240] sm:$0xff]  ;;  %v5858_v8 = vunpack.c.h.bf16 %v438_v0  ;;  %v5864_v10 = vunpack.c.l.bf16 %v438_v0  ;;  %v5872_v22 = vunpack.c.h.bf16 %v436_v6  ;;  %v5878_v28 = vunpack.c.l.bf16 %v436_v6 }
  0x24   : > { %1281 = vmatprep.subr.mxu1 %v5776_v37  ;;  %1205 = vmatpush1.msra.mxu0 %v5780_v38  ;;  %10207 = vst [vmem:[#allocation12_spill] sm:$0xff] %v5832_v61  ;;  %10209 = vst [vmem:[#allocation14_spill] sm:$0xff] %v5838_v63  ;;  %v5860_v9 = vunpack.c.h.bf16 %v502_v1  ;;  %v5866_v15 = vunpack.c.l.bf16 %v502_v1  ;;  %v434_v16 = vld [vmem:[%s5678_s20 + $0x30] sm:$0xff]  ;;  %v5874_v23 = vunpack.c.h.bf16 %v500_v7  ;;  %v5880_v29 = vunpack.c.l.bf16 %v500_v7  ;;  %v432_v34 = vld [vmem:[%s5678_s20 + $0x20] sm:$0xff] }
  0x25   : > { %1282 = vmatpush1.msra.mxu1 %v5782_v39  ;;  %1206 = vmatprep.subr.mxu0 %v5788_v42  ;;  %10210 = vst [vmem:[#allocation15_spill] sm:$0xff] %v5844_v2  ;;  %10211 = vst [vmem:[#allocation16_spill] sm:$0xff] %v5846_v3  ;;  %v498_v17 = vld [vmem:[%s5678_s20 + $0x230] sm:$0xff]  ;;  %v496_v35 = vld [vmem:[%s5678_s20 + $0x220] sm:$0xff]  ;;  %v5886_v40 = vunpack.c.h.bf16 %v434_v16  ;;  %v5892_v46 = vunpack.c.l.bf16 %v434_v16  ;;  %v5900_v58 = vunpack.c.h.bf16 %v432_v34  ;;  %v5906_v0 = vunpack.c.l.bf16 %v432_v34 }
  0x26   : > { %1283 = vmatprep.subr.mxu1 %v5790_v43  ;;  %1207 = vmatpush1.msra.mxu0 %v5794_v44  ;;  %10212 = vst [vmem:[#allocation17_spill] sm:$0xff] %v5850_v4  ;;  %10213 = vst [vmem:[#allocation18_spill] sm:$0xff] %v5852_v5  ;;  %v5888_v41 = vunpack.c.h.bf16 %v498_v17  ;;  %v5894_v47 = vunpack.c.l.bf16 %v498_v17  ;;  %v430_v52 = vld [vmem:[%s5678_s20 + $0x10] sm:$0xff]  ;;  %v5902_v59 = vunpack.c.h.bf16 %v496_v35  ;;  %v5908_v1 = vunpack.c.l.bf16 %v496_v35  ;;  %v428_v6 = vld [vmem:[%s5678_s20] sm:$0xff] }
  0x27   : > { %1284 = vmatpush1.msra.mxu1 %v5796_v45  ;;  %1208 = vmatprep.subr.mxu0 %v5802_v48  ;;  %10214 = vst [vmem:[#allocation19_spill] sm:$0xff] %v5858_v8  ;;  %10215 = vst [vmem:[#allocation20_spill] sm:$0xff] %v5860_v9  ;;  %v494_v53 = vld [vmem:[%s5678_s20 + $0x210] sm:$0xff]  ;;  %v492_v7 = vld [vmem:[%s5678_s20 + $0x200] sm:$0xff]  ;;  %v5914_v16 = vunpack.c.h.bf16 %v430_v52  ;;  %v5920_v34 = vunpack.c.l.bf16 %v430_v52  ;;  %v5934_v52 = vunpack.c.l.bf16 %v428_v6 }
  0x28   : > { %1285 = vmatprep.subr.mxu1 %v5804_v49  ;;  %1209 = vmatpush1.msra.mxu0 %v5808_v50  ;;  %10216 = vst [vmem:[#allocation21_spill] sm:$0xff] %v5864_v10  ;;  %10217 = vst [vmem:[#allocation22_spill] sm:$0xff] %v5866_v15  ;;  %v5916_v17 = vunpack.c.h.bf16 %v494_v53  ;;  %v5922_v35 = vunpack.c.l.bf16 %v494_v53  ;;  %v5936_v53 = vunpack.c.l.bf16 %v492_v7 }
  0x29   : > { %1286 = vmatpush1.msra.mxu1 %v5810_v51  ;;  %1210 = vmatprep.subr.mxu0 %v5816_v54  ;;  %10218 = vst [vmem:[#allocation23_spill] sm:$0xff] %v5872_v22  ;;  %10219 = vst [vmem:[#allocation24_spill] sm:$0xff] %v5874_v23 }
  0x2a   : > { %1287 = vmatprep.subr.mxu1 %v5818_v55  ;;  %1211 = vmatpush1.msra.mxu0 %v5822_v56  ;;  %10220 = vst [vmem:[#allocation25_spill] sm:$0xff] %v5878_v28  ;;  %10221 = vst [vmem:[#allocation26_spill] sm:$0xff] %v5880_v29 }
  0x2b   : > { %1288 = vmatpush1.msra.mxu1 %v5824_v57  ;;  %1212 = vmatprep.subr.mxu0 %v5830_v60  ;;  %10222 = vst [vmem:[#allocation27_spill] sm:$0xff] %v5886_v40  ;;  %10223 = vst [vmem:[#allocation28_spill] sm:$0xff] %v5888_v41 }
  0x2c   : > { %1289 = vmatprep.subr.mxu1 %v5832_v61  ;;  %1213 = vmatpush1.msra.mxu0 %v5836_v62  ;;  %10224 = vst [vmem:[#allocation29_spill] sm:$0xff] %v5892_v46  ;;  %10225 = vst [vmem:[#allocation30_spill] sm:$0xff] %v5894_v47 }
  0x2d   : > { %1290 = vmatpush1.msra.mxu1 %v5838_v63  ;;  %1214 = vmatprep.subr.mxu0 %v5844_v2  ;;  %10226 = vst [vmem:[#allocation31_spill] sm:$0xff] %v5900_v58  ;;  %10227 = vst [vmem:[#allocation32_spill] sm:$0xff] %v5902_v59 }
  0x2e   : > { %1291 = vmatprep.subr.mxu1 %v5846_v3  ;;  %1215 = vmatpush1.msra.mxu0 %v5850_v4  ;;  %10228 = vst [vmem:[#allocation33_spill] sm:$0xff] %v5906_v0  ;;  %10229 = vst [vmem:[#allocation34_spill] sm:$0xff] %v5908_v1 }
  0x2f   : > { %1292 = vmatpush1.msra.mxu1 %v5852_v5  ;;  %1216 = vmatprep.subr.mxu0 %v5858_v8  ;;  %10230 = vst [vmem:[#allocation35_spill] sm:$0xff] %v5914_v16  ;;  %10231 = vst [vmem:[#allocation36_spill] sm:$0xff] %v5916_v17 }
  0x30   : > { %1293 = vmatprep.subr.mxu1 %v5860_v9  ;;  %1217 = vmatpush1.msra.mxu0 %v5864_v10  ;;  %10232 = vst [vmem:[#allocation37_spill] sm:$0xff] %v5920_v34  ;;  %10233 = vst [vmem:[#allocation38_spill] sm:$0xff] %v5922_v35  ;;  %v515_v9 = vld [vmem:[%s5678_s20 + $0x2b8] sm:$0xff] }
  0x31   : > { %1294 = vmatpush1.msra.mxu1 %v5866_v15  ;;  %1218 = vmatprep.subr.mxu0 %v5872_v22  ;;  %10236 = vst [vmem:[#allocation41_spill] sm:$0xff] %v5934_v52  ;;  %10237 = vst [vmem:[#allocation42_spill] sm:$0xff] %v5936_v53  ;;  %v451_v22 = vld [vmem:[%s5678_s20 + $0xb8] sm:$0xff] }
  0x32   : > { %1295 = vmatprep.subr.mxu1 %v5874_v23  ;;  %1219 = vmatpush1.msra.mxu0 %v5878_v28  ;;  %v554_v23 = vld [vmem:[%s5678_s20 + $0x3f0] sm:$0xff]  ;;  %v517_v28 = vld [vmem:[%s5678_s20 + $0x2c8] sm:$0xff] }
  0x33   : > { %1296 = vmatpush1.msra.mxu1 %v5880_v29  ;;  %1220 = vmatprep.subr.mxu0 %v5886_v40  ;;  %v490_v29 = vld [vmem:[%s5678_s20 + $0x1f0] sm:$0xff]  ;;  %v5930_v40 = vunpack.c.h.bf16 %v492_v7  ;;  %v5950_v7 = vunpack.c.l.bf16 %v554_v23 }
  0x34   : > { %1297 = vmatprep.subr.mxu1 %v5888_v41  ;;  %1221 = vmatpush1.msra.mxu0 %v5892_v46  ;;  %v5928_v41 = vunpack.c.h.bf16 %v428_v6  ;;  %v552_v46 = vld [vmem:[%s5678_s20 + $0x3e0] sm:$0xff]  ;;  %v5948_v6 = vunpack.c.l.bf16 %v490_v29 }
  0x35   : > { %1298 = vmatpush1.msra.mxu1 %v5894_v47  ;;  %1222 = vmatprep.subr.mxu0 %v5900_v58  ;;  %10235 = vst [vmem:[#allocation40_spill] sm:$0xff] %v5930_v40  ;;  %v488_v47 = vld [vmem:[%s5678_s20 + $0x1e0] sm:$0xff]  ;;  %v5944_v58 = vunpack.c.h.bf16 %v554_v23  ;;  %10241 = vst [vmem:[#allocation46_spill] sm:$0xff] %v5950_v7  ;;  %v5964_v23 = vunpack.c.l.bf16 %v552_v46 }
  0x36   : > { %1299 = vmatprep.subr.mxu1 %v5902_v59  ;;  %10234 = vst [vmem:[#allocation39_spill] sm:$0xff] %v5928_v41  ;;  %1223 = vmatpush1.msra.mxu0 %v5906_v0  ;;  %v5942_v59 = vunpack.c.h.bf16 %v490_v29  ;;  %10240 = vst [vmem:[#allocation45_spill] sm:$0xff] %v5948_v6  ;;  %v550_v0 = vld [vmem:[%s5678_s20 + $0x3d0] sm:$0xff]  ;;  %v5962_v29 = vunpack.c.l.bf16 %v488_v47 }
  0x37   : > { %1300 = vmatpush1.msra.mxu1 %v5908_v1  ;;  %1224 = vmatprep.subr.mxu0 %v5914_v16  ;;  %10239 = vst [vmem:[#allocation44_spill] sm:$0xff] %v5944_v58  ;;  %v486_v1 = vld [vmem:[%s5678_s20 + $0x1d0] sm:$0xff]  ;;  %v5958_v16 = vunpack.c.h.bf16 %v552_v46  ;;  %10245 = vst [vmem:[#allocation50_spill] sm:$0xff] %v5964_v23  ;;  %v5978_v46 = vunpack.c.l.bf16 %v550_v0 }
  0x38   : > { %1301 = vmatprep.subr.mxu1 %v5916_v17  ;;  %10238 = vst [vmem:[#allocation43_spill] sm:$0xff] %v5942_v59  ;;  %1225 = vmatpush1.msra.mxu0 %v5920_v34  ;;  %v5956_v17 = vunpack.c.h.bf16 %v488_v47  ;;  %10244 = vst [vmem:[#allocation49_spill] sm:$0xff] %v5962_v29  ;;  %v548_v34 = vld [vmem:[%s5678_s20 + $0x3c0] sm:$0xff]  ;;  %v5976_v47 = vunpack.c.l.bf16 %v486_v1 }
  0x39   : > { %1302 = vmatpush1.msra.mxu1 %v5922_v35  ;;  %1226 = vmatprep.subr.mxu0 %v5928_v41  ;;  %10243 = vst [vmem:[#allocation48_spill] sm:$0xff] %v5958_v16  ;;  %v484_v35 = vld [vmem:[%s5678_s20 + $0x1c0] sm:$0xff]  ;;  %v5972_v41 = vunpack.c.h.bf16 %v550_v0  ;;  %10249 = vst [vmem:[#allocation54_spill] sm:$0xff] %v5978_v46  ;;  %v5992_v0 = vunpack.c.l.bf16 %v548_v34 }
  0x3a   : > { %1303 = vmatprep.subr.mxu1 %v5930_v40  ;;  %10242 = vst [vmem:[#allocation47_spill] sm:$0xff] %v5956_v17  ;;  %1227 = vmatpush1.msra.mxu0 %v5934_v52  ;;  %v5970_v40 = vunpack.c.h.bf16 %v486_v1  ;;  %10248 = vst [vmem:[#allocation53_spill] sm:$0xff] %v5976_v47  ;;  %v546_v52 = vld [vmem:[%s5678_s20 + $0x3b0] sm:$0xff]  ;;  %v5990_v1 = vunpack.c.l.bf16 %v484_v35 }
  0x3b   : > { %1304 = vmatpush1.msra.mxu1 %v5936_v53  ;;  %1228 = vmatprep.subr.mxu0 %v5942_v59  ;;  %10247 = vst [vmem:[#allocation52_spill] sm:$0xff] %v5972_v41  ;;  %v482_v53 = vld [vmem:[%s5678_s20 + $0x1b0] sm:$0xff]  ;;  %v5986_v59 = vunpack.c.h.bf16 %v548_v34  ;;  %10253 = vst [vmem:[#allocation58_spill] sm:$0xff] %v5992_v0  ;;  %v6006_v34 = vunpack.c.l.bf16 %v546_v52 }
  0x3c   : > { %1305 = vmatprep.subr.mxu1 %v5944_v58  ;;  %10246 = vst [vmem:[#allocation51_spill] sm:$0xff] %v5970_v40  ;;  %1229 = vmatpush2.msra.mxu0 %v5948_v6  ;;  %v5984_v58 = vunpack.c.h.bf16 %v484_v35  ;;  %10252 = vst [vmem:[#allocation57_spill] sm:$0xff] %v5990_v1  ;;  %v544_v6 = vld [vmem:[%s5678_s20 + $0x3a0] sm:$0xff]  ;;  %v6004_v35 = vunpack.c.l.bf16 %v482_v53 }
  0x3d   : > { %1306 = vmatpush2.msra.mxu1 %v5950_v7  ;;  %1230 = vmatprep.subr.mxu0 %v5956_v17  ;;  %10251 = vst [vmem:[#allocation56_spill] sm:$0xff] %v5986_v59  ;;  %v480_v7 = vld [vmem:[%s5678_s20 + $0x1a0] sm:$0xff]  ;;  %v6000_v17 = vunpack.c.h.bf16 %v546_v52  ;;  %10257 = vst [vmem:[#allocation62_spill] sm:$0xff] %v6006_v34  ;;  %v6020_v52 = vunpack.c.l.bf16 %v544_v6 }
  0x3e   : > { %1307 = vmatprep.subr.mxu1 %v5958_v16  ;;  %10250 = vst [vmem:[#allocation55_spill] sm:$0xff] %v5984_v58  ;;  %1231 = vmatpush2.msra.mxu0 %v5962_v29  ;;  %v5998_v16 = vunpack.c.h.bf16 %v482_v53  ;;  %10256 = vst [vmem:[#allocation61_spill] sm:$0xff] %v6004_v35  ;;  %v542_v29 = vld [vmem:[%s5678_s20 + $0x390] sm:$0xff]  ;;  %v6018_v53 = vunpack.c.l.bf16 %v480_v7 }
  0x3f   : > { %1308 = vmatpush2.msra.mxu1 %v5964_v23  ;;  %1232 = vmatprep.subr.mxu0 %v5970_v40  ;;  %10255 = vst [vmem:[#allocation60_spill] sm:$0xff] %v6000_v17  ;;  %v478_v23 = vld [vmem:[%s5678_s20 + $0x190] sm:$0xff]  ;;  %v6014_v40 = vunpack.c.h.bf16 %v544_v6  ;;  %10261 = vst [vmem:[#allocation66_spill] sm:$0xff] %v6020_v52  ;;  %v6034_v6 = vunpack.c.l.bf16 %v542_v29 }
  0x40   : > { %1309 = vmatprep.subr.mxu1 %v5972_v41  ;;  %10254 = vst [vmem:[#allocation59_spill] sm:$0xff] %v5998_v16  ;;  %1233 = vmatpush2.msra.mxu0 %v5976_v47  ;;  %v6012_v41 = vunpack.c.h.bf16 %v480_v7  ;;  %10260 = vst [vmem:[#allocation65_spill] sm:$0xff] %v6018_v53  ;;  %v540_v47 = vld [vmem:[%s5678_s20 + $0x380] sm:$0xff]  ;;  %v6032_v7 = vunpack.c.l.bf16 %v478_v23 }
  0x41   : > { %1310 = vmatpush2.msra.mxu1 %v5978_v46  ;;  %1234 = vmatprep.subr.mxu0 %v5984_v58  ;;  %10259 = vst [vmem:[#allocation64_spill] sm:$0xff] %v6014_v40  ;;  %v476_v46 = vld [vmem:[%s5678_s20 + $0x180] sm:$0xff]  ;;  %v6028_v58 = vunpack.c.h.bf16 %v542_v29  ;;  %10265 = vst [vmem:[#allocation70_spill] sm:$0xff] %v6034_v6  ;;  %v6048_v29 = vunpack.c.l.bf16 %v540_v47 }
  0x42   : > { %1311 = vmatprep.subr.mxu1 %v5986_v59  ;;  %10258 = vst [vmem:[#allocation63_spill] sm:$0xff] %v6012_v41  ;;  %1235 = vmatpush2.msra.mxu0 %v5990_v1  ;;  %v6026_v59 = vunpack.c.h.bf16 %v478_v23  ;;  %10264 = vst [vmem:[#allocation69_spill] sm:$0xff] %v6032_v7  ;;  %v538_v1 = vld [vmem:[%s5678_s20 + $0x370] sm:$0xff]  ;;  %v6046_v23 = vunpack.c.l.bf16 %v476_v46 }
  0x43   : > { %1312 = vmatpush2.msra.mxu1 %v5992_v0  ;;  %1236 = vmatprep.subr.mxu0 %v5998_v16  ;;  %10263 = vst [vmem:[#allocation68_spill] sm:$0xff] %v6028_v58  ;;  %v474_v0 = vld [vmem:[%s5678_s20 + $0x170] sm:$0xff]  ;;  %v6042_v16 = vunpack.c.h.bf16 %v540_v47  ;;  %10269 = vst [vmem:[#allocation74_spill] sm:$0xff] %v6048_v29  ;;  %v6062_v47 = vunpack.c.l.bf16 %v538_v1 }
  0x44   : > { %1313 = vmatprep.subr.mxu1 %v6000_v17  ;;  %10262 = vst [vmem:[#allocation67_spill] sm:$0xff] %v6026_v59  ;;  %1237 = vmatpush2.msra.mxu0 %v6004_v35  ;;  %v6040_v17 = vunpack.c.h.bf16 %v476_v46  ;;  %10268 = vst [vmem:[#allocation73_spill] sm:$0xff] %v6046_v23  ;;  %v536_v35 = vld [vmem:[%s5678_s20 + $0x360] sm:$0xff]  ;;  %v6060_v46 = vunpack.c.l.bf16 %v474_v0 }
  0x45   : > { %1314 = vmatpush2.msra.mxu1 %v6006_v34  ;;  %1238 = vmatprep.subr.mxu0 %v6012_v41  ;;  %10267 = vst [vmem:[#allocation72_spill] sm:$0xff] %v6042_v16  ;;  %v472_v34 = vld [vmem:[%s5678_s20 + $0x160] sm:$0xff]  ;;  %v6056_v41 = vunpack.c.h.bf16 %v538_v1  ;;  %10273 = vst [vmem:[#allocation78_spill] sm:$0xff] %v6062_v47  ;;  %v6076_v1 = vunpack.c.l.bf16 %v536_v35 }
  0x46   : > { %1315 = vmatprep.subr.mxu1 %v6014_v40  ;;  %10266 = vst [vmem:[#allocation71_spill] sm:$0xff] %v6040_v17  ;;  %1239 = vmatpush2.msra.mxu0 %v6018_v53  ;;  %v6054_v40 = vunpack.c.h.bf16 %v474_v0  ;;  %10272 = vst [vmem:[#allocation77_spill] sm:$0xff] %v6060_v46  ;;  %v534_v53 = vld [vmem:[%s5678_s20 + $0x350] sm:$0xff]  ;;  %v6074_v0 = vunpack.c.l.bf16 %v472_v34 }
  0x47   : > { %1316 = vmatpush2.msra.mxu1 %v6020_v52  ;;  %1240 = vmatprep.subr.mxu0 %v6026_v59  ;;  %10271 = vst [vmem:[#allocation76_spill] sm:$0xff] %v6056_v41  ;;  %v470_v52 = vld [vmem:[%s5678_s20 + $0x150] sm:$0xff]  ;;  %v6070_v59 = vunpack.c.h.bf16 %v536_v35  ;;  %10277 = vst [vmem:[#allocation82_spill] sm:$0xff] %v6076_v1  ;;  %v6090_v35 = vunpack.c.l.bf16 %v534_v53 }
  0x48   : > { %1317 = vmatprep.subr.mxu1 %v6028_v58  ;;  %10270 = vst [vmem:[#allocation75_spill] sm:$0xff] %v6054_v40  ;;  %1241 = vmatpush2.msra.mxu0 %v6032_v7  ;;  %v6068_v58 = vunpack.c.h.bf16 %v472_v34  ;;  %10276 = vst [vmem:[#allocation81_spill] sm:$0xff] %v6074_v0  ;;  %v532_v7 = vld [vmem:[%s5678_s20 + $0x340] sm:$0xff]  ;;  %v6088_v34 = vunpack.c.l.bf16 %v470_v52 }
  0x49   : > { %1318 = vmatpush2.msra.mxu1 %v6034_v6  ;;  %1242 = vmatprep.subr.mxu0 %v6040_v17  ;;  %10275 = vst [vmem:[#allocation80_spill] sm:$0xff] %v6070_v59  ;;  %v468_v6 = vld [vmem:[%s5678_s20 + $0x140] sm:$0xff]  ;;  %v6084_v17 = vunpack.c.h.bf16 %v534_v53  ;;  %10281 = vst [vmem:[#allocation86_spill] sm:$0xff] %v6090_v35  ;;  %v6104_v53 = vunpack.c.l.bf16 %v532_v7 }
  0x4a   : > { %1319 = vmatprep.subr.mxu1 %v6042_v16  ;;  %10274 = vst [vmem:[#allocation79_spill] sm:$0xff] %v6068_v58  ;;  %1243 = vmatpush2.msra.mxu0 %v6046_v23  ;;  %v6082_v16 = vunpack.c.h.bf16 %v470_v52  ;;  %10280 = vst [vmem:[#allocation85_spill] sm:$0xff] %v6088_v34  ;;  %v530_v23 = vld [vmem:[%s5678_s20 + $0x330] sm:$0xff]  ;;  %v6102_v52 = vunpack.c.l.bf16 %v468_v6 }
  0x4b   : > { %1320 = vmatpush2.msra.mxu1 %v6048_v29  ;;  %1244 = vmatprep.subr.mxu0 %v6054_v40  ;;  %10279 = vst [vmem:[#allocation84_spill] sm:$0xff] %v6084_v17  ;;  %v466_v29 = vld [vmem:[%s5678_s20 + $0x130] sm:$0xff]  ;;  %v6098_v40 = vunpack.c.h.bf16 %v532_v7  ;;  %10285 = vst [vmem:[#allocation90_spill] sm:$0xff] %v6104_v53  ;;  %v6118_v7 = vunpack.c.l.bf16 %v530_v23 }
  0x4c   : > { %1321 = vmatprep.subr.mxu1 %v6056_v41  ;;  %10278 = vst [vmem:[#allocation83_spill] sm:$0xff] %v6082_v16  ;;  %1245 = vmatpush2.msra.mxu0 %v6060_v46  ;;  %v6096_v41 = vunpack.c.h.bf16 %v468_v6  ;;  %10284 = vst [vmem:[#allocation89_spill] sm:$0xff] %v6102_v52  ;;  %v528_v46 = vld [vmem:[%s5678_s20 + $0x320] sm:$0xff]  ;;  %v6116_v6 = vunpack.c.l.bf16 %v466_v29 }
  0x4d   : > { %1322 = vmatpush2.msra.mxu1 %v6062_v47  ;;  %1246 = vmatprep.subr.mxu0 %v6068_v58  ;;  %10283 = vst [vmem:[#allocation88_spill] sm:$0xff] %v6098_v40  ;;  %v464_v47 = vld [vmem:[%s5678_s20 + $0x120] sm:$0xff]  ;;  %v6112_v58 = vunpack.c.h.bf16 %v530_v23  ;;  %10289 = vst [vmem:[#allocation94_spill] sm:$0xff] %v6118_v7 }
  0x4e   : > { %1323 = vmatprep.subr.mxu1 %v6070_v59  ;;  %10282 = vst [vmem:[#allocation87_spill] sm:$0xff] %v6096_v41  ;;  %1247 = vmatpush2.msra.mxu0 %v6074_v0  ;;  %v6110_v59 = vunpack.c.h.bf16 %v466_v29  ;;  %10288 = vst [vmem:[#allocation93_spill] sm:$0xff] %v6116_v6  ;;  %v526_v0 = vld [vmem:[%s5678_s20 + $0x310] sm:$0xff]  ;;  %v6132_v29 = vunpack.c.l.bf16 %v528_v46  ;;  %v460_v23 = vld [vmem:[%s5678_s20 + $0x100] sm:$0xff] }
  0x4f   : > { %1324 = vmatpush2.msra.mxu1 %v6076_v1  ;;  %1248 = vmatprep.subr.mxu0 %v6082_v16  ;;  %10287 = vst [vmem:[#allocation92_spill] sm:$0xff] %v6112_v58  ;;  %v462_v1 = vld [vmem:[%s5678_s20 + $0x110] sm:$0xff]  ;;  %v6126_v16 = vunpack.c.h.bf16 %v528_v46  ;;  %v6146_v46 = vunpack.c.l.bf16 %v526_v0 }
  0x50   : > { %1325 = vmatprep.subr.mxu1 %v6084_v17  ;;  %10286 = vst [vmem:[#allocation91_spill] sm:$0xff] %v6110_v59  ;;  %1249 = vmatpush2.msra.mxu0 %v6088_v34  ;;  %v6124_v17 = vunpack.c.h.bf16 %v464_v47  ;;  %v6130_v34 = vunpack.c.l.bf16 %v464_v47  ;;  %10293 = vst [vmem:[#allocation98_spill] sm:$0xff] %v6132_v29  ;;  %v6144_v47 = vunpack.c.l.bf16 %v462_v1 }
  0x51   : > { %1326 = vmatpush2.msra.mxu1 %v6090_v35  ;;  %1250 = vmatprep.subr.mxu0 %v6096_v41  ;;  %10291 = vst [vmem:[#allocation96_spill] sm:$0xff] %v6126_v16  ;;  %v524_v35 = vld [vmem:[%s5678_s20 + $0x300] sm:$0xff]  ;;  %v6140_v41 = vunpack.c.h.bf16 %v526_v0  ;;  %10297 = vst [vmem:[#allocation102_spill] sm:$0xff] %v6146_v46 }
  0x52   : > { %1327 = vmatprep.subr.mxu1 %v6098_v40  ;;  %10290 = vst [vmem:[#allocation95_spill] sm:$0xff] %v6124_v17  ;;  %1251 = vmatpush2.msra.mxu0 %v6102_v52  ;;  %10292 = vst [vmem:[#allocation97_spill] sm:$0xff] %v6130_v34  ;;  %v6138_v40 = vunpack.c.h.bf16 %v462_v1  ;;  %v459_v1 = vld [vmem:[%s5678_s20 + $0xf8] sm:$0xff]  ;;  %v6162_v0 = vld [vmem:[#allocation2] sm:$0xff] }
  0x53   : > { %1328 = vmatpush2.msra.mxu1 %v6104_v53  ;;  %1252 = vmatprep.subr.mxu0 %v6110_v59  ;;  %10295 = vst [vmem:[#allocation100_spill] sm:$0xff] %v6140_v41  ;;  %10296 = vst [vmem:[#allocation101_spill] sm:$0xff] %v6144_v47  ;;  %v6150_v53 = vunpack.c.h.bf16 %v460_v23 }
  0x54   : > { %1329 = vmatprep.subr.mxu1 %v6112_v58  ;;  %10294 = vst [vmem:[#allocation99_spill] sm:$0xff] %v6138_v40  ;;  %1253 = vmatpush2.msra.mxu0 %v6116_v6  ;;  %v6152_v58 = vunpack.c.h.bf16 %v524_v35  ;;  %v6156_v6 = vunpack.c.l.bf16 %v460_v23  ;;  %v457_v23 = vld [vmem:[%s5678_s20 + $0xe8] sm:$0xff] }
  0x55   : > { %1330 = vmatpush2.msra.mxu1 %v6118_v7  ;;  %1254 = vmatprep.subr.mxu0 %v6124_v17  ;;  %10298 = vst [vmem:[#allocation103_spill] sm:$0xff] %v6150_v53  ;;  %v523_v7 = vld [vmem:[%s5678_s20 + $0x2f8] sm:$0xff]  ;;  %v6192_v59 = vunpack.c.h.bf16 %v457_v23 }
  0x56   : > { %1331 = vmatprep.subr.mxu1 %v6126_v16  ;;  %10299 = vst [vmem:[#allocation104_spill] sm:$0xff] %v6152_v58  ;;  %1255 = vmatpush2.msra.mxu0 %v6130_v34  ;;  %10300 = vst [vmem:[#allocation105_spill] sm:$0xff] %v6156_v6  ;;  %v6164_v16 = vunpack.c.l.bf16 %v524_v35  ;;  %v6168_v34 = vld [vmem:[#allocation2 + $0x10] sm:$0xff]  ;;  %v6178_v35 = vunpack.c.h.bf16 %v459_v1  ;;  %v6180_v17 = vunpack.c.h.bf16 %v523_v7 }
  0x57   : > { %1332 = vmatpush2.msra.mxu1 %v6132_v29  ;;  %1256 = vmatprep.subr.mxu0 %v6138_v40  ;;  %v521_v29 = vld [vmem:[%s5678_s20 + $0x2e8] sm:$0xff]  ;;  %v6174_v40 = vld [vmem:[#allocation2 + $0x30] sm:$0xff]  ;;  %10306 = vst [vmem:[#allocation111_spill] sm:$0xff] %v6192_v59 }
  0x58   : > { %1333 = vmatprep.subr.mxu1 %v6140_v41  ;;  %10301 = vst [vmem:[#allocation106_spill] sm:$0xff] %v6164_v16  ;;  %1257 = vmatpush2.msra.mxu0 %v6144_v47  ;;  %v6176_v41 = vld [vmem:[#allocation2 + $0x18] sm:$0xff]  ;;  %10302 = vst [vmem:[#allocation107_spill] sm:$0xff] %v6178_v35  ;;  %v6186_v47 = vunpack.c.l.bf16 %v523_v7  ;;  %v6194_v52 = vunpack.c.h.bf16 %v521_v29  ;;  %v6200_v7 = vunpack.c.l.bf16 %v521_v29 }
  0x59   : > { %1334 = vmatpush2.msra.mxu1 %v6146_v46  ;;  %1258 = vmatprep.subr.mxu0 %v6150_v53  ;;  %10303 = vst [vmem:[#allocation108_spill] sm:$0xff] %v6180_v17  ;;  %v6184_v46 = vunpack.c.l.bf16 %v459_v1  ;;  %v455_v53 = vld [vmem:[%s5678_s20 + $0xd8] sm:$0xff]  ;;  %v6198_v1 = vunpack.c.l.bf16 %v457_v23 }
  0x5a   : > { %1335 = vmatprep.subr.mxu1 %v6152_v58  ;;  %1259 = vmatpush2.msra.mxu0 %v6156_v6  ;;  %10305 = vst [vmem:[#allocation110_spill] sm:$0xff] %v6186_v47  ;;  %v519_v58 = vld [vmem:[%s5678_s20 + $0x2d8] sm:$0xff]  ;;  %10307 = vst [vmem:[#allocation112_spill] sm:$0xff] %v6194_v52  ;;  %v453_v6 = vld [vmem:[%s5678_s20 + $0xc8] sm:$0xff]  ;;  %v6212_v23 = vunpack.c.l.bf16 %v455_v53 }
  0x5b   : > { %1260 = vmatprep.mubr.f32.mxu0 %v6162_v0  ;;  %10304 = vst [vmem:[#allocation109_spill] sm:$0xff] %v6184_v46  ;;  %1336 = vmatpush2.msra.mxu1 %v6164_v16  ;;  %10308 = vst [vmem:[#allocation113_spill] sm:$0xff] %v6198_v1  ;;  %v6206_v16 = vunpack.c.h.bf16 %v455_v53  ;;  %v6208_v15 = vunpack.c.h.bf16 %v519_v58  ;;  %v6214_v29 = vunpack.c.l.bf16 %v519_v58  ;;  %v6226_v53 = vunpack.c.l.bf16 %v453_v6 }
  0x5c   : > { %1337 = vmatprep.mubr.f32.mxu1 %v6168_v34  ;;  %1261 = vmatmul.mubr.f32.vlgmr.msra.gmra.mxu0 %v6174_v40  ;;  %10309 = vst [vmem:[#allocation114_spill] sm:$0xff] %v6200_v7  ;;  %10312 = vst [vmem:[#allocation117_spill] sm:$0xff] %v6212_v23  ;;  %v6228_v58 = vunpack.c.l.bf16 %v517_v28 }
  0x5d   : > { %1338 = vmatmul.mubr.f32.vlgmr.msra.gmra.mxu1 %v6176_v41  ;;  %1350 = vmatprep.subr.mxu0 %v6178_v35  ;;  %10310 = vst [vmem:[#allocation115_spill] sm:$0xff] %v6206_v16  ;;  %10311 = vst [vmem:[#allocation116_spill] sm:$0xff] %v6208_v15  ;;  %v6222_v35 = vunpack.c.h.bf16 %v517_v28  ;;  %v6242_v28 = vunpack.c.l.bf16 %v515_v9 }
  0x5e   : > { %1427 = vmatprep.subr.mxu1 %v6180_v17  ;;  %1351 = vmatpush1.msra.mxu0 %v6184_v46  ;;  %10313 = vst [vmem:[#allocation118_spill] sm:$0xff] %v6214_v29  ;;  %v6220_v17 = vunpack.c.h.bf16 %v453_v6  ;;  %10316 = vst [vmem:[#allocation121_spill] sm:$0xff] %v6226_v53  ;;  %v513_v46 = vld [vmem:[%s5678_s20 + $0x2a8] sm:$0xff]  ;;  %v6240_v6 = vunpack.c.l.bf16 %v451_v22 }
  0x5f   : > { %1428 = vmatpush1.msra.mxu1 %v6186_v47  ;;  %1352 = vmatprep.subr.mxu0 %v6192_v59  ;;  %10315 = vst [vmem:[#allocation120_spill] sm:$0xff] %v6222_v35  ;;  %10317 = vst [vmem:[#allocation122_spill] sm:$0xff] %v6228_v58  ;;  %v449_v47 = vld [vmem:[%s5678_s20 + $0xa8] sm:$0xff]  ;;  %v6236_v59 = vunpack.c.h.bf16 %v515_v9  ;;  %v6256_v9 = vunpack.c.l.bf16 %v513_v46 }
  0x60   : > { %1429 = vmatprep.subr.mxu1 %v6194_v52  ;;  %10314 = vst [vmem:[#allocation119_spill] sm:$0xff] %v6220_v17  ;;  %1353 = vmatpush1.msra.mxu0 %v6198_v1  ;;  %v6234_v52 = vunpack.c.h.bf16 %v451_v22  ;;  %10320 = vst [vmem:[#allocation125_spill] sm:$0xff] %v6240_v6  ;;  %v511_v1 = vld [vmem:[%s5678_s20 + $0x298] sm:$0xff]  ;;  %v6254_v22 = vunpack.c.l.bf16 %v449_v47 }
  0x61   : > { %1430 = vmatpush1.msra.mxu1 %v6200_v7  ;;  %1354 = vmatprep.subr.mxu0 %v6206_v16  ;;  %10319 = vst [vmem:[#allocation124_spill] sm:$0xff] %v6236_v59  ;;  %10321 = vst [vmem:[#allocation126_spill] sm:$0xff] %v6242_v28  ;;  %v447_v7 = vld [vmem:[%s5678_s20 + $0x98] sm:$0xff]  ;;  %v6250_v16 = vunpack.c.h.bf16 %v513_v46  ;;  %v6270_v46 = vunpack.c.l.bf16 %v511_v1 }
  0x62   : > { %1431 = vmatprep.subr.mxu1 %v6208_v15  ;;  %10318 = vst [vmem:[#allocation123_spill] sm:$0xff] %v6234_v52  ;;  %1355 = vmatpush1.msra.mxu0 %v6212_v23  ;;  %v6248_v15 = vunpack.c.h.bf16 %v449_v47  ;;  %10324 = vst [vmem:[#allocation129_spill] sm:$0xff] %v6254_v22  ;;  %v509_v23 = vld [vmem:[%s5678_s20 + $0x288] sm:$0xff]  ;;  %v6268_v47 = vunpack.c.l.bf16 %v447_v7 }
  0x63   : > { %1432 = vmatpush1.msra.mxu1 %v6214_v29  ;;  %1356 = vmatprep.subr.mxu0 %v6220_v17  ;;  %10323 = vst [vmem:[#allocation128_spill] sm:$0xff] %v6250_v16  ;;  %10325 = vst [vmem:[#allocation130_spill] sm:$0xff] %v6256_v9  ;;  %v445_v29 = vld [vmem:[%s5678_s20 + $0x88] sm:$0xff]  ;;  %v6264_v17 = vunpack.c.h.bf16 %v511_v1  ;;  %v6284_v1 = vunpack.c.l.bf16 %v509_v23 }
  0x64   : > { %1433 = vmatprep.subr.mxu1 %v6222_v35  ;;  %10322 = vst [vmem:[#allocation127_spill] sm:$0xff] %v6248_v15  ;;  %1357 = vmatpush1.msra.mxu0 %v6226_v53  ;;  %v6262_v35 = vunpack.c.h.bf16 %v447_v7  ;;  %10328 = vst [vmem:[#allocation133_spill] sm:$0xff] %v6268_v47  ;;  %v507_v53 = vld [vmem:[%s5678_s20 + $0x278] sm:$0xff]  ;;  %v6282_v7 = vunpack.c.l.bf16 %v445_v29 }
  0x65   : > { %1434 = vmatpush1.msra.mxu1 %v6228_v58  ;;  %1358 = vmatprep.subr.mxu0 %v6234_v52  ;;  %10327 = vst [vmem:[#allocation132_spill] sm:$0xff] %v6264_v17  ;;  %10329 = vst [vmem:[#allocation134_spill] sm:$0xff] %v6270_v46  ;;  %v443_v58 = vld [vmem:[%s5678_s20 + $0x78] sm:$0xff]  ;;  %v6278_v52 = vunpack.c.h.bf16 %v509_v23  ;;  %v6298_v23 = vunpack.c.l.bf16 %v507_v53 }
  0x66   : > { %1435 = vmatprep.subr.mxu1 %v6236_v59  ;;  %10326 = vst [vmem:[#allocation131_spill] sm:$0xff] %v6262_v35  ;;  %1359 = vmatpush1.msra.mxu0 %v6240_v6  ;;  %v6276_v59 = vunpack.c.h.bf16 %v445_v29  ;;  %10332 = vst [vmem:[#allocation137_spill] sm:$0xff] %v6282_v7  ;;  %v505_v6 = vld [vmem:[%s5678_s20 + $0x268] sm:$0xff]  ;;  %v6296_v29 = vunpack.c.l.bf16 %v443_v58 }
  0x67   : > { %1436 = vmatpush1.msra.mxu1 %v6242_v28  ;;  %1360 = vmatprep.subr.mxu0 %v6248_v15  ;;  %10331 = vst [vmem:[#allocation136_spill] sm:$0xff] %v6278_v52  ;;  %10333 = vst [vmem:[#allocation138_spill] sm:$0xff] %v6284_v1  ;;  %v441_v28 = vld [vmem:[%s5678_s20 + $0x68] sm:$0xff]  ;;  %v6292_v15 = vunpack.c.h.bf16 %v507_v53  ;;  %v6312_v53 = vunpack.c.l.bf16 %v505_v6 }
  0x68   : > { %1437 = vmatprep.subr.mxu1 %v6250_v16  ;;  %10330 = vst [vmem:[#allocation135_spill] sm:$0xff] %v6276_v59  ;;  %1361 = vmatpush1.msra.mxu0 %v6254_v22  ;;  %v6290_v16 = vunpack.c.h.bf16 %v443_v58  ;;  %10336 = vst [vmem:[#allocation141_spill] sm:$0xff] %v6296_v29  ;;  %v503_v22 = vld [vmem:[%s5678_s20 + $0x258] sm:$0xff]  ;;  %v6310_v58 = vunpack.c.l.bf16 %v441_v28 }
  0x69   : > { %1438 = vmatpush1.msra.mxu1 %v6256_v9  ;;  %1362 = vmatprep.subr.mxu0 %v6262_v35  ;;  %10335 = vst [vmem:[#allocation140_spill] sm:$0xff] %v6292_v15  ;;  %10337 = vst [vmem:[#allocation142_spill] sm:$0xff] %v6298_v23  ;;  %v439_v9 = vld [vmem:[%s5678_s20 + $0x58] sm:$0xff]  ;;  %v6306_v35 = vunpack.c.h.bf16 %v505_v6  ;;  %v6326_v6 = vunpack.c.l.bf16 %v503_v22 }
  0x6a   : > { %1439 = vmatprep.subr.mxu1 %v6264_v17  ;;  %10334 = vst [vmem:[#allocation139_spill] sm:$0xff] %v6290_v16  ;;  %1363 = vmatpush1.msra.mxu0 %v6268_v47  ;;  %v6304_v17 = vunpack.c.h.bf16 %v441_v28  ;;  %10340 = vst [vmem:[#allocation145_spill] sm:$0xff] %v6310_v58  ;;  %v501_v47 = vld [vmem:[%s5678_s20 + $0x248] sm:$0xff]  ;;  %v6324_v28 = vunpack.c.l.bf16 %v439_v9 }
  0x6b   : > { %1440 = vmatpush1.msra.mxu1 %v6270_v46  ;;  %1364 = vmatprep.subr.mxu0 %v6276_v59  ;;  %10339 = vst [vmem:[#allocation144_spill] sm:$0xff] %v6306_v35  ;;  %10341 = vst [vmem:[#allocation146_spill] sm:$0xff] %v6312_v53  ;;  %v437_v46 = vld [vmem:[%s5678_s20 + $0x48] sm:$0xff]  ;;  %v6320_v59 = vunpack.c.h.bf16 %v503_v22  ;;  %v6340_v22 = vunpack.c.l.bf16 %v501_v47 }
  0x6c   : > { %1441 = vmatprep.subr.mxu1 %v6278_v52  ;;  %10338 = vst [vmem:[#allocation143_spill] sm:$0xff] %v6304_v17  ;;  %1365 = vmatpush1.msra.mxu0 %v6282_v7  ;;  %v6318_v52 = vunpack.c.h.bf16 %v439_v9  ;;  %10344 = vst [vmem:[#allocation149_spill] sm:$0xff] %v6324_v28  ;;  %v499_v7 = vld [vmem:[%s5678_s20 + $0x238] sm:$0xff]  ;;  %v6338_v9 = vunpack.c.l.bf16 %v437_v46 }
  0x6d   : > { %1442 = vmatpush1.msra.mxu1 %v6284_v1  ;;  %1366 = vmatprep.subr.mxu0 %v6290_v16  ;;  %10343 = vst [vmem:[#allocation148_spill] sm:$0xff] %v6320_v59  ;;  %10345 = vst [vmem:[#allocation150_spill] sm:$0xff] %v6326_v6  ;;  %v435_v1 = vld [vmem:[%s5678_s20 + $0x38] sm:$0xff]  ;;  %v6334_v16 = vunpack.c.h.bf16 %v501_v47  ;;  %v6354_v47 = vunpack.c.l.bf16 %v499_v7 }
  0x6e   : > { %1443 = vmatprep.subr.mxu1 %v6292_v15  ;;  %10342 = vst [vmem:[#allocation147_spill] sm:$0xff] %v6318_v52  ;;  %1367 = vmatpush1.msra.mxu0 %v6296_v29  ;;  %v6332_v15 = vunpack.c.h.bf16 %v437_v46  ;;  %10348 = vst [vmem:[#allocation153_spill] sm:$0xff] %v6338_v9  ;;  %v497_v29 = vld [vmem:[%s5678_s20 + $0x228] sm:$0xff]  ;;  %v6352_v46 = vunpack.c.l.bf16 %v435_v1 }
  0x6f   : > { %1444 = vmatpush1.msra.mxu1 %v6298_v23  ;;  %1368 = vmatprep.subr.mxu0 %v6304_v17  ;;  %10347 = vst [vmem:[#allocation152_spill] sm:$0xff] %v6334_v16  ;;  %10349 = vst [vmem:[#allocation154_spill] sm:$0xff] %v6340_v22  ;;  %v433_v23 = vld [vmem:[%s5678_s20 + $0x28] sm:$0xff]  ;;  %v6348_v17 = vunpack.c.h.bf16 %v499_v7  ;;  %v6368_v7 = vunpack.c.l.bf16 %v497_v29 }
  0x70   : > { %1445 = vmatprep.subr.mxu1 %v6306_v35  ;;  %10346 = vst [vmem:[#allocation151_spill] sm:$0xff] %v6332_v15  ;;  %1369 = vmatpush1.msra.mxu0 %v6310_v58  ;;  %v6346_v35 = vunpack.c.h.bf16 %v435_v1  ;;  %10352 = vst [vmem:[#allocation157_spill] sm:$0xff] %v6352_v46  ;;  %v495_v58 = vld [vmem:[%s5678_s20 + $0x218] sm:$0xff]  ;;  %v6366_v1 = vunpack.c.l.bf16 %v433_v23 }
  0x71   : > { %1446 = vmatpush1.msra.mxu1 %v6312_v53  ;;  %1370 = vmatprep.subr.mxu0 %v6318_v52  ;;  %10351 = vst [vmem:[#allocation156_spill] sm:$0xff] %v6348_v17  ;;  %10353 = vst [vmem:[#allocation158_spill] sm:$0xff] %v6354_v47  ;;  %v431_v53 = vld [vmem:[%s5678_s20 + $0x18] sm:$0xff]  ;;  %v6362_v52 = vunpack.c.h.bf16 %v497_v29  ;;  %v6382_v29 = vunpack.c.l.bf16 %v495_v58 }
  0x72   : > { %1447 = vmatprep.subr.mxu1 %v6320_v59  ;;  %10350 = vst [vmem:[#allocation155_spill] sm:$0xff] %v6346_v35  ;;  %1371 = vmatpush1.msra.mxu0 %v6324_v28  ;;  %v6360_v59 = vunpack.c.h.bf16 %v433_v23  ;;  %10356 = vst [vmem:[#allocation161_spill] sm:$0xff] %v6366_v1  ;;  %v493_v28 = vld [vmem:[%s5678_s20 + $0x208] sm:$0xff]  ;;  %v6380_v23 = vunpack.c.l.bf16 %v431_v53 }
  0x73   : > { %1448 = vmatpush1.msra.mxu1 %v6326_v6  ;;  %1372 = vmatprep.subr.mxu0 %v6332_v15  ;;  %10355 = vst [vmem:[#allocation160_spill] sm:$0xff] %v6362_v52  ;;  %10357 = vst [vmem:[#allocation162_spill] sm:$0xff] %v6368_v7  ;;  %v429_v6 = vld [vmem:[%s5678_s20 + $0x8] sm:$0xff]  ;;  %v6376_v15 = vunpack.c.h.bf16 %v495_v58  ;;  %v6396_v58 = vunpack.c.l.bf16 %v493_v28 }
  0x74   : > { %1449 = vmatprep.subr.mxu1 %v6334_v16  ;;  %10354 = vst [vmem:[#allocation159_spill] sm:$0xff] %v6360_v59  ;;  %1373 = vmatpush1.msra.mxu0 %v6338_v9  ;;  %v6374_v16 = vunpack.c.h.bf16 %v431_v53  ;;  %10360 = vst [vmem:[#allocation165_spill] sm:$0xff] %v6380_v23  ;;  %v555_v9 = vld [vmem:[%s5678_s20 + $0x3f8] sm:$0xff]  ;;  %v6394_v53 = vunpack.c.l.bf16 %v429_v6 }
  0x75   : > { %1450 = vmatpush1.msra.mxu1 %v6340_v22  ;;  %1374 = vmatprep.subr.mxu0 %v6346_v35  ;;  %10359 = vst [vmem:[#allocation164_spill] sm:$0xff] %v6376_v15  ;;  %10361 = vst [vmem:[#allocation166_spill] sm:$0xff] %v6382_v29  ;;  %v491_v22 = vld [vmem:[%s5678_s20 + $0x1f8] sm:$0xff]  ;;  %v6390_v35 = vunpack.c.h.bf16 %v493_v28  ;;  %v6410_v28 = vunpack.c.l.bf16 %v555_v9 }
  0x76   : > { %1451 = vmatprep.subr.mxu1 %v6348_v17  ;;  %10358 = vst [vmem:[#allocation163_spill] sm:$0xff] %v6374_v16  ;;  %1375 = vmatpush1.msra.mxu0 %v6352_v46  ;;  %v6388_v17 = vunpack.c.h.bf16 %v429_v6  ;;  %10364 = vst [vmem:[#allocation169_spill] sm:$0xff] %v6394_v53  ;;  %v553_v46 = vld [vmem:[%s5678_s20 + $0x3e8] sm:$0xff]  ;;  %v6408_v6 = vunpack.c.l.bf16 %v491_v22 }
  0x77   : > { %1452 = vmatpush1.msra.mxu1 %v6354_v47  ;;  %1376 = vmatprep.subr.mxu0 %v6360_v59  ;;  %10363 = vst [vmem:[#allocation168_spill] sm:$0xff] %v6390_v35  ;;  %10365 = vst [vmem:[#allocation170_spill] sm:$0xff] %v6396_v58  ;;  %v489_v47 = vld [vmem:[%s5678_s20 + $0x1e8] sm:$0xff]  ;;  %v6404_v59 = vunpack.c.h.bf16 %v555_v9  ;;  %v6424_v9 = vunpack.c.l.bf16 %v553_v46 }
  0x78   : > { %1453 = vmatprep.subr.mxu1 %v6362_v52  ;;  %10362 = vst [vmem:[#allocation167_spill] sm:$0xff] %v6388_v17  ;;  %1377 = vmatpush1.msra.mxu0 %v6366_v1  ;;  %v6402_v52 = vunpack.c.h.bf16 %v491_v22  ;;  %10368 = vst [vmem:[#allocation173_spill] sm:$0xff] %v6408_v6  ;;  %v551_v1 = vld [vmem:[%s5678_s20 + $0x3d8] sm:$0xff]  ;;  %v6422_v22 = vunpack.c.l.bf16 %v489_v47 }
  0x79   : > { %1454 = vmatpush1.msra.mxu1 %v6368_v7  ;;  %1378 = vmatprep.subr.mxu0 %v6374_v16  ;;  %10367 = vst [vmem:[#allocation172_spill] sm:$0xff] %v6404_v59  ;;  %10369 = vst [vmem:[#allocation174_spill] sm:$0xff] %v6410_v28  ;;  %v487_v7 = vld [vmem:[%s5678_s20 + $0x1d8] sm:$0xff]  ;;  %v6418_v16 = vunpack.c.h.bf16 %v553_v46  ;;  %v6438_v46 = vunpack.c.l.bf16 %v551_v1 }
  0x7a   : > { %1455 = vmatprep.subr.mxu1 %v6376_v15  ;;  %10366 = vst [vmem:[#allocation171_spill] sm:$0xff] %v6402_v52  ;;  %1379 = vmatpush1.msra.mxu0 %v6380_v23  ;;  %v6416_v15 = vunpack.c.h.bf16 %v489_v47  ;;  %10372 = vst [vmem:[#allocation177_spill] sm:$0xff] %v6422_v22  ;;  %v549_v23 = vld [vmem:[%s5678_s20 + $0x3c8] sm:$0xff]  ;;  %v6436_v47 = vunpack.c.l.bf16 %v487_v7 }
  0x7b   : > { %1456 = vmatpush1.msra.mxu1 %v6382_v29  ;;  %1380 = vmatprep.subr.mxu0 %v6388_v17  ;;  %10371 = vst [vmem:[#allocation176_spill] sm:$0xff] %v6418_v16  ;;  %10373 = vst [vmem:[#allocation178_spill] sm:$0xff] %v6424_v9  ;;  %v485_v29 = vld [vmem:[%s5678_s20 + $0x1c8] sm:$0xff]  ;;  %v6432_v17 = vunpack.c.h.bf16 %v551_v1  ;;  %v6452_v1 = vunpack.c.l.bf16 %v549_v23 }
  0x7c   : > { %1457 = vmatprep.subr.mxu1 %v6390_v35  ;;  %10370 = vst [vmem:[#allocation175_spill] sm:$0xff] %v6416_v15  ;;  %1381 = vmatpush1.msra.mxu0 %v6394_v53  ;;  %v6430_v35 = vunpack.c.h.bf16 %v487_v7  ;;  %10376 = vst [vmem:[#allocation181_spill] sm:$0xff] %v6436_v47  ;;  %v547_v53 = vld [vmem:[%s5678_s20 + $0x3b8] sm:$0xff]  ;;  %v6450_v7 = vunpack.c.l.bf16 %v485_v29 }
  0x7d   : > { %1458 = vmatpush1.msra.mxu1 %v6396_v58  ;;  %1382 = vmatprep.subr.mxu0 %v6402_v52  ;;  %10375 = vst [vmem:[#allocation180_spill] sm:$0xff] %v6432_v17  ;;  %10377 = vst [vmem:[#allocation182_spill] sm:$0xff] %v6438_v46  ;;  %v483_v58 = vld [vmem:[%s5678_s20 + $0x1b8] sm:$0xff]  ;;  %v6446_v52 = vunpack.c.h.bf16 %v549_v23  ;;  %v6466_v23 = vunpack.c.l.bf16 %v547_v53 }
  0x7e   : > { %1459 = vmatprep.subr.mxu1 %v6404_v59  ;;  %10374 = vst [vmem:[#allocation179_spill] sm:$0xff] %v6430_v35  ;;  %1383 = vmatpush2.msra.mxu0 %v6408_v6  ;;  %v6444_v59 = vunpack.c.h.bf16 %v485_v29  ;;  %10380 = vst [vmem:[#allocation185_spill] sm:$0xff] %v6450_v7  ;;  %v545_v6 = vld [vmem:[%s5678_s20 + $0x3a8] sm:$0xff]  ;;  %v6464_v29 = vunpack.c.l.bf16 %v483_v58 }
  0x7f   : > { %1460 = vmatpush2.msra.mxu1 %v6410_v28  ;;  %1384 = vmatprep.subr.mxu0 %v6416_v15  ;;  %10379 = vst [vmem:[#allocation184_spill] sm:$0xff] %v6446_v52  ;;  %10381 = vst [vmem:[#allocation186_spill] sm:$0xff] %v6452_v1  ;;  %v481_v28 = vld [vmem:[%s5678_s20 + $0x1a8] sm:$0xff]  ;;  %v6460_v15 = vunpack.c.h.bf16 %v547_v53  ;;  %v6480_v53 = vunpack.c.l.bf16 %v545_v6 }
  0x80   : > { %1461 = vmatprep.subr.mxu1 %v6418_v16  ;;  %10378 = vst [vmem:[#allocation183_spill] sm:$0xff] %v6444_v59  ;;  %1385 = vmatpush2.msra.mxu0 %v6422_v22  ;;  %v6458_v16 = vunpack.c.h.bf16 %v483_v58  ;;  %10384 = vst [vmem:[#allocation189_spill] sm:$0xff] %v6464_v29  ;;  %v543_v22 = vld [vmem:[%s5678_s20 + $0x398] sm:$0xff]  ;;  %v6478_v58 = vunpack.c.l.bf16 %v481_v28 }
  0x81   : > { %1462 = vmatpush2.msra.mxu1 %v6424_v9  ;;  %1386 = vmatprep.subr.mxu0 %v6430_v35  ;;  %10383 = vst [vmem:[#allocation188_spill] sm:$0xff] %v6460_v15  ;;  %10385 = vst [vmem:[#allocation190_spill] sm:$0xff] %v6466_v23  ;;  %v479_v9 = vld [vmem:[%s5678_s20 + $0x198] sm:$0xff]  ;;  %v6474_v35 = vunpack.c.h.bf16 %v545_v6  ;;  %v6494_v6 = vunpack.c.l.bf16 %v543_v22 }
  0x82   : > { %1463 = vmatprep.subr.mxu1 %v6432_v17  ;;  %10382 = vst [vmem:[#allocation187_spill] sm:$0xff] %v6458_v16  ;;  %1387 = vmatpush2.msra.mxu0 %v6436_v47  ;;  %v6472_v17 = vunpack.c.h.bf16 %v481_v28  ;;  %10388 = vst [vmem:[#allocation193_spill] sm:$0xff] %v6478_v58  ;;  %v541_v47 = vld [vmem:[%s5678_s20 + $0x388] sm:$0xff]  ;;  %v6492_v28 = vunpack.c.l.bf16 %v479_v9 }
  0x83   : > { %1464 = vmatpush2.msra.mxu1 %v6438_v46  ;;  %1388 = vmatprep.subr.mxu0 %v6444_v59  ;;  %10387 = vst [vmem:[#allocation192_spill] sm:$0xff] %v6474_v35  ;;  %10389 = vst [vmem:[#allocation194_spill] sm:$0xff] %v6480_v53  ;;  %v477_v46 = vld [vmem:[%s5678_s20 + $0x188] sm:$0xff]  ;;  %v6488_v59 = vunpack.c.h.bf16 %v543_v22  ;;  %v6508_v22 = vunpack.c.l.bf16 %v541_v47 }
  0x84   : > { %1465 = vmatprep.subr.mxu1 %v6446_v52  ;;  %10386 = vst [vmem:[#allocation191_spill] sm:$0xff] %v6472_v17  ;;  %1389 = vmatpush2.msra.mxu0 %v6450_v7  ;;  %v6486_v52 = vunpack.c.h.bf16 %v479_v9  ;;  %10392 = vst [vmem:[#allocation197_spill] sm:$0xff] %v6492_v28  ;;  %v539_v7 = vld [vmem:[%s5678_s20 + $0x378] sm:$0xff]  ;;  %v6506_v9 = vunpack.c.l.bf16 %v477_v46 }
  0x85   : > { %1466 = vmatpush2.msra.mxu1 %v6452_v1  ;;  %1390 = vmatprep.subr.mxu0 %v6458_v16  ;;  %10391 = vst [vmem:[#allocation196_spill] sm:$0xff] %v6488_v59  ;;  %10393 = vst [vmem:[#allocation198_spill] sm:$0xff] %v6494_v6  ;;  %v475_v1 = vld [vmem:[%s5678_s20 + $0x178] sm:$0xff]  ;;  %v6502_v16 = vunpack.c.h.bf16 %v541_v47  ;;  %v6522_v47 = vunpack.c.l.bf16 %v539_v7 }
  0x86   : > { %1467 = vmatprep.subr.mxu1 %v6460_v15  ;;  %10390 = vst [vmem:[#allocation195_spill] sm:$0xff] %v6486_v52  ;;  %1391 = vmatpush2.msra.mxu0 %v6464_v29  ;;  %v6500_v15 = vunpack.c.h.bf16 %v477_v46  ;;  %10396 = vst [vmem:[#allocation201_spill] sm:$0xff] %v6506_v9  ;;  %v537_v29 = vld [vmem:[%s5678_s20 + $0x368] sm:$0xff]  ;;  %v6520_v46 = vunpack.c.l.bf16 %v475_v1 }
  0x87   : > { %1468 = vmatpush2.msra.mxu1 %v6466_v23  ;;  %1392 = vmatprep.subr.mxu0 %v6472_v17  ;;  %10395 = vst [vmem:[#allocation200_spill] sm:$0xff] %v6502_v16  ;;  %10397 = vst [vmem:[#allocation202_spill] sm:$0xff] %v6508_v22  ;;  %v473_v23 = vld [vmem:[%s5678_s20 + $0x168] sm:$0xff]  ;;  %v6516_v17 = vunpack.c.h.bf16 %v539_v7  ;;  %v6536_v7 = vunpack.c.l.bf16 %v537_v29 }
  0x88   : > { %1469 = vmatprep.subr.mxu1 %v6474_v35  ;;  %10394 = vst [vmem:[#allocation199_spill] sm:$0xff] %v6500_v15  ;;  %1393 = vmatpush2.msra.mxu0 %v6478_v58  ;;  %v6514_v35 = vunpack.c.h.bf16 %v475_v1  ;;  %10400 = vst [vmem:[#allocation205_spill] sm:$0xff] %v6520_v46  ;;  %v535_v58 = vld [vmem:[%s5678_s20 + $0x358] sm:$0xff]  ;;  %v6534_v1 = vunpack.c.l.bf16 %v473_v23 }
  0x89   : > { %1470 = vmatpush2.msra.mxu1 %v6480_v53  ;;  %1394 = vmatprep.subr.mxu0 %v6486_v52  ;;  %10399 = vst [vmem:[#allocation204_spill] sm:$0xff] %v6516_v17  ;;  %10401 = vst [vmem:[#allocation206_spill] sm:$0xff] %v6522_v47  ;;  %v471_v53 = vld [vmem:[%s5678_s20 + $0x158] sm:$0xff]  ;;  %v6530_v52 = vunpack.c.h.bf16 %v537_v29 }
  0x8a   : > { %1471 = vmatprep.subr.mxu1 %v6488_v59  ;;  %10398 = vst [vmem:[#allocation203_spill] sm:$0xff] %v6514_v35  ;;  %1395 = vmatpush2.msra.mxu0 %v6492_v28  ;;  %v6528_v59 = vunpack.c.h.bf16 %v473_v23  ;;  %10404 = vst [vmem:[#allocation209_spill] sm:$0xff] %v6534_v1  ;;  %v533_v28 = vld [vmem:[%s5678_s20 + $0x348] sm:$0xff]  ;;  %v6550_v23 = vunpack.c.l.bf16 %v535_v58  ;;  %v467_v29 = vld [vmem:[%s5678_s20 + $0x138] sm:$0xff] }
  0x8b   : > { %1472 = vmatpush2.msra.mxu1 %v6494_v6  ;;  %1396 = vmatprep.subr.mxu0 %v6500_v15  ;;  %10403 = vst [vmem:[#allocation208_spill] sm:$0xff] %v6530_v52  ;;  %10405 = vst [vmem:[#allocation210_spill] sm:$0xff] %v6536_v7  ;;  %v469_v6 = vld [vmem:[%s5678_s20 + $0x148] sm:$0xff]  ;;  %v6544_v15 = vunpack.c.h.bf16 %v535_v58  ;;  %v6564_v58 = vunpack.c.l.bf16 %v533_v28 }
  0x8c   : > { %1473 = vmatprep.subr.mxu1 %v6502_v16  ;;  %10402 = vst [vmem:[#allocation207_spill] sm:$0xff] %v6528_v59  ;;  %1397 = vmatpush2.msra.mxu0 %v6506_v9  ;;  %v6542_v16 = vunpack.c.h.bf16 %v471_v53  ;;  %v6548_v9 = vunpack.c.l.bf16 %v471_v53  ;;  %10409 = vst [vmem:[#allocation214_spill] sm:$0xff] %v6550_v23  ;;  %v6562_v53 = vunpack.c.l.bf16 %v469_v6 }
  0x8d   : > { %1474 = vmatpush2.msra.mxu1 %v6508_v22  ;;  %1398 = vmatprep.subr.mxu0 %v6514_v35  ;;  %10407 = vst [vmem:[#allocation212_spill] sm:$0xff] %v6544_v15  ;;  %v531_v22 = vld [vmem:[%s5678_s20 + $0x338] sm:$0xff]  ;;  %v6558_v35 = vunpack.c.h.bf16 %v533_v28  ;;  %10413 = vst [vmem:[#allocation218_spill] sm:$0xff] %v6564_v58  ;;  %v6578_v28 = vunpack.c.l.bf16 %v467_v29 }
  0x8e   : > { %1475 = vmatprep.subr.mxu1 %v6516_v17  ;;  %10406 = vst [vmem:[#allocation211_spill] sm:$0xff] %v6542_v16  ;;  %1399 = vmatpush2.msra.mxu0 %v6520_v46  ;;  %10408 = vst [vmem:[#allocation213_spill] sm:$0xff] %v6548_v9  ;;  %v6556_v17 = vunpack.c.h.bf16 %v469_v6  ;;  %v6580_v6 = vunpack.c.l.bf16 %v531_v22 }
  0x8f   : > { %1476 = vmatpush2.msra.mxu1 %v6522_v47  ;;  %1400 = vmatprep.subr.mxu0 %v6528_v59  ;;  %10411 = vst [vmem:[#allocation216_spill] sm:$0xff] %v6558_v35  ;;  %10412 = vst [vmem:[#allocation217_spill] sm:$0xff] %v6562_v53  ;;  %v6568_v59 = vunpack.c.h.bf16 %v467_v29 }
  0x90   : > { %1477 = vmatprep.subr.mxu1 %v6530_v52  ;;  %10410 = vst [vmem:[#allocation215_spill] sm:$0xff] %v6556_v17  ;;  %1401 = vmatpush2.msra.mxu0 %v6534_v1  ;;  %v6570_v52 = vunpack.c.h.bf16 %v531_v22  ;;  %v465_v1 = vld [vmem:[%s5678_s20 + $0x128] sm:$0xff]  ;;  %10416 = vst [vmem:[#allocation221_spill] sm:$0xff] %v6578_v28 }
  0x91   : > { %1478 = vmatpush2.msra.mxu1 %v6536_v7  ;;  %1402 = vmatprep.subr.mxu0 %v6542_v16  ;;  %10414 = vst [vmem:[#allocation219_spill] sm:$0xff] %v6568_v59  ;;  %v529_v7 = vld [vmem:[%s5678_s20 + $0x328] sm:$0xff]  ;;  %10417 = vst [vmem:[#allocation222_spill] sm:$0xff] %v6580_v6  ;;  %v427_v16 = vld [vmem:[#allocation2 + $0x38] sm:$0xff]  ;;  %v6588_v29 = vunpack.c.h.bf16 %v465_v1  ;;  %v6592_v47 = vunpack.c.l.bf16 %v465_v1 }
  0x92   : > { %1479 = vmatprep.subr.mxu1 %v6544_v15  ;;  %10415 = vst [vmem:[#allocation220_spill] sm:$0xff] %v6570_v52  ;;  %1403 = vmatpush2.msra.mxu0 %v6548_v9  ;;  %v425_v15 = vld [vmem:[#allocation2 + $0x20] sm:$0xff]  ;;  %v463_v9 = vld [vmem:[%s5678_s20 + $0x118] sm:$0xff]  ;;  %v6590_v22 = vunpack.c.h.bf16 %v529_v7  ;;  %v6594_v46 = vunpack.c.l.bf16 %v529_v7 }
  0x93   : > { %1480 = vmatpush2.msra.mxu1 %v6550_v23  ;;  %1404 = vmatprep.subr.mxu0 %v6556_v17  ;;  %v527_v23 = vld [vmem:[%s5678_s20 + $0x318] sm:$0xff]  ;;  %v424_v17 = vld [vmem:[#allocation2 + $0x8] sm:$0xff]  ;;  %10418 = vst [vmem:[#allocation223_spill] sm:$0xff] %v6588_v29  ;;  %10420 = vst [vmem:[#allocation225_spill] sm:$0xff] %v6592_v47  ;;  %v6604_v10 = vunpack.c.l.bf16 %v463_v9 }
  0x94   : > { %1481 = vmatprep.subr.mxu1 %v6558_v35  ;;  %1405 = vmatpush2.msra.mxu0 %v6562_v53  ;;  %v426_v35 = vld [vmem:[#allocation2 + $0x28] sm:$0xff]  ;;  %10419 = vst [vmem:[#allocation224_spill] sm:$0xff] %v6590_v22  ;;  %10421 = vst [vmem:[#allocation226_spill] sm:$0xff] %v6594_v46  ;;  %v6606_v5 = vunpack.c.l.bf16 %v527_v23 }
  0x95   : > { %1482 = vmatpush2.msra.mxu1 %v6564_v58  ;;  %1406 = vmatprep.subr.mxu0 %v6568_v59  ;;  %v461_v53 = vld [vmem:[%s5678_s20 + $0x108] sm:$0xff]  ;;  %v6600_v59 = vunpack.c.h.bf16 %v463_v9  ;;  %10424 = vst [vmem:[#allocation229_spill] sm:$0xff] %v6604_v10 }
  0x96   : > { %1483 = vmatprep.subr.mxu1 %v6570_v52  ;;  %1266 = vmatprep.mubr.f32.mxu0 %v425_v15  ;;  %v525_v58 = vld [vmem:[%s5678_s20 + $0x308] sm:$0xff]  ;;  %v6602_v52 = vunpack.c.h.bf16 %v527_v23  ;;  %10425 = vst [vmem:[#allocation230_spill] sm:$0xff] %v6606_v5  ;;  %v6610_v1 = vunpack.c.h.bf16 %v461_v53  ;;  %v5604_v23 = vmov 1966171168  }
  0x97   : > { %1343 = vmatprep.mubr.f32.mxu1 %v427_v16  ;;  %1407 = vmatpush2.msra.mxu0 %v6578_v28  ;;  %10422 = vst [vmem:[#allocation227_spill] sm:$0xff] %v6600_v59  ;;  %v6612_v7 = vunpack.c.h.bf16 %v525_v58  ;;  %v6620_v9 = vunpack.c.l.bf16 %v525_v58  ;;  %v1510_v58 = vlaneseq }
  0x98   : > { %1484 = vmatpush2.msra.mxu1 %v6580_v6  ;;  %10423 = vst [vmem:[#allocation228_spill] sm:$0xff] %v6602_v52  ;;  %1267 = vmatmul.mubr.f32.gmra.mxu0 %v424_v17  ;;  %10426 = vst [vmem:[#allocation231_spill] sm:$0xff] %v6610_v1  ;;  %v6616_v6 = vunpack.c.l.bf16 %v461_v53  ;;  %v1508_v53 = vunpack.c.l.s4 %v5604_v23 }
  0x99   : > { %1344 = vmatmul.mubr.f32.gmra.mxu1 %v426_v35  ;;  %1408 = vmatprep.subr.mxu0 %v6588_v29  ;;  %10427 = vst [vmem:[#allocation232_spill] sm:$0xff] %v6612_v7  ;;  %10429 = vst [vmem:[#allocation234_spill] sm:$0xff] %v6620_v9 }
  0x9a   : > { %1485 = vmatprep.subr.mxu1 %v6590_v22  ;;  %1409 = vmatpush2.msra.mxu0 %v6592_v47  ;;  %10428 = vst [vmem:[#allocation233_spill] sm:$0xff] %v6616_v6 }
  0x9b   : > { %1486 = vmatpush2.msra.mxu1 %v6594_v46  ;;  %1410 = vmatprep.subr.mxu0 %v6600_v59 }
  0x9c   : > { %1487 = vmatprep.subr.mxu1 %v6602_v52  ;;  %1411 = vmatpush2.msra.mxu0 %v6604_v10 }
  0x9d   : > { %1488 = vmatpush2.msra.mxu1 %v6606_v5  ;;  %1412 = vmatprep.subr.mxu0 %v6610_v1  ;;  %v6632_v1 = vshrl.u32 %v1510_v58, 7 }
  0x9e   : > { %1489 = vmatprep.subr.mxu1 %v6612_v7  ;;  %1413 = vmatpush2.msra.mxu0 %v6616_v6  ;;  %v1509_v7 = vunpack.c.0.s8 %v1508_v53 }
  0x9f   : > { %1414 = vmatprep.mubr.f32.mxu0 %v6162_v0  ;;  %1490 = vmatpush2.msra.mxu1 %v6620_v9  ;;  %10430 = vst [vmem:[#allocation235_spill] sm:$0xff] %v6632_v1 }
  0xa0   : > { %1491 = vmatprep.mubr.f32.mxu1 %v6168_v34  ;;  %1415 = vmatmul.mubr.f32.vlgmr.msra.gmra.mxu0 %v6174_v40  ;;  %v6635_v0 = vsub.s32 %v1509_v7, %v6632_v1 }
  0xa1   : > { %1492 = vmatmul.mubr.f32.vlgmr.msra.gmra.mxu1 %v6176_v41  ;;  %1420 = vmatprep.mubr.f32.mxu0 %v425_v15 }
  0xa2   : > { %1497 = vmatprep.mubr.f32.mxu1 %v427_v16  ;;  %10431 = vst [vmem:[#allocation236_spill] sm:$0xff] %v6635_v0 }
  0xa4   : > { %1421 = vmatmul.mubr.f32.gmra.mxu0 %v424_v17 }
  0xa5   : > { %1498 = vmatmul.mubr.f32.gmra.mxu1 %v426_v35 }
 0x11c   : > { %v1262_v9 = vpop.f32.mrf.mxu0 }
 0x11d   : > { %v1339_v6 = vpop.f32.mrf.mxu1 }
 0x11e   : > { %v1340_v34 = vadd.f32 %v1339_v6, %v1262_v9  ;;  %v1264_v5 = vpop.f32.mrf.mxu0 }
 0x11f   : > { %v1341_v40 = vpop.f32.mrf.mxu1 }
 0x120   : > { %v1506_v10 = vcombine.high %v1340_v34, %v1340_v34  ;;  %v1513_v15 = vrot.slane %v1340_v34, %v6635_v0  ;;  %v1342_v41 = vadd.f32 %v1341_v40, %v1264_v5 }
 0x122   : > { %v1520_v16 = vrot.slane %v1506_v10, %v6635_v0  ;;  %v1521_v17 = vcombine.high %v1513_v15, %v1513_v15  ;;  %v1529_v35 = vrot.slane %v1513_v15, %v6635_v0  ;;  %5195 = vst.sshfl [vmem:[#allocation3] sm:$0x1 pattern:$0x73625140] %v1513_v15  ;;  %v1638_v23 = vcombine.high %v1342_v41, %v1342_v41 }
 0x123   : > { %v1645_v53 = vrot.slane %v1342_v41, %v6635_v0 }
 0x124   : > { %v1522_v7 = vcombine.high %v1520_v16, %v1520_v16  ;;  %v1536_v58 = vrot.slane %v1520_v16, %v6635_v0  ;;  %v1543_v6 = vrot.slane %v1521_v17, %v6635_v0  ;;  %v1551_v9 = vcombine.high %v1529_v35, %v1529_v35  ;;  %5196 = vst.sshfl [vmem:[#allocation3 + $0x4] sm:$0x1 pattern:$0x73625140] %v1521_v17 }
 0x125   : > { %5197 = vst.sshfl [vmem:[#allocation3 + $0x10] sm:$0x1 pattern:$0x73625140] %v1520_v16  ;;  %v1652_v34 = vrot.slane %v1638_v23, %v6635_v0  ;;  %v1653_v5 = vcombine.high %v1645_v53, %v1645_v53  ;;  %v1661_v10 = vrot.slane %v1645_v53, %v6635_v0 }
 0x126   : > { %5203 = vst.sshfl [vmem:[#allocation3 + $0x1] sm:$0x1 pattern:$0x73625140] %v1645_v53  ;;  %v1550_v40 = vrot.slane %v1522_v7, %v6635_v0  ;;  %v1552_v15 = vcombine.high %v1536_v58, %v1536_v58  ;;  %v1553_v52 = vcombine.high %v1543_v6, %v1543_v6  ;;  %1622 = vst [vmem:[#allocation3 + $0x8] sm:$0x1] %v1551_v9 }
 0x127   : > { %5198 = vst.sshfl [vmem:[#allocation3 + $0x14] sm:$0x1 pattern:$0x73625140] %v1522_v7  ;;  %v1654_v41 = vcombine.high %v1652_v34, %v1652_v34  ;;  %v1668_v59 = vrot.slane %v1652_v34, %v6635_v0  ;;  %v1675_v46 = vrot.slane %v1653_v5, %v6635_v0  ;;  %v1683_v35 = vcombine.high %v1661_v10, %v1661_v10 }
 0x128   : > { %5204 = vst.sshfl [vmem:[#allocation3 + $0x5] sm:$0x1 pattern:$0x73625140] %v1653_v5  ;;  %v1554_v16 = vcombine.high %v1550_v40, %v1550_v40  ;;  %1623 = vst [vmem:[#allocation3 + $0xc] sm:$0x1] %v1553_v52 }
 0x129   : > { %5205 = vst.sshfl [vmem:[#allocation3 + $0x11] sm:$0x1 pattern:$0x73625140] %v1652_v34  ;;  %1626 = vst [vmem:[#allocation3 + $0x18] sm:$0x1] %v1552_v15  ;;  %v1682_v17 = vrot.slane %v1654_v41, %v6635_v0  ;;  %v1684_v23 = vcombine.high %v1668_v59, %v1668_v59  ;;  %v1685_v53 = vcombine.high %v1675_v46, %v1675_v46 }
 0x12a   : > { %1754 = vst [vmem:[#allocation3 + $0x9] sm:$0x1] %v1683_v35  ;;  %5206 = vst.sshfl [vmem:[#allocation3 + $0x15] sm:$0x1 pattern:$0x73625140] %v1654_v41 }
 0x12b   : > { %1627 = vst [vmem:[#allocation3 + $0x1c] sm:$0x1] %v1554_v16  ;;  %v1686_v58 = vcombine.high %v1682_v17, %v1682_v17  ;;  %1755 = vst [vmem:[#allocation3 + $0xd] sm:$0x1] %v1685_v53 }
 0x12c   : > { %1758 = vst [vmem:[#allocation3 + $0x19] sm:$0x1] %v1684_v23 }
 0x12d   : > { %1759 = vst [vmem:[#allocation3 + $0x1d] sm:$0x1] %v1686_v58 }
 0x158   : > { %v1268_v7 = vpop.f32.mrf.mxu0 }
 0x159   : > { %v1345_v6 = vpop.f32.mrf.mxu1 }
 0x15a   : > { %v1346_v9 = vadd.f32 %v1345_v6, %v1268_v7  ;;  %v1270_v10 = vpop.f32.mrf.mxu0 }
 0x15b   : > { %v1347_v5 = vpop.f32.mrf.mxu1 }
 0x15c   : > { %v1555_v34 = vcombine.high %v1346_v9, %v1346_v9  ;;  %v1562_v52 = vrot.slane %v1346_v9, %v6635_v0  ;;  %v1348_v40 = vadd.f32 %v1347_v5, %v1270_v10 }
 0x15e   : > { %v1569_v15 = vrot.slane %v1555_v34, %v6635_v0  ;;  %v1570_v59 = vcombine.high %v1562_v52, %v1562_v52  ;;  %v1578_v46 = vrot.slane %v1562_v52, %v6635_v0  ;;  %5199 = vst.sshfl [vmem:[#allocation3 + $0x20] sm:$0x1 pattern:$0x73625140] %v1562_v52  ;;  %v1687_v41 = vcombine.high %v1348_v40, %v1348_v40 }
 0x15f   : > { %v1694_v35 = vrot.slane %v1348_v40, %v6635_v0 }
 0x160   : > { %v1571_v16 = vcombine.high %v1569_v15, %v1569_v15  ;;  %v1585_v17 = vrot.slane %v1569_v15, %v6635_v0  ;;  %v1592_v23 = vrot.slane %v1570_v59, %v6635_v0  ;;  %v1600_v53 = vcombine.high %v1578_v46, %v1578_v46  ;;  %5200 = vst.sshfl [vmem:[#allocation3 + $0x24] sm:$0x1 pattern:$0x73625140] %v1570_v59  ;;  %v1416_v9 = vpop.f32.mrf.mxu0 }
 0x161   : > { %5201 = vst.sshfl [vmem:[#allocation3 + $0x30] sm:$0x1 pattern:$0x73625140] %v1569_v15  ;;  %v1701_v58 = vrot.slane %v1687_v41, %v6635_v0  ;;  %v1702_v7 = vcombine.high %v1694_v35, %v1694_v35  ;;  %v1710_v6 = vrot.slane %v1694_v35, %v6635_v0  ;;  %v1493_v10 = vpop.f32.mrf.mxu1 }
 0x162   : > { %5207 = vst.sshfl [vmem:[#allocation3 + $0x21] sm:$0x1 pattern:$0x73625140] %v1694_v35  ;;  %v1599_v5 = vrot.slane %v1571_v16, %v6635_v0  ;;  %v1601_v34 = vcombine.high %v1585_v17, %v1585_v17  ;;  %v1602_v52 = vcombine.high %v1592_v23, %v1592_v23  ;;  %1630 = vst [vmem:[#allocation3 + $0x28] sm:$0x1] %v1600_v53  ;;  %v1418_v41 = vpop.f32.mrf.mxu0 }
 0x163   : > { %5202 = vst.sshfl [vmem:[#allocation3 + $0x34] sm:$0x1 pattern:$0x73625140] %v1571_v16  ;;  %v1494_v40 = vadd.f32 %v1493_v10, %v1416_v9  ;;  %v1703_v47 = vcombine.high %v1701_v58, %v1701_v58  ;;  %v1717_v46 = vrot.slane %v1701_v58, %v6635_v0  ;;  %v1724_v15 = vrot.slane %v1702_v7, %v6635_v0  ;;  %v1495_v22 = vpop.f32.mrf.mxu1 }
 0x164   : > { %v1732_v59 = vcombine.high %v1710_v6, %v1710_v6  ;;  %5208 = vst.sshfl [vmem:[#allocation3 + $0x25] sm:$0x1 pattern:$0x73625140] %v1702_v7  ;;  %v1603_v35 = vcombine.high %v1599_v5, %v1599_v5  ;;  %1631 = vst [vmem:[#allocation3 + $0x2c] sm:$0x1] %v1602_v52  ;;  %v1496_v23 = vadd.f32 %v1495_v22, %v1418_v41  ;;  %v1422_v10 = vpop.f32.mrf.mxu0 }
 0x165   : > { %5209 = vst.sshfl [vmem:[#allocation3 + $0x31] sm:$0x1 pattern:$0x73625140] %v1701_v58  ;;  %1634 = vst [vmem:[#allocation3 + $0x38] sm:$0x1] %v1601_v34  ;;  %v1770_v29 = vcombine.high %v1494_v40, %v1494_v40  ;;  %v1777_v17 = vrot.slane %v1494_v40, %v6635_v0  ;;  %v1731_v16 = vrot.slane %v1703_v47, %v6635_v0  ;;  %v1499_v28 = vpop.f32.mrf.mxu1 }
 0x166   : > { %v1733_v53 = vcombine.high %v1717_v46, %v1717_v46  ;;  %v1734_v9 = vcombine.high %v1724_v15, %v1724_v15  ;;  %1762 = vst [vmem:[#allocation3 + $0x29] sm:$0x1] %v1732_v59  ;;  %5210 = vst.sshfl [vmem:[#allocation3 + $0x35] sm:$0x1 pattern:$0x73625140] %v1703_v47  ;;  %v1902_v5 = vcombine.high %v1496_v23, %v1496_v23 }
 0x167   : > { %1635 = vst [vmem:[#allocation3 + $0x3c] sm:$0x1] %v1603_v35  ;;  %v1784_v58 = vrot.slane %v1770_v29, %v6635_v0  ;;  %v1785_v7 = vcombine.high %v1777_v17, %v1777_v17  ;;  %v1793_v6 = vrot.slane %v1777_v17, %v6635_v0  ;;  %5211 = vst.sshfl [vmem:[#allocation3 + $0x2] sm:$0x1 pattern:$0x73625140] %v1777_v17 }
 0x168   : > { %v1735_v34 = vcombine.high %v1731_v16, %v1731_v16  ;;  %1763 = vst [vmem:[#allocation3 + $0x2d] sm:$0x1] %v1734_v9  ;;  %1766 = vst [vmem:[#allocation3 + $0x39] sm:$0x1] %v1733_v53  ;;  %v1909_v22 = vrot.slane %v1496_v23, %v6635_v0  ;;  %v1500_v52 = vadd.f32 %v1499_v28, %v1422_v10  ;;  %v1424_v53 = vpop.f32.mrf.mxu0  ;;  %v1501_v9 = vpop.f32.mrf.mxu1 }
 0x169   : > { %v1786_v40 = vcombine.high %v1784_v58, %v1784_v58  ;;  %v1800_v46 = vrot.slane %v1784_v58, %v6635_v0  ;;  %v1807_v47 = vrot.slane %v1785_v7, %v6635_v0  ;;  %v1815_v15 = vcombine.high %v1793_v6, %v1793_v6  ;;  %5212 = vst.sshfl [vmem:[#allocation3 + $0x6] sm:$0x1 pattern:$0x73625140] %v1785_v7 }
 0x16a   : > { %5213 = vst.sshfl [vmem:[#allocation3 + $0x12] sm:$0x1 pattern:$0x73625140] %v1784_v58  ;;  %1767 = vst [vmem:[#allocation3 + $0x3d] sm:$0x1] %v1735_v34  ;;  %v1916_v29 = vrot.slane %v1902_v5, %v6635_v0  ;;  %v1917_v59 = vcombine.high %v1909_v22, %v1909_v22  ;;  %v1925_v41 = vrot.slane %v1909_v22, %v6635_v0 }
 0x16b   : > { %5219 = vst.sshfl [vmem:[#allocation3 + $0x3] sm:$0x1 pattern:$0x73625140] %v1909_v22  ;;  %v1819_v35 = vcombine.high %v1500_v52, %v1500_v52  ;;  %v1814_v17 = vrot.slane %v1786_v40, %v6635_v0  ;;  %v1816_v23 = vcombine.high %v1800_v46, %v1800_v46  ;;  %v1817_v28 = vcombine.high %v1807_v47, %v1807_v47 }
 0x16c   : > { %1886 = vst [vmem:[#allocation3 + $0xa] sm:$0x1] %v1815_v15  ;;  %5214 = vst.sshfl [vmem:[#allocation3 + $0x16] sm:$0x1 pattern:$0x73625140] %v1786_v40  ;;  %v1826_v16 = vrot.slane %v1500_v52, %v6635_v0  ;;  %v1918_v10 = vcombine.high %v1916_v29, %v1916_v29  ;;  %v1932_v58 = vrot.slane %v1916_v29, %v6635_v0 }
 0x16d   : > { %v1939_v7 = vrot.slane %v1917_v59, %v6635_v0  ;;  %v1947_v6 = vcombine.high %v1925_v41, %v1925_v41  ;;  %5220 = vst.sshfl [vmem:[#allocation3 + $0x7] sm:$0x1 pattern:$0x73625140] %v1917_v59  ;;  %v1818_v5 = vcombine.high %v1814_v17, %v1814_v17  ;;  %1887 = vst [vmem:[#allocation3 + $0xe] sm:$0x1] %v1817_v28 }
 0x16e   : > { %5221 = vst.sshfl [vmem:[#allocation3 + $0x13] sm:$0x1 pattern:$0x73625140] %v1916_v29  ;;  %1890 = vst [vmem:[#allocation3 + $0x1a] sm:$0x1] %v1816_v23  ;;  %v1833_v34 = vrot.slane %v1819_v35, %v6635_v0  ;;  %v1834_v22 = vcombine.high %v1826_v16, %v1826_v16  ;;  %v1842_v40 = vrot.slane %v1826_v16, %v6635_v0 }
 0x16f   : > { %5215 = vst.sshfl [vmem:[#allocation3 + $0x22] sm:$0x1 pattern:$0x73625140] %v1826_v16  ;;  %v1946_v52 = vrot.slane %v1918_v10, %v6635_v0  ;;  %v1948_v46 = vcombine.high %v1932_v58, %v1932_v58  ;;  %v1949_v47 = vcombine.high %v1939_v7, %v1939_v7  ;;  %2018 = vst [vmem:[#allocation3 + $0xb] sm:$0x1] %v1947_v6 }
 0x170   : > { %5222 = vst.sshfl [vmem:[#allocation3 + $0x17] sm:$0x1 pattern:$0x73625140] %v1918_v10  ;;  %v1502_v15 = vadd.f32 %v1501_v9, %v1424_v53  ;;  %1891 = vst [vmem:[#allocation3 + $0x1e] sm:$0x1] %v1818_v5  ;;  %v1835_v41 = vcombine.high %v1833_v34, %v1833_v34  ;;  %v1849_v29 = vrot.slane %v1833_v34, %v6635_v0 }
 0x171   : > { %v1856_v59 = vrot.slane %v1834_v22, %v6635_v0  ;;  %v1864_v17 = vcombine.high %v1842_v40, %v1842_v40  ;;  %5216 = vst.sshfl [vmem:[#allocation3 + $0x26] sm:$0x1 pattern:$0x73625140] %v1834_v22  ;;  %v1950_v35 = vcombine.high %v1946_v52, %v1946_v52  ;;  %2019 = vst [vmem:[#allocation3 + $0xf] sm:$0x1] %v1949_v47 }
 0x172   : > { %5217 = vst.sshfl [vmem:[#allocation3 + $0x32] sm:$0x1 pattern:$0x73625140] %v1833_v34  ;;  %2022 = vst [vmem:[#allocation3 + $0x1b] sm:$0x1] %v1948_v46  ;;  %v1951_v23 = vcombine.high %v1502_v15, %v1502_v15  ;;  %v1958_v28 = vrot.slane %v1502_v15, %v6635_v0  ;;  %v1863_v16 = vrot.slane %v1835_v41, %v6635_v0 }
 0x173   : > { %v1865_v58 = vcombine.high %v1849_v29, %v1849_v29  ;;  %v1866_v10 = vcombine.high %v1856_v59, %v1856_v59  ;;  %1894 = vst [vmem:[#allocation3 + $0x2a] sm:$0x1] %v1864_v17  ;;  %5218 = vst.sshfl [vmem:[#allocation3 + $0x36] sm:$0x1 pattern:$0x73625140] %v1835_v41 }
 0x174   : > { %2023 = vst [vmem:[#allocation3 + $0x1f] sm:$0x1] %v1950_v35  ;;  %v1965_v53 = vrot.slane %v1951_v23, %v6635_v0  ;;  %v1966_v9 = vcombine.high %v1958_v28, %v1958_v28  ;;  %v1974_v7 = vrot.slane %v1958_v28, %v6635_v0  ;;  %5223 = vst.sshfl [vmem:[#allocation3 + $0x23] sm:$0x1 pattern:$0x73625140] %v1958_v28 }
 0x175   : > { %v1867_v6 = vcombine.high %v1863_v16, %v1863_v16  ;;  %1895 = vst [vmem:[#allocation3 + $0x2e] sm:$0x1] %v1866_v10  ;;  %1898 = vst [vmem:[#allocation3 + $0x3a] sm:$0x1] %v1865_v58  ;;  %v5476_v5 = vld [vmem:[#allocation3] sm:$0xff]  }
 0x176   : > { %v1967_v34 = vcombine.high %v1965_v53, %v1965_v53  ;;  %v1981_v22 = vrot.slane %v1965_v53, %v6635_v0  ;;  %v1988_v40 = vrot.slane %v1966_v9, %v6635_v0  ;;  %v1996_v52 = vcombine.high %v1974_v7, %v1974_v7  ;;  %5224 = vst.sshfl [vmem:[#allocation3 + $0x27] sm:$0x1 pattern:$0x73625140] %v1966_v9  ;;  %v2048_v58 = vld [vmem:[%s9422_s2] sm:$0xff] }
 0x177   : > { %5225 = vst.sshfl [vmem:[#allocation3 + $0x33] sm:$0x1 pattern:$0x73625140] %v1965_v53  ;;  %1899 = vst [vmem:[#allocation3 + $0x3e] sm:$0x1] %v1867_v6  ;;  %5362 = vmatprep.mubr.f32.mxu0 %v5476_v5 }
 0x178   : > { %v1995_v46 = vrot.slane %v1967_v34, %v6635_v0  ;;  %v1997_v47 = vcombine.high %v1981_v22, %v1981_v22  ;;  %v1998_v15 = vcombine.high %v1988_v40, %v1988_v40  ;;  %2026 = vst [vmem:[#allocation3 + $0x2b] sm:$0x1] %v1996_v52  ;;  %5226 = vst.sshfl [vmem:[#allocation3 + $0x37] sm:$0x1 pattern:$0x73625140] %v1967_v34 }
 0x179   : > { %v5482_v28 = vld [vmem:[#allocation3 + $0x10] sm:$0xff]   ;;  %v5483_v16 = vld [vmem:[#allocation3 + $0x8] sm:$0xff]   ;;  %vm2201_vm0 = vcmp.eq.f32.partialorder %v2048_v58, 0.0  ;;  %v2051_v40 = vld [vmem:[%s9422_s2 + $0x18] sm:$0xff] }
 0x17a   : > { %v1999_v41 = vcombine.high %v1995_v46, %v1995_v46  ;;  %2027 = vst [vmem:[#allocation3 + $0x2f] sm:$0x1] %v1998_v15  ;;  %2030 = vst [vmem:[#allocation3 + $0x3b] sm:$0x1] %v1997_v47  ;;  %v2049_v53 = vld [vmem:[%s9422_s2 + $0x8] sm:$0xff]  ;;  %vm2204_vm4 = vcmp.eq.f32.partialorder %v2051_v40, 0.0 }
 0x17b   : > { %v5481_v23 = vld [vmem:[#allocation3 + $0x18] sm:$0xff]   ;;  %vm2202_vm1 = vcmp.eq.f32.partialorder %v2049_v53, 0.0 }
 0x17c   : > { %2031 = vst [vmem:[#allocation3 + $0x3f] sm:$0x1] %v1999_v41 }
 0x17d   : > { %v5480_v35 = vld [vmem:[#allocation3 + $0x20] sm:$0xff]  }
 0x17f   : > { %v5478_v59 = vld [vmem:[#allocation3 + $0x30] sm:$0xff]  }
 0x181   : > { %v5479_v17 = vld [vmem:[#allocation3 + $0x28] sm:$0xff]  }
 0x183   : > { %v5477_v29 = vld [vmem:[#allocation3 + $0x38] sm:$0xff]  }
 0x184   : > { %5346 = vmatprep.subr.mxu0 %v5477_v29  ;;  %5374 = vmatprep.subr.mxu1 %v5477_v29 }
 0x185   : > { %5347 = vmatpush3.xpose.msra.mxu0 %v5477_v29  ;;  %5375 = vmatpush3.msra.mxu1 %v5477_v29 }
 0x186   : > { %5348 = vmatprep.subr.mxu0 %v5478_v59  ;;  %5376 = vmatprep.subr.mxu1 %v5478_v59 }
 0x187   : > { %5377 = vmatpush3.msra.mxu1 %v5478_v59 }
 0x188   : > { %5378 = vmatprep.subr.mxu1 %v5479_v17 }
 0x189   : > { %5349 = vmatpush3.xpose.msra.mxu0 %v5478_v59  ;;  %5379 = vmatpush3.msra.mxu1 %v5479_v17 }
 0x18a   : > { %5350 = vmatprep.subr.mxu0 %v5479_v17  ;;  %5380 = vmatprep.subr.mxu1 %v5480_v35 }
 0x18b   : > { %5381 = vmatpush3.msra.mxu1 %v5480_v35 }
 0x18c   : > { %5382 = vmatprep.subr.mxu1 %v5481_v23 }
 0x18d   : > { %5351 = vmatpush3.xpose.msra.mxu0 %v5479_v17  ;;  %5383 = vmatpush3.msra.mxu1 %v5481_v23 }
 0x18e   : > { %5352 = vmatprep.subr.mxu0 %v5480_v35  ;;  %5384 = vmatprep.subr.mxu1 %v5482_v28 }
 0x18f   : > { %5385 = vmatpush3.msra.mxu1 %v5482_v28 }
 0x190   : > { %5386 = vmatprep.subr.mxu1 %v5483_v16 }
 0x191   : > { %5353 = vmatpush3.xpose.msra.mxu0 %v5480_v35  ;;  %5387 = vmatpush3.msra.mxu1 %v5483_v16 }
 0x192   : > { %5354 = vmatprep.subr.mxu0 %v5481_v23  ;;  %5388 = vmatprep.subr.mxu1 %v5476_v5 }
 0x193   : > { %5389 = vmatpush3.msra.mxu1 %v5476_v5 }
 0x195   : > { %5355 = vmatpush3.xpose.msra.mxu0 %v5481_v23 }
 0x196   : > { %5356 = vmatprep.subr.mxu0 %v5482_v28 }
 0x199   : > { %5357 = vmatpush3.xpose.msra.mxu0 %v5482_v28 }
 0x19a   : > { %5358 = vmatprep.subr.mxu0 %v5483_v16 }
 0x19d   : > { %5359 = vmatpush3.xpose.msra.mxu0 %v5483_v16 }
 0x19e   : > { %5360 = vmatprep.subr.mxu0 %v5476_v5 }
 0x1a1   : > { %5361 = vmatpush3.xpose.msra.mxu0 %v5476_v5  ;;  %v2050_v5 = vld [vmem:[%s9422_s2 + $0x10] sm:$0xff] }
 0x1a2   : > { %vm2203_vm3 = vcmp.eq.f32.partialorder %v2050_v5, 0.0 }
 0x1a4   : > { %5363 = vmatmul.mubr.f32.vlgmr.msra.gmra.mxu0 %v5483_v16 }
 0x1a5   : > { %5365 = vmatprep.mubr.f32.mxu0 %v5482_v28 }
 0x1a8   : > { %5366 = vmatmul.mubr.f32.gmra.mxu0 %v5481_v23 }
 0x1a9   : > { %5368 = vmatprep.mubr.f32.mxu0 %v5480_v35  ;;  %v2053_v35 = vld [vmem:[%s9422_s2 + $0x28] sm:$0xff] }
 0x1aa   : > { %vm2206_vm6 = vcmp.eq.f32.partialorder %v2053_v35, 0.0 }
 0x1ac   : > { %5369 = vmatmul.mubr.f32.gmra.mxu0 %v5479_v17 }
 0x1ad   : > { %5371 = vmatprep.mubr.f32.mxu0 %v5478_v59 }
 0x1b0   : > { %5372 = vmatmul.mubr.f32.gmra.mxu0 %v5477_v29  ;;  %v2052_v29 = vld [vmem:[%s9422_s2 + $0x20] sm:$0xff] }
 0x1b1   : > { %vm2205_vm5 = vcmp.eq.f32.partialorder %v2052_v29, 0.0 }
 0x264   : > { %v5364_v10 = vpop.f32.mrf.mxu0 }
 0x265   : > { %v2194_v7 = vmul.f32 0.088388346, %v5364_v10 }
 0x266   : > { %v2154_v9 = vpop.f32.mrf.mxu0 }
 0x267   : > { %v2193_v6 = vmul.f32 0.088388346, %v2154_v9  ;;  %v2210_v41 = vsel %vm2202_vm1, %v2194_v7, %v2049_v53  ;;  %v2054_v9 = vld [vmem:[%s9422_s2 + $0x30] sm:$0xff] }
 0x268   : > { %v5367_v34 = vpop.f32.mrf.mxu0  ;;  %v2221_v28 = vsel %vm2217_vm2, %v2210_v41, -inf  ;;  %vm2207_vm7 = vcmp.eq.f32.partialorder %v2054_v9, 0.0 }
 0x269   : > { %v2209_v22 = vsel %vm2201_vm0, %v2193_v6, %v2048_v58  ;;  %v2196_v47 = vmul.f32 0.088388346, %v5367_v34 }
 0x26a   : > { %v2164_v52 = vpop.f32.mrf.mxu0  ;;  %v2218_v46 = vsel %vm2217_vm2, %v2209_v22, -inf }
 0x26b   : > { %v2195_v15 = vmul.f32 0.088388346, %v2164_v52  ;;  %2219 = vmax.xlane.f32.xlu0 %v2218_v46  ;;  %v2212_v53 = vsel %vm2204_vm4, %v2196_v47, %v2051_v40 }
 0x26c   : > { %v5370_v59 = vpop.f32.mrf.mxu0  ;;  %v2227_v52 = vsel %vm2217_vm2, %v2212_v53, -inf }
 0x26d   : > { %v2211_v17 = vsel %vm2203_vm3, %v2195_v15, %v2050_v5  ;;  %v2198_v58 = vmul.f32 0.088388346, %v5370_v59  ;;  %v2055_v5 = vld [vmem:[%s9422_s2 + $0x38] sm:$0xff] }
 0x26e   : > { %v2174_v23 = vpop.f32.mrf.mxu0  ;;  %v2224_v16 = vsel %vm2217_vm2, %v2211_v17, -inf  ;;  %vm2208_vm8 = vcmp.eq.f32.partialorder %v2055_v5, 0.0 }
 0x26f   : > { %v2197_v10 = vmul.f32 0.088388346, %v2174_v23  ;;  %2222 = vmax.xlane.f32.xlu0 %v2221_v28  ;;  %2225 = vmax.xlane.f32.xlu1 %v2224_v16  ;;  %v2214_v40 = vsel %vm2206_vm6, %v2198_v58, %v2053_v35 }
 0x270   : > { %v5373_v7 = vpop.f32.mrf.mxu0  ;;  %v2233_v23 = vsel %vm2217_vm2, %v2214_v40, -inf }
 0x271   : > { %v2213_v6 = vsel %vm2205_vm5, %v2197_v10, %v2052_v29  ;;  %v2200_v15 = vmul.f32 0.088388346, %v5373_v7 }
 0x272   : > { %v2184_v34 = vpop.f32.mrf.mxu0  ;;  %v2230_v46 = vsel %vm2217_vm2, %v2213_v6, -inf }
 0x273   : > { %v2199_v59 = vmul.f32 0.088388346, %v2184_v34  ;;  %2228 = vmax.xlane.f32.xlu1 %v2227_v52  ;;  %2231 = vmax.xlane.f32.xlu0 %v2230_v46  ;;  %v2216_v28 = vsel %vm2208_vm8, %v2200_v15, %v2055_v5 }
 0x274   : > { %v2239_v16 = vsel %vm2217_vm2, %v2216_v28, -inf }
 0x275   : > { %v2215_v47 = vsel %vm2207_vm7, %v2199_v59, %v2054_v9 }
 0x276   : > { %v2236_v29 = vsel %vm2217_vm2, %v2215_v47, -inf }
 0x277   : > { %2234 = vmax.xlane.f32.xlu1 %v2233_v23  ;;  %2237 = vmax.xlane.f32.xlu0 %v2236_v29 }
 0x27b   : > { %2240 = vmax.xlane.f32.xlu1 %v2239_v16 }
 0x2f4   : > { %v2220_v10 = vpop.xlane.xlu0 %2219 }
 0x2f5   : > { %v2242_v0 = vsub.f32 %v2209_v22, %v2220_v10 }
 0x2f7   : > { %v2250_v1 = vmul.f32 1.442695, %v2242_v0 }
 0x2f8   : > { %v2223_v7 = vpop.xlane.xlu0 %2222  ;;  %v2226_v34 = vpop.xlane.xlu1 %2225 }
 0x2f9   : > { %5492 = vpow2.f32 %v2250_v1  ;;  %v2243_v52 = vsub.f32 %v2210_v41, %v2223_v7  ;;  %v2244_v35 = vsub.f32 %v2211_v17, %v2226_v34 }
 0x2fb   : > { %v2252_v58 = vmul.f32 1.442695, %v2243_v52  ;;  %v2254_v9 = vmul.f32 1.442695, %v2244_v35 }
 0x2fc   : > { %v2229_v46 = vpop.xlane.xlu1 %2228  ;;  %v2232_v59 = vpop.xlane.xlu0 %2231 }
 0x2fd   : > { %5494 = vpow2.f32 %v2252_v58  ;;  %v2245_v8 = vsub.f32 %v2212_v53, %v2229_v46  ;;  %v2246_v23 = vsub.f32 %v2213_v6, %v2232_v59 }
 0x2fe   : > { %5496 = vpow2.f32 %v2254_v9 }
 0x2ff   : > { %v2256_v5 = vmul.f32 1.442695, %v2245_v8  ;;  %v2258_v15 = vmul.f32 1.442695, %v2246_v23 }
 0x300   : > { %v2235_v29 = vpop.xlane.xlu1 %2234  ;;  %v2238_v16 = vpop.xlane.xlu0 %2237 }
 0x301   : > { %5498 = vpow2.f32 %v2256_v5  ;;  %v2247_v22 = vsub.f32 %v2214_v40, %v2235_v29  ;;  %v2248_v0 = vsub.f32 %v2215_v47, %v2238_v16  ;;  %v6750_v29 = vld [vmem:[%s5683_s23 + $0xf0] sm:$0xff] }
 0x302   : > { %5500 = vpow2.f32 %v2258_v15  ;;  %10432 = vst [vmem:[#allocation237_spill] sm:$0xff] %v6750_v29  ;;  %v9876_v16 = vunpack.c.h.bf16 %v6750_v29 }
 0x303   : > { %v2260_v10 = vmul.f32 1.442695, %v2247_v22  ;;  %v2262_v1 = vmul.f32 1.442695, %v2248_v0  ;;  %v6754_v22 = vld [vmem:[%s5683_s23 + $0x2f0] sm:$0xff]  ;;  %v6757_v0 = vld [vmem:[%s5683_s23 + $0x2e0] sm:$0xff] }
 0x304   : > { %v2241_v41 = vpop.xlane.xlu1 %2240  ;;  %10433 = vst [vmem:[#allocation238_spill] sm:$0xff] %v6754_v22  ;;  %10434 = vst [vmem:[#allocation239_spill] sm:$0xff] %v6757_v0  ;;  %2435 = vmatprep.subr.mxu1 %v9876_v16  ;;  %v6814_v16 = vld [vmem:[%s5683_s23 + $0x270] sm:$0xff] }
 0x305   : > { %5502 = vpow2.f32 %v2260_v10  ;;  %v2249_v17 = vsub.f32 %v2216_v28, %v2241_v41  ;;  %v9870_v10 = vunpack.c.l.bf16 %v6754_v22  ;;  %v6762_v41 = vld [vmem:[%s5683_s23 + $0x2d0] sm:$0xff]  ;;  %10441 = vst [vmem:[#allocation246_spill] sm:$0xff] %v6814_v16 }
 0x306   : > { %v6717_v7 = vpop.eup %5492  ;;  %5504 = vpow2.f32 %v2262_v1  ;;  %v9873_v1 = vunpack.c.h.bf16 %v6754_v22  ;;  %10435 = vst [vmem:[#allocation240_spill] sm:$0xff] %v6762_v41  ;;  %v10775_v22 = vld [vmem:[#allocation40_spill] sm:$0xff] }
 0x307   : > { %v2264_v34 = vmul.f32 1.442695, %v2249_v17  ;;  %v2266_v53 = vsel %vm2217_vm2, %v6717_v7, 0.0  ;;  %v9871_v17 = vunpack.c.l.bf16 %v6757_v0 }
 0x308   : > { %2267 = vadd.xlane.f32.xlu0 %v2266_v53  ;;  %v6769_v53 = vld [vmem:[%s5683_s23 + $0x2c0] sm:$0xff]  ;;  %2512 = vmatprep.subr.mxu0 %v9873_v1 }
 0x309   : > { %5506 = vpow2.f32 %v2264_v34  ;;  %v9869_v34 = vunpack.c.h.bf16 %v6757_v0  ;;  %10436 = vst [vmem:[#allocation241_spill] sm:$0xff] %v6769_v53  ;;  %2513 = vmatpush1.msra.mxu0 %v9870_v10  ;;  %v6796_v10 = vld [vmem:[%s5683_s23 + $0x290] sm:$0xff]  ;;  %v6805_v1 = vld [vmem:[%s5683_s23 + $0x280] sm:$0xff]  ;;  %v7482_v0 = vld [vmem:[%s5683_s23 + $0x68] sm:$0xff] }
 0x30a   : > { %v6721_v8 = vpop.eup %5494  ;;  %10439 = vst [vmem:[#allocation244_spill] sm:$0xff] %v6796_v10  ;;  %10440 = vst [vmem:[#allocation245_spill] sm:$0xff] %v6805_v1 }
 0x30b   : > { %v6723_v6 = vpop.eup %5496  ;;  %v2269_v40 = vsel %vm2217_vm2, %v6721_v8, 0.0  ;;  %2514 = vmatprep.subr.mxu0 %v9869_v34  ;;  %10601 = vst [vmem:[#allocation317_spill] sm:$0xff] %v7482_v0 }
 0x30c   : > { %2270 = vadd.xlane.f32.xlu1 %v2269_v40  ;;  %v2272_v47 = vsel %vm2217_vm2, %v6723_v6, 0.0  ;;  %v9872_v40 = vunpack.c.h.bf16 %v6762_v41  ;;  %2515 = vmatpush1.msra.mxu0 %v9871_v17 }
 0x30d   : > { %2273 = vadd.xlane.f32.xlu0 %v2272_v47  ;;  %v9874_v47 = vunpack.c.l.bf16 %v6762_v41 }
 0x30e   : > { %v6729_v28 = vpop.eup %5498  ;;  %2516 = vmatprep.subr.mxu0 %v9872_v40 }
 0x30f   : > { %v6731_v52 = vpop.eup %5500  ;;  %v2275_v35 = vsel %vm2217_vm2, %v6729_v28, 0.0  ;;  %2517 = vmatpush1.msra.mxu0 %v9874_v47  ;;  %v6823_v47 = vld [vmem:[%s5683_s23 + $0x260] sm:$0xff] }
 0x310   : > { %2276 = vadd.xlane.f32.xlu1 %v2275_v35  ;;  %v2278_v58 = vsel %vm2217_vm2, %v6731_v52, 0.0  ;;  %v6778_v35 = vld [vmem:[%s5683_s23 + $0x2b0] sm:$0xff]  ;;  %10442 = vst [vmem:[#allocation247_spill] sm:$0xff] %v6823_v47 }
 0x311   : > { %2279 = vadd.xlane.f32.xlu0 %v2278_v58  ;;  %10437 = vst [vmem:[#allocation242_spill] sm:$0xff] %v6778_v35  ;;  %v9875_v58 = vunpack.c.h.bf16 %v6769_v53  ;;  %v9879_v34 = vunpack.c.l.bf16 %v6778_v35 }
 0x312   : > { %v6737_v9 = vpop.eup %5502 }
 0x313   : > { %v6739_v46 = vpop.eup %5504  ;;  %v2281_v59 = vsel %vm2217_vm2, %v6737_v9, 0.0  ;;  %2518 = vmatprep.subr.mxu0 %v9875_v58  ;;  %v6841_v58 = vld [vmem:[%s5683_s23 + $0x240] sm:$0xff] }
 0x314   : > { %2282 = vadd.xlane.f32.xlu1 %v2281_v59  ;;  %v2284_v23 = vsel %vm2217_vm2, %v6739_v46, 0.0  ;;  %v9877_v59 = vunpack.c.l.bf16 %v6769_v53  ;;  %10448 = vst [vmem:[#allocation249_spill] sm:$0xff] %v6841_v58  ;;  %v6976_v53 = vld [vmem:[%s5683_s23 + $0x350] sm:$0xff] }
 0x315   : > { %2285 = vadd.xlane.f32.xlu0 %v2284_v23  ;;  %v6787_v23 = vld [vmem:[%s5683_s23 + $0x2a0] sm:$0xff]  ;;  %10493 = vst [vmem:[#allocation264_spill] sm:$0xff] %v6976_v53 }
 0x316   : > { %v6745_v5 = vpop.eup %5506  ;;  %10438 = vst [vmem:[#allocation243_spill] sm:$0xff] %v6787_v23  ;;  %v9882_v17 = vunpack.c.h.bf16 %v6787_v23  ;;  %2519 = vmatpush1.msra.mxu0 %v9877_v59  ;;  %v9883_v40 = vunpack.c.l.bf16 %v6787_v23  ;;  %v6832_v59 = vld [vmem:[%s5683_s23 + $0x250] sm:$0xff]  ;;  %v10447_v23 = vunpack.c.l.bf16 %v6805_v1 }
 0x317   : > { %v2287_v15 = vsel %vm2217_vm2, %v6745_v5, 0.0  ;;  %10445 = vst [vmem:[#allocation248_spill] sm:$0xff] %v6832_v59 }
 0x318   : > { %2288 = vadd.xlane.f32.xlu1 %v2287_v15  ;;  %v9878_v15 = vunpack.c.h.bf16 %v6778_v35  ;;  %v10444_v35 = vunpack.c.l.bf16 %v6796_v10 }
 0x31a   : > { %2520 = vmatprep.subr.mxu0 %v9878_v15  ;;  %v6850_v15 = vld [vmem:[%s5683_s23 + $0x230] sm:$0xff] }
 0x31b   : > { %2521 = vmatpush1.msra.mxu0 %v9879_v34  ;;  %v10443_v34 = vunpack.c.h.bf16 %v6796_v10  ;;  %v10450_v10 = vunpack.c.l.bf16 %v6814_v16  ;;  %10451 = vst [vmem:[#allocation250_spill] sm:$0xff] %v6850_v15 }
 0x31c   : > { %2522 = vmatprep.subr.mxu0 %v9882_v17  ;;  %v6859_v17 = vld [vmem:[%s5683_s23 + $0x220] sm:$0xff] }
 0x31d   : > { %2523 = vmatpush1.msra.mxu0 %v9883_v40  ;;  %v10446_v40 = vunpack.c.h.bf16 %v6805_v1  ;;  %v10453_v1 = vunpack.c.l.bf16 %v6823_v47  ;;  %10454 = vst [vmem:[#allocation251_spill] sm:$0xff] %v6859_v17 }
 0x31e   : > { %2524 = vmatprep.subr.mxu0 %v10443_v34  ;;  %v6868_v34 = vld [vmem:[%s5683_s23 + $0x210] sm:$0xff] }
 0x31f   : > { %2525 = vmatpush1.msra.mxu0 %v10444_v35  ;;  %v10449_v35 = vunpack.c.h.bf16 %v6814_v16  ;;  %v10456_v16 = vunpack.c.l.bf16 %v6832_v59  ;;  %10457 = vst [vmem:[#allocation252_spill] sm:$0xff] %v6868_v34 }
 0x320   : > { %2526 = vmatprep.subr.mxu0 %v10446_v40  ;;  %v6877_v40 = vld [vmem:[%s5683_s23 + $0x200] sm:$0xff] }
 0x321   : > { %2527 = vmatpush1.msra.mxu0 %v10447_v23  ;;  %v10452_v23 = vunpack.c.h.bf16 %v6823_v47  ;;  %v10459_v47 = vunpack.c.l.bf16 %v6841_v58  ;;  %10460 = vst [vmem:[#allocation253_spill] sm:$0xff] %v6877_v40 }
 0x322   : > { %2528 = vmatprep.subr.mxu0 %v10449_v35  ;;  %v6886_v35 = vld [vmem:[%s5683_s23 + $0x3f0] sm:$0xff] }
 0x323   : > { %2529 = vmatpush1.msra.mxu0 %v10450_v10  ;;  %v10455_v10 = vunpack.c.h.bf16 %v6832_v59  ;;  %v10462_v59 = vunpack.c.l.bf16 %v6850_v15  ;;  %10463 = vst [vmem:[#allocation254_spill] sm:$0xff] %v6886_v35 }
 0x324   : > { %2530 = vmatprep.subr.mxu0 %v10452_v23  ;;  %v6895_v23 = vld [vmem:[%s5683_s23 + $0x3e0] sm:$0xff] }
 0x325   : > { %2531 = vmatpush1.msra.mxu0 %v10453_v1  ;;  %v10458_v1 = vunpack.c.h.bf16 %v6841_v58  ;;  %v10465_v58 = vunpack.c.l.bf16 %v6859_v17  ;;  %10466 = vst [vmem:[#allocation255_spill] sm:$0xff] %v6895_v23 }
 0x326   : > { %2532 = vmatprep.subr.mxu0 %v10455_v10  ;;  %v6904_v10 = vld [vmem:[%s5683_s23 + $0x3d0] sm:$0xff] }
 0x327   : > { %2533 = vmatpush1.msra.mxu0 %v10456_v16  ;;  %v10461_v16 = vunpack.c.h.bf16 %v6850_v15  ;;  %v10468_v15 = vunpack.c.l.bf16 %v6868_v34  ;;  %10469 = vst [vmem:[#allocation256_spill] sm:$0xff] %v6904_v10 }
 0x328   : > { %2534 = vmatprep.subr.mxu0 %v10458_v1  ;;  %v6913_v1 = vld [vmem:[%s5683_s23 + $0x3c0] sm:$0xff] }
 0x329   : > { %2535 = vmatpush1.msra.mxu0 %v10459_v47  ;;  %v10464_v47 = vunpack.c.h.bf16 %v6859_v17  ;;  %v10471_v17 = vunpack.c.l.bf16 %v6877_v40  ;;  %10472 = vst [vmem:[#allocation257_spill] sm:$0xff] %v6913_v1 }
 0x32a   : > { %2536 = vmatprep.subr.mxu0 %v10461_v16  ;;  %v6922_v16 = vld [vmem:[%s5683_s23 + $0x3b0] sm:$0xff] }
 0x32b   : > { %2537 = vmatpush1.msra.mxu0 %v10462_v59  ;;  %v10467_v59 = vunpack.c.h.bf16 %v6868_v34  ;;  %v10474_v34 = vunpack.c.l.bf16 %v6886_v35  ;;  %10475 = vst [vmem:[#allocation258_spill] sm:$0xff] %v6922_v16 }
 0x32c   : > { %2538 = vmatprep.subr.mxu0 %v10464_v47  ;;  %v6931_v47 = vld [vmem:[%s5683_s23 + $0x3a0] sm:$0xff] }
 0x32d   : > { %2539 = vmatpush1.msra.mxu0 %v10465_v58  ;;  %v10470_v58 = vunpack.c.h.bf16 %v6877_v40  ;;  %v10477_v40 = vunpack.c.l.bf16 %v6895_v23  ;;  %10478 = vst [vmem:[#allocation259_spill] sm:$0xff] %v6931_v47 }
 0x32e   : > { %2540 = vmatprep.subr.mxu0 %v10467_v59  ;;  %v6940_v59 = vld [vmem:[%s5683_s23 + $0x390] sm:$0xff] }
 0x32f   : > { %2541 = vmatpush1.msra.mxu0 %v10468_v15  ;;  %v10473_v15 = vunpack.c.h.bf16 %v6886_v35  ;;  %v10480_v35 = vunpack.c.l.bf16 %v6904_v10  ;;  %10481 = vst [vmem:[#allocation260_spill] sm:$0xff] %v6940_v59 }
 0x330   : > { %2542 = vmatprep.subr.mxu0 %v10470_v58  ;;  %v6949_v58 = vld [vmem:[%s5683_s23 + $0x380] sm:$0xff] }
 0x331   : > { %2543 = vmatpush1.msra.mxu0 %v10471_v17  ;;  %v10476_v17 = vunpack.c.h.bf16 %v6895_v23  ;;  %v10483_v23 = vunpack.c.l.bf16 %v6913_v1  ;;  %10484 = vst [vmem:[#allocation261_spill] sm:$0xff] %v6949_v58 }
 0x332   : > { %2544 = vmatprep.subr.mxu0 %v10473_v15  ;;  %v6958_v15 = vld [vmem:[%s5683_s23 + $0x370] sm:$0xff] }
 0x333   : > { %2545 = vmatpush2.msra.mxu0 %v10474_v34  ;;  %v10479_v34 = vunpack.c.h.bf16 %v6904_v10  ;;  %v10486_v10 = vunpack.c.l.bf16 %v6922_v16  ;;  %10487 = vst [vmem:[#allocation262_spill] sm:$0xff] %v6958_v15 }
 0x334   : > { %2546 = vmatprep.subr.mxu0 %v10476_v17  ;;  %v6967_v17 = vld [vmem:[%s5683_s23 + $0x360] sm:$0xff] }
 0x335   : > { %2547 = vmatpush2.msra.mxu0 %v10477_v40  ;;  %v10482_v40 = vunpack.c.h.bf16 %v6913_v1  ;;  %v10489_v1 = vunpack.c.l.bf16 %v6931_v47  ;;  %10490 = vst [vmem:[#allocation263_spill] sm:$0xff] %v6967_v17 }
 0x336   : > { %2548 = vmatprep.subr.mxu0 %v10479_v34  ;;  %v9922_v34 = vunpack.c.h.bf16 %v6949_v58 }
 0x337   : > { %2549 = vmatpush2.msra.mxu0 %v10480_v35  ;;  %v10485_v35 = vunpack.c.h.bf16 %v6922_v16  ;;  %v10492_v16 = vunpack.c.l.bf16 %v6940_v59 }
 0x338   : > { %2550 = vmatprep.subr.mxu0 %v10482_v40  ;;  %v9926_v40 = vunpack.c.h.bf16 %v6958_v15 }
 0x339   : > { %2551 = vmatpush2.msra.mxu0 %v10483_v23  ;;  %v10488_v23 = vunpack.c.h.bf16 %v6931_v47  ;;  %v9929_v47 = vunpack.c.l.bf16 %v6967_v17 }
 0x33a   : > { %2552 = vmatprep.subr.mxu0 %v10485_v35  ;;  %v9923_v35 = vunpack.c.l.bf16 %v6949_v58 }
 0x33b   : > { %2553 = vmatpush2.msra.mxu0 %v10486_v10  ;;  %v10491_v10 = vunpack.c.h.bf16 %v6940_v59  ;;  %v9930_v59 = vunpack.c.l.bf16 %v6976_v53 }
 0x33c   : > { %2554 = vmatprep.subr.mxu0 %v10488_v23  ;;  %v9927_v23 = vunpack.c.l.bf16 %v6958_v15  ;;  %v7452_v15 = vld [vmem:[%s5683_s23 + $0x2a8] sm:$0xff] }
 0x33d   : > { %2555 = vmatpush2.msra.mxu0 %v10489_v1  ;;  %v9931_v1 = vunpack.c.h.bf16 %v6967_v17  ;;  %10592 = vst [vmem:[#allocation314_spill] sm:$0xff] %v7452_v15 }
 0x33e   : > { %2556 = vmatprep.subr.mxu0 %v10491_v10  ;;  %v6985_v10 = vld [vmem:[%s5683_s23 + $0x340] sm:$0xff] }
 0x33f   : > { %2557 = vmatpush2.msra.mxu0 %v10492_v16  ;;  %10494 = vst [vmem:[#allocation265_spill] sm:$0xff] %v6985_v10  ;;  %v9928_v16 = vunpack.c.h.bf16 %v6976_v53  ;;  %v9935_v58 = vunpack.c.l.bf16 %v6985_v10 }
 0x340   : > { %2558 = vmatprep.subr.mxu0 %v9922_v34  ;;  %v6994_v34 = vld [vmem:[%s5683_s23 + $0x330] sm:$0xff] }
 0x341   : > { %2559 = vmatpush2.msra.mxu0 %v9923_v35  ;;  %10495 = vst [vmem:[#allocation266_spill] sm:$0xff] %v6994_v34  ;;  %v9932_v35 = vunpack.c.h.bf16 %v6985_v10 }
 0x342   : > { %2560 = vmatprep.subr.mxu0 %v9926_v40  ;;  %v9936_v40 = vunpack.c.h.bf16 %v6994_v34 }
 0x343   : > { %2561 = vmatpush2.msra.mxu0 %v9927_v23  ;;  %v9937_v23 = vunpack.c.l.bf16 %v6994_v34 }
 0x344   : > { %2562 = vmatprep.subr.mxu0 %v9931_v1 }
 0x345   : > { %2563 = vmatpush2.msra.mxu0 %v9929_v47 }
 0x346   : > { %2564 = vmatprep.subr.mxu0 %v9928_v16 }
 0x347   : > { %2565 = vmatpush2.msra.mxu0 %v9930_v59 }
 0x348   : > { %2566 = vmatprep.subr.mxu0 %v9932_v35 }
 0x349   : > { %2567 = vmatpush2.msra.mxu0 %v9935_v58 }
 0x34a   : > { %2568 = vmatprep.subr.mxu0 %v9936_v40 }
 0x34b   : > { %2569 = vmatpush2.msra.mxu0 %v9937_v23 }
 0x391   : > { %v2268_v16 = vpop.xlane.xlu0 %2267 }
 0x392   : > { %5508 = vrcp.f32 %v2268_v16  ;;  %v7018_v16 = vld [vmem:[%s5683_s23 + $0xe0] sm:$0xff] }
 0x393   : > { %10496 = vst [vmem:[#allocation267_spill] sm:$0xff] %v7018_v16  ;;  %v9944_v53 = vunpack.c.h.bf16 %v7018_v16 }
 0x395   : > { %v2271_v47 = vpop.xlane.xlu1 %2270 }
 0x396   : > { %5510 = vrcp.f32 %v2271_v47  ;;  %v2274_v59 = vpop.xlane.xlu0 %2273 }
 0x397   : > { %5512 = vrcp.f32 %v2274_v59  ;;  %v9942_v59 = vunpack.c.l.bf16 %v6750_v29  ;;  %v10776_v29 = vld [vmem:[#allocation43_spill] sm:$0xff] }
 0x399   : > { %v2277_v1 = vpop.xlane.xlu1 %2276 }
 0x39a   : > { %5514 = vrcp.f32 %v2277_v1  ;;  %v2280_v35 = vpop.xlane.xlu0 %2279  ;;  %v7023_v1 = vld [vmem:[%s5683_s23 + $0xd0] sm:$0xff] }
 0x39b   : > { %5516 = vrcp.f32 %v2280_v35  ;;  %10497 = vst [vmem:[#allocation268_spill] sm:$0xff] %v7023_v1 }
 0x39d   : > { %v2283_v10 = vpop.xlane.xlu1 %2282 }
 0x39e   : > { %5518 = vrcp.f32 %v2283_v10  ;;  %v2286_v58 = vpop.xlane.xlu0 %2285 }
 0x39f   : > { %v5509_v40 = vpop.eup %5508  ;;  %5520 = vrcp.f32 %v2286_v58 }
 0x3a0   : > { %v2298_v23 = vmul.f32 %v5509_v40, %v6717_v7  ;;  %v9943_v7 = vunpack.c.l.bf16 %v7018_v16  ;;  %v7030_v40 = vld [vmem:[%s5683_s23 + $0xc0] sm:$0xff] }
 0x3a1   : > { %v2289_v34 = vpop.xlane.xlu1 %2288  ;;  %10498 = vst [vmem:[#allocation269_spill] sm:$0xff] %v7030_v40 }
 0x3a2   : > { %5522 = vrcp.f32 %v2289_v34  ;;  %5390 = vmatprep.mubr.msk.f32.mxu1 %vm2217_vm2, %v2298_v23 }
 0x3a3   : > { %v5511_v47 = vpop.eup %5510 }
 0x3a4   : > { %v5513_v35 = vpop.eup %5512  ;;  %v2299_v10 = vmul.f32 %v5511_v47, %v6721_v8  ;;  %v7039_v47 = vld [vmem:[%s5683_s23 + $0xb0] sm:$0xff]  ;;  %v10501_v8 = vunpack.c.h.bf16 %v7023_v1 }
 0x3a5   : > { %v2300_v58 = vmul.f32 %v5513_v35, %v6723_v6  ;;  %10499 = vst [vmem:[#allocation270_spill] sm:$0xff] %v7039_v47 }
 0x3a6   : > { %5391 = vmatmul.mubr.msk.f32.vlgmr.msra.gmra.mxu1 %vm2217_vm2, %v2299_v10  ;;  %v9945_v10 = vunpack.c.h.bf16 %v7030_v40 }
 0x3a7   : > { %v5515_v23 = vpop.eup %5514  ;;  %5393 = vmatprep.mubr.msk.f32.mxu1 %vm2217_vm2, %v2300_v58  ;;  %2436 = vmatpush1.msra.mxu1 %v9942_v59  ;;  %v7050_v59 = vld [vmem:[%s5683_s23 + $0xa0] sm:$0xff] }
 0x3a8   : > { %v5517_v6 = vpop.eup %5516  ;;  %v2301_v35 = vmul.f32 %v5515_v23, %v6729_v28  ;;  %2437 = vmatprep.subr.mxu1 %v9944_v53  ;;  %10500 = vst [vmem:[#allocation271_spill] sm:$0xff] %v7050_v59  ;;  %v9946_v28 = vunpack.c.h.bf16 %v7039_v47 }
 0x3a9   : > { %v2302_v34 = vmul.f32 %v5517_v6, %v6731_v52  ;;  %2438 = vmatpush1.msra.mxu1 %v9943_v7  ;;  %v10502_v52 = vunpack.c.l.bf16 %v7023_v1  ;;  %v7061_v7 = vld [vmem:[%s5683_s23 + $0x90] sm:$0xff]  ;;  %v7072_v6 = vld [vmem:[%s5683_s23 + $0x80] sm:$0xff]  ;;  %v7379_v1 = vld [vmem:[%s5683_s23 + $0xb8] sm:$0xff] }
 0x3aa   : > { %5394 = vmatmul.mubr.msk.f32.gmra.mxu1 %vm2217_vm2, %v2301_v35  ;;  %2439 = vmatprep.subr.mxu1 %v10501_v8  ;;  %10503 = vst [vmem:[#allocation272_spill] sm:$0xff] %v7061_v7  ;;  %v9951_v8 = vunpack.c.h.bf16 %v7050_v59  ;;  %10505 = vst [vmem:[#allocation273_spill] sm:$0xff] %v7072_v6 }
 0x3ab   : > { %v5519_v23 = vpop.eup %5518  ;;  %5396 = vmatprep.mubr.msk.f32.mxu1 %vm2217_vm2, %v2302_v34  ;;  %2440 = vmatpush1.msra.mxu1 %v10502_v52  ;;  %v10504_v34 = vunpack.c.l.bf16 %v7030_v40  ;;  %v9947_v52 = vunpack.c.l.bf16 %v7050_v59  ;;  %v7368_v59 = vld [vmem:[%s5683_s23 + $0x2e8] sm:$0xff]  ;;  %10572 = vst [vmem:[#allocation307_spill] sm:$0xff] %v7379_v1 }
 0x3ac   : > { %v5521_v53 = vpop.eup %5520  ;;  %v2303_v58 = vmul.f32 %v5519_v23, %v6737_v9  ;;  %2441 = vmatprep.subr.mxu1 %v9945_v10  ;;  %v9948_v9 = vunpack.c.h.bf16 %v7061_v7  ;;  %10571 = vst [vmem:[#allocation306_spill] sm:$0xff] %v7368_v59 }
 0x3ad   : > { %v2304_v35 = vmul.f32 %v5521_v53, %v6739_v46  ;;  %2442 = vmatpush1.msra.mxu1 %v10504_v34  ;;  %v10506_v46 = vunpack.c.l.bf16 %v7039_v47  ;;  %v9949_v53 = vunpack.c.l.bf16 %v7061_v7  ;;  %v7083_v34 = vld [vmem:[%s5683_s23 + $0x70] sm:$0xff] }
 0x3ae   : > { %5397 = vmatmul.mubr.msk.f32.gmra.mxu1 %vm2217_vm2, %v2303_v58  ;;  %2443 = vmatprep.subr.mxu1 %v9946_v28  ;;  %10507 = vst [vmem:[#allocation274_spill] sm:$0xff] %v7083_v34  ;;  %v9950_v58 = vunpack.c.h.bf16 %v7072_v6  ;;  %v7093_v28 = vld [vmem:[%s5683_s23 + $0x60] sm:$0xff] }
 0x3af   : > { %v5523_v23 = vpop.eup %5522  ;;  %5399 = vmatprep.mubr.msk.f32.mxu1 %vm2217_vm2, %v2304_v35  ;;  %2444 = vmatpush1.msra.mxu1 %v10506_v46  ;;  %v9952_v35 = vunpack.c.l.bf16 %v7072_v6  ;;  %10508 = vst [vmem:[#allocation275_spill] sm:$0xff] %v7093_v28  ;;  %v7103_v46 = vld [vmem:[%s5683_s23 + $0x50] sm:$0xff] }
 0x3b0   : > { %v2305_v10 = vmul.f32 %v5523_v23, %v6745_v5  ;;  %2445 = vmatprep.subr.mxu1 %v9951_v8  ;;  %v9953_v5 = vunpack.c.h.bf16 %v7083_v34  ;;  %v9954_v23 = vunpack.c.l.bf16 %v7083_v34  ;;  %10509 = vst [vmem:[#allocation276_spill] sm:$0xff] %v7103_v46  ;;  %v7121_v8 = vld [vmem:[%s5683_s23 + $0x30] sm:$0xff]  ;;  %v10514_v34 = vunpack.c.l.bf16 %v7103_v46 }
 0x3b1   : > { %2446 = vmatpush1.msra.mxu1 %v9947_v52  ;;  %v9957_v52 = vunpack.c.h.bf16 %v7093_v28  ;;  %10511 = vst [vmem:[#allocation278_spill] sm:$0xff] %v7121_v8  ;;  %v7265_v6 = vld [vmem:[%s5683_s23 + $0x130] sm:$0xff] }
 0x3b2   : > { %5400 = vmatmul.mubr.msk.f32.gmra.mxu1 %vm2217_vm2, %v2305_v10  ;;  %2447 = vmatprep.subr.mxu1 %v9948_v9  ;;  %v9958_v10 = vunpack.c.l.bf16 %v7093_v28  ;;  %v7112_v9 = vld [vmem:[%s5683_s23 + $0x40] sm:$0xff]  ;;  %10557 = vst [vmem:[#allocation294_spill] sm:$0xff] %v7265_v6 }
 0x3b3   : > { %2448 = vmatpush1.msra.mxu1 %v9949_v53  ;;  %10510 = vst [vmem:[#allocation277_spill] sm:$0xff] %v7112_v9  ;;  %v7130_v53 = vld [vmem:[%s5683_s23 + $0x20] sm:$0xff]  ;;  %v10517_v28 = vunpack.c.l.bf16 %v7112_v9 }
 0x3b4   : > { %2449 = vmatprep.subr.mxu1 %v9950_v58  ;;  %10512 = vst [vmem:[#allocation279_spill] sm:$0xff] %v7130_v53  ;;  %v7148_v58 = vld [vmem:[%s5683_s23] sm:$0xff] }
 0x3b5   : > { %2450 = vmatpush1.msra.mxu1 %v9952_v35  ;;  %v7139_v35 = vld [vmem:[%s5683_s23 + $0x10] sm:$0xff]  ;;  %10518 = vst [vmem:[#allocation281_spill] sm:$0xff] %v7148_v58 }
 0x3b6   : > { %2451 = vmatprep.subr.mxu1 %v9953_v5  ;;  %10515 = vst [vmem:[#allocation280_spill] sm:$0xff] %v7139_v35  ;;  %v7157_v5 = vld [vmem:[%s5683_s23 + $0x1f0] sm:$0xff] }
 0x3b7   : > { %2452 = vmatpush1.msra.mxu1 %v9954_v23  ;;  %v10513_v23 = vunpack.c.h.bf16 %v7103_v46  ;;  %v10520_v46 = vunpack.c.l.bf16 %v7121_v8  ;;  %10521 = vst [vmem:[#allocation282_spill] sm:$0xff] %v7157_v5 }
 0x3b8   : > { %2453 = vmatprep.subr.mxu1 %v9957_v52  ;;  %v7166_v52 = vld [vmem:[%s5683_s23 + $0x1e0] sm:$0xff] }
 0x3b9   : > { %2454 = vmatpush1.msra.mxu1 %v9958_v10  ;;  %v10516_v10 = vunpack.c.h.bf16 %v7112_v9  ;;  %v10523_v9 = vunpack.c.l.bf16 %v7130_v53  ;;  %10524 = vst [vmem:[#allocation283_spill] sm:$0xff] %v7166_v52 }
 0x3ba   : > { %2455 = vmatprep.subr.mxu1 %v10513_v23  ;;  %v7175_v23 = vld [vmem:[%s5683_s23 + $0x1d0] sm:$0xff] }
 0x3bb   : > { %2456 = vmatpush1.msra.mxu1 %v10514_v34  ;;  %v10519_v34 = vunpack.c.h.bf16 %v7121_v8  ;;  %v10526_v8 = vunpack.c.l.bf16 %v7139_v35  ;;  %10527 = vst [vmem:[#allocation284_spill] sm:$0xff] %v7175_v23 }
 0x3bc   : > { %2457 = vmatprep.subr.mxu1 %v10516_v10  ;;  %v7184_v10 = vld [vmem:[%s5683_s23 + $0x1c0] sm:$0xff] }
 0x3bd   : > { %2458 = vmatpush1.msra.mxu1 %v10517_v28  ;;  %v10522_v28 = vunpack.c.h.bf16 %v7130_v53  ;;  %v10529_v53 = vunpack.c.l.bf16 %v7148_v58  ;;  %10530 = vst [vmem:[#allocation285_spill] sm:$0xff] %v7184_v10 }
 0x3be   : > { %2459 = vmatprep.subr.mxu1 %v10519_v34  ;;  %v7193_v34 = vld [vmem:[%s5683_s23 + $0x1b0] sm:$0xff] }
 0x3bf   : > { %2460 = vmatpush1.msra.mxu1 %v10520_v46  ;;  %v10525_v46 = vunpack.c.h.bf16 %v7139_v35  ;;  %v10532_v35 = vunpack.c.l.bf16 %v7157_v5  ;;  %10533 = vst [vmem:[#allocation286_spill] sm:$0xff] %v7193_v34 }
 0x3c0   : > { %2461 = vmatprep.subr.mxu1 %v10522_v28  ;;  %v7202_v28 = vld [vmem:[%s5683_s23 + $0x1a0] sm:$0xff] }
 0x3c1   : > { %2462 = vmatpush1.msra.mxu1 %v10523_v9  ;;  %v10528_v9 = vunpack.c.h.bf16 %v7148_v58  ;;  %v10535_v58 = vunpack.c.l.bf16 %v7166_v52  ;;  %10536 = vst [vmem:[#allocation287_spill] sm:$0xff] %v7202_v28 }
 0x3c2   : > { %2463 = vmatprep.subr.mxu1 %v10525_v46  ;;  %v7211_v46 = vld [vmem:[%s5683_s23 + $0x190] sm:$0xff] }
 0x3c3   : > { %2464 = vmatpush1.msra.mxu1 %v10526_v8  ;;  %v10531_v8 = vunpack.c.h.bf16 %v7157_v5  ;;  %v10538_v5 = vunpack.c.l.bf16 %v7175_v23  ;;  %10539 = vst [vmem:[#allocation288_spill] sm:$0xff] %v7211_v46 }
 0x3c4   : > { %2465 = vmatprep.subr.mxu1 %v10528_v9  ;;  %v7220_v9 = vld [vmem:[%s5683_s23 + $0x180] sm:$0xff] }
 0x3c5   : > { %2466 = vmatpush1.msra.mxu1 %v10529_v53  ;;  %v10534_v53 = vunpack.c.h.bf16 %v7166_v52  ;;  %v10541_v52 = vunpack.c.l.bf16 %v7184_v10  ;;  %10542 = vst [vmem:[#allocation289_spill] sm:$0xff] %v7220_v9 }
 0x3c6   : > { %2467 = vmatprep.subr.mxu1 %v10531_v8  ;;  %v7229_v8 = vld [vmem:[%s5683_s23 + $0x170] sm:$0xff] }
 0x3c7   : > { %2468 = vmatpush2.msra.mxu1 %v10532_v35  ;;  %v10537_v35 = vunpack.c.h.bf16 %v7175_v23  ;;  %v10544_v23 = vunpack.c.l.bf16 %v7193_v34  ;;  %10545 = vst [vmem:[#allocation290_spill] sm:$0xff] %v7229_v8 }
 0x3c8   : > { %2469 = vmatprep.subr.mxu1 %v10534_v53  ;;  %v7238_v53 = vld [vmem:[%s5683_s23 + $0x160] sm:$0xff] }
 0x3c9   : > { %2470 = vmatpush2.msra.mxu1 %v10535_v58  ;;  %v10540_v58 = vunpack.c.h.bf16 %v7184_v10  ;;  %v10547_v10 = vunpack.c.l.bf16 %v7202_v28  ;;  %10548 = vst [vmem:[#allocation291_spill] sm:$0xff] %v7238_v53 }
 0x3ca   : > { %2471 = vmatprep.subr.mxu1 %v10537_v35  ;;  %v7247_v35 = vld [vmem:[%s5683_s23 + $0x150] sm:$0xff] }
 0x3cb   : > { %2472 = vmatpush2.msra.mxu1 %v10538_v5  ;;  %v10543_v5 = vunpack.c.h.bf16 %v7193_v34  ;;  %v10550_v34 = vunpack.c.l.bf16 %v7211_v46  ;;  %10551 = vst [vmem:[#allocation292_spill] sm:$0xff] %v7247_v35 }
 0x3cc   : > { %2473 = vmatprep.subr.mxu1 %v10540_v58  ;;  %v7256_v58 = vld [vmem:[%s5683_s23 + $0x140] sm:$0xff] }
 0x3cd   : > { %2474 = vmatpush2.msra.mxu1 %v10541_v52  ;;  %v10546_v52 = vunpack.c.h.bf16 %v7202_v28  ;;  %v10553_v28 = vunpack.c.l.bf16 %v7220_v9  ;;  %10554 = vst [vmem:[#allocation293_spill] sm:$0xff] %v7256_v58 }
 0x3ce   : > { %2475 = vmatprep.subr.mxu1 %v10543_v5  ;;  %v9991_v5 = vunpack.c.h.bf16 %v7238_v53 }
 0x3cf   : > { %2476 = vmatpush2.msra.mxu1 %v10544_v23  ;;  %v10549_v23 = vunpack.c.h.bf16 %v7211_v46  ;;  %v10556_v46 = vunpack.c.l.bf16 %v7229_v8 }
 0x3d0   : > { %2477 = vmatprep.subr.mxu1 %v10546_v52  ;;  %v9995_v52 = vunpack.c.h.bf16 %v7247_v35 }
 0x3d1   : > { %2478 = vmatpush2.msra.mxu1 %v10547_v10  ;;  %v10552_v10 = vunpack.c.h.bf16 %v7220_v9 }
 0x3d2   : > { %2479 = vmatprep.subr.mxu1 %v10549_v23  ;;  %v9992_v23 = vunpack.c.l.bf16 %v7238_v53  ;;  %v10561_v53 = vunpack.c.l.bf16 %v7256_v58 }
 0x3d3   : > { %2480 = vmatpush2.msra.mxu1 %v10550_v34  ;;  %v10555_v34 = vunpack.c.h.bf16 %v7229_v8 }
 0x3d4   : > { %2481 = vmatprep.subr.mxu1 %v10552_v10  ;;  %v9996_v10 = vunpack.c.l.bf16 %v7247_v35 }
 0x3d5   : > { %2482 = vmatpush2.msra.mxu1 %v10553_v28  ;;  %v7283_v28 = vld [vmem:[%s5683_s23 + $0x110] sm:$0xff] }
 0x3d6   : > { %2483 = vmatprep.subr.mxu1 %v10555_v34  ;;  %v7274_v34 = vld [vmem:[%s5683_s23 + $0x120] sm:$0xff]  ;;  %10559 = vst [vmem:[#allocation296_spill] sm:$0xff] %v7283_v28  ;;  %v10006_v35 = vunpack.c.l.bf16 %v7283_v28 }
 0x3d7   : > { %2484 = vmatpush2.msra.mxu1 %v10556_v46  ;;  %10558 = vst [vmem:[#allocation295_spill] sm:$0xff] %v7274_v34  ;;  %v10000_v46 = vunpack.c.h.bf16 %v7265_v6  ;;  %v10001_v9 = vunpack.c.h.bf16 %v7274_v34 }
 0x3d8   : > { %2485 = vmatprep.subr.mxu1 %v9991_v5  ;;  %v9999_v5 = vunpack.c.l.bf16 %v7265_v6 }
 0x3d9   : > { %2486 = vmatpush2.msra.mxu1 %v9992_v23  ;;  %v10560_v23 = vunpack.c.h.bf16 %v7256_v58  ;;  %v7333_v58 = vld [vmem:[%s5683_s23 + $0x300] sm:$0xff] }
 0x3da   : > { %2487 = vmatprep.subr.mxu1 %v9995_v52  ;;  %v10004_v52 = vunpack.c.l.bf16 %v7274_v34  ;;  %10566 = vst [vmem:[#allocation301_spill] sm:$0xff] %v7333_v58 }
 0x3db   : > { %2488 = vmatpush2.msra.mxu1 %v9996_v10  ;;  %v10005_v10 = vunpack.c.h.bf16 %v7283_v28 }
 0x3dc   : > { %2489 = vmatprep.subr.mxu1 %v10560_v23  ;;  %v7309_v23 = vld [vmem:[%s5683_s23 + $0x320] sm:$0xff] }
 0x3dd   : > { %2490 = vmatpush2.msra.mxu1 %v10561_v53  ;;  %v7306_v53 = vld [vmem:[%s5683_s23 + $0x100] sm:$0xff]  ;;  %10563 = vst [vmem:[#allocation298_spill] sm:$0xff] %v7309_v23  ;;  %v10015_v34 = vunpack.c.l.bf16 %v7309_v23 }
 0x3de   : > { %2491 = vmatprep.subr.mxu1 %v10000_v46  ;;  %10562 = vst [vmem:[#allocation297_spill] sm:$0xff] %v7306_v53  ;;  %v10016_v46 = vunpack.c.h.bf16 %v7309_v23  ;;  %v10587_v23 = vunpack.c.h.bf16 %v7379_v1 }
 0x3df   : > { %2492 = vmatpush2.msra.mxu1 %v9999_v5  ;;  %v10013_v5 = vunpack.c.h.bf16 %v7306_v53 }
 0x3e0   : > { %2493 = vmatprep.subr.mxu1 %v10001_v9  ;;  %v10014_v9 = vunpack.c.l.bf16 %v7306_v53  ;;  %2570 = vmatprep.subr.mxu0 %v10016_v46  ;;  %v7358_v53 = vld [vmem:[%s5683_s23 + $0xd8] sm:$0xff] }
 0x3e1   : > { %2494 = vmatpush2.msra.mxu1 %v10004_v52  ;;  %v7316_v52 = vld [vmem:[%s5683_s23 + $0x310] sm:$0xff]  ;;  %2571 = vmatpush2.msra.mxu0 %v10015_v34  ;;  %v7344_v34 = vld [vmem:[%s5683_s23 + $0x2f8] sm:$0xff]  ;;  %10569 = vst [vmem:[#allocation304_spill] sm:$0xff] %v7358_v53 }
 0x3e2   : > { %2495 = vmatprep.subr.mxu1 %v10005_v10  ;;  %10564 = vst [vmem:[#allocation299_spill] sm:$0xff] %v7316_v52  ;;  %v7319_v10 = vld [vmem:[%s5683_s23 + $0xf8] sm:$0xff]  ;;  %v10018_v6 = vunpack.c.l.bf16 %v7316_v52  ;;  %10567 = vst [vmem:[#allocation302_spill] sm:$0xff] %v7344_v34  ;;  %v10030_v46 = vunpack.c.h.bf16 %v7344_v34 }
 0x3e3   : > { %2496 = vmatpush2.msra.mxu1 %v10006_v35  ;;  %10565 = vst [vmem:[#allocation300_spill] sm:$0xff] %v7319_v10  ;;  %v10019_v35 = vunpack.c.h.bf16 %v7316_v52  ;;  %v10017_v28 = vunpack.c.h.bf16 %v7319_v10  ;;  %v7410_v52 = vld [vmem:[%s5683_s23 + $0x2c8] sm:$0xff] }
 0x3e4   : > { %2497 = vmatprep.subr.mxu1 %v10013_v5  ;;  %v10024_v5 = vunpack.c.h.bf16 %v7333_v58  ;;  %10580 = vst [vmem:[#allocation310_spill] sm:$0xff] %v7410_v52  ;;  %v10594_v41 = vunpack.c.h.bf16 %v7410_v52 }
 0x3e5   : > { %2498 = vmatpush2.msra.mxu1 %v10014_v9  ;;  %2572 = vmatprep.subr.mxu0 %v10019_v35  ;;  %v10027_v9 = vunpack.c.l.bf16 %v7333_v58  ;;  %v10039_v35 = vunpack.c.l.bf16 %v7319_v10  ;;  %v10576_v58 = vunpack.c.h.bf16 %v7358_v53  ;;  %v7400_v10 = vld [vmem:[%s5683_s23 + $0xa8] sm:$0xff] }
 0x3e6   : > { %2589 = vmatprep.subr.mxu1 %v10017_v28  ;;  %2573 = vmatpush2.msra.mxu0 %v10018_v6  ;;  %v7354_v28 = vld [vmem:[%s5683_s23 + $0xe8] sm:$0xff]  ;;  %10577 = vst [vmem:[#allocation309_spill] sm:$0xff] %v7400_v10 }
 0x3e7   : > { %2574 = vmatprep.subr.mxu0 %v10024_v5  ;;  %10568 = vst [vmem:[#allocation303_spill] sm:$0xff] %v7354_v28  ;;  %v10573_v7 = vunpack.c.h.bf16 %v7354_v28  ;;  %v10575_v16 = vunpack.c.l.bf16 %v7354_v28  ;;  %v10578_v28 = vunpack.c.l.bf16 %v7358_v53 }
 0x3e8   : > { %2575 = vmatpush2.msra.mxu0 %v10027_v9  ;;  %v7365_v9 = vld [vmem:[%s5683_s23 + $0xc8] sm:$0xff] }
 0x3e9   : > { %2666 = vmatprep.subr.mxu0 %v10030_v46  ;;  %10570 = vst [vmem:[#allocation305_spill] sm:$0xff] %v7365_v9  ;;  %v10582_v46 = vunpack.c.h.bf16 %v7368_v59 }
 0x466   : > { %v5392_v6 = vpop.f32.mrf.mxu1 }
 0x467   : > { %2499 = vmatprep.mubr.f32.mxu1 %v5392_v6 }
 0x468   : > { %v7361_v5 = vpop.f32.mrf.mxu1 }
 0x469   : > { %2500 = vmatmul.mubr.f32.vlgmr.msra.gmra.mxu1 %v7361_v5 }
 0x46a   : > { %2590 = vmatpush1.msra.mxu1 %v10039_v35  ;;  %v7374_v47 = vpop.f32.mrf.mxu1  ;;  %v7387_v35 = vld [vmem:[%s5683_s23 + $0x2d8] sm:$0xff] }
 0x46b   : > { %2591 = vmatprep.subr.mxu1 %v10573_v7  ;;  %2576 = vmatprep.mubr.f32.mxu0 %v7374_v47  ;;  %10574 = vst [vmem:[#allocation308_spill] sm:$0xff] %v7387_v35  ;;  %v10581_v7 = vunpack.c.h.bf16 %v7365_v9 }
 0x46c   : > { %2592 = vmatpush1.msra.mxu1 %v10575_v16  ;;  %v7391_v8 = vpop.f32.mrf.mxu1  ;;  %v10579_v16 = vunpack.c.l.bf16 %v7344_v34  ;;  %v7425_v34 = vld [vmem:[%s5683_s23 + $0x98] sm:$0xff] }
 0x46d   : > { %2593 = vmatprep.subr.mxu1 %v10576_v58  ;;  %2577 = vmatmul.mubr.f32.vlgmr.msra.gmra.mxu0 %v7391_v8  ;;  %10584 = vst [vmem:[#allocation311_spill] sm:$0xff] %v7425_v34  ;;  %v10593_v58 = vunpack.c.h.bf16 %v7400_v10  ;;  %v10599_v17 = vunpack.c.h.bf16 %v7425_v34 }
 0x46e   : > { %2594 = vmatpush1.msra.mxu1 %v10578_v28  ;;  %2667 = vmatpush1.msra.mxu0 %v10579_v16  ;;  %v7406_v40 = vpop.f32.mrf.mxu1  ;;  %v10583_v16 = vunpack.c.l.bf16 %v7365_v9  ;;  %v10588_v9 = vunpack.c.h.bf16 %v7387_v35 }
 0x46f   : > { %2595 = vmatprep.subr.mxu1 %v10581_v7  ;;  %2668 = vmatprep.subr.mxu0 %v10582_v46  ;;  %v7428_v7 = vld [vmem:[%s5683_s23 + $0x2b8] sm:$0xff]  ;;  %v10586_v46 = vunpack.c.l.bf16 %v7368_v59  ;;  %v7443_v59 = vld [vmem:[%s5683_s23 + $0x88] sm:$0xff] }
 0x470   : > { %2505 = vmatprep.mubr.f32.mxu1 %v7406_v40  ;;  %2596 = vmatpush1.msra.mxu1 %v10583_v16  ;;  %v7421_v53 = vpop.f32.mrf.mxu1  ;;  %10585 = vst [vmem:[#allocation312_spill] sm:$0xff] %v7428_v7  ;;  %10589 = vst [vmem:[#allocation313_spill] sm:$0xff] %v7443_v59 }
 0x471   : > { %2669 = vmatpush1.msra.mxu0 %v10586_v46  ;;  %2597 = vmatprep.subr.mxu1 %v10587_v23  ;;  %v10590_v46 = vunpack.c.l.bf16 %v7379_v1  ;;  %v10591_v23 = vunpack.c.l.bf16 %v7387_v35  ;;  %v7468_v35 = vld [vmem:[%s5683_s23 + $0x298] sm:$0xff]  ;;  %v10605_v1 = vunpack.c.h.bf16 %v7443_v59 }
 0x472   : > { %2670 = vmatprep.subr.mxu0 %v10588_v9  ;;  %2506 = vmatmul.mubr.f32.gmra.mxu1 %v7421_v53  ;;  %v7438_v16 = vpop.f32.mrf.mxu1  ;;  %v7465_v9 = vld [vmem:[%s5683_s23 + $0x78] sm:$0xff]  ;;  %10596 = vst [vmem:[#allocation316_spill] sm:$0xff] %v7468_v35 }
 0x473   : > { %2598 = vmatpush1.msra.mxu1 %v10590_v46  ;;  %2671 = vmatpush1.msra.mxu0 %v10591_v23  ;;  %10595 = vst [vmem:[#allocation315_spill] sm:$0xff] %v7465_v9  ;;  %v10600_v23 = vunpack.c.h.bf16 %v7428_v7 }
 0x474   : > { %2599 = vmatprep.subr.mxu1 %v10593_v58  ;;  %2653 = vmatprep.mubr.f32.mxu1 %v5392_v6  ;;  %v7460_v46 = vpop.f32.mrf.mxu1  ;;  %v10597_v6 = vunpack.c.l.bf16 %v7400_v10  ;;  %v10598_v58 = vunpack.c.l.bf16 %v7410_v52  ;;  %v7499_v10 = vld [vmem:[%s5683_s23 + $0x58] sm:$0xff]  ;;  %v10610_v52 = vunpack.c.l.bf16 %v7452_v15 }
 0x475   : > { %2672 = vmatprep.subr.mxu0 %v10594_v41  ;;  %2582 = vmatprep.mubr.f32.mxu0 %v7438_v16  ;;  %10606 = vst [vmem:[#allocation319_spill] sm:$0xff] %v7499_v10  ;;  %v10616_v41 = vunpack.c.l.bf16 %v7468_v35 }
 0x476   : > { %2600 = vmatpush1.msra.mxu1 %v10597_v6  ;;  %2673 = vmatpush1.msra.mxu0 %v10598_v58  ;;  %v7485_v6 = vld [vmem:[%s5683_s23 + $0x288] sm:$0xff]  ;;  %v10603_v58 = vunpack.c.l.bf16 %v7425_v34  ;;  %v7502_v34 = vld [vmem:[%s5683_s23 + $0x278] sm:$0xff] }
 0x477   : > { %2601 = vmatprep.subr.mxu1 %v10599_v17  ;;  %2674 = vmatprep.subr.mxu0 %v10600_v23  ;;  %10602 = vst [vmem:[#allocation318_spill] sm:$0xff] %v7485_v6  ;;  %v10604_v23 = vunpack.c.l.bf16 %v7428_v7  ;;  %10607 = vst [vmem:[#allocation320_spill] sm:$0xff] %v7502_v34  ;;  %v7516_v7 = vld [vmem:[%s5683_s23 + $0x48] sm:$0xff] }
 0x478   : > { %2583 = vmatmul.mubr.f32.gmra.mxu0 %v7460_v46  ;;  %2602 = vmatpush1.msra.mxu1 %v10603_v58  ;;  %v10608_v58 = vunpack.c.h.bf16 %v7452_v15  ;;  %10611 = vst [vmem:[#allocation321_spill] sm:$0xff] %v7516_v7  ;;  %v10622_v15 = vunpack.c.l.bf16 %v7485_v6 }
 0x479   : > { %2675 = vmatpush1.msra.mxu0 %v10604_v23  ;;  %2603 = vmatprep.subr.mxu1 %v10605_v1  ;;  %v10609_v1 = vunpack.c.l.bf16 %v7443_v59  ;;  %v10614_v23 = vunpack.c.h.bf16 %v7468_v35  ;;  %v7537_v59 = vld [vmem:[%s5683_s23 + $0x258] sm:$0xff]  ;;  %v10628_v35 = vunpack.c.l.bf16 %v7502_v34 }
 0x47a   : > { %2676 = vmatprep.subr.mxu0 %v10608_v58  ;;  %2730 = vmatprep.mubr.f32.mxu0 %v7374_v47  ;;  %v7519_v58 = vld [vmem:[%s5683_s23 + $0x268] sm:$0xff]  ;;  %v10613_v47 = vunpack.c.h.bf16 %v7465_v9  ;;  %10618 = vst [vmem:[#allocation324_spill] sm:$0xff] %v7537_v59 }
 0x47b   : > { %2604 = vmatpush1.msra.mxu1 %v10609_v1  ;;  %2677 = vmatpush1.msra.mxu0 %v10610_v52  ;;  %10612 = vst [vmem:[#allocation322_spill] sm:$0xff] %v7519_v58  ;;  %v10615_v52 = vunpack.c.l.bf16 %v7465_v9  ;;  %v10620_v1 = vunpack.c.h.bf16 %v7485_v6  ;;  %v7555_v9 = vld [vmem:[%s5683_s23 + $0x248] sm:$0xff]  ;;  %v10634_v6 = vunpack.c.l.bf16 %v7519_v58 }
 0x47c   : > { %2605 = vmatprep.subr.mxu1 %v10613_v47  ;;  %2678 = vmatprep.subr.mxu0 %v10614_v23  ;;  %v7534_v47 = vld [vmem:[%s5683_s23 + $0x38] sm:$0xff]  ;;  %v10619_v23 = vunpack.c.h.bf16 %v7482_v0  ;;  %10624 = vst [vmem:[#allocation326_spill] sm:$0xff] %v7555_v9 }
 0x47d   : > { %2606 = vmatpush1.msra.mxu1 %v10615_v52  ;;  %2679 = vmatpush1.msra.mxu0 %v10616_v41  ;;  %10617 = vst [vmem:[#allocation323_spill] sm:$0xff] %v7534_v47  ;;  %v10621_v41 = vunpack.c.l.bf16 %v7482_v0  ;;  %v10626_v52 = vunpack.c.h.bf16 %v7502_v34  ;;  %v7573_v0 = vld [vmem:[%s5683_s23 + $0x238] sm:$0xff]  ;;  %v10640_v34 = vunpack.c.l.bf16 %v7537_v59 }
 0x47e   : > { %2607 = vmatprep.subr.mxu1 %v10619_v23  ;;  %2680 = vmatprep.subr.mxu0 %v10620_v1  ;;  %v7552_v23 = vld [vmem:[%s5683_s23 + $0x28] sm:$0xff]  ;;  %v10625_v1 = vunpack.c.h.bf16 %v7499_v10  ;;  %10630 = vst [vmem:[#allocation328_spill] sm:$0xff] %v7573_v0 }
 0x47f   : > { %2608 = vmatpush1.msra.mxu1 %v10621_v41  ;;  %2681 = vmatpush1.msra.mxu0 %v10622_v15  ;;  %10623 = vst [vmem:[#allocation325_spill] sm:$0xff] %v7552_v23  ;;  %v10627_v15 = vunpack.c.l.bf16 %v7499_v10  ;;  %v10632_v41 = vunpack.c.h.bf16 %v7519_v58  ;;  %v7591_v10 = vld [vmem:[%s5683_s23 + $0x228] sm:$0xff]  ;;  %v10646_v58 = vunpack.c.l.bf16 %v7555_v9 }
 0x480   : > { %2609 = vmatprep.subr.mxu1 %v10625_v1  ;;  %2682 = vmatprep.subr.mxu0 %v10626_v52  ;;  %v7570_v1 = vld [vmem:[%s5683_s23 + $0x18] sm:$0xff]  ;;  %v10631_v52 = vunpack.c.h.bf16 %v7516_v7  ;;  %10636 = vst [vmem:[#allocation330_spill] sm:$0xff] %v7591_v10 }
 0x481   : > { %2610 = vmatpush1.msra.mxu1 %v10627_v15  ;;  %2683 = vmatpush1.msra.mxu0 %v10628_v35  ;;  %10629 = vst [vmem:[#allocation327_spill] sm:$0xff] %v7570_v1  ;;  %v10633_v35 = vunpack.c.l.bf16 %v7516_v7  ;;  %v10638_v15 = vunpack.c.h.bf16 %v7537_v59  ;;  %v7609_v7 = vld [vmem:[%s5683_s23 + $0x218] sm:$0xff]  ;;  %v10652_v59 = vunpack.c.l.bf16 %v7573_v0 }
 0x482   : > { %2611 = vmatprep.subr.mxu1 %v10631_v52  ;;  %2684 = vmatprep.subr.mxu0 %v10632_v41  ;;  %v7588_v52 = vld [vmem:[%s5683_s23 + $0x8] sm:$0xff]  ;;  %v10637_v41 = vunpack.c.h.bf16 %v7534_v47  ;;  %10642 = vst [vmem:[#allocation332_spill] sm:$0xff] %v7609_v7 }
 0x483   : > { %2612 = vmatpush1.msra.mxu1 %v10633_v35  ;;  %2685 = vmatpush1.msra.mxu0 %v10634_v6  ;;  %10635 = vst [vmem:[#allocation329_spill] sm:$0xff] %v7588_v52  ;;  %v10639_v6 = vunpack.c.l.bf16 %v7534_v47  ;;  %v10644_v35 = vunpack.c.h.bf16 %v7555_v9  ;;  %v7627_v47 = vld [vmem:[%s5683_s23 + $0x208] sm:$0xff]  ;;  %v10658_v9 = vunpack.c.l.bf16 %v7591_v10 }
 0x484   : > { %2613 = vmatprep.subr.mxu1 %v10637_v41  ;;  %2686 = vmatprep.subr.mxu0 %v10638_v15  ;;  %v7606_v41 = vld [vmem:[%s5683_s23 + $0x1f8] sm:$0xff]  ;;  %v10643_v15 = vunpack.c.h.bf16 %v7552_v23  ;;  %10648 = vst [vmem:[#allocation334_spill] sm:$0xff] %v7627_v47 }
 0x485   : > { %2614 = vmatpush1.msra.mxu1 %v10639_v6  ;;  %2687 = vmatpush1.msra.mxu0 %v10640_v34  ;;  %10641 = vst [vmem:[#allocation331_spill] sm:$0xff] %v7606_v41  ;;  %v10645_v34 = vunpack.c.l.bf16 %v7552_v23  ;;  %v10650_v6 = vunpack.c.h.bf16 %v7573_v0  ;;  %v7645_v23 = vld [vmem:[%s5683_s23 + $0x3f8] sm:$0xff]  ;;  %v10664_v0 = vunpack.c.l.bf16 %v7609_v7 }
 0x486   : > { %2615 = vmatprep.subr.mxu1 %v10643_v15  ;;  %2688 = vmatprep.subr.mxu0 %v10644_v35  ;;  %v7624_v15 = vld [vmem:[%s5683_s23 + $0x1e8] sm:$0xff]  ;;  %v10649_v35 = vunpack.c.h.bf16 %v7570_v1  ;;  %10654 = vst [vmem:[#allocation336_spill] sm:$0xff] %v7645_v23 }
 0x487   : > { %2616 = vmatpush1.msra.mxu1 %v10645_v34  ;;  %2689 = vmatpush1.msra.mxu0 %v10646_v58  ;;  %10647 = vst [vmem:[#allocation333_spill] sm:$0xff] %v7624_v15  ;;  %v10651_v58 = vunpack.c.l.bf16 %v7570_v1  ;;  %v10656_v34 = vunpack.c.h.bf16 %v7591_v10  ;;  %v7663_v1 = vld [vmem:[%s5683_s23 + $0x3e8] sm:$0xff]  ;;  %v10670_v10 = vunpack.c.l.bf16 %v7627_v47 }
 0x488   : > { %2617 = vmatprep.subr.mxu1 %v10649_v35  ;;  %2690 = vmatprep.subr.mxu0 %v10650_v6  ;;  %v7642_v35 = vld [vmem:[%s5683_s23 + $0x1d8] sm:$0xff]  ;;  %v10655_v6 = vunpack.c.h.bf16 %v7588_v52  ;;  %10660 = vst [vmem:[#allocation338_spill] sm:$0xff] %v7663_v1 }
 0x489   : > { %2618 = vmatpush1.msra.mxu1 %v10651_v58  ;;  %2691 = vmatpush1.msra.mxu0 %v10652_v59  ;;  %10653 = vst [vmem:[#allocation335_spill] sm:$0xff] %v7642_v35  ;;  %v10657_v59 = vunpack.c.l.bf16 %v7588_v52  ;;  %v10662_v58 = vunpack.c.h.bf16 %v7609_v7  ;;  %v7681_v52 = vld [vmem:[%s5683_s23 + $0x3d8] sm:$0xff]  ;;  %v10676_v7 = vunpack.c.l.bf16 %v7645_v23 }
 0x48a   : > { %2619 = vmatprep.subr.mxu1 %v10655_v6  ;;  %2692 = vmatprep.subr.mxu0 %v10656_v34  ;;  %v7660_v6 = vld [vmem:[%s5683_s23 + $0x1c8] sm:$0xff]  ;;  %v10661_v34 = vunpack.c.h.bf16 %v7606_v41  ;;  %10666 = vst [vmem:[#allocation340_spill] sm:$0xff] %v7681_v52 }
 0x48b   : > { %2620 = vmatpush1.msra.mxu1 %v10657_v59  ;;  %2693 = vmatpush1.msra.mxu0 %v10658_v9  ;;  %10659 = vst [vmem:[#allocation337_spill] sm:$0xff] %v7660_v6  ;;  %v10663_v9 = vunpack.c.l.bf16 %v7606_v41  ;;  %v10668_v59 = vunpack.c.h.bf16 %v7627_v47  ;;  %v7699_v41 = vld [vmem:[%s5683_s23 + $0x3c8] sm:$0xff]  ;;  %v10682_v47 = vunpack.c.l.bf16 %v7663_v1 }
 0x48c   : > { %2621 = vmatprep.subr.mxu1 %v10661_v34  ;;  %2694 = vmatprep.subr.mxu0 %v10662_v58  ;;  %v7678_v34 = vld [vmem:[%s5683_s23 + $0x1b8] sm:$0xff]  ;;  %v10667_v58 = vunpack.c.h.bf16 %v7624_v15  ;;  %10672 = vst [vmem:[#allocation342_spill] sm:$0xff] %v7699_v41 }
 0x48d   : > { %2622 = vmatpush2.msra.mxu1 %v10663_v9  ;;  %2695 = vmatpush1.msra.mxu0 %v10664_v0  ;;  %10665 = vst [vmem:[#allocation339_spill] sm:$0xff] %v7678_v34  ;;  %v10669_v0 = vunpack.c.l.bf16 %v7624_v15  ;;  %v10674_v9 = vunpack.c.h.bf16 %v7645_v23  ;;  %v7717_v15 = vld [vmem:[%s5683_s23 + $0x3b8] sm:$0xff]  ;;  %v10688_v23 = vunpack.c.l.bf16 %v7681_v52 }
 0x48e   : > { %2623 = vmatprep.subr.mxu1 %v10667_v58  ;;  %2696 = vmatprep.subr.mxu0 %v10668_v59  ;;  %v7696_v58 = vld [vmem:[%s5683_s23 + $0x1a8] sm:$0xff]  ;;  %v10673_v59 = vunpack.c.h.bf16 %v7642_v35  ;;  %10678 = vst [vmem:[#allocation344_spill] sm:$0xff] %v7717_v15 }
 0x48f   : > { %2624 = vmatpush2.msra.mxu1 %v10669_v0  ;;  %2697 = vmatpush1.msra.mxu0 %v10670_v10  ;;  %10671 = vst [vmem:[#allocation341_spill] sm:$0xff] %v7696_v58  ;;  %v10675_v10 = vunpack.c.l.bf16 %v7642_v35  ;;  %v10680_v0 = vunpack.c.h.bf16 %v7663_v1  ;;  %v7735_v35 = vld [vmem:[%s5683_s23 + $0x3a8] sm:$0xff]  ;;  %v10694_v1 = vunpack.c.l.bf16 %v7699_v41 }
 0x490   : > { %2625 = vmatprep.subr.mxu1 %v10673_v59  ;;  %2698 = vmatprep.subr.mxu0 %v10674_v9  ;;  %v7714_v59 = vld [vmem:[%s5683_s23 + $0x198] sm:$0xff]  ;;  %v10679_v9 = vunpack.c.h.bf16 %v7660_v6  ;;  %10684 = vst [vmem:[#allocation346_spill] sm:$0xff] %v7735_v35 }
 0x491   : > { %2626 = vmatpush2.msra.mxu1 %v10675_v10  ;;  %2699 = vmatpush2.msra.mxu0 %v10676_v7  ;;  %10677 = vst [vmem:[#allocation343_spill] sm:$0xff] %v7714_v59  ;;  %v10681_v7 = vunpack.c.l.bf16 %v7660_v6  ;;  %v10686_v10 = vunpack.c.h.bf16 %v7681_v52  ;;  %v7753_v6 = vld [vmem:[%s5683_s23 + $0x398] sm:$0xff]  ;;  %v10700_v52 = vunpack.c.l.bf16 %v7717_v15 }
 0x492   : > { %2627 = vmatprep.subr.mxu1 %v10679_v9  ;;  %2700 = vmatprep.subr.mxu0 %v10680_v0  ;;  %v7732_v9 = vld [vmem:[%s5683_s23 + $0x188] sm:$0xff]  ;;  %v10685_v0 = vunpack.c.h.bf16 %v7678_v34  ;;  %10690 = vst [vmem:[#allocation348_spill] sm:$0xff] %v7753_v6 }
 0x493   : > { %2628 = vmatpush2.msra.mxu1 %v10681_v7  ;;  %2701 = vmatpush2.msra.mxu0 %v10682_v47  ;;  %10683 = vst [vmem:[#allocation345_spill] sm:$0xff] %v7732_v9  ;;  %v10687_v47 = vunpack.c.l.bf16 %v7678_v34  ;;  %v10692_v7 = vunpack.c.h.bf16 %v7699_v41  ;;  %v7771_v34 = vld [vmem:[%s5683_s23 + $0x388] sm:$0xff]  ;;  %v10706_v41 = vunpack.c.l.bf16 %v7735_v35 }
 0x494   : > { %2629 = vmatprep.subr.mxu1 %v10685_v0  ;;  %2702 = vmatprep.subr.mxu0 %v10686_v10  ;;  %v7750_v0 = vld [vmem:[%s5683_s23 + $0x178] sm:$0xff]  ;;  %v10691_v10 = vunpack.c.h.bf16 %v7696_v58  ;;  %10696 = vst [vmem:[#allocation350_spill] sm:$0xff] %v7771_v34 }
 0x495   : > { %2630 = vmatpush2.msra.mxu1 %v10687_v47  ;;  %2703 = vmatpush2.msra.mxu0 %v10688_v23  ;;  %10689 = vst [vmem:[#allocation347_spill] sm:$0xff] %v7750_v0  ;;  %v10693_v23 = vunpack.c.l.bf16 %v7696_v58  ;;  %v10698_v47 = vunpack.c.h.bf16 %v7717_v15  ;;  %v7789_v58 = vld [vmem:[%s5683_s23 + $0x378] sm:$0xff]  ;;  %v10712_v15 = vunpack.c.l.bf16 %v7753_v6 }
 0x496   : > { %2631 = vmatprep.subr.mxu1 %v10691_v10  ;;  %2704 = vmatprep.subr.mxu0 %v10692_v7  ;;  %v7768_v10 = vld [vmem:[%s5683_s23 + $0x168] sm:$0xff]  ;;  %v10697_v7 = vunpack.c.h.bf16 %v7714_v59  ;;  %10702 = vst [vmem:[#allocation352_spill] sm:$0xff] %v7789_v58 }
 0x497   : > { %2632 = vmatpush2.msra.mxu1 %v10693_v23  ;;  %2705 = vmatpush2.msra.mxu0 %v10694_v1  ;;  %10695 = vst [vmem:[#allocation349_spill] sm:$0xff] %v7768_v10  ;;  %v10699_v1 = vunpack.c.l.bf16 %v7714_v59  ;;  %v10704_v23 = vunpack.c.h.bf16 %v7735_v35  ;;  %v7807_v59 = vld [vmem:[%s5683_s23 + $0x368] sm:$0xff]  ;;  %v10718_v35 = vunpack.c.l.bf16 %v7771_v34 }
 0x498   : > { %2633 = vmatprep.subr.mxu1 %v10697_v7  ;;  %2706 = vmatprep.subr.mxu0 %v10698_v47  ;;  %v7786_v7 = vld [vmem:[%s5683_s23 + $0x158] sm:$0xff]  ;;  %v10703_v47 = vunpack.c.h.bf16 %v7732_v9  ;;  %10708 = vst [vmem:[#allocation354_spill] sm:$0xff] %v7807_v59 }
 0x499   : > { %2634 = vmatpush2.msra.mxu1 %v10699_v1  ;;  %2707 = vmatpush2.msra.mxu0 %v10700_v52  ;;  %10701 = vst [vmem:[#allocation351_spill] sm:$0xff] %v7786_v7  ;;  %v10705_v52 = vunpack.c.l.bf16 %v7732_v9  ;;  %v10710_v1 = vunpack.c.h.bf16 %v7753_v6  ;;  %v7825_v9 = vld [vmem:[%s5683_s23 + $0x358] sm:$0xff]  ;;  %v10724_v6 = vunpack.c.l.bf16 %v7789_v58 }
 0x49a   : > { %2635 = vmatprep.subr.mxu1 %v10703_v47  ;;  %2708 = vmatprep.subr.mxu0 %v10704_v23  ;;  %v7804_v47 = vld [vmem:[%s5683_s23 + $0x148] sm:$0xff]  ;;  %v10709_v23 = vunpack.c.h.bf16 %v7750_v0  ;;  %10714 = vst [vmem:[#allocation356_spill] sm:$0xff] %v7825_v9  ;;  %v10734_v17 = vunpack.c.h.bf16 %v7825_v9 }
 0x49b   : > { %2636 = vmatpush2.msra.mxu1 %v10705_v52  ;;  %2709 = vmatpush2.msra.mxu0 %v10706_v41  ;;  %10707 = vst [vmem:[#allocation353_spill] sm:$0xff] %v7804_v47  ;;  %v10711_v41 = vunpack.c.l.bf16 %v7750_v0  ;;  %v10716_v52 = vunpack.c.h.bf16 %v7771_v34  ;;  %v7843_v0 = vld [vmem:[%s5683_s23 + $0x348] sm:$0xff]  ;;  %v10730_v34 = vunpack.c.l.bf16 %v7807_v59 }
 0x49c   : > { %2637 = vmatprep.subr.mxu1 %v10709_v23  ;;  %2710 = vmatprep.subr.mxu0 %v10710_v1  ;;  %v7822_v23 = vld [vmem:[%s5683_s23 + $0x138] sm:$0xff]  ;;  %v10715_v1 = vunpack.c.h.bf16 %v7768_v10  ;;  %10720 = vst [vmem:[#allocation358_spill] sm:$0xff] %v7843_v0 }
 0x49d   : > { %2638 = vmatpush2.msra.mxu1 %v10711_v41  ;;  %2711 = vmatpush2.msra.mxu0 %v10712_v15  ;;  %10713 = vst [vmem:[#allocation355_spill] sm:$0xff] %v7822_v23  ;;  %v10717_v15 = vunpack.c.l.bf16 %v7768_v10  ;;  %v10722_v41 = vunpack.c.h.bf16 %v7789_v58  ;;  %v7861_v10 = vld [vmem:[%s5683_s23 + $0x338] sm:$0xff]  ;;  %v10736_v58 = vunpack.c.l.bf16 %v7825_v9  ;;  %v7909_v9 = vld [vmem:[%s5683_s23 + $0x308] sm:$0xff] }
 0x49e   : > { %2639 = vmatprep.subr.mxu1 %v10715_v1  ;;  %2712 = vmatprep.subr.mxu0 %v10716_v52  ;;  %v7840_v1 = vld [vmem:[%s5683_s23 + $0x128] sm:$0xff]  ;;  %v10721_v52 = vunpack.c.h.bf16 %v7786_v7  ;;  %10726 = vst [vmem:[#allocation360_spill] sm:$0xff] %v7861_v10  ;;  %10742 = vst [vmem:[#allocation364_spill] sm:$0xff] %v7909_v9 }
 0x49f   : > { %2640 = vmatpush2.msra.mxu1 %v10717_v15  ;;  %2713 = vmatpush2.msra.mxu0 %v10718_v35  ;;  %10719 = vst [vmem:[#allocation357_spill] sm:$0xff] %v7840_v1  ;;  %v10723_v35 = vunpack.c.l.bf16 %v7786_v7  ;;  %v10728_v15 = vunpack.c.h.bf16 %v7807_v59  ;;  %v7876_v7 = vld [vmem:[%s5683_s23 + $0x108] sm:$0xff] }
 0x4a0   : > { %2641 = vmatprep.subr.mxu1 %v10721_v52  ;;  %2714 = vmatprep.subr.mxu0 %v10722_v41  ;;  %v7858_v52 = vld [vmem:[%s5683_s23 + $0x118] sm:$0xff]  ;;  %v10727_v41 = vunpack.c.h.bf16 %v7804_v47  ;;  %10731 = vst [vmem:[#allocation361_spill] sm:$0xff] %v7876_v7  ;;  %v10747_v28 = vunpack.c.h.bf16 %v7876_v7 }
 0x4a1   : > { %2642 = vmatpush2.msra.mxu1 %v10723_v35  ;;  %2715 = vmatpush2.msra.mxu0 %v10724_v6  ;;  %10725 = vst [vmem:[#allocation359_spill] sm:$0xff] %v7858_v52  ;;  %v10729_v6 = vunpack.c.l.bf16 %v7804_v47  ;;  %v7894_v47 = vld [vmem:[%s5683_s23 + $0x318] sm:$0xff]  ;;  %v10745_v35 = vunpack.c.l.bf16 %v7858_v52 }
 0x4a2   : > { %2643 = vmatprep.subr.mxu1 %v10727_v41  ;;  %2716 = vmatprep.subr.mxu0 %v10728_v15  ;;  %v7879_v41 = vld [vmem:[%s5683_s23 + $0x328] sm:$0xff]  ;;  %v10733_v15 = vunpack.c.h.bf16 %v7822_v23  ;;  %10737 = vst [vmem:[#allocation363_spill] sm:$0xff] %v7894_v47 }
 0x4a3   : > { %2644 = vmatpush2.msra.mxu1 %v10729_v6  ;;  %2717 = vmatpush2.msra.mxu0 %v10730_v34  ;;  %10732 = vst [vmem:[#allocation362_spill] sm:$0xff] %v7879_v41  ;;  %v10735_v34 = vunpack.c.l.bf16 %v7822_v23  ;;  %v10748_v59 = vunpack.c.h.bf16 %v7879_v41  ;;  %v10750_v6 = vunpack.c.l.bf16 %v7879_v41  ;;  %v10768_v41 = vld [vmem:[#allocation35_spill] sm:$0xff]  ;;  %v10774_v23 = vld [vmem:[#allocation41_spill] sm:$0xff] }
 0x4a4   : > { %2645 = vmatprep.subr.mxu1 %v10733_v15  ;;  %2718 = vmatprep.subr.mxu0 %v10734_v17  ;;  %v10738_v15 = vunpack.c.h.bf16 %v7840_v1  ;;  %v10739_v17 = vunpack.c.h.bf16 %v7843_v0 }
 0x4a5   : > { %2646 = vmatpush2.msra.mxu1 %v10735_v34  ;;  %2719 = vmatpush2.msra.mxu0 %v10736_v58  ;;  %v10740_v34 = vunpack.c.l.bf16 %v7840_v1  ;;  %v10741_v58 = vunpack.c.l.bf16 %v7843_v0  ;;  %v10772_v0 = vld [vmem:[#allocation39_spill] sm:$0xff]  ;;  %v10773_v1 = vld [vmem:[#allocation38_spill] sm:$0xff] }
 0x4a6   : > { %2647 = vmatprep.subr.mxu1 %v10738_v15  ;;  %2720 = vmatprep.subr.mxu0 %v10739_v17  ;;  %v10743_v15 = vunpack.c.h.bf16 %v7858_v52  ;;  %v10744_v17 = vunpack.c.h.bf16 %v7861_v10  ;;  %v10771_v52 = vld [vmem:[#allocation36_spill] sm:$0xff] }
 0x4a7   : > { %2648 = vmatpush2.msra.mxu1 %v10740_v34  ;;  %2721 = vmatpush2.msra.mxu0 %v10741_v58  ;;  %v10746_v34 = vunpack.c.l.bf16 %v7861_v10  ;;  %v10166_v58 = vunpack.c.l.bf16 %v7894_v47  ;;  %v10770_v10 = vld [vmem:[#allocation37_spill] sm:$0xff] }
 0x4a8   : > { %2649 = vmatprep.subr.mxu1 %v10743_v15  ;;  %2722 = vmatprep.subr.mxu0 %v10744_v17  ;;  %v10165_v15 = vunpack.c.h.bf16 %v7909_v9  ;;  %v10749_v17 = vunpack.c.l.bf16 %v7876_v7  ;;  %v10769_v7 = vld [vmem:[#allocation34_spill] sm:$0xff] }
 0x4a9   : > { %2650 = vmatpush2.msra.mxu1 %v10745_v35  ;;  %2723 = vmatpush2.msra.mxu0 %v10746_v34  ;;  %v10164_v35 = vunpack.c.l.bf16 %v7909_v9  ;;  %v10751_v34 = vunpack.c.h.bf16 %v7894_v47  ;;  %v10766_v9 = vld [vmem:[#allocation33_spill] sm:$0xff]  ;;  %v10767_v47 = vld [vmem:[#allocation32_spill] sm:$0xff] }
 0x4aa   : > { %2651 = vmatprep.subr.mxu1 %v10747_v28  ;;  %2724 = vmatprep.subr.mxu0 %v10748_v59  ;;  %v10756_v28 = vld [vmem:[#allocation23_spill] sm:$0xff]  ;;  %v10759_v59 = vld [vmem:[#allocation24_spill] sm:$0xff] }
 0x4ab   : > { %2652 = vmatpush2.msra.mxu1 %v10749_v17  ;;  %2725 = vmatpush2.msra.mxu0 %v10750_v6  ;;  %v10760_v6 = vld [vmem:[#allocation27_spill] sm:$0xff]  ;;  %v10761_v17 = vld [vmem:[#allocation26_spill] sm:$0xff] }
 0x4ac   : > { %2654 = vmatmul.mubr.f32.vlgmr.msra.gmra.mxu1 %v7361_v5  ;;  %2726 = vmatprep.subr.mxu0 %v10751_v34  ;;  %v10754_v5 = vld [vmem:[#allocation21_spill] sm:$0xff] }
 0x4ad   : > { %2659 = vmatprep.mubr.f32.mxu1 %v7406_v40  ;;  %2727 = vmatpush2.msra.mxu0 %v10166_v58  ;;  %v10752_v40 = vld [vmem:[#allocation19_spill] sm:$0xff]  ;;  %v10762_v34 = vld [vmem:[#allocation29_spill] sm:$0xff]  ;;  %v10765_v58 = vld [vmem:[#allocation30_spill] sm:$0xff] }
 0x4ae   : > { %2728 = vmatprep.subr.mxu0 %v10165_v15  ;;  %2864 = vmatprep.subr.mxu1 %v5723_v11  ;;  %v10764_v15 = vld [vmem:[#allocation31_spill] sm:$0xff] }
 0x4af   : > { %2729 = vmatpush2.msra.mxu0 %v10164_v35  ;;  %2865 = vmatpush1.msra.mxu1 %v5727_v13  ;;  %v10763_v35 = vld [vmem:[#allocation28_spill] sm:$0xff] }
 0x4b0   : > { %2660 = vmatmul.mubr.f32.gmra.mxu1 %v7421_v53  ;;  %2731 = vmatmul.mubr.f32.vlgmr.msra.gmra.mxu0 %v7391_v8  ;;  %v10753_v8 = vld [vmem:[#allocation18_spill] sm:$0xff]  ;;  %v10755_v53 = vld [vmem:[#allocation20_spill] sm:$0xff] }
 0x4b1   : > { %2736 = vmatprep.mubr.f32.mxu0 %v7438_v16  ;;  %2941 = vmatprep.subr.mxu0 %v5725_v12  ;;  %v10757_v16 = vld [vmem:[#allocation22_spill] sm:$0xff] }
 0x4b2   : > { %2942 = vmatpush1.msra.mxu0 %v5729_v14  ;;  %2866 = vmatprep.subr.mxu1 %v5734_v18 }
 0x4b3   : > { %2943 = vmatprep.subr.mxu0 %v5736_v19  ;;  %2867 = vmatpush1.msra.mxu1 %v5738_v20 }
 0x4b4   : > { %2737 = vmatmul.mubr.f32.gmra.mxu0 %v7460_v46  ;;  %2868 = vmatprep.subr.mxu1 %v5746_v24  ;;  %v10758_v46 = vld [vmem:[#allocation25_spill] sm:$0xff] }
 0x4b5   : > { %2944 = vmatpush1.msra.mxu0 %v5740_v21  ;;  %2869 = vmatpush1.msra.mxu1 %v5752_v26 }
 0x4b6   : > { %2945 = vmatprep.subr.mxu0 %v5748_v25  ;;  %2870 = vmatprep.subr.mxu1 %v5760_v30 }
 0x4b7   : > { %2946 = vmatpush1.msra.mxu0 %v5754_v27  ;;  %2871 = vmatpush1.msra.mxu1 %v5766_v32 }
 0x4b8   : > { %2947 = vmatprep.subr.mxu0 %v5762_v31  ;;  %2872 = vmatprep.subr.mxu1 %v5774_v36 }
 0x4b9   : > { %2948 = vmatpush1.msra.mxu0 %v5768_v33  ;;  %2873 = vmatpush1.msra.mxu1 %v5780_v38 }
 0x4ba   : > { %2949 = vmatprep.subr.mxu0 %v5776_v37  ;;  %2874 = vmatprep.subr.mxu1 %v5788_v42 }
 0x4bb   : > { %2950 = vmatpush1.msra.mxu0 %v5782_v39  ;;  %2875 = vmatpush1.msra.mxu1 %v5794_v44 }
 0x4bc   : > { %2951 = vmatprep.subr.mxu0 %v5790_v43  ;;  %2876 = vmatprep.subr.mxu1 %v5802_v48 }
 0x4bd   : > { %2952 = vmatpush1.msra.mxu0 %v5796_v45  ;;  %2877 = vmatpush1.msra.mxu1 %v5808_v50 }
 0x4be   : > { %2953 = vmatprep.subr.mxu0 %v5804_v49  ;;  %2878 = vmatprep.subr.mxu1 %v5816_v54 }
 0x4bf   : > { %2954 = vmatpush1.msra.mxu0 %v5810_v51  ;;  %2879 = vmatpush1.msra.mxu1 %v5822_v56 }
 0x4c0   : > { %2955 = vmatprep.subr.mxu0 %v5818_v55  ;;  %2880 = vmatprep.subr.mxu1 %v5830_v60 }
 0x4c1   : > { %2956 = vmatpush1.msra.mxu0 %v5824_v57  ;;  %2881 = vmatpush1.msra.mxu1 %v5836_v62 }
 0x4c2   : > { %2957 = vmatprep.subr.mxu0 %v5832_v61  ;;  %2882 = vmatprep.subr.mxu1 %v5844_v2  ;;  %v5564_v2 = vld [vmem:[#allocation2 + $0x8] sm:$0xff] }
 0x4c3   : > { %2958 = vmatpush1.msra.mxu0 %v5838_v63  ;;  %2883 = vmatpush1.msra.mxu1 %v5850_v4  ;;  %v5563_v4 = vld [vmem:[#allocation2 + $0x18] sm:$0xff] }
 0x4c4   : > { %2959 = vmatprep.subr.mxu0 %v5846_v3  ;;  %2884 = vmatprep.subr.mxu1 %v10752_v40  ;;  %v5562_v40 = vld [vmem:[#allocation2 + $0x20] sm:$0xff] }
 0x4c5   : > { %2960 = vmatpush1.msra.mxu0 %v10753_v8  ;;  %2885 = vmatpush1.msra.mxu1 %v10754_v5 }
 0x4c6   : > { %2961 = vmatprep.subr.mxu0 %v10755_v53  ;;  %2886 = vmatprep.subr.mxu1 %v10756_v28 }
 0x4c7   : > { %2962 = vmatpush1.msra.mxu0 %v10757_v16  ;;  %2887 = vmatpush1.msra.mxu1 %v10758_v46 }
 0x4c8   : > { %2963 = vmatprep.subr.mxu0 %v10759_v59  ;;  %2888 = vmatprep.subr.mxu1 %v10760_v6  ;;  %v5561_v59 = vld [vmem:[#allocation2 + $0x30] sm:$0xff] }
 0x4c9   : > { %2964 = vmatpush1.msra.mxu0 %v10761_v17  ;;  %2889 = vmatpush1.msra.mxu1 %v10762_v34  ;;  %v5560_v17 = vld [vmem:[#allocation2] sm:$0xff] }
 0x4ca   : > { %2965 = vmatprep.subr.mxu0 %v10763_v35  ;;  %2890 = vmatprep.subr.mxu1 %v10764_v15 }
 0x4cb   : > { %2966 = vmatpush1.msra.mxu0 %v10765_v58  ;;  %2891 = vmatpush1.msra.mxu1 %v10766_v9  ;;  %v10777_v9 = vld [vmem:[#allocation42_spill] sm:$0xff] }
 0x4cc   : > { %2967 = vmatprep.subr.mxu0 %v10767_v47  ;;  %2892 = vmatprep.subr.mxu1 %v10768_v41  ;;  %v10778_v47 = vld [vmem:[#allocation45_spill] sm:$0xff]  ;;  %v10779_v41 = vld [vmem:[#allocation44_spill] sm:$0xff] }
 0x4cd   : > { %2968 = vmatpush1.msra.mxu0 %v10769_v7  ;;  %2893 = vmatpush1.msra.mxu1 %v10770_v10  ;;  %v10780_v7 = vld [vmem:[#allocation47_spill] sm:$0xff]  ;;  %v10781_v10 = vld [vmem:[#allocation46_spill] sm:$0xff] }
 0x4ce   : > { %2969 = vmatprep.subr.mxu0 %v10771_v52  ;;  %2894 = vmatprep.subr.mxu1 %v10772_v0  ;;  %v10782_v52 = vld [vmem:[#allocation49_spill] sm:$0xff]  ;;  %v10783_v0 = vld [vmem:[#allocation48_spill] sm:$0xff] }
 0x4cf   : > { %2970 = vmatpush1.msra.mxu0 %v10773_v1  ;;  %2895 = vmatpush1.msra.mxu1 %v10774_v23  ;;  %v10784_v1 = vld [vmem:[#allocation51_spill] sm:$0xff]  ;;  %v10785_v23 = vld [vmem:[#allocation50_spill] sm:$0xff] }
 0x4d0   : > { %2971 = vmatprep.subr.mxu0 %v10775_v22  ;;  %2896 = vmatprep.subr.mxu1 %v10776_v29  ;;  %v10786_v22 = vld [vmem:[#allocation53_spill] sm:$0xff]  ;;  %v10787_v29 = vld [vmem:[#allocation52_spill] sm:$0xff] }
 0x4d1   : > { %2972 = vmatpush1.msra.mxu0 %v10777_v9  ;;  %2897 = vmatpush2.msra.mxu1 %v10778_v47  ;;  %v10788_v9 = vld [vmem:[#allocation55_spill] sm:$0xff]  ;;  %v10789_v47 = vld [vmem:[#allocation54_spill] sm:$0xff] }
 0x4d2   : > { %2973 = vmatprep.subr.mxu0 %v10779_v41  ;;  %2898 = vmatprep.subr.mxu1 %v10780_v7  ;;  %v10790_v41 = vld [vmem:[#allocation57_spill] sm:$0xff]  ;;  %v10791_v7 = vld [vmem:[#allocation56_spill] sm:$0xff] }
 0x4d3   : > { %2974 = vmatpush2.msra.mxu0 %v10781_v10  ;;  %2899 = vmatpush2.msra.mxu1 %v10782_v52  ;;  %v10792_v10 = vld [vmem:[#allocation59_spill] sm:$0xff]  ;;  %v10793_v52 = vld [vmem:[#allocation58_spill] sm:$0xff] }
 0x4d4   : > { %2975 = vmatprep.subr.mxu0 %v10783_v0  ;;  %2900 = vmatprep.subr.mxu1 %v10784_v1  ;;  %v10794_v0 = vld [vmem:[#allocation61_spill] sm:$0xff]  ;;  %v10795_v1 = vld [vmem:[#allocation60_spill] sm:$0xff] }
 0x4d5   : > { %2976 = vmatpush2.msra.mxu0 %v10785_v23  ;;  %2901 = vmatpush2.msra.mxu1 %v10786_v22  ;;  %v10796_v23 = vld [vmem:[#allocation63_spill] sm:$0xff]  ;;  %v10797_v22 = vld [vmem:[#allocation62_spill] sm:$0xff] }
 0x4d6   : > { %2977 = vmatprep.subr.mxu0 %v10787_v29  ;;  %2902 = vmatprep.subr.mxu1 %v10788_v9  ;;  %v10798_v29 = vld [vmem:[#allocation65_spill] sm:$0xff]  ;;  %v10799_v9 = vld [vmem:[#allocation64_spill] sm:$0xff] }
 0x4d7   : > { %2978 = vmatpush2.msra.mxu0 %v10789_v47  ;;  %2903 = vmatpush2.msra.mxu1 %v10790_v41  ;;  %v10800_v47 = vld [vmem:[#allocation67_spill] sm:$0xff]  ;;  %v10801_v41 = vld [vmem:[#allocation66_spill] sm:$0xff] }
 0x4d8   : > { %2979 = vmatprep.subr.mxu0 %v10791_v7  ;;  %2904 = vmatprep.subr.mxu1 %v10792_v10  ;;  %v10802_v7 = vld [vmem:[#allocation69_spill] sm:$0xff]  ;;  %v10803_v10 = vld [vmem:[#allocation68_spill] sm:$0xff] }
 0x4d9   : > { %2980 = vmatpush2.msra.mxu0 %v10793_v52  ;;  %2905 = vmatpush2.msra.mxu1 %v10794_v0  ;;  %v10804_v52 = vld [vmem:[#allocation71_spill] sm:$0xff]  ;;  %v10805_v0 = vld [vmem:[#allocation70_spill] sm:$0xff] }
 0x4da   : > { %2981 = vmatprep.subr.mxu0 %v10795_v1  ;;  %2906 = vmatprep.subr.mxu1 %v10796_v23  ;;  %v10806_v1 = vld [vmem:[#allocation73_spill] sm:$0xff]  ;;  %v10807_v23 = vld [vmem:[#allocation72_spill] sm:$0xff] }
 0x4db   : > { %2982 = vmatpush2.msra.mxu0 %v10797_v22  ;;  %2907 = vmatpush2.msra.mxu1 %v10798_v29  ;;  %v10808_v22 = vld [vmem:[#allocation75_spill] sm:$0xff]  ;;  %v10809_v29 = vld [vmem:[#allocation74_spill] sm:$0xff] }
 0x4dc   : > { %2983 = vmatprep.subr.mxu0 %v10799_v9  ;;  %2908 = vmatprep.subr.mxu1 %v10800_v47  ;;  %v10810_v9 = vld [vmem:[#allocation77_spill] sm:$0xff]  ;;  %v10811_v47 = vld [vmem:[#allocation76_spill] sm:$0xff] }
 0x4dd   : > { %2984 = vmatpush2.msra.mxu0 %v10801_v41  ;;  %2909 = vmatpush2.msra.mxu1 %v10802_v7  ;;  %v10812_v41 = vld [vmem:[#allocation79_spill] sm:$0xff]  ;;  %v10813_v7 = vld [vmem:[#allocation78_spill] sm:$0xff] }
 0x4de   : > { %2985 = vmatprep.subr.mxu0 %v10803_v10  ;;  %2910 = vmatprep.subr.mxu1 %v10804_v52  ;;  %v10814_v10 = vld [vmem:[#allocation81_spill] sm:$0xff]  ;;  %v10815_v52 = vld [vmem:[#allocation80_spill] sm:$0xff] }
 0x4df   : > { %2986 = vmatpush2.msra.mxu0 %v10805_v0  ;;  %2911 = vmatpush2.msra.mxu1 %v10806_v1  ;;  %v10816_v0 = vld [vmem:[#allocation83_spill] sm:$0xff]  ;;  %v10817_v1 = vld [vmem:[#allocation82_spill] sm:$0xff] }
 0x4e0   : > { %2987 = vmatprep.subr.mxu0 %v10807_v23  ;;  %2912 = vmatprep.subr.mxu1 %v10808_v22  ;;  %v10818_v23 = vld [vmem:[#allocation85_spill] sm:$0xff]  ;;  %v10819_v22 = vld [vmem:[#allocation84_spill] sm:$0xff] }
 0x4e1   : > { %2988 = vmatpush2.msra.mxu0 %v10809_v29  ;;  %2913 = vmatpush2.msra.mxu1 %v10810_v9  ;;  %v10820_v29 = vld [vmem:[#allocation87_spill] sm:$0xff]  ;;  %v10821_v9 = vld [vmem:[#allocation86_spill] sm:$0xff] }
 0x4e2   : > { %2989 = vmatprep.subr.mxu0 %v10811_v47  ;;  %2914 = vmatprep.subr.mxu1 %v10812_v41  ;;  %v10822_v47 = vld [vmem:[#allocation89_spill] sm:$0xff]  ;;  %v10823_v41 = vld [vmem:[#allocation88_spill] sm:$0xff] }
 0x4e3   : > { %2990 = vmatpush2.msra.mxu0 %v10813_v7  ;;  %2915 = vmatpush2.msra.mxu1 %v10814_v10  ;;  %v10824_v7 = vld [vmem:[#allocation91_spill] sm:$0xff]  ;;  %v10825_v10 = vld [vmem:[#allocation90_spill] sm:$0xff] }
 0x4e4   : > { %2991 = vmatprep.subr.mxu0 %v10815_v52  ;;  %2916 = vmatprep.subr.mxu1 %v10816_v0  ;;  %v10826_v52 = vld [vmem:[#allocation93_spill] sm:$0xff]  ;;  %v10827_v0 = vld [vmem:[#allocation92_spill] sm:$0xff] }
 0x4e5   : > { %2992 = vmatpush2.msra.mxu0 %v10817_v1  ;;  %2917 = vmatpush2.msra.mxu1 %v10818_v23  ;;  %v10828_v1 = vld [vmem:[#allocation95_spill] sm:$0xff]  ;;  %v10829_v23 = vld [vmem:[#allocation94_spill] sm:$0xff] }
 0x4e6   : > { %2993 = vmatprep.subr.mxu0 %v10819_v22  ;;  %2918 = vmatprep.subr.mxu1 %v10820_v29  ;;  %v10830_v22 = vld [vmem:[#allocation97_spill] sm:$0xff]  ;;  %v10831_v29 = vld [vmem:[#allocation96_spill] sm:$0xff] }
 0x4e7   : > { %2994 = vmatpush2.msra.mxu0 %v10821_v9  ;;  %2919 = vmatpush2.msra.mxu1 %v10822_v47  ;;  %v10832_v9 = vld [vmem:[#allocation99_spill] sm:$0xff]  ;;  %v10833_v47 = vld [vmem:[#allocation98_spill] sm:$0xff] }
 0x4e8   : > { %2995 = vmatprep.subr.mxu0 %v10823_v41  ;;  %2920 = vmatprep.subr.mxu1 %v10824_v7  ;;  %v10834_v41 = vld [vmem:[#allocation101_spill] sm:$0xff]  ;;  %v10835_v7 = vld [vmem:[#allocation100_spill] sm:$0xff] }
 0x4e9   : > { %2996 = vmatpush2.msra.mxu0 %v10825_v10  ;;  %2921 = vmatpush2.msra.mxu1 %v10826_v52  ;;  %v10836_v10 = vld [vmem:[#allocation103_spill] sm:$0xff]  ;;  %v10837_v52 = vld [vmem:[#allocation102_spill] sm:$0xff] }
 0x4ea   : > { %2997 = vmatprep.subr.mxu0 %v10827_v0  ;;  %2922 = vmatprep.subr.mxu1 %v10828_v1  ;;  %v10838_v0 = vld [vmem:[#allocation105_spill] sm:$0xff]  ;;  %v10839_v1 = vld [vmem:[#allocation104_spill] sm:$0xff] }
 0x4eb   : > { %2998 = vmatpush2.msra.mxu0 %v10829_v23  ;;  %2923 = vmatpush2.msra.mxu1 %v10830_v22  ;;  %v10840_v23 = vld [vmem:[#allocation107_spill] sm:$0xff]  ;;  %v10841_v22 = vld [vmem:[#allocation106_spill] sm:$0xff] }
 0x4ec   : > { %2999 = vmatprep.subr.mxu0 %v10831_v29  ;;  %2924 = vmatprep.subr.mxu1 %v10832_v9  ;;  %v10842_v29 = vld [vmem:[#allocation108_spill] sm:$0xff] }
 0x4ed   : > { %3000 = vmatpush2.msra.mxu0 %v10833_v47  ;;  %2925 = vmatpush2.msra.mxu1 %v10834_v41 }
 0x4ee   : > { %3001 = vmatprep.subr.mxu0 %v10835_v7  ;;  %2926 = vmatprep.subr.mxu1 %v10836_v10 }
 0x4ef   : > { %3002 = vmatpush2.msra.mxu0 %v10837_v52  ;;  %2927 = vmatpush2.msra.mxu1 %v10838_v0 }
 0x4f0   : > { %3003 = vmatprep.subr.mxu0 %v10839_v1  ;;  %3018 = vmatprep.subr.mxu1 %v10840_v23 }
 0x4f1   : > { %3004 = vmatpush2.msra.mxu0 %v10841_v22 }
 0x4f2   : > { %3095 = vmatprep.subr.mxu0 %v10842_v29 }
 0x529   : > { %v2501_v9 = vpop.f32.mrf.mxu1 }
 0x52b   : > { %v2503_v15 = vpop.f32.mrf.mxu1 }
 0x52d   : > { %v2578_v47 = vpop.f32.mrf.mxu0 }
 0x52e   : > { %v2579_v6 = vadd.f32 %v2578_v47, %v2501_v9  ;;  %v5565_v47 = vld [vmem:[#allocation2 + $0x10] sm:$0xff] }
 0x52f   : > { %v2580_v41 = vpop.f32.mrf.mxu0 }
 0x530   : > { %v2581_v10 = vadd.f32 %v2580_v41, %v2503_v15  ;;  %v2743_v22 = vadd.f32 %v5561_v59, %v2579_v6  ;;  %v5567_v6 = vld [vmem:[#allocation2 + $0x38] sm:$0xff] }
 0x532   : > { %v2507_v58 = vpop.f32.mrf.mxu1  ;;  %v2744_v1 = vadd.f32 %v5560_v17, %v2581_v10 }
 0x534   : > { %v2509_v34 = vpop.f32.mrf.mxu1  ;;  %v2751_v53 = vadd.f32 %v2744_v1, %v2743_v22 }
 0x538   : > { %v2584_v7 = vpop.f32.mrf.mxu0 }
 0x539   : > { %v2585_v28 = vadd.f32 %v2584_v7, %v2507_v58  ;;  %v5566_v7 = vld [vmem:[#allocation2 + $0x28] sm:$0xff] }
 0x53a   : > { %v2586_v35 = vpop.f32.mrf.mxu0 }
 0x53b   : > { %v2587_v46 = vadd.f32 %v2586_v35, %v2509_v34  ;;  %v2747_v9 = vadd.f32 %v5564_v2, %v2585_v28 }
 0x53d   : > { %v2748_v8 = vadd.f32 %v5562_v40, %v2587_v46 }
 0x53f   : > { %v2756_v59 = vadd.f32 %v2748_v8, %v2747_v9 }
 0x56c   : > { %v2655_v52 = vpop.f32.mrf.mxu1 }
 0x56e   : > { %v2657_v0 = vpop.f32.mrf.mxu1 }
 0x570   : > { %v2732_v23 = vpop.f32.mrf.mxu0  ;;  %v2661_v16 = vpop.f32.mrf.mxu1 }
 0x571   : > { %v2733_v29 = vadd.f32 %v2732_v23, %v2655_v52 }
 0x572   : > { %v2734_v5 = vpop.f32.mrf.mxu0  ;;  %v2663_v17 = vpop.f32.mrf.mxu1 }
 0x573   : > { %v2745_v3 = vadd.f32 %v5563_v4, %v2733_v29  ;;  %v2735_v41 = vadd.f32 %v2734_v5, %v2657_v0 }
 0x574   : > { %v2738_v15 = vpop.f32.mrf.mxu0 }
 0x575   : > { %v2746_v63 = vadd.f32 %v5565_v47, %v2735_v41  ;;  %v2739_v10 = vadd.f32 %v2738_v15, %v2661_v16  ;;  %v2752_v35 = vadd.f32 %v2751_v53, %v2745_v3 }
 0x576   : > { %v2740_v34 = vpop.f32.mrf.mxu0 }
 0x577   : > { %v2749_v23 = vadd.f32 %v5566_v7, %v2739_v10  ;;  %v2741_v52 = vadd.f32 %v2740_v34, %v2663_v17  ;;  %v2753_v58 = vadd.f32 %v2752_v35, %v2746_v63 }
 0x579   : > { %v2750_v62 = vadd.f32 %v5567_v6, %v2741_v52  ;;  %2754 = vadd.xlane.f32.xlu0 %v2753_v58  ;;  %v2757_v40 = vadd.f32 %v2756_v59, %v2749_v23 }
 0x57b   : > { %v2758_v4 = vadd.f32 %v2757_v40, %v2750_v62 }
 0x57d   : > { %2759 = vadd.xlane.f32.xlu1 %v2758_v4 }
 0x602   : > { %v2755_v29 = vpop.xlane.xlu0 %2754 }
 0x603   : > { %v2762_v0 = vmul.f32 0.001953125, %v2755_v29 }
 0x605   : > { %v2764_v2 = vsub.f32 %v2743_v22, %v2762_v0  ;;  %v2765_v5 = vsub.f32 %v2744_v1, %v2762_v0  ;;  %v2766_v28 = vsub.f32 %v2745_v3, %v2762_v0  ;;  %v2767_v53 = vsub.f32 %v2746_v63, %v2762_v0 }
 0x606   : > { %v2760_v16 = vpop.xlane.xlu1 %2759 }
 0x607   : > { %v2763_v46 = vmul.f32 0.001953125, %v2760_v16  ;;  %v2772_v41 = vmul.f32 %v2764_v2, %v2764_v2  ;;  %v2773_v15 = vmul.f32 %v2765_v5, %v2765_v5  ;;  %v2774_v47 = vmul.f32 %v2766_v28, %v2766_v28 }
 0x608   : > { %v2775_v7 = vmul.f32 %v2767_v53, %v2767_v53 }
 0x609   : > { %v2768_v10 = vsub.f32 %v2747_v9, %v2763_v46  ;;  %v2769_v17 = vsub.f32 %v2748_v8, %v2763_v46  ;;  %v2780_v35 = vadd.f32 %v2773_v15, %v2772_v41  ;;  %v2770_v34 = vsub.f32 %v2749_v23, %v2763_v46 }
 0x60a   : > { %v2771_v59 = vsub.f32 %v2750_v62, %v2763_v46  ;;  %v10843_v62 = vld [vmem:[#allocation235_spill] sm:$0xff] }
 0x60b   : > { %v2781_v52 = vadd.f32 %v2780_v35, %v2774_v47  ;;  %v2776_v58 = vmul.f32 %v2768_v10, %v2768_v10  ;;  %v2777_v6 = vmul.f32 %v2769_v17, %v2769_v17  ;;  %v2778_v4 = vmul.f32 %v2770_v34, %v2770_v34  ;;  %v2804_v35 = vld [vmem:[%s5688_s26] sm:$0xf] }
 0x60c   : > { %v2779_v3 = vmul.f32 %v2771_v59, %v2771_v59  ;;  %v8076_v46 = vsub.s32 1, %v10843_v62  ;;  %v2820_v41 = vsub.s32 3, %v10843_v62  ;;  %v8080_v15 = vsub.s32 0, %v10843_v62 }
 0x60d   : > { %v2782_v40 = vadd.f32 %v2781_v52, %v2775_v7  ;;  %v2785_v22 = vadd.f32 %v2777_v6, %v2776_v58  ;;  %v2816_v47 = vsub.s32 2, %v10843_v62  ;;  %v2834_v7 = vld [vmem:[%s5693_s29] sm:$0xf] }
 0x60e   : > { %10844 = vst [vmem:[#allocation235_spill] sm:$0xff] %v8076_v46  ;;  %10845 = vst [vmem:[#allocation365_spill] sm:$0xff] %v8080_v15  ;;  %v2813_v52 = vrot.slane %v2804_v35, %v8076_v46  ;;  %v2821_v58 = vrot.slane %v2804_v35, %v2820_v41  ;;  %v2809_v6 = vrot.slane %v2804_v35, %v8080_v15 }
 0x60f   : > { %2783 = vadd.xlane.f32.xlu0 %v2782_v40  ;;  %v2786_v63 = vadd.f32 %v2785_v22, %v2778_v4  ;;  %v2817_v40 = vrot.slane %v2804_v35, %v2816_v47  ;;  %v2843_v22 = vrot.slane %v2834_v7, %v8076_v46 }
 0x611   : > { %v2787_v1 = vadd.f32 %v2786_v63, %v2779_v3  ;;  %v2851_v3 = vrot.slane %v2834_v7, %v2820_v41  ;;  %v2839_v63 = vrot.slane %v2834_v7, %v8080_v15 }
 0x613   : > { %2788 = vadd.xlane.f32.xlu1 %v2787_v1  ;;  %v2847_v1 = vrot.slane %v2834_v7, %v2816_v47  ;;  %v10847_v47 = vld [vmem:[#allocation110_spill] sm:$0xff] }
 0x698   : > { %v2784_v29 = vpop.xlane.xlu0 %2783 }
 0x699   : > { %v2790_v9 = vmul.f32 0.001953125, %v2784_v29 }
 0x69b   : > { %v2792_v8 = vadd.f32 1e-05, %v2790_v9 }
 0x69c   : > { %v2789_v0 = vpop.xlane.xlu1 %2788 }
 0x69d   : > { %5524 = vrsqrt.f32 %v2792_v8  ;;  %v2791_v23 = vmul.f32 0.001953125, %v2789_v0 }
 0x69f   : > { %v2793_v16 = vadd.f32 1e-05, %v2791_v23 }
 0x6a1   : > { %5526 = vrsqrt.f32 %v2793_v16 }
 0x6aa   : > { %v5525_v4 = vpop.eup %5524 }
 0x6ab   : > { %v2797_v29 = vmul.f32 %v5525_v4, %v2765_v5  ;;  %v2799_v9 = vmul.f32 %v5525_v4, %v2767_v53  ;;  %v2796_v8 = vmul.f32 %v5525_v4, %v2764_v2  ;;  %v2798_v0 = vmul.f32 %v5525_v4, %v2766_v28  ;;  %v10846_v53 = vld [vmem:[#allocation109_spill] sm:$0xff]  ;;  %v10857_v4 = vld [vmem:[#allocation120_spill] sm:$0xff] }
 0x6ad   : > { %v2827_v23 = vmul.f32 %v2813_v52, %v2797_v29  ;;  %v2829_v16 = vmul.f32 %v2821_v58, %v2799_v9  ;;  %v2826_v62 = vmul.f32 %v2809_v6, %v2796_v8  ;;  %v2828_v61 = vmul.f32 %v2817_v40, %v2798_v0  ;;  %v10862_v29 = vld [vmem:[#allocation125_spill] sm:$0xff]  ;;  %v10863_v9 = vld [vmem:[#allocation126_spill] sm:$0xff]  ;;  %v10864_v8 = vld [vmem:[#allocation127_spill] sm:$0xff] }
 0x6ae   : > { %v5527_v60 = vpop.eup %5526  ;;  %v10865_v0 = vld [vmem:[#allocation128_spill] sm:$0xff] }
 0x6af   : > { %v2857_v57 = vadd.f32 %v2843_v22, %v2827_v23  ;;  %v2859_v56 = vadd.f32 %v2851_v3, %v2829_v16  ;;  %v8089_v55 = vadd.f32 %v2839_v63, %v2826_v62  ;;  %v8091_v35 = vadd.f32 %v2847_v1, %v2828_v61  ;;  %v10848_v61 = vld [vmem:[#allocation111_spill] sm:$0xff]  ;;  %v10867_v23 = vld [vmem:[#allocation130_spill] sm:$0xff]  ;;  %v10869_v16 = vld [vmem:[#allocation132_spill] sm:$0xff] }
 0x6b0   : > { %v2801_v46 = vmul.f32 %v5527_v60, %v2769_v17  ;;  %v2803_v41 = vmul.f32 %v5527_v60, %v2771_v59  ;;  %v2800_v54 = vmul.f32 %v5527_v60, %v2768_v10  ;;  %v2802_v15 = vmul.f32 %v5527_v60, %v2770_v34  ;;  %v10849_v17 = vld [vmem:[#allocation112_spill] sm:$0xff]  ;;  %v10850_v59 = vld [vmem:[#allocation113_spill] sm:$0xff] }
 0x6b1   : > { %2928 = vmatprep.mubr.f32.mxu1 %v2857_v57  ;;  %3005 = vmatprep.mubr.f32.mxu0 %v2859_v56  ;;  %v10870_v62 = vld [vmem:[#allocation133_spill] sm:$0xff] }
 0x6b2   : > { %2929 = vmatmul.mubr.f32.vlgmr.msra.gmra.mxu1 %v8089_v55  ;;  %3006 = vmatmul.mubr.f32.vlgmr.msra.gmra.mxu0 %v8091_v35  ;;  %v2831_v2 = vmul.f32 %v2813_v52, %v2801_v46  ;;  %v2833_v5 = vmul.f32 %v2821_v58, %v2803_v41  ;;  %v2830_v28 = vmul.f32 %v2809_v6, %v2800_v54  ;;  %v10851_v46 = vld [vmem:[#allocation114_spill] sm:$0xff]  ;;  %v10853_v52 = vld [vmem:[#allocation116_spill] sm:$0xff]  ;;  %v10854_v58 = vld [vmem:[#allocation117_spill] sm:$0xff] }
 0x6b3   : > { %3019 = vmatpush1.msra.mxu1 %v10846_v53  ;;  %3096 = vmatpush1.msra.mxu0 %v10847_v47  ;;  %v2832_v7 = vmul.f32 %v2817_v40, %v2802_v15  ;;  %v10852_v15 = vld [vmem:[#allocation115_spill] sm:$0xff]  ;;  %v10855_v6 = vld [vmem:[#allocation118_spill] sm:$0xff] }
 0x6b4   : > { %3020 = vmatprep.subr.mxu1 %v10848_v61  ;;  %3097 = vmatprep.subr.mxu0 %v10849_v17  ;;  %v8099_v10 = vadd.f32 %v2843_v22, %v2831_v2  ;;  %v8101_v60 = vadd.f32 %v2851_v3, %v2833_v5  ;;  %v8103_v34 = vadd.f32 %v2839_v63, %v2830_v28  ;;  %v10856_v40 = vld [vmem:[#allocation119_spill] sm:$0xff]  ;;  %v10858_v22 = vld [vmem:[#allocation121_spill] sm:$0xff]  ;;  %v10859_v3 = vld [vmem:[#allocation122_spill] sm:$0xff] }
 0x6b5   : > { %3021 = vmatpush1.msra.mxu1 %v10850_v59  ;;  %3098 = vmatpush1.msra.mxu0 %v10851_v46  ;;  %v8107_v54 = vadd.f32 %v2847_v1, %v2832_v7  ;;  %v10860_v63 = vld [vmem:[#allocation123_spill] sm:$0xff]  ;;  %v10861_v1 = vld [vmem:[#allocation124_spill] sm:$0xff]  ;;  %v10871_v41 = vld [vmem:[#allocation134_spill] sm:$0xff] }
 0x6b6   : > { %2934 = vmatprep.mubr.f32.mxu1 %v8099_v10  ;;  %3011 = vmatprep.mubr.f32.mxu0 %v8101_v60  ;;  %v10872_v2 = vld [vmem:[#allocation135_spill] sm:$0xff]  ;;  %v10873_v5 = vld [vmem:[#allocation136_spill] sm:$0xff]  ;;  %v10874_v28 = vld [vmem:[#allocation137_spill] sm:$0xff] }
 0x6b7   : > { %3022 = vmatprep.subr.mxu1 %v10852_v15  ;;  %3099 = vmatprep.subr.mxu0 %v10853_v52  ;;  %v10875_v7 = vld [vmem:[#allocation138_spill] sm:$0xff] }
 0x6b8   : > { %2935 = vmatmul.mubr.f32.gmra.mxu1 %v8103_v34  ;;  %3012 = vmatmul.mubr.f32.gmra.mxu0 %v8107_v54 }
 0x6b9   : > { %3023 = vmatpush1.msra.mxu1 %v10854_v58  ;;  %3100 = vmatpush1.msra.mxu0 %v10855_v6 }
 0x6ba   : > { %3024 = vmatprep.subr.mxu1 %v10856_v40  ;;  %3082 = vmatprep.mubr.f32.mxu1 %v2857_v57  ;;  %v10866_v57 = vld [vmem:[#allocation129_spill] sm:$0xff] }
 0x6bb   : > { %3101 = vmatprep.subr.mxu0 %v10857_v4  ;;  %3159 = vmatprep.mubr.f32.mxu0 %v2859_v56  ;;  %v10868_v56 = vld [vmem:[#allocation131_spill] sm:$0xff] }
 0x6bc   : > { %3025 = vmatpush1.msra.mxu1 %v10858_v22  ;;  %3102 = vmatpush1.msra.mxu0 %v10859_v3 }
 0x6bd   : > { %3026 = vmatprep.subr.mxu1 %v10860_v63  ;;  %3103 = vmatprep.subr.mxu0 %v10861_v1 }
 0x6be   : > { %3027 = vmatpush1.msra.mxu1 %v10862_v29  ;;  %3104 = vmatpush1.msra.mxu0 %v10863_v9 }
 0x6bf   : > { %3028 = vmatprep.subr.mxu1 %v10864_v8  ;;  %3105 = vmatprep.subr.mxu0 %v10865_v0  ;;  %v10876_v0 = vld [vmem:[#allocation139_spill] sm:$0xff] }
 0x6c0   : > { %3029 = vmatpush1.msra.mxu1 %v10866_v57  ;;  %3106 = vmatpush1.msra.mxu0 %v10867_v23  ;;  %v10877_v57 = vld [vmem:[#allocation140_spill] sm:$0xff]  ;;  %v10878_v23 = vld [vmem:[#allocation141_spill] sm:$0xff] }
 0x6c1   : > { %3030 = vmatprep.subr.mxu1 %v10868_v56  ;;  %3107 = vmatprep.subr.mxu0 %v10869_v16  ;;  %v10879_v56 = vld [vmem:[#allocation142_spill] sm:$0xff]  ;;  %v10880_v16 = vld [vmem:[#allocation143_spill] sm:$0xff] }
 0x6c2   : > { %3031 = vmatpush1.msra.mxu1 %v10870_v62  ;;  %3108 = vmatpush1.msra.mxu0 %v10871_v41  ;;  %v10881_v62 = vld [vmem:[#allocation144_spill] sm:$0xff]  ;;  %v10882_v41 = vld [vmem:[#allocation145_spill] sm:$0xff] }
 0x6c3   : > { %3032 = vmatprep.subr.mxu1 %v10872_v2  ;;  %3109 = vmatprep.subr.mxu0 %v10873_v5  ;;  %v10883_v2 = vld [vmem:[#allocation146_spill] sm:$0xff]  ;;  %v10884_v5 = vld [vmem:[#allocation147_spill] sm:$0xff] }
 0x6c4   : > { %3033 = vmatpush1.msra.mxu1 %v10874_v28  ;;  %3110 = vmatpush1.msra.mxu0 %v10875_v7  ;;  %v10885_v28 = vld [vmem:[#allocation148_spill] sm:$0xff]  ;;  %v10886_v7 = vld [vmem:[#allocation149_spill] sm:$0xff] }
 0x6c5   : > { %3034 = vmatprep.subr.mxu1 %v10876_v0  ;;  %3111 = vmatprep.subr.mxu0 %v10877_v57  ;;  %v10887_v0 = vld [vmem:[#allocation150_spill] sm:$0xff]  ;;  %v10888_v57 = vld [vmem:[#allocation151_spill] sm:$0xff] }
 0x6c6   : > { %3035 = vmatpush1.msra.mxu1 %v10878_v23  ;;  %3112 = vmatpush1.msra.mxu0 %v10879_v56  ;;  %v10889_v23 = vld [vmem:[#allocation152_spill] sm:$0xff]  ;;  %v10890_v56 = vld [vmem:[#allocation153_spill] sm:$0xff] }
 0x6c7   : > { %3036 = vmatprep.subr.mxu1 %v10880_v16  ;;  %3113 = vmatprep.subr.mxu0 %v10881_v62  ;;  %v10891_v16 = vld [vmem:[#allocation154_spill] sm:$0xff]  ;;  %v10892_v62 = vld [vmem:[#allocation155_spill] sm:$0xff] }
 0x6c8   : > { %3037 = vmatpush1.msra.mxu1 %v10882_v41  ;;  %3114 = vmatpush1.msra.mxu0 %v10883_v2  ;;  %v10893_v41 = vld [vmem:[#allocation156_spill] sm:$0xff]  ;;  %v10894_v2 = vld [vmem:[#allocation157_spill] sm:$0xff] }
 0x6c9   : > { %3038 = vmatprep.subr.mxu1 %v10884_v5  ;;  %3115 = vmatprep.subr.mxu0 %v10885_v28  ;;  %v10895_v5 = vld [vmem:[#allocation158_spill] sm:$0xff]  ;;  %v10896_v28 = vld [vmem:[#allocation159_spill] sm:$0xff] }
 0x6ca   : > { %3039 = vmatpush1.msra.mxu1 %v10886_v7  ;;  %3116 = vmatpush1.msra.mxu0 %v10887_v0  ;;  %v10897_v7 = vld [vmem:[#allocation160_spill] sm:$0xff]  ;;  %v10898_v0 = vld [vmem:[#allocation161_spill] sm:$0xff] }
 0x6cb   : > { %3040 = vmatprep.subr.mxu1 %v10888_v57  ;;  %3117 = vmatprep.subr.mxu0 %v10889_v23  ;;  %v10899_v57 = vld [vmem:[#allocation162_spill] sm:$0xff]  ;;  %v10900_v23 = vld [vmem:[#allocation163_spill] sm:$0xff] }
 0x6cc   : > { %3041 = vmatpush1.msra.mxu1 %v10890_v56  ;;  %3118 = vmatpush1.msra.mxu0 %v10891_v16  ;;  %v10901_v56 = vld [vmem:[#allocation164_spill] sm:$0xff]  ;;  %v10902_v16 = vld [vmem:[#allocation165_spill] sm:$0xff] }
 0x6cd   : > { %3042 = vmatprep.subr.mxu1 %v10892_v62  ;;  %3119 = vmatprep.subr.mxu0 %v10893_v41  ;;  %v10903_v62 = vld [vmem:[#allocation166_spill] sm:$0xff]  ;;  %v10904_v41 = vld [vmem:[#allocation167_spill] sm:$0xff] }
 0x6ce   : > { %3043 = vmatpush1.msra.mxu1 %v10894_v2  ;;  %3120 = vmatpush1.msra.mxu0 %v10895_v5  ;;  %v10905_v2 = vld [vmem:[#allocation168_spill] sm:$0xff]  ;;  %v10906_v5 = vld [vmem:[#allocation169_spill] sm:$0xff] }
 0x6cf   : > { %3044 = vmatprep.subr.mxu1 %v10896_v28  ;;  %3121 = vmatprep.subr.mxu0 %v10897_v7  ;;  %v10907_v28 = vld [vmem:[#allocation170_spill] sm:$0xff]  ;;  %v10908_v7 = vld [vmem:[#allocation171_spill] sm:$0xff] }
 0x6d0   : > { %3045 = vmatpush1.msra.mxu1 %v10898_v0  ;;  %3122 = vmatpush1.msra.mxu0 %v10899_v57  ;;  %v10909_v0 = vld [vmem:[#allocation172_spill] sm:$0xff]  ;;  %v10910_v57 = vld [vmem:[#allocation173_spill] sm:$0xff] }
 0x6d1   : > { %3046 = vmatprep.subr.mxu1 %v10900_v23  ;;  %3123 = vmatprep.subr.mxu0 %v10901_v56  ;;  %v10911_v23 = vld [vmem:[#allocation174_spill] sm:$0xff]  ;;  %v10912_v56 = vld [vmem:[#allocation175_spill] sm:$0xff] }
 0x6d2   : > { %3047 = vmatpush1.msra.mxu1 %v10902_v16  ;;  %3124 = vmatpush1.msra.mxu0 %v10903_v62  ;;  %v10913_v16 = vld [vmem:[#allocation176_spill] sm:$0xff]  ;;  %v10914_v62 = vld [vmem:[#allocation177_spill] sm:$0xff] }
 0x6d3   : > { %3048 = vmatprep.subr.mxu1 %v10904_v41  ;;  %3125 = vmatprep.subr.mxu0 %v10905_v2  ;;  %v10915_v41 = vld [vmem:[#allocation178_spill] sm:$0xff]  ;;  %v10916_v2 = vld [vmem:[#allocation179_spill] sm:$0xff] }
 0x6d4   : > { %3049 = vmatpush1.msra.mxu1 %v10906_v5  ;;  %3126 = vmatpush1.msra.mxu0 %v10907_v28  ;;  %v10917_v5 = vld [vmem:[#allocation180_spill] sm:$0xff]  ;;  %v10918_v28 = vld [vmem:[#allocation181_spill] sm:$0xff] }
 0x6d5   : > { %3050 = vmatprep.subr.mxu1 %v10908_v7  ;;  %3127 = vmatprep.subr.mxu0 %v10909_v0  ;;  %v10919_v7 = vld [vmem:[#allocation182_spill] sm:$0xff]  ;;  %v10920_v0 = vld [vmem:[#allocation183_spill] sm:$0xff] }
 0x6d6   : > { %3051 = vmatpush2.msra.mxu1 %v10910_v57  ;;  %3128 = vmatpush2.msra.mxu0 %v10911_v23  ;;  %v10921_v57 = vld [vmem:[#allocation184_spill] sm:$0xff]  ;;  %v10922_v23 = vld [vmem:[#allocation185_spill] sm:$0xff] }
 0x6d7   : > { %3052 = vmatprep.subr.mxu1 %v10912_v56  ;;  %3129 = vmatprep.subr.mxu0 %v10913_v16  ;;  %v10923_v56 = vld [vmem:[#allocation186_spill] sm:$0xff]  ;;  %v10924_v16 = vld [vmem:[#allocation187_spill] sm:$0xff] }
 0x6d8   : > { %3053 = vmatpush2.msra.mxu1 %v10914_v62  ;;  %3130 = vmatpush2.msra.mxu0 %v10915_v41  ;;  %v10925_v62 = vld [vmem:[#allocation188_spill] sm:$0xff]  ;;  %v10926_v41 = vld [vmem:[#allocation189_spill] sm:$0xff] }
 0x6d9   : > { %3054 = vmatprep.subr.mxu1 %v10916_v2  ;;  %3131 = vmatprep.subr.mxu0 %v10917_v5  ;;  %v10927_v2 = vld [vmem:[#allocation190_spill] sm:$0xff]  ;;  %v10928_v5 = vld [vmem:[#allocation191_spill] sm:$0xff] }
 0x6da   : > { %3055 = vmatpush2.msra.mxu1 %v10918_v28  ;;  %3132 = vmatpush2.msra.mxu0 %v10919_v7  ;;  %v10929_v28 = vld [vmem:[#allocation192_spill] sm:$0xff]  ;;  %v10930_v7 = vld [vmem:[#allocation193_spill] sm:$0xff] }
 0x6db   : > { %3056 = vmatprep.subr.mxu1 %v10920_v0  ;;  %3133 = vmatprep.subr.mxu0 %v10921_v57  ;;  %v10931_v0 = vld [vmem:[#allocation194_spill] sm:$0xff]  ;;  %v10932_v57 = vld [vmem:[#allocation195_spill] sm:$0xff] }
 0x6dc   : > { %3057 = vmatpush2.msra.mxu1 %v10922_v23  ;;  %3134 = vmatpush2.msra.mxu0 %v10923_v56  ;;  %v10933_v23 = vld [vmem:[#allocation196_spill] sm:$0xff]  ;;  %v10934_v56 = vld [vmem:[#allocation197_spill] sm:$0xff] }
 0x6dd   : > { %3058 = vmatprep.subr.mxu1 %v10924_v16  ;;  %3135 = vmatprep.subr.mxu0 %v10925_v62  ;;  %v10935_v16 = vld [vmem:[#allocation198_spill] sm:$0xff]  ;;  %v10936_v62 = vld [vmem:[#allocation199_spill] sm:$0xff] }
 0x6de   : > { %3059 = vmatpush2.msra.mxu1 %v10926_v41  ;;  %3136 = vmatpush2.msra.mxu0 %v10927_v2  ;;  %v10937_v41 = vld [vmem:[#allocation200_spill] sm:$0xff]  ;;  %v10938_v2 = vld [vmem:[#allocation201_spill] sm:$0xff] }
 0x6df   : > { %3060 = vmatprep.subr.mxu1 %v10928_v5  ;;  %3137 = vmatprep.subr.mxu0 %v10929_v28  ;;  %v10939_v5 = vld [vmem:[#allocation202_spill] sm:$0xff]  ;;  %v10940_v28 = vld [vmem:[#allocation203_spill] sm:$0xff] }
 0x6e0   : > { %3061 = vmatpush2.msra.mxu1 %v10930_v7  ;;  %3138 = vmatpush2.msra.mxu0 %v10931_v0  ;;  %v10941_v7 = vld [vmem:[#allocation204_spill] sm:$0xff]  ;;  %v10942_v0 = vld [vmem:[#allocation205_spill] sm:$0xff] }
 0x6e1   : > { %3062 = vmatprep.subr.mxu1 %v10932_v57  ;;  %3139 = vmatprep.subr.mxu0 %v10933_v23  ;;  %v10943_v57 = vld [vmem:[#allocation206_spill] sm:$0xff]  ;;  %v10944_v23 = vld [vmem:[#allocation207_spill] sm:$0xff] }
 0x6e2   : > { %3063 = vmatpush2.msra.mxu1 %v10934_v56  ;;  %3140 = vmatpush2.msra.mxu0 %v10935_v16  ;;  %v10945_v56 = vld [vmem:[#allocation208_spill] sm:$0xff]  ;;  %v10946_v16 = vld [vmem:[#allocation209_spill] sm:$0xff] }
 0x6e3   : > { %3064 = vmatprep.subr.mxu1 %v10936_v62  ;;  %3141 = vmatprep.subr.mxu0 %v10937_v41  ;;  %v10947_v62 = vld [vmem:[#allocation210_spill] sm:$0xff]  ;;  %v10948_v41 = vld [vmem:[#allocation211_spill] sm:$0xff] }
 0x6e4   : > { %3065 = vmatpush2.msra.mxu1 %v10938_v2  ;;  %3142 = vmatpush2.msra.mxu0 %v10939_v5  ;;  %v10949_v2 = vld [vmem:[#allocation212_spill] sm:$0xff]  ;;  %v10950_v5 = vld [vmem:[#allocation213_spill] sm:$0xff] }
 0x6e5   : > { %3066 = vmatprep.subr.mxu1 %v10940_v28  ;;  %3143 = vmatprep.subr.mxu0 %v10941_v7  ;;  %v10951_v28 = vld [vmem:[#allocation214_spill] sm:$0xff]  ;;  %v10952_v7 = vld [vmem:[#allocation215_spill] sm:$0xff] }
 0x6e6   : > { %3067 = vmatpush2.msra.mxu1 %v10942_v0  ;;  %3144 = vmatpush2.msra.mxu0 %v10943_v57  ;;  %v10953_v0 = vld [vmem:[#allocation216_spill] sm:$0xff]  ;;  %v10954_v57 = vld [vmem:[#allocation217_spill] sm:$0xff] }
 0x6e7   : > { %3068 = vmatprep.subr.mxu1 %v10944_v23  ;;  %3145 = vmatprep.subr.mxu0 %v10945_v56  ;;  %v10955_v23 = vld [vmem:[#allocation218_spill] sm:$0xff]  ;;  %v10956_v56 = vld [vmem:[#allocation219_spill] sm:$0xff] }
 0x6e8   : > { %3069 = vmatpush2.msra.mxu1 %v10946_v16  ;;  %3146 = vmatpush2.msra.mxu0 %v10947_v62  ;;  %v10957_v16 = vld [vmem:[#allocation220_spill] sm:$0xff]  ;;  %v10958_v62 = vld [vmem:[#allocation221_spill] sm:$0xff] }
 0x6e9   : > { %3070 = vmatprep.subr.mxu1 %v10948_v41  ;;  %3147 = vmatprep.subr.mxu0 %v10949_v2  ;;  %v10959_v41 = vld [vmem:[#allocation222_spill] sm:$0xff]  ;;  %v10960_v2 = vld [vmem:[#allocation223_spill] sm:$0xff] }
 0x6ea   : > { %3071 = vmatpush2.msra.mxu1 %v10950_v5  ;;  %3148 = vmatpush2.msra.mxu0 %v10951_v28  ;;  %v10961_v5 = vld [vmem:[#allocation224_spill] sm:$0xff]  ;;  %v10962_v28 = vld [vmem:[#allocation225_spill] sm:$0xff] }
 0x6eb   : > { %3072 = vmatprep.subr.mxu1 %v10952_v7  ;;  %3149 = vmatprep.subr.mxu0 %v10953_v0  ;;  %v10963_v7 = vld [vmem:[#allocation226_spill] sm:$0xff]  ;;  %v10964_v0 = vld [vmem:[#allocation227_spill] sm:$0xff] }
 0x6ec   : > { %3073 = vmatpush2.msra.mxu1 %v10954_v57  ;;  %3150 = vmatpush2.msra.mxu0 %v10955_v23  ;;  %v10965_v57 = vld [vmem:[#allocation228_spill] sm:$0xff]  ;;  %v10966_v23 = vld [vmem:[#allocation229_spill] sm:$0xff] }
 0x6ed   : > { %3074 = vmatprep.subr.mxu1 %v10956_v56  ;;  %3151 = vmatprep.subr.mxu0 %v10957_v16  ;;  %v10967_v56 = vld [vmem:[#allocation230_spill] sm:$0xff]  ;;  %v10968_v16 = vld [vmem:[#allocation231_spill] sm:$0xff] }
 0x6ee   : > { %3075 = vmatpush2.msra.mxu1 %v10958_v62  ;;  %3152 = vmatpush2.msra.mxu0 %v10959_v41  ;;  %v10969_v62 = vld [vmem:[#allocation232_spill] sm:$0xff]  ;;  %v10970_v41 = vld [vmem:[#allocation233_spill] sm:$0xff] }
 0x6ef   : > { %3076 = vmatprep.subr.mxu1 %v10960_v2  ;;  %3153 = vmatprep.subr.mxu0 %v10961_v5  ;;  %v10971_v2 = vld [vmem:[#allocation234_spill] sm:$0xff] }
 0x6f0   : > { %3077 = vmatpush2.msra.mxu1 %v10962_v28  ;;  %3154 = vmatpush2.msra.mxu0 %v10963_v7 }
 0x6f1   : > { %3078 = vmatprep.subr.mxu1 %v10964_v0  ;;  %3155 = vmatprep.subr.mxu0 %v10965_v57 }
 0x6f2   : > { %3079 = vmatpush2.msra.mxu1 %v10966_v23  ;;  %3156 = vmatpush2.msra.mxu0 %v10967_v56 }
 0x6f3   : > { %3080 = vmatprep.subr.mxu1 %v10968_v16  ;;  %3157 = vmatprep.subr.mxu0 %v10969_v62 }
 0x6f4   : > { %3081 = vmatpush2.msra.mxu1 %v10970_v41  ;;  %3158 = vmatpush2.msra.mxu0 %v10971_v2 }
 0x6f5   : > { %3083 = vmatmul.mubr.f32.vlgmr.msra.gmra.mxu1 %v8089_v55  ;;  %3160 = vmatmul.mubr.f32.vlgmr.msra.gmra.mxu0 %v8091_v35  ;;  %v11000_v55 = vld [vmem:[#allocation35_spill] sm:$0xff]  ;;  %v11001_v35 = vld [vmem:[#allocation36_spill] sm:$0xff] }
 0x6f6   : > { %3180 = vmatprep.subr.mxu1 %v5723_v11  ;;  %3257 = vmatprep.subr.mxu0 %v5725_v12  ;;  %v10972_v11 = vld [vmem:[#allocation7_spill] sm:$0xff]  ;;  %v10973_v12 = vld [vmem:[#allocation8_spill] sm:$0xff] }
 0x6f7   : > { %3088 = vmatprep.mubr.f32.mxu1 %v8099_v10  ;;  %3165 = vmatprep.mubr.f32.mxu0 %v8101_v60  ;;  %v11002_v10 = vld [vmem:[#allocation37_spill] sm:$0xff]  ;;  %v11003_v60 = vld [vmem:[#allocation38_spill] sm:$0xff] }
 0x6f8   : > { %3181 = vmatpush1.msra.mxu1 %v5727_v13  ;;  %3258 = vmatpush1.msra.mxu0 %v5729_v14  ;;  %v10974_v13 = vld [vmem:[#allocation9_spill] sm:$0xff]  ;;  %v10975_v14 = vld [vmem:[#allocation10_spill] sm:$0xff] }
 0x6f9   : > { %3182 = vmatprep.subr.mxu1 %v5734_v18  ;;  %3259 = vmatprep.subr.mxu0 %v5736_v19  ;;  %v10976_v18 = vld [vmem:[#allocation11_spill] sm:$0xff]  ;;  %v10977_v19 = vld [vmem:[#allocation12_spill] sm:$0xff] }
 0x6fa   : > { %3183 = vmatpush1.msra.mxu1 %v5738_v20  ;;  %3260 = vmatpush1.msra.mxu0 %v5740_v21  ;;  %v10978_v20 = vld [vmem:[#allocation13_spill] sm:$0xff]  ;;  %v10979_v21 = vld [vmem:[#allocation14_spill] sm:$0xff] }
 0x6fb   : > { %3089 = vmatmul.mubr.f32.gmra.mxu1 %v8103_v34  ;;  %3166 = vmatmul.mubr.f32.gmra.mxu0 %v8107_v54  ;;  %v11004_v34 = vld [vmem:[#allocation39_spill] sm:$0xff]  ;;  %v11005_v54 = vld [vmem:[#allocation40_spill] sm:$0xff] }
 0x6fc   : > { %3184 = vmatprep.subr.mxu1 %v5746_v24  ;;  %3261 = vmatprep.subr.mxu0 %v5748_v25  ;;  %v10980_v24 = vld [vmem:[#allocation15_spill] sm:$0xff]  ;;  %v10981_v25 = vld [vmem:[#allocation16_spill] sm:$0xff] }
 0x6fd   : > { %3185 = vmatpush1.msra.mxu1 %v5752_v26  ;;  %3262 = vmatpush1.msra.mxu0 %v5754_v27  ;;  %v10982_v26 = vld [vmem:[#allocation17_spill] sm:$0xff]  ;;  %v10983_v27 = vld [vmem:[#allocation18_spill] sm:$0xff] }
 0x6fe   : > { %3186 = vmatprep.subr.mxu1 %v5760_v30  ;;  %3263 = vmatprep.subr.mxu0 %v5762_v31  ;;  %v10984_v30 = vld [vmem:[#allocation19_spill] sm:$0xff]  ;;  %v10985_v31 = vld [vmem:[#allocation20_spill] sm:$0xff] }
 0x6ff   : > { %3187 = vmatpush1.msra.mxu1 %v5766_v32  ;;  %3264 = vmatpush1.msra.mxu0 %v5768_v33  ;;  %v10986_v32 = vld [vmem:[#allocation21_spill] sm:$0xff]  ;;  %v10987_v33 = vld [vmem:[#allocation22_spill] sm:$0xff] }
 0x700   : > { %3188 = vmatprep.subr.mxu1 %v5774_v36  ;;  %3265 = vmatprep.subr.mxu0 %v5776_v37  ;;  %v10988_v36 = vld [vmem:[#allocation23_spill] sm:$0xff]  ;;  %v10989_v37 = vld [vmem:[#allocation24_spill] sm:$0xff] }
 0x701   : > { %3189 = vmatpush1.msra.mxu1 %v5780_v38  ;;  %3266 = vmatpush1.msra.mxu0 %v5782_v39  ;;  %v10990_v38 = vld [vmem:[#allocation25_spill] sm:$0xff]  ;;  %v10991_v39 = vld [vmem:[#allocation26_spill] sm:$0xff] }
 0x702   : > { %3190 = vmatprep.subr.mxu1 %v5788_v42  ;;  %3267 = vmatprep.subr.mxu0 %v5790_v43  ;;  %v10992_v42 = vld [vmem:[#allocation27_spill] sm:$0xff]  ;;  %v10993_v43 = vld [vmem:[#allocation28_spill] sm:$0xff] }
 0x703   : > { %3191 = vmatpush1.msra.mxu1 %v5794_v44  ;;  %3268 = vmatpush1.msra.mxu0 %v5796_v45  ;;  %v10994_v44 = vld [vmem:[#allocation29_spill] sm:$0xff]  ;;  %v10995_v45 = vld [vmem:[#allocation30_spill] sm:$0xff] }
 0x704   : > { %3192 = vmatprep.subr.mxu1 %v5802_v48  ;;  %3269 = vmatprep.subr.mxu0 %v5804_v49  ;;  %v10996_v48 = vld [vmem:[#allocation31_spill] sm:$0xff]  ;;  %v10997_v49 = vld [vmem:[#allocation32_spill] sm:$0xff] }
 0x705   : > { %3193 = vmatpush1.msra.mxu1 %v5808_v50  ;;  %3270 = vmatpush1.msra.mxu0 %v5810_v51  ;;  %v10998_v50 = vld [vmem:[#allocation33_spill] sm:$0xff]  ;;  %v10999_v51 = vld [vmem:[#allocation34_spill] sm:$0xff] }
 0x706   : > { %3194 = vmatprep.subr.mxu1 %v10972_v11  ;;  %3271 = vmatprep.subr.mxu0 %v10973_v12  ;;  %v11006_v11 = vld [vmem:[#allocation41_spill] sm:$0xff]  ;;  %v11007_v12 = vld [vmem:[#allocation42_spill] sm:$0xff] }
 0x707   : > { %3195 = vmatpush1.msra.mxu1 %v10974_v13  ;;  %3272 = vmatpush1.msra.mxu0 %v10975_v14  ;;  %v11008_v13 = vld [vmem:[#allocation43_spill] sm:$0xff]  ;;  %v11009_v14 = vld [vmem:[#allocation44_spill] sm:$0xff] }
 0x708   : > { %3196 = vmatprep.subr.mxu1 %v10976_v18  ;;  %3273 = vmatprep.subr.mxu0 %v10977_v19  ;;  %v11010_v18 = vld [vmem:[#allocation45_spill] sm:$0xff]  ;;  %v11011_v19 = vld [vmem:[#allocation46_spill] sm:$0xff] }
 0x709   : > { %3197 = vmatpush1.msra.mxu1 %v10978_v20  ;;  %3274 = vmatpush1.msra.mxu0 %v10979_v21  ;;  %v11012_v20 = vld [vmem:[#allocation47_spill] sm:$0xff]  ;;  %v11013_v21 = vld [vmem:[#allocation48_spill] sm:$0xff] }
 0x70a   : > { %3198 = vmatprep.subr.mxu1 %v10980_v24  ;;  %3275 = vmatprep.subr.mxu0 %v10981_v25  ;;  %v11014_v24 = vld [vmem:[#allocation49_spill] sm:$0xff]  ;;  %v11015_v25 = vld [vmem:[#allocation50_spill] sm:$0xff] }
 0x70b   : > { %3199 = vmatpush1.msra.mxu1 %v10982_v26  ;;  %3276 = vmatpush1.msra.mxu0 %v10983_v27  ;;  %v11016_v26 = vld [vmem:[#allocation51_spill] sm:$0xff]  ;;  %v11017_v27 = vld [vmem:[#allocation52_spill] sm:$0xff] }
 0x70c   : > { %3200 = vmatprep.subr.mxu1 %v10984_v30  ;;  %3277 = vmatprep.subr.mxu0 %v10985_v31  ;;  %v11018_v30 = vld [vmem:[#allocation53_spill] sm:$0xff]  ;;  %v11019_v31 = vld [vmem:[#allocation54_spill] sm:$0xff] }
 0x70d   : > { %3201 = vmatpush1.msra.mxu1 %v10986_v32  ;;  %3278 = vmatpush1.msra.mxu0 %v10987_v33  ;;  %v11020_v32 = vld [vmem:[#allocation55_spill] sm:$0xff]  ;;  %v11021_v33 = vld [vmem:[#allocation56_spill] sm:$0xff] }
 0x70e   : > { %3202 = vmatprep.subr.mxu1 %v10988_v36  ;;  %3279 = vmatprep.subr.mxu0 %v10989_v37  ;;  %v11022_v36 = vld [vmem:[#allocation57_spill] sm:$0xff]  ;;  %v11023_v37 = vld [vmem:[#allocation58_spill] sm:$0xff] }
 0x70f   : > { %3203 = vmatpush1.msra.mxu1 %v10990_v38  ;;  %3280 = vmatpush1.msra.mxu0 %v10991_v39  ;;  %v11024_v38 = vld [vmem:[#allocation59_spill] sm:$0xff]  ;;  %v11025_v39 = vld [vmem:[#allocation60_spill] sm:$0xff] }
 0x710   : > { %3204 = vmatprep.subr.mxu1 %v10992_v42  ;;  %3281 = vmatprep.subr.mxu0 %v10993_v43  ;;  %v11026_v42 = vld [vmem:[#allocation61_spill] sm:$0xff]  ;;  %v11027_v43 = vld [vmem:[#allocation62_spill] sm:$0xff] }
 0x711   : > { %3205 = vmatpush1.msra.mxu1 %v10994_v44  ;;  %3282 = vmatpush1.msra.mxu0 %v10995_v45  ;;  %v11028_v44 = vld [vmem:[#allocation63_spill] sm:$0xff]  ;;  %v11029_v45 = vld [vmem:[#allocation64_spill] sm:$0xff] }
 0x712   : > { %3206 = vmatprep.subr.mxu1 %v10996_v48  ;;  %3283 = vmatprep.subr.mxu0 %v10997_v49  ;;  %v11030_v48 = vld [vmem:[#allocation65_spill] sm:$0xff]  ;;  %v11031_v49 = vld [vmem:[#allocation66_spill] sm:$0xff] }
 0x713   : > { %3207 = vmatpush1.msra.mxu1 %v10998_v50  ;;  %3284 = vmatpush1.msra.mxu0 %v10999_v51  ;;  %v11032_v50 = vld [vmem:[#allocation67_spill] sm:$0xff]  ;;  %v11033_v51 = vld [vmem:[#allocation68_spill] sm:$0xff] }
 0x714   : > { %3208 = vmatprep.subr.mxu1 %v11000_v55  ;;  %3285 = vmatprep.subr.mxu0 %v11001_v35  ;;  %v11034_v55 = vld [vmem:[#allocation69_spill] sm:$0xff]  ;;  %v11035_v35 = vld [vmem:[#allocation70_spill] sm:$0xff] }
 0x715   : > { %3209 = vmatpush1.msra.mxu1 %v11002_v10  ;;  %3286 = vmatpush1.msra.mxu0 %v11003_v60  ;;  %v11036_v10 = vld [vmem:[#allocation71_spill] sm:$0xff]  ;;  %v11037_v60 = vld [vmem:[#allocation72_spill] sm:$0xff] }
 0x716   : > { %3210 = vmatprep.subr.mxu1 %v11004_v34  ;;  %3287 = vmatprep.subr.mxu0 %v11005_v54  ;;  %v11038_v34 = vld [vmem:[#allocation73_spill] sm:$0xff]  ;;  %v11039_v54 = vld [vmem:[#allocation74_spill] sm:$0xff] }
 0x717   : > { %3211 = vmatpush1.msra.mxu1 %v11006_v11  ;;  %3288 = vmatpush1.msra.mxu0 %v11007_v12  ;;  %v11040_v11 = vld [vmem:[#allocation75_spill] sm:$0xff]  ;;  %v11041_v12 = vld [vmem:[#allocation76_spill] sm:$0xff] }
 0x718   : > { %3212 = vmatprep.subr.mxu1 %v11008_v13  ;;  %3289 = vmatprep.subr.mxu0 %v11009_v14  ;;  %v11042_v13 = vld [vmem:[#allocation77_spill] sm:$0xff]  ;;  %v11043_v14 = vld [vmem:[#allocation78_spill] sm:$0xff] }
 0x719   : > { %3213 = vmatpush2.msra.mxu1 %v11010_v18  ;;  %3290 = vmatpush2.msra.mxu0 %v11011_v19  ;;  %v11044_v18 = vld [vmem:[#allocation79_spill] sm:$0xff]  ;;  %v11045_v19 = vld [vmem:[#allocation80_spill] sm:$0xff] }
 0x71a   : > { %3214 = vmatprep.subr.mxu1 %v11012_v20  ;;  %3291 = vmatprep.subr.mxu0 %v11013_v21  ;;  %v11046_v20 = vld [vmem:[#allocation81_spill] sm:$0xff]  ;;  %v11047_v21 = vld [vmem:[#allocation82_spill] sm:$0xff] }
 0x71b   : > { %3215 = vmatpush2.msra.mxu1 %v11014_v24  ;;  %3292 = vmatpush2.msra.mxu0 %v11015_v25  ;;  %v11048_v24 = vld [vmem:[#allocation83_spill] sm:$0xff]  ;;  %v11049_v25 = vld [vmem:[#allocation84_spill] sm:$0xff] }
 0x71c   : > { %3216 = vmatprep.subr.mxu1 %v11016_v26  ;;  %3293 = vmatprep.subr.mxu0 %v11017_v27  ;;  %v11050_v26 = vld [vmem:[#allocation85_spill] sm:$0xff]  ;;  %v11051_v27 = vld [vmem:[#allocation86_spill] sm:$0xff] }
 0x71d   : > { %3217 = vmatpush2.msra.mxu1 %v11018_v30  ;;  %3294 = vmatpush2.msra.mxu0 %v11019_v31  ;;  %v11052_v30 = vld [vmem:[#allocation87_spill] sm:$0xff]  ;;  %v11053_v31 = vld [vmem:[#allocation88_spill] sm:$0xff] }
 0x71e   : > { %3218 = vmatprep.subr.mxu1 %v11020_v32  ;;  %3295 = vmatprep.subr.mxu0 %v11021_v33  ;;  %v11054_v32 = vld [vmem:[#allocation89_spill] sm:$0xff]  ;;  %v11055_v33 = vld [vmem:[#allocation90_spill] sm:$0xff] }
 0x71f   : > { %3219 = vmatpush2.msra.mxu1 %v11022_v36  ;;  %3296 = vmatpush2.msra.mxu0 %v11023_v37  ;;  %v11056_v36 = vld [vmem:[#allocation91_spill] sm:$0xff]  ;;  %v11057_v37 = vld [vmem:[#allocation92_spill] sm:$0xff] }
 0x720   : > { %3220 = vmatprep.subr.mxu1 %v11024_v38  ;;  %3297 = vmatprep.subr.mxu0 %v11025_v39  ;;  %v11058_v38 = vld [vmem:[#allocation93_spill] sm:$0xff]  ;;  %v11059_v39 = vld [vmem:[#allocation94_spill] sm:$0xff] }
 0x721   : > { %3221 = vmatpush2.msra.mxu1 %v11026_v42  ;;  %3298 = vmatpush2.msra.mxu0 %v11027_v43  ;;  %v11060_v42 = vld [vmem:[#allocation95_spill] sm:$0xff]  ;;  %v11061_v43 = vld [vmem:[#allocation96_spill] sm:$0xff] }
 0x722   : > { %3222 = vmatprep.subr.mxu1 %v11028_v44  ;;  %3299 = vmatprep.subr.mxu0 %v11029_v45  ;;  %v11062_v44 = vld [vmem:[#allocation97_spill] sm:$0xff]  ;;  %v11063_v45 = vld [vmem:[#allocation98_spill] sm:$0xff] }
 0x723   : > { %3223 = vmatpush2.msra.mxu1 %v11030_v48  ;;  %3300 = vmatpush2.msra.mxu0 %v11031_v49  ;;  %v11064_v48 = vld [vmem:[#allocation99_spill] sm:$0xff]  ;;  %v11065_v49 = vld [vmem:[#allocation100_spill] sm:$0xff] }
 0x724   : > { %3224 = vmatprep.subr.mxu1 %v11032_v50  ;;  %3301 = vmatprep.subr.mxu0 %v11033_v51  ;;  %v8364_v50 = vld [vmem:[%s9421_s1 + $0x8] sm:$0xff]  ;;  %v11066_v51 = vld [vmem:[#allocation101_spill] sm:$0xff] }
 0x725   : > { %3225 = vmatpush2.msra.mxu1 %v11034_v55  ;;  %3302 = vmatpush2.msra.mxu0 %v11035_v35  ;;  %v11067_v55 = vld [vmem:[#allocation102_spill] sm:$0xff] }
 0x726   : > { %3226 = vmatprep.subr.mxu1 %v11036_v10  ;;  %3303 = vmatprep.subr.mxu0 %v11037_v60  ;;  %v8371_v35 = vld [vmem:[%s9421_s1 + $0x18] sm:$0xff]  ;;  %v11068_v10 = vld [vmem:[#allocation103_spill] sm:$0xff]  ;;  %v11069_v60 = vld [vmem:[#allocation104_spill] sm:$0xff] }
 0x727   : > { %3227 = vmatpush2.msra.mxu1 %v11038_v34  ;;  %3304 = vmatpush2.msra.mxu0 %v11039_v54  ;;  %v8378_v34 = vld [vmem:[%s9421_s1] sm:$0xff]  ;;  %v8383_v54 = vld [vmem:[%s9421_s1 + $0x10] sm:$0xff] }
 0x728   : > { %3228 = vmatprep.subr.mxu1 %v11040_v11  ;;  %3305 = vmatprep.subr.mxu0 %v11041_v12  ;;  %v11070_v11 = vld [vmem:[#allocation105_spill] sm:$0xff]  ;;  %v11071_v12 = vld [vmem:[#allocation106_spill] sm:$0xff] }
 0x729   : > { %3229 = vmatpush2.msra.mxu1 %v11042_v13  ;;  %3306 = vmatpush2.msra.mxu0 %v11043_v14  ;;  %v11072_v13 = vld [vmem:[#allocation107_spill] sm:$0xff]  ;;  %v11073_v14 = vld [vmem:[#allocation108_spill] sm:$0xff] }
 0x72a   : > { %3230 = vmatprep.subr.mxu1 %v11044_v18  ;;  %3307 = vmatprep.subr.mxu0 %v11045_v19  ;;  %v11093_v18 = vld [vmem:[#allocation147_spill] sm:$0xff]  ;;  %v11094_v19 = vld [vmem:[#allocation148_spill] sm:$0xff] }
 0x72b   : > { %3231 = vmatpush2.msra.mxu1 %v11046_v20  ;;  %3308 = vmatpush2.msra.mxu0 %v11047_v21  ;;  %v11095_v20 = vld [vmem:[#allocation149_spill] sm:$0xff]  ;;  %v11096_v21 = vld [vmem:[#allocation150_spill] sm:$0xff] }
 0x72c   : > { %3232 = vmatprep.subr.mxu1 %v11048_v24  ;;  %3309 = vmatprep.subr.mxu0 %v11049_v25  ;;  %v11097_v24 = vld [vmem:[#allocation151_spill] sm:$0xff]  ;;  %v11098_v25 = vld [vmem:[#allocation152_spill] sm:$0xff] }
 0x72d   : > { %3233 = vmatpush2.msra.mxu1 %v11050_v26  ;;  %3310 = vmatpush2.msra.mxu0 %v11051_v27  ;;  %v11099_v26 = vld [vmem:[#allocation153_spill] sm:$0xff]  ;;  %v11100_v27 = vld [vmem:[#allocation154_spill] sm:$0xff] }
 0x72e   : > { %3234 = vmatprep.subr.mxu1 %v11052_v30  ;;  %3311 = vmatprep.subr.mxu0 %v11053_v31  ;;  %v11101_v30 = vld [vmem:[#allocation155_spill] sm:$0xff]  ;;  %v11102_v31 = vld [vmem:[#allocation156_spill] sm:$0xff] }
 0x72f   : > { %3235 = vmatpush2.msra.mxu1 %v11054_v32  ;;  %3312 = vmatpush2.msra.mxu0 %v11055_v33  ;;  %v11103_v32 = vld [vmem:[#allocation157_spill] sm:$0xff]  ;;  %v11104_v33 = vld [vmem:[#allocation158_spill] sm:$0xff] }
 0x730   : > { %3236 = vmatprep.subr.mxu1 %v11056_v36  ;;  %3313 = vmatprep.subr.mxu0 %v11057_v37  ;;  %v11105_v36 = vld [vmem:[#allocation159_spill] sm:$0xff]  ;;  %v11106_v37 = vld [vmem:[#allocation160_spill] sm:$0xff] }
 0x731   : > { %3237 = vmatpush2.msra.mxu1 %v11058_v38  ;;  %3314 = vmatpush2.msra.mxu0 %v11059_v39  ;;  %v11107_v38 = vld [vmem:[#allocation161_spill] sm:$0xff]  ;;  %v11108_v39 = vld [vmem:[#allocation162_spill] sm:$0xff] }
 0x732   : > { %3238 = vmatprep.subr.mxu1 %v11060_v42  ;;  %3315 = vmatprep.subr.mxu0 %v11061_v43  ;;  %v11109_v42 = vld [vmem:[#allocation163_spill] sm:$0xff]  ;;  %v11110_v43 = vld [vmem:[#allocation164_spill] sm:$0xff] }
 0x733   : > { %3239 = vmatpush2.msra.mxu1 %v11062_v44  ;;  %3316 = vmatpush2.msra.mxu0 %v11063_v45  ;;  %v11111_v44 = vld [vmem:[#allocation165_spill] sm:$0xff]  ;;  %v11112_v45 = vld [vmem:[#allocation166_spill] sm:$0xff] }
 0x734   : > { %3240 = vmatprep.subr.mxu1 %v11064_v48  ;;  %3317 = vmatprep.subr.mxu0 %v11065_v49  ;;  %v11113_v48 = vld [vmem:[#allocation167_spill] sm:$0xff]  ;;  %v11114_v49 = vld [vmem:[#allocation168_spill] sm:$0xff] }
 0x735   : > { %3241 = vmatpush2.msra.mxu1 %v11066_v51  ;;  %3318 = vmatpush2.msra.mxu0 %v11067_v55  ;;  %v11115_v51 = vld [vmem:[#allocation169_spill] sm:$0xff]  ;;  %v11116_v55 = vld [vmem:[#allocation170_spill] sm:$0xff] }
 0x736   : > { %3242 = vmatprep.subr.mxu1 %v11068_v10  ;;  %3319 = vmatprep.subr.mxu0 %v11069_v60  ;;  %v11117_v10 = vld [vmem:[#allocation171_spill] sm:$0xff]  ;;  %v11118_v60 = vld [vmem:[#allocation172_spill] sm:$0xff] }
 0x737   : > { %3243 = vmatpush2.msra.mxu1 %v11070_v11  ;;  %3244 = vmatprep.mubr.f32.mxu1 %v8364_v50  ;;  %v11119_v11 = vld [vmem:[#allocation173_spill] sm:$0xff] }
 0x738   : > { %3320 = vmatpush2.msra.mxu0 %v11071_v12  ;;  %3321 = vmatprep.mubr.f32.mxu0 %v8371_v35  ;;  %v11120_v12 = vld [vmem:[#allocation174_spill] sm:$0xff] }
 0x739   : > { %3245 = vmatmul.mubr.f32.vlgmr.msra.gmra.mxu1 %v8378_v34  ;;  %3322 = vmatmul.mubr.f32.vlgmr.msra.gmra.mxu0 %v8383_v54 }
 0x73a   : > { %3334 = vmatprep.subr.mxu1 %v11072_v13  ;;  %3411 = vmatprep.subr.mxu0 %v11073_v14  ;;  %v11121_v13 = vld [vmem:[#allocation175_spill] sm:$0xff]  ;;  %v11122_v14 = vld [vmem:[#allocation176_spill] sm:$0xff] }
 0x73b   : > { %3335 = vmatpush1.msra.mxu1 %v10846_v53  ;;  %3412 = vmatpush1.msra.mxu0 %v10847_v47  ;;  %v11074_v53 = vld [vmem:[#allocation128_spill] sm:$0xff]  ;;  %v11075_v47 = vld [vmem:[#allocation129_spill] sm:$0xff] }
 0x73c   : > { %3336 = vmatprep.subr.mxu1 %v10848_v61  ;;  %3413 = vmatprep.subr.mxu0 %v10849_v17  ;;  %v11076_v61 = vld [vmem:[#allocation130_spill] sm:$0xff]  ;;  %v11077_v17 = vld [vmem:[#allocation131_spill] sm:$0xff] }
 0x73d   : > { %3337 = vmatpush1.msra.mxu1 %v10850_v59  ;;  %3414 = vmatpush1.msra.mxu0 %v10851_v46  ;;  %v11078_v59 = vld [vmem:[#allocation132_spill] sm:$0xff]  ;;  %v11079_v46 = vld [vmem:[#allocation133_spill] sm:$0xff] }
 0x73e   : > { %3338 = vmatprep.subr.mxu1 %v10852_v15  ;;  %3415 = vmatprep.subr.mxu0 %v10853_v52  ;;  %v11080_v15 = vld [vmem:[#allocation134_spill] sm:$0xff]  ;;  %v11081_v52 = vld [vmem:[#allocation135_spill] sm:$0xff] }
 0x73f   : > { %3339 = vmatpush1.msra.mxu1 %v10854_v58  ;;  %3416 = vmatpush1.msra.mxu0 %v10855_v6  ;;  %v11082_v58 = vld [vmem:[#allocation136_spill] sm:$0xff]  ;;  %v11083_v6 = vld [vmem:[#allocation137_spill] sm:$0xff] }
 0x740   : > { %3340 = vmatprep.subr.mxu1 %v10856_v40  ;;  %3417 = vmatprep.subr.mxu0 %v10857_v4  ;;  %v11084_v40 = vld [vmem:[#allocation138_spill] sm:$0xff]  ;;  %v11085_v4 = vld [vmem:[#allocation139_spill] sm:$0xff] }
 0x741   : > { %3341 = vmatpush1.msra.mxu1 %v10858_v22  ;;  %3418 = vmatpush1.msra.mxu0 %v10859_v3  ;;  %v11086_v22 = vld [vmem:[#allocation140_spill] sm:$0xff]  ;;  %v11087_v3 = vld [vmem:[#allocation141_spill] sm:$0xff] }
 0x742   : > { %3342 = vmatprep.subr.mxu1 %v10860_v63  ;;  %3419 = vmatprep.subr.mxu0 %v10861_v1  ;;  %v11088_v63 = vld [vmem:[#allocation142_spill] sm:$0xff]  ;;  %v11089_v1 = vld [vmem:[#allocation143_spill] sm:$0xff] }
 0x743   : > { %3343 = vmatpush1.msra.mxu1 %v10862_v29  ;;  %3420 = vmatpush1.msra.mxu0 %v10863_v9  ;;  %v11090_v29 = vld [vmem:[#allocation144_spill] sm:$0xff]  ;;  %v11091_v9 = vld [vmem:[#allocation145_spill] sm:$0xff] }
 0x744   : > { %3344 = vmatprep.subr.mxu1 %v10864_v8  ;;  %3421 = vmatprep.subr.mxu0 %v11074_v53  ;;  %v11092_v8 = vld [vmem:[#allocation146_spill] sm:$0xff]  ;;  %v11123_v53 = vld [vmem:[#allocation177_spill] sm:$0xff] }
 0x745   : > { %3345 = vmatpush1.msra.mxu1 %v11075_v47  ;;  %3422 = vmatpush1.msra.mxu0 %v11076_v61  ;;  %v11124_v47 = vld [vmem:[#allocation178_spill] sm:$0xff]  ;;  %v11125_v61 = vld [vmem:[#allocation179_spill] sm:$0xff] }
 0x746   : > { %3346 = vmatprep.subr.mxu1 %v11077_v17  ;;  %3423 = vmatprep.subr.mxu0 %v11078_v59  ;;  %v11126_v17 = vld [vmem:[#allocation180_spill] sm:$0xff]  ;;  %v11127_v59 = vld [vmem:[#allocation181_spill] sm:$0xff] }
 0x747   : > { %3347 = vmatpush1.msra.mxu1 %v11079_v46  ;;  %3424 = vmatpush1.msra.mxu0 %v11080_v15  ;;  %v11128_v46 = vld [vmem:[#allocation182_spill] sm:$0xff]  ;;  %v11129_v15 = vld [vmem:[#allocation183_spill] sm:$0xff] }
 0x748   : > { %3348 = vmatprep.subr.mxu1 %v11081_v52  ;;  %3425 = vmatprep.subr.mxu0 %v11082_v58  ;;  %v11130_v52 = vld [vmem:[#allocation184_spill] sm:$0xff]  ;;  %v11131_v58 = vld [vmem:[#allocation185_spill] sm:$0xff] }
 0x749   : > { %3349 = vmatpush1.msra.mxu1 %v11083_v6  ;;  %3426 = vmatpush1.msra.mxu0 %v11084_v40  ;;  %v11132_v6 = vld [vmem:[#allocation186_spill] sm:$0xff]  ;;  %v11133_v40 = vld [vmem:[#allocation187_spill] sm:$0xff] }
 0x74a   : > { %3350 = vmatprep.subr.mxu1 %v11085_v4  ;;  %3427 = vmatprep.subr.mxu0 %v11086_v22  ;;  %v11134_v4 = vld [vmem:[#allocation188_spill] sm:$0xff]  ;;  %v11135_v22 = vld [vmem:[#allocation189_spill] sm:$0xff] }
 0x74b   : > { %3351 = vmatpush1.msra.mxu1 %v11087_v3  ;;  %3428 = vmatpush1.msra.mxu0 %v11088_v63  ;;  %v11136_v3 = vld [vmem:[#allocation190_spill] sm:$0xff]  ;;  %v11137_v63 = vld [vmem:[#allocation191_spill] sm:$0xff] }
 0x74c   : > { %3352 = vmatprep.subr.mxu1 %v11089_v1  ;;  %3429 = vmatprep.subr.mxu0 %v11090_v29  ;;  %v11138_v1 = vld [vmem:[#allocation192_spill] sm:$0xff]  ;;  %v11139_v29 = vld [vmem:[#allocation193_spill] sm:$0xff] }
 0x74d   : > { %3353 = vmatpush1.msra.mxu1 %v11091_v9  ;;  %3430 = vmatpush1.msra.mxu0 %v11092_v8  ;;  %v11140_v9 = vld [vmem:[#allocation194_spill] sm:$0xff]  ;;  %v11141_v8 = vld [vmem:[#allocation195_spill] sm:$0xff] }
 0x74e   : > { %3354 = vmatprep.subr.mxu1 %v11093_v18  ;;  %3431 = vmatprep.subr.mxu0 %v11094_v19  ;;  %v11142_v18 = vld [vmem:[#allocation196_spill] sm:$0xff]  ;;  %v11143_v19 = vld [vmem:[#allocation197_spill] sm:$0xff] }
 0x74f   : > { %3355 = vmatpush1.msra.mxu1 %v11095_v20  ;;  %3432 = vmatpush1.msra.mxu0 %v11096_v21  ;;  %v11144_v20 = vld [vmem:[#allocation198_spill] sm:$0xff]  ;;  %v11145_v21 = vld [vmem:[#allocation199_spill] sm:$0xff] }
 0x750   : > { %3356 = vmatprep.subr.mxu1 %v11097_v24  ;;  %3433 = vmatprep.subr.mxu0 %v11098_v25  ;;  %v11146_v24 = vld [vmem:[#allocation200_spill] sm:$0xff]  ;;  %v11147_v25 = vld [vmem:[#allocation201_spill] sm:$0xff] }
 0x751   : > { %3357 = vmatpush1.msra.mxu1 %v11099_v26  ;;  %3434 = vmatpush1.msra.mxu0 %v11100_v27  ;;  %v11148_v26 = vld [vmem:[#allocation202_spill] sm:$0xff]  ;;  %v11149_v27 = vld [vmem:[#allocation203_spill] sm:$0xff] }
 0x752   : > { %3358 = vmatprep.subr.mxu1 %v11101_v30  ;;  %3435 = vmatprep.subr.mxu0 %v11102_v31  ;;  %v11150_v30 = vld [vmem:[#allocation204_spill] sm:$0xff]  ;;  %v11151_v31 = vld [vmem:[#allocation205_spill] sm:$0xff] }
 0x753   : > { %3359 = vmatpush1.msra.mxu1 %v11103_v32  ;;  %3436 = vmatpush1.msra.mxu0 %v11104_v33  ;;  %v11152_v32 = vld [vmem:[#allocation206_spill] sm:$0xff]  ;;  %v11153_v33 = vld [vmem:[#allocation207_spill] sm:$0xff] }
 0x754   : > { %3360 = vmatprep.subr.mxu1 %v11105_v36  ;;  %3437 = vmatprep.subr.mxu0 %v11106_v37  ;;  %v11154_v36 = vld [vmem:[#allocation208_spill] sm:$0xff]  ;;  %v11155_v37 = vld [vmem:[#allocation209_spill] sm:$0xff] }
 0x755   : > { %3361 = vmatpush1.msra.mxu1 %v11107_v38  ;;  %3438 = vmatpush1.msra.mxu0 %v11108_v39  ;;  %v11156_v38 = vld [vmem:[#allocation210_spill] sm:$0xff]  ;;  %v11157_v39 = vld [vmem:[#allocation211_spill] sm:$0xff] }
 0x756   : > { %3362 = vmatprep.subr.mxu1 %v11109_v42  ;;  %3439 = vmatprep.subr.mxu0 %v11110_v43  ;;  %v11158_v42 = vld [vmem:[#allocation212_spill] sm:$0xff]  ;;  %v11159_v43 = vld [vmem:[#allocation213_spill] sm:$0xff] }
 0x757   : > { %3363 = vmatpush1.msra.mxu1 %v11111_v44  ;;  %3440 = vmatpush1.msra.mxu0 %v11112_v45  ;;  %v11160_v44 = vld [vmem:[#allocation214_spill] sm:$0xff]  ;;  %v11161_v45 = vld [vmem:[#allocation215_spill] sm:$0xff] }
 0x758   : > { %3364 = vmatprep.subr.mxu1 %v11113_v48  ;;  %3441 = vmatprep.subr.mxu0 %v11114_v49  ;;  %v11162_v48 = vld [vmem:[#allocation216_spill] sm:$0xff] }
 0x759   : > { %3365 = vmatpush1.msra.mxu1 %v11115_v51  ;;  %3442 = vmatpush1.msra.mxu0 %v11116_v55  ;;  %v8504_v49 = vld [vmem:[%s9421_s1 + $0x28] sm:$0xff]  ;;  %v8509_v51 = vld [vmem:[%s9421_s1 + $0x38] sm:$0xff]  ;;  %v11163_v55 = vld [vmem:[#allocation217_spill] sm:$0xff] }
 0x75a   : > { %3366 = vmatprep.subr.mxu1 %v11117_v10  ;;  %3443 = vmatprep.subr.mxu0 %v11118_v60  ;;  %v11164_v10 = vld [vmem:[#allocation218_spill] sm:$0xff]  ;;  %v11165_v60 = vld [vmem:[#allocation219_spill] sm:$0xff] }
 0x75b   : > { %3367 = vmatpush2.msra.mxu1 %v11119_v11  ;;  %3444 = vmatpush2.msra.mxu0 %v11120_v12  ;;  %v11166_v11 = vld [vmem:[#allocation220_spill] sm:$0xff]  ;;  %v8518_v12 = vld [vmem:[%s9421_s1 + $0x20] sm:$0xff] }
 0x75c   : > { %3368 = vmatprep.subr.mxu1 %v11121_v13  ;;  %3445 = vmatprep.subr.mxu0 %v11122_v14  ;;  %v8523_v13 = vld [vmem:[%s9421_s1 + $0x30] sm:$0xff] }
 0x75d   : > { %3369 = vmatpush2.msra.mxu1 %v11123_v53  ;;  %3446 = vmatpush2.msra.mxu0 %v11124_v47 }
 0x75e   : > { %3370 = vmatprep.subr.mxu1 %v11125_v61  ;;  %3447 = vmatprep.subr.mxu0 %v11126_v17  ;;  %v11167_v61 = vld [vmem:[#allocation221_spill] sm:$0xff]  ;;  %v11168_v17 = vld [vmem:[#allocation222_spill] sm:$0xff] }
 0x75f   : > { %3371 = vmatpush2.msra.mxu1 %v11127_v59  ;;  %3448 = vmatpush2.msra.mxu0 %v11128_v46 }
 0x760   : > { %3372 = vmatprep.subr.mxu1 %v11129_v15  ;;  %3449 = vmatprep.subr.mxu0 %v11130_v52  ;;  %v11169_v52 = vld [vmem:[#allocation236_spill] sm:$0xff] }
 0x761   : > { %3373 = vmatpush2.msra.mxu1 %v11131_v58  ;;  %3450 = vmatpush2.msra.mxu0 %v11132_v6 }
 0x762   : > { %3374 = vmatprep.subr.mxu1 %v11133_v40  ;;  %3451 = vmatprep.subr.mxu0 %v11134_v4  ;;  %v11170_v40 = vld [vmem:[#allocation223_spill] sm:$0xff] }
 0x763   : > { %3375 = vmatpush2.msra.mxu1 %v11135_v22  ;;  %3452 = vmatpush2.msra.mxu0 %v11136_v3 }
 0x764   : > { %3376 = vmatprep.subr.mxu1 %v11137_v63  ;;  %3453 = vmatprep.subr.mxu0 %v11138_v1 }
 0x765   : > { %3377 = vmatpush2.msra.mxu1 %v11139_v29  ;;  %3454 = vmatpush2.msra.mxu0 %v11140_v9 }
 0x766   : > { %3378 = vmatprep.subr.mxu1 %v11141_v8  ;;  %3455 = vmatprep.subr.mxu0 %v11142_v18 }
 0x767   : > { %3379 = vmatpush2.msra.mxu1 %v11143_v19  ;;  %3456 = vmatpush2.msra.mxu0 %v11144_v20 }
 0x768   : > { %3380 = vmatprep.subr.mxu1 %v11145_v21  ;;  %3457 = vmatprep.subr.mxu0 %v11146_v24 }
 0x769   : > { %3381 = vmatpush2.msra.mxu1 %v11147_v25  ;;  %3458 = vmatpush2.msra.mxu0 %v11148_v26 }
 0x76a   : > { %3382 = vmatprep.subr.mxu1 %v11149_v27  ;;  %3459 = vmatprep.subr.mxu0 %v11150_v30 }
 0x76b   : > { %3383 = vmatpush2.msra.mxu1 %v11151_v31  ;;  %3460 = vmatpush2.msra.mxu0 %v11152_v32 }
 0x76c   : > { %3384 = vmatprep.subr.mxu1 %v11153_v33  ;;  %3461 = vmatprep.subr.mxu0 %v11154_v36 }
 0x76d   : > { %3385 = vmatpush2.msra.mxu1 %v11155_v37  ;;  %3462 = vmatpush2.msra.mxu0 %v11156_v38 }
 0x76e   : > { %3386 = vmatprep.subr.mxu1 %v11157_v39  ;;  %3463 = vmatprep.subr.mxu0 %v11158_v42 }
 0x76f   : > { %3387 = vmatpush2.msra.mxu1 %v11159_v43  ;;  %3464 = vmatpush2.msra.mxu0 %v11160_v44 }
 0x770   : > { %3388 = vmatprep.subr.mxu1 %v11161_v45  ;;  %3465 = vmatprep.subr.mxu0 %v11162_v48 }
 0x771   : > { %3389 = vmatpush2.msra.mxu1 %v11163_v55  ;;  %3466 = vmatpush2.msra.mxu0 %v11164_v10 }
 0x772   : > { %3390 = vmatprep.subr.mxu1 %v11165_v60  ;;  %3467 = vmatprep.subr.mxu0 %v11166_v11  ;;  %v2930_v14 = vpop.f32.mrf.mxu1  ;;  %v3007_v53 = vpop.f32.mrf.mxu0 }
 0x773   : > { %3250 = vmatprep.mubr.f32.mxu1 %v8504_v49  ;;  %3327 = vmatprep.mubr.f32.mxu0 %v8509_v51  ;;  %v3008_v47 = vadd.f32 %v3007_v53, %v2930_v14 }
 0x774   : > { %3391 = vmatpush2.msra.mxu1 %v11167_v61  ;;  %3468 = vmatpush2.msra.mxu0 %v11168_v17  ;;  %v2932_v59 = vpop.f32.mrf.mxu1  ;;  %v3009_v46 = vpop.f32.mrf.mxu0 }
 0x775   : > { %3251 = vmatmul.mubr.f32.gmra.mxu1 %v8518_v12  ;;  %3328 = vmatmul.mubr.f32.gmra.mxu0 %v8523_v13  ;;  %v3490_v15 = vcombine.high %v3008_v47, %v3008_v47  ;;  %v3497_v58 = vrot.slane %v3008_v47, %v11169_v52  ;;  %v3010_v6 = vadd.f32 %v3009_v46, %v2932_v59 }
 0x776   : > { %3392 = vmatprep.subr.mxu1 %v11170_v40  ;;  %3469 = vmatprep.subr.mxu0 %v10961_v5 }
 0x777   : > { %3393 = vmatpush2.msra.mxu1 %v10962_v28  ;;  %3470 = vmatpush2.msra.mxu0 %v10963_v7  ;;  %v3504_v4 = vrot.slane %v3490_v15, %v11169_v52  ;;  %v3505_v22 = vcombine.high %v3497_v58, %v3497_v58  ;;  %v3513_v3 = vrot.slane %v3497_v58, %v11169_v52 }
 0x778   : > { %5235 = vst.sshfl [vmem:[#allocation3] sm:$0x1 pattern:$0x73625140] %v3497_v58  ;;  %3394 = vmatprep.subr.mxu1 %v10964_v0  ;;  %3471 = vmatprep.subr.mxu0 %v10965_v57  ;;  %v3622_v63 = vcombine.high %v3010_v6, %v3010_v6  ;;  %v3629_v1 = vrot.slane %v3010_v6, %v11169_v52  ;;  %v2936_v29 = vpop.f32.mrf.mxu1  ;;  %v3013_v9 = vpop.f32.mrf.mxu0 }
 0x779   : > { %3395 = vmatpush2.msra.mxu1 %v10966_v23  ;;  %3472 = vmatpush2.msra.mxu0 %v10967_v56  ;;  %v3506_v5 = vcombine.high %v3504_v4, %v3504_v4  ;;  %v3520_v28 = vrot.slane %v3504_v4, %v11169_v52  ;;  %v3527_v7 = vrot.slane %v3505_v22, %v11169_v52 }
 0x77a   : > { %5236 = vst.sshfl [vmem:[#allocation3 + $0x4] sm:$0x1 pattern:$0x73625140] %v3505_v22  ;;  %3396 = vmatprep.subr.mxu1 %v10968_v16  ;;  %3473 = vmatprep.subr.mxu0 %v10969_v62  ;;  %v3535_v0 = vcombine.high %v3513_v3, %v3513_v3  ;;  %v3636_v57 = vrot.slane %v3622_v63, %v11169_v52  ;;  %v3015_v20 = vpop.f32.mrf.mxu0 }
 0x77b   : > { %5237 = vst.sshfl [vmem:[#allocation3 + $0x10] sm:$0x1 pattern:$0x73625140] %v3504_v4  ;;  %v3637_v8 = vcombine.high %v3629_v1, %v3629_v1  ;;  %3397 = vmatpush2.msra.mxu1 %v10970_v41  ;;  %3398 = vmatprep.mubr.f32.mxu1 %v8364_v50  ;;  %v3534_v23 = vrot.slane %v3506_v5, %v11169_v52  ;;  %v2938_v41 = vpop.f32.mrf.mxu1 }
 0x77c   : > { %5243 = vst.sshfl [vmem:[#allocation3 + $0x1] sm:$0x1 pattern:$0x73625140] %v3629_v1  ;;  %v3536_v56 = vcombine.high %v3520_v28, %v3520_v28  ;;  %v3537_v18 = vcombine.high %v3527_v7, %v3527_v7  ;;  %3474 = vmatpush2.msra.mxu0 %v10971_v2  ;;  %3475 = vmatprep.mubr.f32.mxu0 %v8371_v35  ;;  %3606 = vst [vmem:[#allocation3 + $0x8] sm:$0x1] %v3535_v0 }
 0x77d   : > { %5238 = vst.sshfl [vmem:[#allocation3 + $0x14] sm:$0x1 pattern:$0x73625140] %v3506_v5  ;;  %v3638_v16 = vcombine.high %v3636_v57, %v3636_v57  ;;  %v3645_v62 = vrot.slane %v3629_v1, %v11169_v52  ;;  %v3652_v19 = vrot.slane %v3636_v57, %v11169_v52  ;;  %3399 = vmatmul.mubr.f32.vlgmr.msra.gmra.mxu1 %v8378_v34 }
 0x77e   : > { %5244 = vst.sshfl [vmem:[#allocation3 + $0x5] sm:$0x1 pattern:$0x73625140] %v3637_v8  ;;  %3476 = vmatmul.mubr.f32.vlgmr.msra.gmra.mxu0 %v8383_v54  ;;  %v3538_v50 = vcombine.high %v3534_v23, %v3534_v23  ;;  %3607 = vst [vmem:[#allocation3 + $0xc] sm:$0x1] %v3537_v18  ;;  %v3659_v2 = vrot.slane %v3637_v8, %v11169_v52  ;;  %v3014_v35 = vadd.f32 %v3013_v9, %v2936_v29 }
 0x77f   : > { %5245 = vst.sshfl [vmem:[#allocation3 + $0x11] sm:$0x1 pattern:$0x73625140] %v3636_v57  ;;  %3610 = vst [vmem:[#allocation3 + $0x18] sm:$0x1] %v3536_v56  ;;  %v3666_v21 = vrot.slane %v3638_v16, %v11169_v52  ;;  %v3667_v24 = vcombine.high %v3645_v62, %v3645_v62  ;;  %v3668_v25 = vcombine.high %v3652_v19, %v3652_v19  ;;  %3404 = vmatprep.mubr.f32.mxu1 %v8504_v49 }
 0x780   : > { %5246 = vst.sshfl [vmem:[#allocation3 + $0x15] sm:$0x1 pattern:$0x73625140] %v3638_v16  ;;  %3481 = vmatprep.mubr.f32.mxu0 %v8509_v51  ;;  %3611 = vst [vmem:[#allocation3 + $0x1c] sm:$0x1] %v3538_v50  ;;  %v3669_v26 = vcombine.high %v3659_v2, %v3659_v2  ;;  %v3539_v34 = vcombine.high %v3014_v35, %v3014_v35  ;;  %v3546_v54 = vrot.slane %v3014_v35, %v11169_v52 }
 0x781   : > { %v3016_v27 = vadd.f32 %v3015_v20, %v2938_v41  ;;  %v3670_v30 = vcombine.high %v3666_v21, %v3666_v21  ;;  %3738 = vst [vmem:[#allocation3 + $0x9] sm:$0x1] %v3667_v24  ;;  %3742 = vst [vmem:[#allocation3 + $0x19] sm:$0x1] %v3668_v25  ;;  %3405 = vmatmul.mubr.f32.gmra.mxu1 %v8518_v12 }
 0x782   : > { %3739 = vst [vmem:[#allocation3 + $0xd] sm:$0x1] %v3669_v26  ;;  %3482 = vmatmul.mubr.f32.gmra.mxu0 %v8523_v13  ;;  %v3553_v31 = vrot.slane %v3539_v34, %v11169_v52  ;;  %v3554_v32 = vcombine.high %v3546_v54, %v3546_v54  ;;  %v3562_v33 = vrot.slane %v3546_v54, %v11169_v52  ;;  %5239 = vst.sshfl [vmem:[#allocation3 + $0x20] sm:$0x1 pattern:$0x73625140] %v3546_v54 }
 0x783   : > { %3743 = vst [vmem:[#allocation3 + $0x1d] sm:$0x1] %v3670_v30  ;;  %v3671_v36 = vcombine.high %v3016_v27, %v3016_v27  ;;  %v3678_v37 = vrot.slane %v3016_v27, %v11169_v52 }
 0x784   : > { %v3555_v38 = vcombine.high %v3553_v31, %v3553_v31  ;;  %v3569_v39 = vrot.slane %v3553_v31, %v11169_v52  ;;  %v3576_v42 = vrot.slane %v3554_v32, %v11169_v52  ;;  %v3584_v43 = vcombine.high %v3562_v33, %v3562_v33  ;;  %5240 = vst.sshfl [vmem:[#allocation3 + $0x24] sm:$0x1 pattern:$0x73625140] %v3554_v32 }
 0x785   : > { %5241 = vst.sshfl [vmem:[#allocation3 + $0x30] sm:$0x1 pattern:$0x73625140] %v3553_v31  ;;  %v3685_v44 = vrot.slane %v3671_v36, %v11169_v52  ;;  %v3686_v45 = vcombine.high %v3678_v37, %v3678_v37  ;;  %v3694_v48 = vrot.slane %v3678_v37, %v11169_v52 }
 0x786   : > { %5247 = vst.sshfl [vmem:[#allocation3 + $0x21] sm:$0x1 pattern:$0x73625140] %v3678_v37  ;;  %v3583_v49 = vrot.slane %v3555_v38, %v11169_v52  ;;  %v3585_v51 = vcombine.high %v3569_v39, %v3569_v39  ;;  %v3586_v55 = vcombine.high %v3576_v42, %v3576_v42  ;;  %3614 = vst [vmem:[#allocation3 + $0x28] sm:$0x1] %v3584_v43 }
 0x787   : > { %5242 = vst.sshfl [vmem:[#allocation3 + $0x34] sm:$0x1 pattern:$0x73625140] %v3555_v38  ;;  %v3687_v10 = vcombine.high %v3685_v44, %v3685_v44  ;;  %v3701_v60 = vrot.slane %v3685_v44, %v11169_v52  ;;  %v3708_v11 = vrot.slane %v3686_v45, %v11169_v52  ;;  %v3716_v12 = vcombine.high %v3694_v48, %v3694_v48 }
 0x788   : > { %5248 = vst.sshfl [vmem:[#allocation3 + $0x25] sm:$0x1 pattern:$0x73625140] %v3686_v45  ;;  %v3587_v13 = vcombine.high %v3583_v49, %v3583_v49  ;;  %3615 = vst [vmem:[#allocation3 + $0x2c] sm:$0x1] %v3586_v55 }
 0x789   : > { %5249 = vst.sshfl [vmem:[#allocation3 + $0x31] sm:$0x1 pattern:$0x73625140] %v3685_v44  ;;  %3618 = vst [vmem:[#allocation3 + $0x38] sm:$0x1] %v3585_v51  ;;  %v3715_v14 = vrot.slane %v3687_v10, %v11169_v52  ;;  %v3717_v53 = vcombine.high %v3701_v60, %v3701_v60  ;;  %v3718_v47 = vcombine.high %v3708_v11, %v3708_v11 }
 0x78a   : > { %3746 = vst [vmem:[#allocation3 + $0x29] sm:$0x1] %v3716_v12  ;;  %5250 = vst.sshfl [vmem:[#allocation3 + $0x35] sm:$0x1 pattern:$0x73625140] %v3687_v10 }
 0x78b   : > { %3619 = vst [vmem:[#allocation3 + $0x3c] sm:$0x1] %v3587_v13  ;;  %v3719_v61 = vcombine.high %v3715_v14, %v3715_v14  ;;  %3747 = vst [vmem:[#allocation3 + $0x2d] sm:$0x1] %v3718_v47 }
 0x78c   : > { %3750 = vst [vmem:[#allocation3 + $0x39] sm:$0x1] %v3717_v53 }
 0x78d   : > { %3751 = vst [vmem:[#allocation3 + $0x3d] sm:$0x1] %v3719_v61 }
 0x7b5   : > { %v3084_v17 = vpop.f32.mrf.mxu1  ;;  %v3161_v59 = vpop.f32.mrf.mxu0 }
 0x7b6   : > { %v3162_v46 = vadd.f32 %v3161_v59, %v3084_v17 }
 0x7b7   : > { %v3086_v15 = vpop.f32.mrf.mxu1  ;;  %v3163_v58 = vpop.f32.mrf.mxu0 }
 0x7b8   : > { %v3754_v6 = vcombine.high %v3162_v46, %v3162_v46  ;;  %v3761_v40 = vrot.slane %v3162_v46, %v11169_v52  ;;  %v3164_v4 = vadd.f32 %v3163_v58, %v3086_v15 }
 0x7ba   : > { %v3768_v22 = vrot.slane %v3754_v6, %v11169_v52  ;;  %v3769_v3 = vcombine.high %v3761_v40, %v3761_v40  ;;  %v3777_v63 = vrot.slane %v3761_v40, %v11169_v52  ;;  %5251 = vst.sshfl [vmem:[#allocation3 + $0x2] sm:$0x1 pattern:$0x73625140] %v3761_v40  ;;  %v3886_v1 = vcombine.high %v3164_v4, %v3164_v4 }
 0x7bb   : > { %v3893_v29 = vrot.slane %v3164_v4, %v11169_v52  ;;  %v3090_v9 = vpop.f32.mrf.mxu1  ;;  %v3167_v5 = vpop.f32.mrf.mxu0 }
 0x7bc   : > { %v3770_v28 = vcombine.high %v3768_v22, %v3768_v22  ;;  %v3784_v7 = vrot.slane %v3768_v22, %v11169_v52  ;;  %v3791_v0 = vrot.slane %v3769_v3, %v11169_v52  ;;  %v3799_v57 = vcombine.high %v3777_v63, %v3777_v63  ;;  %5252 = vst.sshfl [vmem:[#allocation3 + $0x6] sm:$0x1 pattern:$0x73625140] %v3769_v3 }
 0x7bd   : > { %5253 = vst.sshfl [vmem:[#allocation3 + $0x12] sm:$0x1 pattern:$0x73625140] %v3768_v22  ;;  %v3900_v8 = vrot.slane %v3886_v1, %v11169_v52  ;;  %v3901_v23 = vcombine.high %v3893_v29, %v3893_v29  ;;  %v3909_v56 = vrot.slane %v3893_v29, %v11169_v52  ;;  %v3168_v18 = vadd.f32 %v3167_v5, %v3090_v9  ;;  %v3092_v16 = vpop.f32.mrf.mxu1  ;;  %v3169_v62 = vpop.f32.mrf.mxu0 }
 0x7be   : > { %5259 = vst.sshfl [vmem:[#allocation3 + $0x3] sm:$0x1 pattern:$0x73625140] %v3893_v29  ;;  %v3798_v19 = vrot.slane %v3770_v28, %v11169_v52  ;;  %v3800_v41 = vcombine.high %v3784_v7, %v3784_v7  ;;  %v3801_v20 = vcombine.high %v3791_v0, %v3791_v0  ;;  %3870 = vst [vmem:[#allocation3 + $0xa] sm:$0x1] %v3799_v57 }
 0x7bf   : > { %5254 = vst.sshfl [vmem:[#allocation3 + $0x16] sm:$0x1 pattern:$0x73625140] %v3770_v28  ;;  %v3170_v50 = vadd.f32 %v3169_v62, %v3092_v16  ;;  %v3902_v2 = vcombine.high %v3900_v8, %v3900_v8  ;;  %v3916_v35 = vrot.slane %v3900_v8, %v11169_v52  ;;  %v3923_v21 = vrot.slane %v3901_v23, %v11169_v52 }
 0x7c0   : > { %v3931_v24 = vcombine.high %v3909_v56, %v3909_v56  ;;  %5260 = vst.sshfl [vmem:[#allocation3 + $0x7] sm:$0x1 pattern:$0x73625140] %v3901_v23  ;;  %v3802_v25 = vcombine.high %v3798_v19, %v3798_v19  ;;  %3871 = vst [vmem:[#allocation3 + $0xe] sm:$0x1] %v3801_v20  ;;  %v3803_v26 = vcombine.high %v3168_v18, %v3168_v18 }
 0x7c1   : > { %5261 = vst.sshfl [vmem:[#allocation3 + $0x13] sm:$0x1 pattern:$0x73625140] %v3900_v8  ;;  %3874 = vst [vmem:[#allocation3 + $0x1a] sm:$0x1] %v3800_v41  ;;  %v3810_v34 = vrot.slane %v3168_v18, %v11169_v52  ;;  %v3935_v54 = vcombine.high %v3170_v50, %v3170_v50  ;;  %v3930_v27 = vrot.slane %v3902_v2, %v11169_v52 }
 0x7c2   : > { %v3932_v30 = vcombine.high %v3916_v35, %v3916_v35  ;;  %v3933_v31 = vcombine.high %v3923_v21, %v3923_v21  ;;  %4002 = vst [vmem:[#allocation3 + $0xb] sm:$0x1] %v3931_v24  ;;  %5262 = vst.sshfl [vmem:[#allocation3 + $0x17] sm:$0x1 pattern:$0x73625140] %v3902_v2  ;;  %v3942_v32 = vrot.slane %v3170_v50, %v11169_v52 }
 0x7c3   : > { %3875 = vst [vmem:[#allocation3 + $0x1e] sm:$0x1] %v3802_v25  ;;  %v3817_v33 = vrot.slane %v3803_v26, %v11169_v52  ;;  %v3818_v36 = vcombine.high %v3810_v34, %v3810_v34  ;;  %v3826_v37 = vrot.slane %v3810_v34, %v11169_v52  ;;  %5255 = vst.sshfl [vmem:[#allocation3 + $0x22] sm:$0x1 pattern:$0x73625140] %v3810_v34 }
 0x7c4   : > { %v3949_v38 = vrot.slane %v3935_v54, %v11169_v52  ;;  %v3934_v39 = vcombine.high %v3930_v27, %v3930_v27  ;;  %4003 = vst [vmem:[#allocation3 + $0xf] sm:$0x1] %v3933_v31  ;;  %4006 = vst [vmem:[#allocation3 + $0x1b] sm:$0x1] %v3932_v30  ;;  %v3950_v42 = vcombine.high %v3942_v32, %v3942_v32  ;;  %v11171_v19 = vld [vmem:[#allocation237_spill] sm:$0xff]  ;;  %v11173_v50 = vld [vmem:[#allocation238_spill] sm:$0xff] }
 0x7c5   : > { %v3958_v43 = vrot.slane %v3942_v32, %v11169_v52  ;;  %5263 = vst.sshfl [vmem:[#allocation3 + $0x23] sm:$0x1 pattern:$0x73625140] %v3942_v32  ;;  %v3819_v44 = vcombine.high %v3817_v33, %v3817_v33  ;;  %v3833_v45 = vrot.slane %v3817_v33, %v11169_v52  ;;  %v3840_v48 = vrot.slane %v3818_v36, %v11169_v52  ;;  %v11176_v25 = vld [vmem:[#allocation239_spill] sm:$0xff]  ;;  %v11179_v27 = vld [vmem:[#allocation240_spill] sm:$0xff] }
 0x7c6   : > { %v3848_v49 = vcombine.high %v3826_v37, %v3826_v37  ;;  %5256 = vst.sshfl [vmem:[#allocation3 + $0x26] sm:$0x1 pattern:$0x73625140] %v3818_v36  ;;  %4007 = vst [vmem:[#allocation3 + $0x1f] sm:$0x1] %v3934_v39  ;;  %v3951_v51 = vcombine.high %v3949_v38, %v3949_v38  ;;  %v3965_v55 = vrot.slane %v3949_v38, %v11169_v52  ;;  %v11172_v41 = vunpack.c.h.bf16 %v11171_v19 }
 0x7c7   : > { %5257 = vst.sshfl [vmem:[#allocation3 + $0x32] sm:$0x1 pattern:$0x73625140] %v3817_v33  ;;  %v3972_v10 = vrot.slane %v3950_v42, %v11169_v52  ;;  %v3980_v60 = vcombine.high %v3958_v43, %v3958_v43  ;;  %v3847_v11 = vrot.slane %v3819_v44, %v11169_v52  ;;  %v3849_v12 = vcombine.high %v3833_v45, %v3833_v45  ;;  %v5484_v14 = vld [vmem:[#allocation3] sm:$0xff]   ;;  %v11182_v33 = vld [vmem:[#allocation241_spill] sm:$0xff] }
 0x7c8   : > { %5265 = vst.sshfl [vmem:[#allocation3 + $0x33] sm:$0x1 pattern:$0x73625140] %v3949_v38  ;;  %v3850_v13 = vcombine.high %v3840_v48, %v3840_v48  ;;  %3878 = vst [vmem:[#allocation3 + $0x2a] sm:$0x1] %v3848_v49  ;;  %v3979_v53 = vrot.slane %v3951_v51, %v11169_v52  ;;  %v3981_v47 = vcombine.high %v3965_v55, %v3965_v55  ;;  %5418 = vmatprep.mubr.f32.mxu1 %v5484_v14 }
 0x7c9   : > { %5264 = vst.sshfl [vmem:[#allocation3 + $0x27] sm:$0x1 pattern:$0x73625140] %v3950_v42  ;;  %v3982_v61 = vcombine.high %v3972_v10, %v3972_v10  ;;  %4010 = vst [vmem:[#allocation3 + $0x2b] sm:$0x1] %v3980_v60  ;;  %v3851_v17 = vcombine.high %v3847_v11, %v3847_v11  ;;  %v11174_v2 = vunpack.c.h.bf16 %v11173_v50  ;;  %v11175_v21 = vunpack.c.l.bf16 %v11173_v50 }
 0x7ca   : > { %5258 = vst.sshfl [vmem:[#allocation3 + $0x36] sm:$0x1 pattern:$0x73625140] %v3819_v44  ;;  %3879 = vst [vmem:[#allocation3 + $0x2e] sm:$0x1] %v3850_v13  ;;  %v3983_v59 = vcombine.high %v3979_v53, %v3979_v53  ;;  %v11177_v26 = vunpack.c.h.bf16 %v11176_v25  ;;  %v11178_v54 = vunpack.c.l.bf16 %v11176_v25  ;;  %v11180_v30 = vunpack.c.h.bf16 %v11179_v27 }
 0x7cb   : > { %5266 = vst.sshfl [vmem:[#allocation3 + $0x37] sm:$0x1 pattern:$0x73625140] %v3951_v51  ;;  %3882 = vst [vmem:[#allocation3 + $0x3a] sm:$0x1] %v3849_v12  ;;  %v11181_v31 = vunpack.c.l.bf16 %v11179_v27  ;;  %v11183_v36 = vunpack.c.h.bf16 %v11182_v33  ;;  %v11184_v38 = vunpack.c.l.bf16 %v11182_v33 }
 0x7cc   : > { %4011 = vst [vmem:[#allocation3 + $0x2f] sm:$0x1] %v3982_v61  ;;  %4014 = vst [vmem:[#allocation3 + $0x3b] sm:$0x1] %v3981_v47  ;;  %v5485_v20 = vld [vmem:[#allocation3 + $0x8] sm:$0xff]   ;;  %v5486_v35 = vld [vmem:[#allocation3 + $0x10] sm:$0xff]  }
 0x7cd   : > { %3883 = vst [vmem:[#allocation3 + $0x3e] sm:$0x1] %v3851_v17  ;;  %4015 = vst [vmem:[#allocation3 + $0x3f] sm:$0x1] %v3983_v59  ;;  %v5487_v24 = vld [vmem:[#allocation3 + $0x18] sm:$0xff]   ;;  %v11188_v45 = vld [vmem:[#allocation243_spill] sm:$0xff] }
 0x7ce   : > { %v11185_v39 = vld [vmem:[#allocation242_spill] sm:$0xff]  ;;  %v11189_v48 = vunpack.c.h.bf16 %v11188_v45  ;;  %v11190_v49 = vunpack.c.l.bf16 %v11188_v45  ;;  %v11191_v51 = vld [vmem:[#allocation244_spill] sm:$0xff]  ;;  %v11194_v60 = vld [vmem:[#allocation245_spill] sm:$0xff] }
 0x7cf   : > { %v11186_v42 = vunpack.c.h.bf16 %v11185_v39  ;;  %v11187_v43 = vunpack.c.l.bf16 %v11185_v39  ;;  %v11192_v55 = vunpack.c.h.bf16 %v11191_v51  ;;  %v11193_v10 = vunpack.c.l.bf16 %v11191_v51  ;;  %v11197_v13 = vld [vmem:[#allocation246_spill] sm:$0xff]  ;;  %v11200_v47 = vld [vmem:[#allocation247_spill] sm:$0xff]  ;;  %v11203_v59 = vld [vmem:[#allocation248_spill] sm:$0xff] }
 0x7d0   : > { %v5488_v34 = vld [vmem:[#allocation3 + $0x20] sm:$0xff]   ;;  %v11195_v11 = vunpack.c.h.bf16 %v11194_v60  ;;  %v11196_v12 = vunpack.c.l.bf16 %v11194_v60  ;;  %v11198_v14 = vunpack.c.h.bf16 %v11197_v13  ;;  %v11199_v53 = vunpack.c.l.bf16 %v11197_v13  ;;  %v11230_v50 = vld [vmem:[#allocation257_spill] sm:$0xff]  ;;  %v11239_v27 = vld [vmem:[#allocation260_spill] sm:$0xff] }
 0x7d1   : > { %v11201_v61 = vunpack.c.h.bf16 %v11200_v47  ;;  %v11202_v17 = vunpack.c.l.bf16 %v11200_v47  ;;  %v11251_v45 = vld [vmem:[#allocation264_spill] sm:$0xff]  ;;  %v11254_v51 = vld [vmem:[#allocation265_spill] sm:$0xff]  ;;  %v11257_v60 = vld [vmem:[#allocation266_spill] sm:$0xff] }
 0x7d2   : > { %v5490_v37 = vld [vmem:[#allocation3 + $0x30] sm:$0xff]   ;;  %v11260_v13 = vld [vmem:[#allocation298_spill] sm:$0xff]  ;;  %v11263_v47 = vld [vmem:[#allocation299_spill] sm:$0xff] }
 0x7d3   : > { %v5489_v32 = vld [vmem:[#allocation3 + $0x28] sm:$0xff]  }
 0x7d4   : > { %v5491_v44 = vld [vmem:[#allocation3 + $0x38] sm:$0xff]  }
 0x7f9   : > { %v3246_v46 = vpop.f32.mrf.mxu1  ;;  %v3323_v15 = vpop.f32.mrf.mxu0 }
 0x7fa   : > { %v3324_v62 = vadd.f32 %v3323_v15, %v3246_v46  ;;  %v11204_v46 = vunpack.c.h.bf16 %v11203_v59  ;;  %v11205_v15 = vunpack.c.l.bf16 %v11203_v59  ;;  %v11266_v59 = vld [vmem:[#allocation301_spill] sm:$0xff] }
 0x7fb   : > { %v3248_v58 = vpop.f32.mrf.mxu1  ;;  %v3325_v6 = vpop.f32.mrf.mxu0 }
 0x7fc   : > { %v3326_v18 = vadd.f32 %v3325_v6, %v3248_v58  ;;  %v11206_v58 = vld [vmem:[#allocation249_spill] sm:$0xff] }
 0x7fd   : > { %v11207_v6 = vunpack.c.h.bf16 %v11206_v58 }
 0x835   : > { %v3252_v40 = vpop.f32.mrf.mxu1  ;;  %v3329_v4 = vpop.f32.mrf.mxu0 }
 0x836   : > { %v3330_v16 = vadd.f32 %v3329_v4, %v3252_v40  ;;  %v11208_v40 = vunpack.c.l.bf16 %v11206_v58  ;;  %v11209_v4 = vld [vmem:[#allocation250_spill] sm:$0xff] }
 0x837   : > { %v3254_v52 = vpop.f32.mrf.mxu1  ;;  %v3331_v22 = vpop.f32.mrf.mxu0  ;;  %v11269_v58 = vld [vmem:[#allocation302_spill] sm:$0xff] }
 0x838   : > { %v3332_v56 = vadd.f32 %v3331_v22, %v3254_v52  ;;  %v11210_v52 = vunpack.c.h.bf16 %v11209_v4  ;;  %v11211_v22 = vunpack.c.l.bf16 %v11209_v4  ;;  %v4032_v4 = vld [vmem:[%s9423_s3] sm:$0xff] }
 0x839   : > { %vm4185_vm10 = vcmp.eq.f32.partialorder %v4032_v4, 0.0 }
 0x83d   : > { %v3400_v3 = vpop.f32.mrf.mxu1 }
 0x83e   : > { %v3477_v63 = vpop.f32.mrf.mxu0 }
 0x83f   : > { %v3402_v1 = vpop.f32.mrf.mxu1  ;;  %v3478_v23 = vadd.f32 %v3477_v63, %v3400_v3  ;;  %v11212_v3 = vld [vmem:[#allocation251_spill] sm:$0xff] }
 0x840   : > { %v3479_v29 = vpop.f32.mrf.mxu0  ;;  %v11213_v63 = vunpack.c.h.bf16 %v11212_v3 }
 0x841   : > { %v3406_v9 = vpop.f32.mrf.mxu1  ;;  %v3480_v57 = vadd.f32 %v3479_v29, %v3402_v1  ;;  %v11214_v1 = vunpack.c.l.bf16 %v11212_v3  ;;  %v11215_v29 = vld [vmem:[#allocation252_spill] sm:$0xff]  ;;  %v4035_v3 = vld [vmem:[%s9423_s3 + $0x18] sm:$0xff] }
 0x842   : > { %v3483_v5 = vpop.f32.mrf.mxu0  ;;  %vm4188_vm11 = vcmp.eq.f32.partialorder %v4035_v3, 0.0 }
 0x843   : > { %v3408_v28 = vpop.f32.mrf.mxu1  ;;  %v3484_v8 = vadd.f32 %v3483_v5, %v3406_v9  ;;  %v11216_v9 = vunpack.c.h.bf16 %v11215_v29  ;;  %v11217_v5 = vunpack.c.l.bf16 %v11215_v29 }
 0x844   : > { %v3485_v7 = vpop.f32.mrf.mxu0 }
 0x845   : > { %v3486_v0 = vadd.f32 %v3485_v7, %v3408_v28  ;;  %v11218_v28 = vld [vmem:[#allocation253_spill] sm:$0xff] }
 0x846   : > { %v11219_v7 = vunpack.c.h.bf16 %v11218_v28 }
 0x847   : > { %5402 = vmatprep.subr.mxu1 %v3486_v0  ;;  %5430 = vmatprep.subr.mxu0 %v3486_v0 }
 0x848   : > { %5403 = vmatpush3.xpose.msra.mxu1 %v3486_v0  ;;  %5431 = vmatpush3.msra.mxu0 %v3486_v0  ;;  %v11220_v0 = vunpack.c.l.bf16 %v11218_v28 }
 0x849   : > { %5404 = vmatprep.subr.mxu1 %v3480_v57  ;;  %5432 = vmatprep.subr.mxu0 %v3480_v57 }
 0x84a   : > { %5433 = vmatpush3.msra.mxu0 %v3480_v57 }
 0x84b   : > { %5434 = vmatprep.subr.mxu0 %v3484_v8 }
 0x84c   : > { %5405 = vmatpush3.xpose.msra.mxu1 %v3480_v57  ;;  %5435 = vmatpush3.msra.mxu0 %v3484_v8  ;;  %v11221_v57 = vld [vmem:[#allocation254_spill] sm:$0xff] }
 0x84d   : > { %5406 = vmatprep.subr.mxu1 %v3484_v8  ;;  %5436 = vmatprep.subr.mxu0 %v3478_v23 }
 0x84e   : > { %5437 = vmatpush3.msra.mxu0 %v3478_v23 }
 0x84f   : > { %5438 = vmatprep.subr.mxu0 %v3332_v56 }
 0x850   : > { %5407 = vmatpush3.xpose.msra.mxu1 %v3484_v8  ;;  %5439 = vmatpush3.msra.mxu0 %v3332_v56  ;;  %v11222_v8 = vunpack.c.h.bf16 %v11221_v57 }
 0x851   : > { %5408 = vmatprep.subr.mxu1 %v3478_v23  ;;  %5440 = vmatprep.subr.mxu0 %v3326_v18 }
 0x852   : > { %5441 = vmatpush3.msra.mxu0 %v3326_v18 }
 0x853   : > { %5442 = vmatprep.subr.mxu0 %v3330_v16 }
 0x854   : > { %5409 = vmatpush3.xpose.msra.mxu1 %v3478_v23  ;;  %5443 = vmatpush3.msra.mxu0 %v3330_v16  ;;  %v11223_v23 = vunpack.c.l.bf16 %v11221_v57  ;;  %v4037_v57 = vld [vmem:[%s9423_s3 + $0x28] sm:$0xff] }
 0x855   : > { %5410 = vmatprep.subr.mxu1 %v3332_v56  ;;  %5444 = vmatprep.subr.mxu0 %v3324_v62  ;;  %vm4190_vm13 = vcmp.eq.f32.partialorder %v4037_v57, 0.0 }
 0x856   : > { %5445 = vmatpush3.msra.mxu0 %v3324_v62 }
 0x857   : > { %4418 = vmatprep.subr.mxu0 %v11172_v41 }
 0x858   : > { %5411 = vmatpush3.xpose.msra.mxu1 %v3332_v56  ;;  %v11224_v56 = vld [vmem:[#allocation255_spill] sm:$0xff] }
 0x859   : > { %5412 = vmatprep.subr.mxu1 %v3326_v18 }
 0x85c   : > { %5413 = vmatpush3.xpose.msra.mxu1 %v3326_v18  ;;  %v11225_v18 = vunpack.c.h.bf16 %v11224_v56 }
 0x85d   : > { %5414 = vmatprep.subr.mxu1 %v3330_v16 }
 0x860   : > { %5415 = vmatpush3.xpose.msra.mxu1 %v3330_v16  ;;  %v11226_v16 = vunpack.c.l.bf16 %v11224_v56 }
 0x861   : > { %5416 = vmatprep.subr.mxu1 %v3324_v62 }
 0x864   : > { %5417 = vmatpush3.xpose.msra.mxu1 %v3324_v62  ;;  %v11227_v62 = vld [vmem:[#allocation256_spill] sm:$0xff] }
 0x865   : > { %4495 = vmatprep.subr.mxu1 %v11174_v2  ;;  %v11228_v41 = vunpack.c.h.bf16 %v11227_v62  ;;  %v11231_v2 = vunpack.c.h.bf16 %v11230_v50 }
 0x867   : > { %5419 = vmatmul.mubr.f32.vlgmr.msra.gmra.mxu1 %v5485_v20  ;;  %v11229_v20 = vunpack.c.l.bf16 %v11227_v62 }
 0x868   : > { %5421 = vmatprep.mubr.f32.mxu1 %v5486_v35  ;;  %4496 = vmatpush1.msra.mxu1 %v11175_v21  ;;  %v11232_v35 = vunpack.c.l.bf16 %v11230_v50  ;;  %v11233_v21 = vld [vmem:[#allocation258_spill] sm:$0xff] }
 0x869   : > { %4497 = vmatprep.subr.mxu1 %v11177_v26  ;;  %v11235_v25 = vunpack.c.l.bf16 %v11233_v21  ;;  %v11236_v26 = vld [vmem:[#allocation259_spill] sm:$0xff] }
 0x86a   : > { %4498 = vmatpush1.msra.mxu1 %v11178_v54  ;;  %v11238_v54 = vunpack.c.l.bf16 %v11236_v26 }
 0x86b   : > { %5422 = vmatmul.mubr.f32.gmra.mxu1 %v5487_v24  ;;  %4499 = vmatprep.subr.mxu1 %v11180_v30  ;;  %v11234_v24 = vunpack.c.h.bf16 %v11233_v21  ;;  %v11240_v30 = vunpack.c.h.bf16 %v11239_v27 }
 0x86c   : > { %5424 = vmatprep.mubr.f32.mxu1 %v5488_v34  ;;  %4500 = vmatpush1.msra.mxu1 %v11181_v31  ;;  %v11237_v34 = vunpack.c.h.bf16 %v11236_v26  ;;  %v11241_v31 = vunpack.c.l.bf16 %v11239_v27  ;;  %v4038_v26 = vld [vmem:[%s9423_s3 + $0x30] sm:$0xff] }
 0x86d   : > { %4501 = vmatprep.subr.mxu1 %v11183_v36  ;;  %vm4191_vm0 = vcmp.eq.f32.partialorder %v4038_v26, 0.0 }
 0x86e   : > { %4502 = vmatpush1.msra.mxu1 %v11184_v38 }
 0x86f   : > { %5425 = vmatmul.mubr.f32.gmra.mxu1 %v5489_v32  ;;  %4503 = vmatprep.subr.mxu1 %v11186_v42  ;;  %v11242_v32 = vld [vmem:[#allocation261_spill] sm:$0xff]  ;;  %v11248_v42 = vld [vmem:[#allocation263_spill] sm:$0xff] }
 0x870   : > { %5427 = vmatprep.mubr.f32.mxu1 %v5490_v37  ;;  %4504 = vmatpush1.msra.mxu1 %v11187_v43  ;;  %v11243_v33 = vunpack.c.h.bf16 %v11242_v32  ;;  %v11244_v36 = vunpack.c.l.bf16 %v11242_v32  ;;  %v11245_v37 = vld [vmem:[#allocation262_spill] sm:$0xff]  ;;  %v11249_v43 = vunpack.c.h.bf16 %v11248_v42 }
 0x871   : > { %4505 = vmatprep.subr.mxu1 %v11189_v48  ;;  %v11246_v38 = vunpack.c.h.bf16 %v11245_v37  ;;  %v11247_v39 = vunpack.c.l.bf16 %v11245_v37  ;;  %v11252_v48 = vunpack.c.h.bf16 %v11251_v45 }
 0x872   : > { %4506 = vmatpush1.msra.mxu1 %v11190_v49  ;;  %v11253_v49 = vunpack.c.l.bf16 %v11251_v45 }
 0x873   : > { %5428 = vmatmul.mubr.f32.gmra.mxu1 %v5491_v44  ;;  %4507 = vmatprep.subr.mxu1 %v11192_v55  ;;  %v11250_v44 = vunpack.c.l.bf16 %v11248_v42  ;;  %v11255_v55 = vunpack.c.h.bf16 %v11254_v51 }
 0x874   : > { %4508 = vmatpush1.msra.mxu1 %v11193_v10  ;;  %v11256_v10 = vunpack.c.l.bf16 %v11254_v51 }
 0x875   : > { %4509 = vmatprep.subr.mxu1 %v11195_v11  ;;  %v11258_v11 = vunpack.c.h.bf16 %v11257_v60 }
 0x876   : > { %4510 = vmatpush1.msra.mxu1 %v11196_v12  ;;  %v11259_v12 = vunpack.c.l.bf16 %v11257_v60 }
 0x877   : > { %4511 = vmatprep.subr.mxu1 %v11198_v14  ;;  %v11261_v14 = vunpack.c.h.bf16 %v11260_v13 }
 0x878   : > { %4512 = vmatpush1.msra.mxu1 %v11199_v53  ;;  %v11262_v53 = vunpack.c.l.bf16 %v11260_v13 }
 0x879   : > { %4513 = vmatprep.subr.mxu1 %v11201_v61  ;;  %v11264_v61 = vunpack.c.h.bf16 %v11263_v47 }
 0x87a   : > { %4514 = vmatpush1.msra.mxu1 %v11202_v17  ;;  %v11265_v17 = vunpack.c.l.bf16 %v11263_v47 }
 0x87b   : > { %4515 = vmatprep.subr.mxu1 %v11204_v46  ;;  %v11267_v46 = vunpack.c.h.bf16 %v11266_v59 }
 0x87c   : > { %4516 = vmatpush1.msra.mxu1 %v11205_v15  ;;  %v11268_v15 = vunpack.c.l.bf16 %v11266_v59 }
 0x87d   : > { %4517 = vmatprep.subr.mxu1 %v11207_v6  ;;  %v11270_v6 = vunpack.c.h.bf16 %v11269_v58 }
 0x87e   : > { %4518 = vmatpush1.msra.mxu1 %v11208_v40  ;;  %v4033_v40 = vld [vmem:[%s9423_s3 + $0x8] sm:$0xff] }
 0x87f   : > { %4519 = vmatprep.subr.mxu1 %v11210_v52  ;;  %vm4186_vm9 = vcmp.eq.f32.partialorder %v4033_v40, 0.0 }
 0x880   : > { %4520 = vmatpush1.msra.mxu1 %v11211_v22 }
 0x881   : > { %4521 = vmatprep.subr.mxu1 %v11213_v63 }
 0x882   : > { %4522 = vmatpush1.msra.mxu1 %v11214_v1 }
 0x883   : > { %4523 = vmatprep.subr.mxu1 %v11216_v9  ;;  %v4034_v9 = vld [vmem:[%s9423_s3 + $0x10] sm:$0xff] }
 0x884   : > { %4524 = vmatpush1.msra.mxu1 %v11217_v5  ;;  %vm4187_vm12 = vcmp.eq.f32.partialorder %v4034_v9, 0.0 }
 0x885   : > { %4525 = vmatprep.subr.mxu1 %v11219_v7 }
 0x886   : > { %4526 = vmatpush1.msra.mxu1 %v11220_v0 }
 0x887   : > { %4527 = vmatprep.subr.mxu1 %v11222_v8 }
 0x888   : > { %4528 = vmatpush2.msra.mxu1 %v11223_v23 }
 0x889   : > { %4529 = vmatprep.subr.mxu1 %v11225_v18 }
 0x88a   : > { %4530 = vmatpush2.msra.mxu1 %v11226_v16  ;;  %v4036_v16 = vld [vmem:[%s9423_s3 + $0x20] sm:$0xff] }
 0x88b   : > { %4531 = vmatprep.subr.mxu1 %v11228_v41  ;;  %vm4189_vm14 = vcmp.eq.f32.partialorder %v4036_v16, 0.0 }
 0x88c   : > { %4532 = vmatpush2.msra.mxu1 %v11229_v20 }
 0x88d   : > { %4533 = vmatprep.subr.mxu1 %v11231_v2  ;;  %v4039_v2 = vld [vmem:[%s9423_s3 + $0x38] sm:$0xff] }
 0x88e   : > { %4534 = vmatpush2.msra.mxu1 %v11232_v35  ;;  %vm4192_vm15 = vcmp.eq.f32.partialorder %v4039_v2, 0.0 }
 0x88f   : > { %4535 = vmatprep.subr.mxu1 %v11234_v24 }
 0x890   : > { %4536 = vmatpush2.msra.mxu1 %v11235_v25 }
 0x891   : > { %4537 = vmatprep.subr.mxu1 %v11237_v34 }
 0x892   : > { %4538 = vmatpush2.msra.mxu1 %v11238_v54 }
 0x893   : > { %4539 = vmatprep.subr.mxu1 %v11240_v30 }
 0x894   : > { %4540 = vmatpush2.msra.mxu1 %v11241_v31 }
 0x895   : > { %4541 = vmatprep.subr.mxu1 %v11243_v33 }
 0x896   : > { %4542 = vmatpush2.msra.mxu1 %v11244_v36 }
 0x897   : > { %4543 = vmatprep.subr.mxu1 %v11246_v38 }
 0x898   : > { %4544 = vmatpush2.msra.mxu1 %v11247_v39 }
 0x899   : > { %4545 = vmatprep.subr.mxu1 %v11249_v43 }
 0x89a   : > { %4546 = vmatpush2.msra.mxu1 %v11250_v44 }
 0x89b   : > { %4547 = vmatprep.subr.mxu1 %v11252_v48 }
 0x89c   : > { %4548 = vmatpush2.msra.mxu1 %v11253_v49 }
 0x89d   : > { %4549 = vmatprep.subr.mxu1 %v11255_v55 }
 0x89e   : > { %4550 = vmatpush2.msra.mxu1 %v11256_v10 }
 0x89f   : > { %4551 = vmatprep.subr.mxu1 %v11258_v11 }
 0x8a0   : > { %4552 = vmatpush2.msra.mxu1 %v11259_v12 }
 0x8a1   : > { %4553 = vmatprep.subr.mxu1 %v11261_v14 }
 0x8a2   : > { %4554 = vmatpush2.msra.mxu1 %v11262_v53 }
 0x8a3   : > { %4555 = vmatprep.subr.mxu1 %v11264_v61 }
 0x8a4   : > { %4556 = vmatpush2.msra.mxu1 %v11265_v17 }
 0x8a5   : > { %4557 = vmatprep.subr.mxu1 %v11267_v46 }
 0x8a6   : > { %4558 = vmatpush2.msra.mxu1 %v11268_v15 }
 0x8a7   : > { %4649 = vmatprep.subr.mxu1 %v11270_v6 }
 0x927   : > { %v5420_v52 = vpop.f32.mrf.mxu1 }
 0x928   : > { %v4178_v22 = vmul.f32 0.088388346, %v5420_v52 }
 0x929   : > { %v4138_v63 = vpop.f32.mrf.mxu1 }
 0x92a   : > { %v4177_v1 = vmul.f32 0.088388346, %v4138_v63  ;;  %v4194_v29 = vsel %vm4186_vm9, %v4178_v22, %v4033_v40 }
 0x92b   : > { %v5423_v5 = vpop.f32.mrf.mxu1  ;;  %v4204_v28 = vsel %vm2217_vm2, %v4194_v29, -inf }
 0x92c   : > { %v4180_v7 = vmul.f32 0.088388346, %v5423_v5  ;;  %4205 = vmax.xlane.f32.xlu1 %v4204_v28  ;;  %v4193_v0 = vsel %vm4185_vm10, %v4177_v1, %v4032_v4 }
 0x92d   : > { %v4148_v8 = vpop.f32.mrf.mxu1  ;;  %v4201_v23 = vsel %vm2217_vm2, %v4193_v0, -inf }
 0x92e   : > { %v4179_v56 = vmul.f32 0.088388346, %v4148_v8  ;;  %4202 = vmax.xlane.f32.xlu0 %v4201_v23  ;;  %v4196_v18 = vsel %vm4188_vm11, %v4180_v7, %v4035_v3 }
 0x92f   : > { %v5426_v62 = vpop.f32.mrf.mxu1  ;;  %v4210_v41 = vsel %vm2217_vm2, %v4196_v18, -inf }
 0x930   : > { %v4182_v20 = vmul.f32 0.088388346, %v5426_v62  ;;  %4211 = vmax.xlane.f32.xlu1 %v4210_v41  ;;  %v4195_v50 = vsel %vm4187_vm12, %v4179_v56, %v4034_v9 }
 0x931   : > { %v4158_v35 = vpop.f32.mrf.mxu1  ;;  %v4207_v21 = vsel %vm2217_vm2, %v4195_v50, -inf }
 0x932   : > { %v4181_v24 = vmul.f32 0.088388346, %v4158_v35  ;;  %4208 = vmax.xlane.f32.xlu0 %v4207_v21  ;;  %v4198_v25 = vsel %vm4190_vm13, %v4182_v20, %v4037_v57 }
 0x933   : > { %v5429_v34 = vpop.f32.mrf.mxu1  ;;  %v4216_v54 = vsel %vm2217_vm2, %v4198_v25, -inf }
 0x934   : > { %v4184_v27 = vmul.f32 0.088388346, %v5429_v34  ;;  %4217 = vmax.xlane.f32.xlu1 %v4216_v54  ;;  %v4197_v30 = vsel %vm4189_vm14, %v4181_v24, %v4036_v16 }
 0x935   : > { %v4168_v31 = vpop.f32.mrf.mxu1  ;;  %v4213_v32 = vsel %vm2217_vm2, %v4197_v30, -inf }
 0x936   : > { %v4183_v33 = vmul.f32 0.088388346, %v4168_v31  ;;  %4214 = vmax.xlane.f32.xlu0 %v4213_v32  ;;  %v4200_v36 = vsel %vm4192_vm15, %v4184_v27, %v4039_v2  ;;  %v11271_v31 = vunpack.c.l.bf16 %v11171_v19 }
 0x937   : > { %v4222_v37 = vsel %vm2217_vm2, %v4200_v36, -inf }
 0x938   : > { %4223 = vmax.xlane.f32.xlu1 %v4222_v37  ;;  %v4199_v38 = vsel %vm4191_vm0, %v4183_v33, %v4038_v26  ;;  %v11272_v33 = vld [vmem:[#allocation267_spill] sm:$0xff] }
 0x939   : > { %v4219_v39 = vsel %vm2217_vm2, %v4199_v38, -inf }
 0x93a   : > { %4220 = vmax.xlane.f32.xlu0 %v4219_v39 }
 0x9b5   : > { %v4206_v42 = vpop.xlane.xlu1 %4205 }
 0x9b6   : > { %v4226_v43 = vsub.f32 %v4194_v29, %v4206_v42  ;;  %v11275_v42 = vld [vmem:[#allocation268_spill] sm:$0xff] }
 0x9b7   : > { %v4203_v44 = vpop.xlane.xlu0 %4202  ;;  %v11277_v19 = vunpack.c.l.bf16 %v11275_v42 }
 0x9b8   : > { %v4235_v45 = vmul.f32 1.442695, %v4226_v43  ;;  %v4225_v48 = vsub.f32 %v4193_v0, %v4203_v44  ;;  %v11276_v43 = vunpack.c.h.bf16 %v11275_v42  ;;  %v11332_v42 = vld [vmem:[#allocation287_spill] sm:$0xff] }
 0x9b9   : > { %v4212_v49 = vpop.xlane.xlu1 %4211 }
 0x9ba   : > { %5528 = vpow2.f32 %v4235_v45  ;;  %v4233_v51 = vmul.f32 1.442695, %v4225_v48  ;;  %v4228_v55 = vsub.f32 %v4196_v18, %v4212_v49  ;;  %v11278_v48 = vld [vmem:[#allocation269_spill] sm:$0xff] }
 0x9bb   : > { %v4209_v10 = vpop.xlane.xlu0 %4208  ;;  %v11279_v49 = vunpack.c.h.bf16 %v11278_v48 }
 0x9bc   : > { %5530 = vpow2.f32 %v4233_v51  ;;  %v4239_v60 = vmul.f32 1.442695, %v4228_v55  ;;  %v4227_v11 = vsub.f32 %v4195_v50, %v4209_v10  ;;  %v11280_v55 = vunpack.c.l.bf16 %v11278_v48 }
 0x9bd   : > { %v4218_v12 = vpop.xlane.xlu1 %4217 }
 0x9be   : > { %5532 = vpow2.f32 %v4239_v60  ;;  %v4237_v13 = vmul.f32 1.442695, %v4227_v11  ;;  %v4230_v14 = vsub.f32 %v4198_v25, %v4218_v12  ;;  %v11281_v60 = vld [vmem:[#allocation270_spill] sm:$0xff] }
 0x9bf   : > { %v4215_v53 = vpop.xlane.xlu0 %4214  ;;  %v11282_v11 = vunpack.c.h.bf16 %v11281_v60 }
 0x9c0   : > { %5534 = vpow2.f32 %v4237_v13  ;;  %v4243_v47 = vmul.f32 1.442695, %v4230_v14  ;;  %v4229_v61 = vsub.f32 %v4197_v30, %v4215_v53  ;;  %v11283_v13 = vunpack.c.l.bf16 %v11281_v60  ;;  %v11284_v53 = vld [vmem:[#allocation271_spill] sm:$0xff] }
 0x9c1   : > { %v4224_v17 = vpop.xlane.xlu1 %4223 }
 0x9c2   : > { %5536 = vpow2.f32 %v4243_v47  ;;  %v4241_v59 = vmul.f32 1.442695, %v4229_v61  ;;  %v4232_v46 = vsub.f32 %v4200_v36, %v4224_v17  ;;  %v11273_v36 = vunpack.c.h.bf16 %v11272_v33  ;;  %v11287_v17 = vld [vmem:[#allocation272_spill] sm:$0xff] }
 0x9c3   : > { %v4221_v15 = vpop.xlane.xlu0 %4220  ;;  %v11285_v47 = vunpack.c.h.bf16 %v11284_v53  ;;  %v11286_v61 = vunpack.c.l.bf16 %v11284_v53  ;;  %v11347_v53 = vld [vmem:[#allocation292_spill] sm:$0xff] }
 0x9c4   : > { %5538 = vpow2.f32 %v4241_v59  ;;  %v4247_v6 = vmul.f32 1.442695, %v4232_v46  ;;  %v4231_v40 = vsub.f32 %v4199_v38, %v4221_v15  ;;  %v11274_v38 = vunpack.c.l.bf16 %v11272_v33  ;;  %v11290_v15 = vld [vmem:[#allocation273_spill] sm:$0xff] }
 0x9c5   : > { %v11288_v59 = vunpack.c.h.bf16 %v11287_v17  ;;  %v11289_v46 = vunpack.c.l.bf16 %v11287_v17  ;;  %v11350_v17 = vld [vmem:[#allocation293_spill] sm:$0xff] }
 0x9c6   : > { %5540 = vpow2.f32 %v4247_v6  ;;  %v4245_v4 = vmul.f32 1.442695, %v4231_v40  ;;  %v11291_v6 = vunpack.c.h.bf16 %v11290_v15  ;;  %v11292_v40 = vunpack.c.l.bf16 %v11290_v15  ;;  %v11353_v15 = vld [vmem:[#allocation294_spill] sm:$0xff] }
 0x9c7   : > { %v5529_v52 = vpop.eup %5528 }
 0x9c8   : > { %5542 = vpow2.f32 %v4245_v4  ;;  %v4252_v22 = vsel %vm2217_vm2, %v5529_v52, 0.0  ;;  %v11293_v4 = vld [vmem:[#allocation274_spill] sm:$0xff] }
 0x9c9   : > { %v5531_v3 = vpop.eup %5530  ;;  %4253 = vadd.xlane.f32.xlu1 %v4252_v22  ;;  %v11295_v22 = vunpack.c.l.bf16 %v11293_v4 }
 0x9ca   : > { %v4249_v63 = vsel %vm2217_vm2, %v5531_v3, 0.0 }
 0x9cb   : > { %v5533_v1 = vpop.eup %5532  ;;  %4250 = vadd.xlane.f32.xlu0 %v4249_v63 }
 0x9cc   : > { %v4258_v29 = vsel %vm2217_vm2, %v5533_v1, 0.0 }
 0x9cd   : > { %v5535_v9 = vpop.eup %5534  ;;  %4259 = vadd.xlane.f32.xlu1 %v4258_v29  ;;  %v11299_v29 = vld [vmem:[#allocation276_spill] sm:$0xff] }
 0x9ce   : > { %v4255_v5 = vsel %vm2217_vm2, %v5535_v9, 0.0 }
 0x9cf   : > { %v5537_v28 = vpop.eup %5536  ;;  %4256 = vadd.xlane.f32.xlu0 %v4255_v5  ;;  %v11301_v5 = vunpack.c.l.bf16 %v11299_v29 }
 0x9d0   : > { %v4264_v7 = vsel %vm2217_vm2, %v5537_v28, 0.0 }
 0x9d1   : > { %v5539_v0 = vpop.eup %5538  ;;  %4265 = vadd.xlane.f32.xlu1 %v4264_v7 }
 0x9d2   : > { %v4261_v57 = vsel %vm2217_vm2, %v5539_v0, 0.0 }
 0x9d3   : > { %v5541_v8 = vpop.eup %5540  ;;  %4262 = vadd.xlane.f32.xlu0 %v4261_v57  ;;  %v11305_v57 = vld [vmem:[#allocation278_spill] sm:$0xff] }
 0x9d4   : > { %v4270_v23 = vsel %vm2217_vm2, %v5541_v8, 0.0 }
 0x9d5   : > { %v5543_v56 = vpop.eup %5542  ;;  %4271 = vadd.xlane.f32.xlu1 %v4270_v23  ;;  %v11307_v23 = vunpack.c.l.bf16 %v11305_v57 }
 0x9d6   : > { %v4267_v18 = vsel %vm2217_vm2, %v5543_v56, 0.0 }
 0x9d7   : > { %4268 = vadd.xlane.f32.xlu0 %v4267_v18 }
 0xa52   : > { %v4254_v16 = vpop.xlane.xlu1 %4253 }
 0xa53   : > { %5544 = vrcp.f32 %v4254_v16 }
 0xa54   : > { %v4251_v62 = vpop.xlane.xlu0 %4250 }
 0xa55   : > { %5546 = vrcp.f32 %v4251_v62  ;;  %v11311_v62 = vld [vmem:[#allocation280_spill] sm:$0xff] }
 0xa56   : > { %v4260_v41 = vpop.xlane.xlu1 %4259 }
 0xa57   : > { %5548 = vrcp.f32 %v4260_v41  ;;  %v11312_v41 = vunpack.c.h.bf16 %v11311_v62 }
 0xa58   : > { %v4257_v20 = vpop.xlane.xlu0 %4256 }
 0xa59   : > { %5550 = vrcp.f32 %v4257_v20  ;;  %v11313_v20 = vunpack.c.l.bf16 %v11311_v62 }
 0xa5a   : > { %v4266_v50 = vpop.xlane.xlu1 %4265 }
 0xa5b   : > { %5552 = vrcp.f32 %v4266_v50  ;;  %v11314_v50 = vld [vmem:[#allocation281_spill] sm:$0xff] }
 0xa5c   : > { %v4263_v2 = vpop.xlane.xlu0 %4262 }
 0xa5d   : > { %5554 = vrcp.f32 %v4263_v2  ;;  %v11315_v2 = vunpack.c.h.bf16 %v11314_v50 }
 0xa5e   : > { %v4272_v35 = vpop.xlane.xlu1 %4271 }
 0xa5f   : > { %5556 = vrcp.f32 %v4272_v35  ;;  %v11316_v35 = vunpack.c.l.bf16 %v11314_v50 }
 0xa60   : > { %v4269_v21 = vpop.xlane.xlu0 %4268  ;;  %v5545_v24 = vpop.eup %5544 }
 0xa61   : > { %5558 = vrcp.f32 %v4269_v21  ;;  %v4282_v34 = vmul.f32 %v5545_v24, %v5529_v52  ;;  %v11294_v52 = vunpack.c.h.bf16 %v11293_v4  ;;  %v11317_v21 = vld [vmem:[#allocation282_spill] sm:$0xff]  ;;  %v11356_v4 = vld [vmem:[#allocation295_spill] sm:$0xff] }
 0xa62   : > { %v5547_v25 = vpop.eup %5546  ;;  %v11318_v24 = vunpack.c.h.bf16 %v11317_v21 }
 0xa63   : > { %v4281_v26 = vmul.f32 %v5547_v25, %v5531_v3  ;;  %v11296_v3 = vld [vmem:[#allocation275_spill] sm:$0xff]  ;;  %v11319_v25 = vunpack.c.l.bf16 %v11317_v21  ;;  %v11375_v21 = vld [vmem:[#allocation305_spill] sm:$0xff] }
 0xa64   : > { %v5549_v54 = vpop.eup %5548  ;;  %v11297_v63 = vunpack.c.h.bf16 %v11296_v3 }
 0xa65   : > { %5446 = vmatprep.mubr.msk.f32.mxu0 %vm2217_vm2, %v4281_v26  ;;  %v4284_v32 = vmul.f32 %v5549_v54, %v5533_v1  ;;  %v11298_v1 = vunpack.c.l.bf16 %v11296_v3  ;;  %v11320_v26 = vld [vmem:[#allocation283_spill] sm:$0xff]  ;;  %v11359_v3 = vld [vmem:[#allocation296_spill] sm:$0xff] }
 0xa66   : > { %v5551_v27 = vpop.eup %5550  ;;  %5447 = vmatmul.mubr.msk.f32.vlgmr.msra.gmra.mxu0 %vm2217_vm2, %v4282_v34  ;;  %v11321_v34 = vunpack.c.h.bf16 %v11320_v26  ;;  %v11322_v54 = vunpack.c.l.bf16 %v11320_v26 }
 0xa67   : > { %v4283_v30 = vmul.f32 %v5551_v27, %v5535_v9  ;;  %4419 = vmatpush1.msra.mxu0 %v11271_v31  ;;  %v11300_v9 = vunpack.c.h.bf16 %v11299_v29  ;;  %v11323_v27 = vld [vmem:[#allocation284_spill] sm:$0xff]  ;;  %v11362_v29 = vld [vmem:[#allocation297_spill] sm:$0xff] }
 0xa68   : > { %4420 = vmatprep.subr.mxu0 %v11273_v36  ;;  %v5553_v37 = vpop.eup %5552  ;;  %v11325_v31 = vunpack.c.l.bf16 %v11323_v27 }
 0xa69   : > { %5449 = vmatprep.mubr.msk.f32.mxu0 %vm2217_vm2, %v4283_v30  ;;  %4421 = vmatpush1.msra.mxu0 %v11274_v38  ;;  %v4286_v45 = vmul.f32 %v5553_v37, %v5537_v28  ;;  %v11302_v28 = vld [vmem:[#allocation277_spill] sm:$0xff]  ;;  %v11324_v30 = vunpack.c.h.bf16 %v11323_v27  ;;  %v11329_v37 = vld [vmem:[#allocation286_spill] sm:$0xff] }
 0xa6a   : > { %v5555_v39 = vpop.eup %5554  ;;  %5450 = vmatmul.mubr.msk.f32.gmra.mxu0 %vm2217_vm2, %v4284_v32  ;;  %4422 = vmatprep.subr.mxu0 %v11276_v43  ;;  %v11303_v7 = vunpack.c.h.bf16 %v11302_v28  ;;  %v11326_v32 = vld [vmem:[#allocation285_spill] sm:$0xff]  ;;  %v11330_v38 = vunpack.c.h.bf16 %v11329_v37  ;;  %v11333_v43 = vunpack.c.h.bf16 %v11332_v42 }
 0xa6b   : > { %v4285_v44 = vmul.f32 %v5555_v39, %v5539_v0  ;;  %4423 = vmatpush1.msra.mxu0 %v11277_v19  ;;  %v11304_v0 = vunpack.c.l.bf16 %v11302_v28  ;;  %v11327_v33 = vunpack.c.h.bf16 %v11326_v32  ;;  %v11328_v36 = vunpack.c.l.bf16 %v11326_v32  ;;  %v11335_v19 = vld [vmem:[#allocation288_spill] sm:$0xff] }
 0xa6c   : > { %4424 = vmatprep.subr.mxu0 %v11279_v49  ;;  %v5557_v51 = vpop.eup %5556  ;;  %v11331_v39 = vunpack.c.l.bf16 %v11329_v37  ;;  %v11337_v48 = vunpack.c.l.bf16 %v11335_v19  ;;  %v11338_v49 = vld [vmem:[#allocation289_spill] sm:$0xff]  ;;  %v11365_v28 = vld [vmem:[#allocation300_spill] sm:$0xff] }
 0xa6d   : > { %5452 = vmatprep.mubr.msk.f32.mxu0 %vm2217_vm2, %v4285_v44  ;;  %4425 = vmatpush1.msra.mxu0 %v11280_v55  ;;  %v4288_v14 = vmul.f32 %v5557_v51, %v5541_v8  ;;  %v11306_v8 = vunpack.c.h.bf16 %v11305_v57  ;;  %v11334_v44 = vunpack.c.l.bf16 %v11332_v42  ;;  %v11339_v51 = vunpack.c.h.bf16 %v11338_v49  ;;  %v11389_v42 = vld [vmem:[#allocation310_spill] sm:$0xff] }
 0xa6e   : > { %v5559_v10 = vpop.eup %5558  ;;  %5453 = vmatmul.mubr.msk.f32.gmra.mxu0 %vm2217_vm2, %v4286_v45  ;;  %4426 = vmatprep.subr.mxu0 %v11282_v11  ;;  %v11336_v45 = vunpack.c.h.bf16 %v11335_v19  ;;  %v11340_v55 = vunpack.c.l.bf16 %v11338_v49 }
 0xa6f   : > { %v4287_v12 = vmul.f32 %v5559_v10, %v5543_v56  ;;  %4427 = vmatpush1.msra.mxu0 %v11283_v13  ;;  %v11308_v56 = vld [vmem:[#allocation279_spill] sm:$0xff]  ;;  %v11341_v10 = vld [vmem:[#allocation290_spill] sm:$0xff] }
 0xa70   : > { %4428 = vmatprep.subr.mxu0 %v11285_v47  ;;  %v11309_v18 = vunpack.c.h.bf16 %v11308_v56  ;;  %v11310_v16 = vunpack.c.l.bf16 %v11308_v56  ;;  %v11342_v60 = vunpack.c.h.bf16 %v11341_v10  ;;  %v11343_v11 = vunpack.c.l.bf16 %v11341_v10  ;;  %v11368_v56 = vld [vmem:[#allocation303_spill] sm:$0xff] }
 0xa71   : > { %5455 = vmatprep.mubr.msk.f32.mxu0 %vm2217_vm2, %v4287_v12  ;;  %4429 = vmatpush1.msra.mxu0 %v11286_v61  ;;  %v11344_v12 = vld [vmem:[#allocation291_spill] sm:$0xff]  ;;  %v11348_v47 = vunpack.c.h.bf16 %v11347_v53  ;;  %v11349_v61 = vunpack.c.l.bf16 %v11347_v53 }
 0xa72   : > { %5456 = vmatmul.mubr.msk.f32.gmra.mxu0 %vm2217_vm2, %v4288_v14  ;;  %4430 = vmatprep.subr.mxu0 %v11288_v59  ;;  %v11345_v13 = vunpack.c.h.bf16 %v11344_v12  ;;  %v11346_v14 = vunpack.c.l.bf16 %v11344_v12  ;;  %v11351_v59 = vunpack.c.h.bf16 %v11350_v17 }
 0xa73   : > { %4431 = vmatpush1.msra.mxu0 %v11289_v46  ;;  %v11352_v46 = vunpack.c.l.bf16 %v11350_v17 }
 0xa74   : > { %4432 = vmatprep.subr.mxu0 %v11291_v6  ;;  %v11354_v6 = vunpack.c.h.bf16 %v11353_v15 }
 0xa75   : > { %4433 = vmatpush1.msra.mxu0 %v11292_v40  ;;  %v11355_v40 = vunpack.c.l.bf16 %v11353_v15 }
 0xa76   : > { %4434 = vmatprep.subr.mxu0 %v11294_v52  ;;  %v11357_v52 = vunpack.c.h.bf16 %v11356_v4 }
 0xa77   : > { %4435 = vmatpush1.msra.mxu0 %v11295_v22  ;;  %v11358_v22 = vunpack.c.l.bf16 %v11356_v4 }
 0xa78   : > { %4436 = vmatprep.subr.mxu0 %v11297_v63  ;;  %v11360_v63 = vunpack.c.h.bf16 %v11359_v3 }
 0xa79   : > { %4437 = vmatpush1.msra.mxu0 %v11298_v1  ;;  %v11361_v1 = vunpack.c.l.bf16 %v11359_v3 }
 0xa7a   : > { %4438 = vmatprep.subr.mxu0 %v11300_v9  ;;  %v11363_v9 = vunpack.c.h.bf16 %v11362_v29 }
 0xa7b   : > { %4439 = vmatpush1.msra.mxu0 %v11301_v5  ;;  %v11364_v5 = vunpack.c.l.bf16 %v11362_v29 }
 0xa7c   : > { %4440 = vmatprep.subr.mxu0 %v11303_v7  ;;  %v11366_v7 = vunpack.c.h.bf16 %v11365_v28 }
 0xa7d   : > { %4441 = vmatpush1.msra.mxu0 %v11304_v0 }
 0xa7e   : > { %4442 = vmatprep.subr.mxu0 %v11306_v8  ;;  %v11367_v8 = vunpack.c.l.bf16 %v11365_v28 }
 0xa7f   : > { %4443 = vmatpush1.msra.mxu0 %v11307_v23 }
 0xa80   : > { %4444 = vmatprep.subr.mxu0 %v11309_v18  ;;  %v11369_v18 = vunpack.c.h.bf16 %v11368_v56 }
 0xa81   : > { %4445 = vmatpush1.msra.mxu0 %v11310_v16  ;;  %v11370_v16 = vunpack.c.l.bf16 %v11368_v56 }
 0xa82   : > { %4446 = vmatprep.subr.mxu0 %v11312_v41  ;;  %v11371_v41 = vld [vmem:[#allocation304_spill] sm:$0xff] }
 0xa83   : > { %4447 = vmatpush1.msra.mxu0 %v11313_v20  ;;  %v11372_v20 = vunpack.c.h.bf16 %v11371_v41  ;;  %v11373_v50 = vunpack.c.l.bf16 %v11371_v41  ;;  %v11429_v41 = vld [vmem:[#allocation323_spill] sm:$0xff] }
 0xa84   : > { %4448 = vmatprep.subr.mxu0 %v11315_v2  ;;  %v11374_v2 = vunpack.c.l.bf16 %v11269_v58  ;;  %v11381_v58 = vld [vmem:[#allocation307_spill] sm:$0xff] }
 0xa85   : > { %4449 = vmatpush1.msra.mxu0 %v11316_v35 }
 0xa86   : > { %4450 = vmatprep.subr.mxu0 %v11318_v24  ;;  %v11376_v24 = vunpack.c.h.bf16 %v11375_v21 }
 0xa87   : > { %4451 = vmatpush2.msra.mxu0 %v11319_v25  ;;  %v11377_v25 = vld [vmem:[#allocation306_spill] sm:$0xff] }
 0xa88   : > { %4452 = vmatprep.subr.mxu0 %v11321_v34  ;;  %v11378_v26 = vunpack.c.h.bf16 %v11377_v25  ;;  %v11379_v34 = vunpack.c.l.bf16 %v11375_v21  ;;  %v11380_v27 = vunpack.c.l.bf16 %v11377_v25  ;;  %v11433_v21 = vunpack.c.l.bf16 %v11429_v41  ;;  %v11435_v25 = vld [vmem:[#allocation325_spill] sm:$0xff] }
 0xa89   : > { %4453 = vmatpush2.msra.mxu0 %v11322_v54 }
 0xa8a   : > { %4454 = vmatprep.subr.mxu0 %v11324_v30  ;;  %v11382_v30 = vunpack.c.h.bf16 %v11381_v58 }
 0xa8b   : > { %4455 = vmatpush2.msra.mxu0 %v11325_v31  ;;  %v11383_v31 = vld [vmem:[#allocation308_spill] sm:$0xff] }
 0xa8c   : > { %4456 = vmatprep.subr.mxu0 %v11327_v33  ;;  %v11384_v32 = vunpack.c.h.bf16 %v11383_v31  ;;  %v11386_v37 = vunpack.c.l.bf16 %v11383_v31  ;;  %v11441_v31 = vld [vmem:[#allocation327_spill] sm:$0xff] }
 0xa8d   : > { %4457 = vmatpush2.msra.mxu0 %v11328_v36  ;;  %v11385_v36 = vunpack.c.l.bf16 %v11381_v58  ;;  %v11439_v58 = vunpack.c.l.bf16 %v11435_v25 }
 0xa8e   : > { %4458 = vmatprep.subr.mxu0 %v11330_v38  ;;  %v11387_v38 = vld [vmem:[#allocation309_spill] sm:$0xff] }
 0xa8f   : > { %4459 = vmatpush2.msra.mxu0 %v11331_v39  ;;  %v11388_v39 = vunpack.c.h.bf16 %v11387_v38  ;;  %v11391_v19 = vunpack.c.l.bf16 %v11387_v38  ;;  %v11445_v38 = vunpack.c.l.bf16 %v11441_v31 }
 0xa90   : > { %4460 = vmatprep.subr.mxu0 %v11333_v43  ;;  %v11390_v43 = vunpack.c.h.bf16 %v11389_v42 }
 0xa91   : > { %4461 = vmatpush2.msra.mxu0 %v11334_v44 }
 0xa92   : > { %4462 = vmatprep.subr.mxu0 %v11336_v45  ;;  %v11392_v45 = vunpack.c.l.bf16 %v11389_v42  ;;  %v11447_v42 = vld [vmem:[#allocation329_spill] sm:$0xff] }
 0xa93   : > { %4463 = vmatpush2.msra.mxu0 %v11337_v48  ;;  %v11393_v48 = vld [vmem:[#allocation311_spill] sm:$0xff] }
 0xa94   : > { %4464 = vmatprep.subr.mxu0 %v11339_v51  ;;  %v11394_v49 = vunpack.c.h.bf16 %v11393_v48  ;;  %v11395_v51 = vld [vmem:[#allocation312_spill] sm:$0xff]  ;;  %v11397_v10 = vunpack.c.l.bf16 %v11393_v48  ;;  %v11451_v48 = vunpack.c.l.bf16 %v11447_v42 }
 0xa95   : > { %4465 = vmatpush2.msra.mxu0 %v11340_v55  ;;  %v11396_v55 = vunpack.c.h.bf16 %v11395_v51 }
 0xa96   : > { %4466 = vmatprep.subr.mxu0 %v11342_v60  ;;  %v11398_v60 = vunpack.c.l.bf16 %v11395_v51  ;;  %v11453_v51 = vld [vmem:[#allocation331_spill] sm:$0xff] }
 0xa97   : > { %4467 = vmatpush2.msra.mxu0 %v11343_v11  ;;  %v11399_v11 = vld [vmem:[#allocation313_spill] sm:$0xff] }
 0xa98   : > { %4468 = vmatprep.subr.mxu0 %v11345_v13  ;;  %v11400_v12 = vunpack.c.h.bf16 %v11399_v11  ;;  %v11401_v13 = vld [vmem:[#allocation314_spill] sm:$0xff]  ;;  %v11403_v53 = vunpack.c.l.bf16 %v11399_v11  ;;  %v11457_v11 = vunpack.c.l.bf16 %v11453_v51 }
 0xa99   : > { %4469 = vmatpush2.msra.mxu0 %v11346_v14  ;;  %v11402_v14 = vunpack.c.h.bf16 %v11401_v13 }
 0xa9a   : > { %4470 = vmatprep.subr.mxu0 %v11348_v47  ;;  %v11404_v47 = vunpack.c.l.bf16 %v11401_v13  ;;  %v11459_v13 = vld [vmem:[#allocation333_spill] sm:$0xff] }
 0xa9b   : > { %4471 = vmatpush2.msra.mxu0 %v11349_v61  ;;  %v11405_v61 = vld [vmem:[#allocation315_spill] sm:$0xff] }
 0xa9c   : > { %4472 = vmatprep.subr.mxu0 %v11351_v59  ;;  %v11406_v17 = vunpack.c.h.bf16 %v11405_v61  ;;  %v11407_v59 = vld [vmem:[#allocation316_spill] sm:$0xff]  ;;  %v11409_v15 = vunpack.c.l.bf16 %v11405_v61  ;;  %v11463_v61 = vunpack.c.l.bf16 %v11459_v13 }
 0xa9d   : > { %4473 = vmatpush2.msra.mxu0 %v11352_v46  ;;  %v11408_v46 = vunpack.c.h.bf16 %v11407_v59 }
 0xa9e   : > { %4474 = vmatprep.subr.mxu0 %v11354_v6  ;;  %v11410_v6 = vunpack.c.l.bf16 %v11407_v59  ;;  %v11465_v59 = vld [vmem:[#allocation335_spill] sm:$0xff] }
 0xa9f   : > { %4475 = vmatpush2.msra.mxu0 %v11355_v40  ;;  %v11411_v40 = vld [vmem:[#allocation317_spill] sm:$0xff] }
 0xaa0   : > { %4476 = vmatprep.subr.mxu0 %v11357_v52  ;;  %v11412_v4 = vunpack.c.h.bf16 %v11411_v40  ;;  %v11413_v52 = vld [vmem:[#allocation318_spill] sm:$0xff]  ;;  %v11415_v3 = vunpack.c.l.bf16 %v11411_v40  ;;  %v11469_v40 = vunpack.c.l.bf16 %v11465_v59 }
 0xaa1   : > { %4477 = vmatpush2.msra.mxu0 %v11358_v22  ;;  %v11414_v22 = vunpack.c.h.bf16 %v11413_v52 }
 0xaa2   : > { %4478 = vmatprep.subr.mxu0 %v11360_v63  ;;  %v11416_v63 = vunpack.c.l.bf16 %v11413_v52  ;;  %v11471_v52 = vld [vmem:[#allocation337_spill] sm:$0xff] }
 0xaa3   : > { %4479 = vmatpush2.msra.mxu0 %v11361_v1  ;;  %v11417_v1 = vld [vmem:[#allocation319_spill] sm:$0xff] }
 0xaa4   : > { %4480 = vmatprep.subr.mxu0 %v11363_v9  ;;  %v11418_v29 = vunpack.c.h.bf16 %v11417_v1  ;;  %v11419_v9 = vld [vmem:[#allocation320_spill] sm:$0xff]  ;;  %v11421_v28 = vunpack.c.l.bf16 %v11417_v1  ;;  %v11475_v1 = vunpack.c.l.bf16 %v11471_v52 }
 0xaa5   : > { %4481 = vmatpush2.msra.mxu0 %v11364_v5  ;;  %v11420_v5 = vunpack.c.h.bf16 %v11419_v9 }
 0xaa6   : > { %4572 = vmatprep.subr.mxu0 %v11366_v7  ;;  %v11422_v7 = vunpack.c.l.bf16 %v11419_v9  ;;  %v11477_v9 = vld [vmem:[#allocation339_spill] sm:$0xff] }
 0xb26   : > { %v5448_v0 = vpop.f32.mrf.mxu0 }
 0xb27   : > { %4482 = vmatprep.mubr.f32.mxu0 %v5448_v0 }
 0xb28   : > { %v8907_v57 = vpop.f32.mrf.mxu0 }
 0xb29   : > { %4483 = vmatmul.mubr.f32.vlgmr.msra.gmra.mxu0 %v8907_v57 }
 0xb2a   : > { %4573 = vmatpush1.msra.mxu0 %v11367_v8  ;;  %v5451_v23 = vpop.f32.mrf.mxu0 }
 0xb2b   : > { %4574 = vmatprep.subr.mxu0 %v11369_v18  ;;  %4559 = vmatprep.mubr.f32.mxu1 %v5451_v23 }
 0xb2c   : > { %4575 = vmatpush1.msra.mxu0 %v11370_v16  ;;  %v8916_v62 = vpop.f32.mrf.mxu0 }
 0xb2d   : > { %4576 = vmatprep.subr.mxu0 %v11372_v20  ;;  %4560 = vmatmul.mubr.f32.vlgmr.msra.gmra.mxu1 %v8916_v62  ;;  %v11430_v20 = vunpack.c.h.bf16 %v11429_v41 }
 0xb2e   : > { %4577 = vmatpush1.msra.mxu0 %v11373_v50  ;;  %4650 = vmatpush1.msra.mxu1 %v11374_v2  ;;  %v8925_v35 = vpop.f32.mrf.mxu0  ;;  %v11431_v50 = vld [vmem:[#allocation324_spill] sm:$0xff] }
 0xb2f   : > { %4578 = vmatprep.subr.mxu0 %v11376_v24  ;;  %4651 = vmatprep.subr.mxu1 %v11378_v26  ;;  %v11432_v2 = vunpack.c.h.bf16 %v11431_v50  ;;  %v11434_v24 = vunpack.c.l.bf16 %v11431_v50  ;;  %v11436_v26 = vunpack.c.h.bf16 %v11435_v25  ;;  %v11489_v50 = vld [vmem:[#allocation343_spill] sm:$0xff] }
 0xb30   : > { %4488 = vmatprep.mubr.f32.mxu0 %v8925_v35  ;;  %4579 = vmatpush1.msra.mxu0 %v11379_v34  ;;  %v8934_v54 = vpop.f32.mrf.mxu0  ;;  %v11437_v34 = vld [vmem:[#allocation326_spill] sm:$0xff]  ;;  %v11493_v25 = vunpack.c.l.bf16 %v11489_v50 }
 0xb31   : > { %4652 = vmatpush1.msra.mxu1 %v11380_v27  ;;  %4580 = vmatprep.subr.mxu0 %v11382_v30  ;;  %v11438_v27 = vunpack.c.h.bf16 %v11437_v34  ;;  %v11440_v30 = vunpack.c.l.bf16 %v11437_v34  ;;  %v11495_v34 = vld [vmem:[#allocation345_spill] sm:$0xff] }
 0xb32   : > { %4653 = vmatprep.subr.mxu1 %v11384_v32  ;;  %4489 = vmatmul.mubr.f32.gmra.mxu0 %v8934_v54  ;;  %v8943_v33 = vpop.f32.mrf.mxu0  ;;  %v11442_v32 = vunpack.c.h.bf16 %v11441_v31  ;;  %v11499_v31 = vunpack.c.l.bf16 %v11495_v34 }
 0xb33   : > { %4581 = vmatpush1.msra.mxu0 %v11385_v36  ;;  %4654 = vmatpush1.msra.mxu1 %v11386_v37  ;;  %v11443_v36 = vld [vmem:[#allocation328_spill] sm:$0xff] }
 0xb34   : > { %4582 = vmatprep.subr.mxu0 %v11388_v39  ;;  %4636 = vmatprep.mubr.f32.mxu0 %v5448_v0  ;;  %v8954_v44 = vpop.f32.mrf.mxu0  ;;  %v11423_v0 = vld [vmem:[#allocation321_spill] sm:$0xff]  ;;  %v11444_v37 = vunpack.c.h.bf16 %v11443_v36  ;;  %v11446_v39 = vunpack.c.l.bf16 %v11443_v36  ;;  %v11501_v36 = vld [vmem:[#allocation347_spill] sm:$0xff] }
 0xb35   : > { %4655 = vmatprep.subr.mxu1 %v11390_v43  ;;  %4565 = vmatprep.mubr.f32.mxu1 %v8943_v33  ;;  %v11424_v8 = vunpack.c.h.bf16 %v11423_v0  ;;  %v11427_v18 = vunpack.c.l.bf16 %v11423_v0  ;;  %v11448_v43 = vunpack.c.h.bf16 %v11447_v42  ;;  %v11481_v0 = vunpack.c.l.bf16 %v11477_v9 }
 0xb36   : > { %4583 = vmatpush1.msra.mxu0 %v11391_v19  ;;  %4656 = vmatpush1.msra.mxu1 %v11392_v45  ;;  %v11449_v19 = vld [vmem:[#allocation330_spill] sm:$0xff]  ;;  %v11505_v42 = vunpack.c.l.bf16 %v11501_v36 }
 0xb37   : > { %4584 = vmatprep.subr.mxu0 %v11394_v49  ;;  %4657 = vmatprep.subr.mxu1 %v11396_v55  ;;  %v11450_v45 = vunpack.c.h.bf16 %v11449_v19  ;;  %v11452_v49 = vunpack.c.l.bf16 %v11449_v19  ;;  %v11454_v55 = vunpack.c.h.bf16 %v11453_v51  ;;  %v11507_v19 = vld [vmem:[#allocation349_spill] sm:$0xff] }
 0xb38   : > { %4566 = vmatmul.mubr.f32.gmra.mxu1 %v8954_v44  ;;  %4585 = vmatpush1.msra.mxu0 %v11397_v10  ;;  %v11455_v10 = vld [vmem:[#allocation332_spill] sm:$0xff]  ;;  %v11511_v51 = vunpack.c.l.bf16 %v11507_v19 }
 0xb39   : > { %4658 = vmatpush1.msra.mxu1 %v11398_v60  ;;  %4586 = vmatprep.subr.mxu0 %v11400_v12  ;;  %v11456_v60 = vunpack.c.h.bf16 %v11455_v10  ;;  %v11458_v12 = vunpack.c.l.bf16 %v11455_v10  ;;  %v11513_v10 = vld [vmem:[#allocation351_spill] sm:$0xff] }
 0xb3a   : > { %4659 = vmatprep.subr.mxu1 %v11402_v14  ;;  %4713 = vmatprep.mubr.f32.mxu1 %v5451_v23  ;;  %v11425_v23 = vld [vmem:[#allocation322_spill] sm:$0xff]  ;;  %v11460_v14 = vunpack.c.h.bf16 %v11459_v13  ;;  %v11517_v13 = vunpack.c.l.bf16 %v11513_v10 }
 0xb3b   : > { %4587 = vmatpush1.msra.mxu0 %v11403_v53  ;;  %4660 = vmatpush1.msra.mxu1 %v11404_v47  ;;  %v11426_v56 = vunpack.c.h.bf16 %v11425_v23  ;;  %v11428_v16 = vunpack.c.l.bf16 %v11425_v23  ;;  %v11461_v53 = vld [vmem:[#allocation334_spill] sm:$0xff]  ;;  %v11483_v23 = vld [vmem:[#allocation341_spill] sm:$0xff] }
 0xb3c   : > { %4588 = vmatprep.subr.mxu0 %v11406_v17  ;;  %4661 = vmatprep.subr.mxu1 %v11408_v46  ;;  %v11462_v47 = vunpack.c.h.bf16 %v11461_v53  ;;  %v11464_v17 = vunpack.c.l.bf16 %v11461_v53  ;;  %v11466_v46 = vunpack.c.h.bf16 %v11465_v59  ;;  %v11487_v41 = vunpack.c.l.bf16 %v11483_v23  ;;  %v11519_v53 = vld [vmem:[#allocation353_spill] sm:$0xff] }
 0xb3d   : > { %4589 = vmatpush1.msra.mxu0 %v11409_v15  ;;  %4662 = vmatpush1.msra.mxu1 %v11410_v6  ;;  %v11467_v15 = vld [vmem:[#allocation336_spill] sm:$0xff]  ;;  %v11523_v59 = vunpack.c.l.bf16 %v11519_v53 }
 0xb3e   : > { %4590 = vmatprep.subr.mxu0 %v11412_v4  ;;  %4663 = vmatprep.subr.mxu1 %v11414_v22  ;;  %v11468_v6 = vunpack.c.h.bf16 %v11467_v15  ;;  %v11470_v4 = vunpack.c.l.bf16 %v11467_v15  ;;  %v11472_v22 = vunpack.c.h.bf16 %v11471_v52  ;;  %v11525_v15 = vld [vmem:[#allocation355_spill] sm:$0xff] }
 0xb3f   : > { %4591 = vmatpush1.msra.mxu0 %v11415_v3  ;;  %4664 = vmatpush1.msra.mxu1 %v11416_v63  ;;  %v11473_v3 = vld [vmem:[#allocation338_spill] sm:$0xff]  ;;  %v11529_v52 = vunpack.c.l.bf16 %v11525_v15 }
 0xb40   : > { %4592 = vmatprep.subr.mxu0 %v11418_v29  ;;  %4665 = vmatprep.subr.mxu1 %v11420_v5  ;;  %v11474_v63 = vunpack.c.h.bf16 %v11473_v3  ;;  %v11476_v29 = vunpack.c.l.bf16 %v11473_v3  ;;  %v11478_v5 = vunpack.c.h.bf16 %v11477_v9  ;;  %v11531_v3 = vld [vmem:[#allocation357_spill] sm:$0xff] }
 0xb41   : > { %4593 = vmatpush1.msra.mxu0 %v11421_v28  ;;  %4666 = vmatpush1.msra.mxu1 %v11422_v7  ;;  %v11479_v28 = vld [vmem:[#allocation340_spill] sm:$0xff]  ;;  %v11535_v9 = vunpack.c.l.bf16 %v11531_v3 }
 0xb42   : > { %4594 = vmatprep.subr.mxu0 %v11424_v8  ;;  %4667 = vmatprep.subr.mxu1 %v11426_v56  ;;  %v11480_v7 = vunpack.c.h.bf16 %v11479_v28  ;;  %v11482_v8 = vunpack.c.l.bf16 %v11479_v28  ;;  %v11484_v56 = vunpack.c.h.bf16 %v11483_v23  ;;  %v11537_v28 = vld [vmem:[#allocation359_spill] sm:$0xff] }
 0xb43   : > { %4595 = vmatpush1.msra.mxu0 %v11427_v18  ;;  %4668 = vmatpush1.msra.mxu1 %v11428_v16  ;;  %v11485_v18 = vld [vmem:[#allocation342_spill] sm:$0xff]  ;;  %v11541_v23 = vunpack.c.l.bf16 %v11537_v28 }
 0xb44   : > { %4596 = vmatprep.subr.mxu0 %v11430_v20  ;;  %4669 = vmatprep.subr.mxu1 %v11432_v2  ;;  %v11486_v16 = vunpack.c.h.bf16 %v11485_v18  ;;  %v11488_v20 = vunpack.c.l.bf16 %v11485_v18  ;;  %v11490_v2 = vunpack.c.h.bf16 %v11489_v50  ;;  %v11543_v18 = vld [vmem:[#allocation361_spill] sm:$0xff] }
 0xb45   : > { %4597 = vmatpush1.msra.mxu0 %v11433_v21  ;;  %4670 = vmatpush1.msra.mxu1 %v11434_v24  ;;  %v11491_v21 = vld [vmem:[#allocation344_spill] sm:$0xff]  ;;  %v11547_v50 = vunpack.c.l.bf16 %v11543_v18 }
 0xb46   : > { %4598 = vmatprep.subr.mxu0 %v11436_v26  ;;  %4671 = vmatprep.subr.mxu1 %v11438_v27  ;;  %v11492_v24 = vunpack.c.h.bf16 %v11491_v21  ;;  %v11494_v26 = vunpack.c.l.bf16 %v11491_v21  ;;  %v11496_v27 = vunpack.c.h.bf16 %v11495_v34  ;;  %v11549_v21 = vld [vmem:[#allocation363_spill] sm:$0xff] }
 0xb47   : > { %4599 = vmatpush1.msra.mxu0 %v11439_v58  ;;  %4672 = vmatpush1.msra.mxu1 %v11440_v30  ;;  %v11497_v58 = vld [vmem:[#allocation346_spill] sm:$0xff] }
 0xb48   : > { %4600 = vmatprep.subr.mxu0 %v11442_v32  ;;  %4673 = vmatprep.subr.mxu1 %v11444_v37  ;;  %v11498_v30 = vunpack.c.h.bf16 %v11497_v58  ;;  %v11500_v32 = vunpack.c.l.bf16 %v11497_v58  ;;  %v11502_v37 = vunpack.c.h.bf16 %v11501_v36 }
 0xb49   : > { %4601 = vmatpush1.msra.mxu0 %v11445_v38  ;;  %4674 = vmatpush1.msra.mxu1 %v11446_v39  ;;  %v11503_v38 = vld [vmem:[#allocation348_spill] sm:$0xff] }
 0xb4a   : > { %4602 = vmatprep.subr.mxu0 %v11448_v43  ;;  %4675 = vmatprep.subr.mxu1 %v11450_v45  ;;  %v11504_v39 = vunpack.c.h.bf16 %v11503_v38  ;;  %v11506_v43 = vunpack.c.l.bf16 %v11503_v38  ;;  %v11508_v45 = vunpack.c.h.bf16 %v11507_v19 }
 0xb4b   : > { %4603 = vmatpush1.msra.mxu0 %v11451_v48  ;;  %4676 = vmatpush1.msra.mxu1 %v11452_v49  ;;  %v11509_v48 = vld [vmem:[#allocation350_spill] sm:$0xff] }
 0xb4c   : > { %4604 = vmatprep.subr.mxu0 %v11454_v55  ;;  %4677 = vmatprep.subr.mxu1 %v11456_v60  ;;  %v11510_v49 = vunpack.c.h.bf16 %v11509_v48  ;;  %v11512_v55 = vunpack.c.l.bf16 %v11509_v48  ;;  %v11514_v60 = vunpack.c.h.bf16 %v11513_v10 }
 0xb4d   : > { %4605 = vmatpush2.msra.mxu0 %v11457_v11  ;;  %4678 = vmatpush1.msra.mxu1 %v11458_v12  ;;  %v11515_v11 = vld [vmem:[#allocation352_spill] sm:$0xff] }
 0xb4e   : > { %4606 = vmatprep.subr.mxu0 %v11460_v14  ;;  %4679 = vmatprep.subr.mxu1 %v11462_v47  ;;  %v11516_v12 = vunpack.c.h.bf16 %v11515_v11  ;;  %v11518_v14 = vunpack.c.l.bf16 %v11515_v11  ;;  %v11520_v47 = vunpack.c.h.bf16 %v11519_v53 }
 0xb4f   : > { %4607 = vmatpush2.msra.mxu0 %v11463_v61  ;;  %4680 = vmatpush1.msra.mxu1 %v11464_v17  ;;  %v11521_v61 = vld [vmem:[#allocation354_spill] sm:$0xff] }
 0xb50   : > { %4608 = vmatprep.subr.mxu0 %v11466_v46  ;;  %4681 = vmatprep.subr.mxu1 %v11468_v6  ;;  %v11522_v17 = vunpack.c.h.bf16 %v11521_v61  ;;  %v11524_v46 = vunpack.c.l.bf16 %v11521_v61  ;;  %v11526_v6 = vunpack.c.h.bf16 %v11525_v15 }
 0xb51   : > { %4609 = vmatpush2.msra.mxu0 %v11469_v40  ;;  %4682 = vmatpush2.msra.mxu1 %v11470_v4  ;;  %v11527_v40 = vld [vmem:[#allocation356_spill] sm:$0xff] }
 0xb52   : > { %4610 = vmatprep.subr.mxu0 %v11472_v22  ;;  %4683 = vmatprep.subr.mxu1 %v11474_v63  ;;  %v11528_v4 = vunpack.c.h.bf16 %v11527_v40  ;;  %v11530_v22 = vunpack.c.l.bf16 %v11527_v40  ;;  %v11532_v63 = vunpack.c.h.bf16 %v11531_v3 }
 0xb53   : > { %4611 = vmatpush2.msra.mxu0 %v11475_v1  ;;  %4684 = vmatpush2.msra.mxu1 %v11476_v29  ;;  %v11533_v1 = vld [vmem:[#allocation358_spill] sm:$0xff] }
 0xb54   : > { %4612 = vmatprep.subr.mxu0 %v11478_v5  ;;  %4685 = vmatprep.subr.mxu1 %v11480_v7  ;;  %v11534_v29 = vunpack.c.h.bf16 %v11533_v1  ;;  %v11536_v5 = vunpack.c.l.bf16 %v11533_v1  ;;  %v11538_v7 = vunpack.c.h.bf16 %v11537_v28 }
 0xb55   : > { %4613 = vmatpush2.msra.mxu0 %v11481_v0  ;;  %4686 = vmatpush2.msra.mxu1 %v11482_v8  ;;  %v11539_v0 = vld [vmem:[#allocation360_spill] sm:$0xff] }
 0xb56   : > { %4614 = vmatprep.subr.mxu0 %v11484_v56  ;;  %4687 = vmatprep.subr.mxu1 %v11486_v16  ;;  %v11540_v8 = vunpack.c.h.bf16 %v11539_v0  ;;  %v11542_v56 = vunpack.c.l.bf16 %v11539_v0  ;;  %v11544_v16 = vunpack.c.h.bf16 %v11543_v18 }
 0xb57   : > { %4615 = vmatpush2.msra.mxu0 %v11487_v41  ;;  %4688 = vmatpush2.msra.mxu1 %v11488_v20  ;;  %v11545_v41 = vld [vmem:[#allocation362_spill] sm:$0xff] }
 0xb58   : > { %4616 = vmatprep.subr.mxu0 %v11490_v2  ;;  %4689 = vmatprep.subr.mxu1 %v11492_v24  ;;  %v11546_v20 = vunpack.c.h.bf16 %v11545_v41  ;;  %v11548_v2 = vunpack.c.l.bf16 %v11545_v41  ;;  %v11550_v24 = vunpack.c.h.bf16 %v11549_v21 }
 0xb59   : > { %4617 = vmatpush2.msra.mxu0 %v11493_v25  ;;  %4690 = vmatpush2.msra.mxu1 %v11494_v26  ;;  %v11551_v25 = vunpack.c.l.bf16 %v11549_v21  ;;  %v11552_v26 = vld [vmem:[#allocation364_spill] sm:$0xff] }
 0xb5a   : > { %4618 = vmatprep.subr.mxu0 %v11496_v27  ;;  %4691 = vmatprep.subr.mxu1 %v11498_v30  ;;  %v11553_v34 = vunpack.c.h.bf16 %v11552_v26  ;;  %v11554_v27 = vunpack.c.l.bf16 %v11552_v26 }
 0xb5b   : > { %4619 = vmatpush2.msra.mxu0 %v11499_v31  ;;  %4692 = vmatpush2.msra.mxu1 %v11500_v32 }
 0xb5c   : > { %4620 = vmatprep.subr.mxu0 %v11502_v37  ;;  %4693 = vmatprep.subr.mxu1 %v11504_v39 }
 0xb5d   : > { %4621 = vmatpush2.msra.mxu0 %v11505_v42  ;;  %4694 = vmatpush2.msra.mxu1 %v11506_v43 }
 0xb5e   : > { %4622 = vmatprep.subr.mxu0 %v11508_v45  ;;  %4695 = vmatprep.subr.mxu1 %v11510_v49 }
 0xb5f   : > { %4623 = vmatpush2.msra.mxu0 %v11511_v51  ;;  %4696 = vmatpush2.msra.mxu1 %v11512_v55 }
 0xb60   : > { %4624 = vmatprep.subr.mxu0 %v11514_v60  ;;  %4697 = vmatprep.subr.mxu1 %v11516_v12 }
 0xb61   : > { %4625 = vmatpush2.msra.mxu0 %v11517_v13  ;;  %4698 = vmatpush2.msra.mxu1 %v11518_v14 }
 0xb62   : > { %4626 = vmatprep.subr.mxu0 %v11520_v47  ;;  %4699 = vmatprep.subr.mxu1 %v11522_v17 }
 0xb63   : > { %4627 = vmatpush2.msra.mxu0 %v11523_v59  ;;  %4700 = vmatpush2.msra.mxu1 %v11524_v46 }
 0xb64   : > { %4628 = vmatprep.subr.mxu0 %v11526_v6  ;;  %4701 = vmatprep.subr.mxu1 %v11528_v4 }
 0xb65   : > { %4629 = vmatpush2.msra.mxu0 %v11529_v52  ;;  %4702 = vmatpush2.msra.mxu1 %v11530_v22 }
 0xb66   : > { %4630 = vmatprep.subr.mxu0 %v11532_v63  ;;  %4703 = vmatprep.subr.mxu1 %v11534_v29 }
 0xb67   : > { %4631 = vmatpush2.msra.mxu0 %v11535_v9  ;;  %4704 = vmatpush2.msra.mxu1 %v11536_v5 }
 0xb68   : > { %4632 = vmatprep.subr.mxu0 %v11538_v7  ;;  %4705 = vmatprep.subr.mxu1 %v11540_v8 }
 0xb69   : > { %4633 = vmatpush2.msra.mxu0 %v11541_v23  ;;  %4706 = vmatpush2.msra.mxu1 %v11542_v56 }
 0xb6a   : > { %4634 = vmatprep.subr.mxu0 %v11544_v16  ;;  %4707 = vmatprep.subr.mxu1 %v11546_v20 }
 0xb6b   : > { %4635 = vmatpush2.msra.mxu0 %v11547_v50  ;;  %4708 = vmatpush2.msra.mxu1 %v11548_v2 }
 0xb6c   : > { %4637 = vmatmul.mubr.f32.vlgmr.msra.gmra.mxu0 %v8907_v57  ;;  %4709 = vmatprep.subr.mxu1 %v11550_v24 }
 0xb6d   : > { %4642 = vmatprep.mubr.f32.mxu0 %v8925_v35  ;;  %4710 = vmatpush2.msra.mxu1 %v11551_v25 }
 0xb6e   : > { %4711 = vmatprep.subr.mxu1 %v11553_v34 }
 0xb6f   : > { %4712 = vmatpush2.msra.mxu1 %v11554_v27 }
 0xb70   : > { %4643 = vmatmul.mubr.f32.gmra.mxu0 %v8934_v54  ;;  %4714 = vmatmul.mubr.f32.vlgmr.msra.gmra.mxu1 %v8916_v62 }
 0xb71   : > { %4719 = vmatprep.mubr.f32.mxu1 %v8943_v33 }
 0xb74   : > { %4720 = vmatmul.mubr.f32.gmra.mxu1 %v8954_v44 }
 0xbe9   : > { %v4484_v57 = vpop.f32.mrf.mxu0 }
 0xbeb   : > { %v4486_v30 = vpop.f32.mrf.mxu0 }
 0xbed   : > { %v4561_v58 = vpop.f32.mrf.mxu1 }
 0xbee   : > { %v9183_v35 = vadd.f32 %v4561_v58, %v4484_v57 }
 0xbef   : > { %v4563_v31 = vpop.f32.mrf.mxu1 }
 0xbf0   : > { %4726 = vst [vmem:[#allocation2 + $0x30] sm:$0xff] %v9183_v35  ;;  %v4564_v32 = vadd.f32 %v4563_v31, %v4486_v30 }
 0xbf2   : > { %4727 = vst [vmem:[#allocation2] sm:$0xff] %v4564_v32  ;;  %v4490_v36 = vpop.f32.mrf.mxu0 }
 0xbf4   : > { %v4492_v54 = vpop.f32.mrf.mxu0 }
 0xbf8   : > { %v4567_v37 = vpop.f32.mrf.mxu1 }
 0xbf9   : > { %v9186_v38 = vadd.f32 %v4567_v37, %v4490_v36 }
 0xbfa   : > { %v4569_v62 = vpop.f32.mrf.mxu1 }
 0xbfb   : > { %4730 = vst [vmem:[#allocation2 + $0x8] sm:$0xff] %v9186_v38  ;;  %v9189_v33 = vadd.f32 %v4569_v62, %v4492_v54 }
 0xbfd   : > { %4731 = vst [vmem:[#allocation2 + $0x20] sm:$0xff] %v9189_v33 }
 0xc2c   : > { %v4638_v44 = vpop.f32.mrf.mxu0 }
 0xc2e   : > { %v4640_v39 = vpop.f32.mrf.mxu0 }
 0xc30   : > { %v4715_v42 = vpop.f32.mrf.mxu1  ;;  %v4644_v19 = vpop.f32.mrf.mxu0 }
 0xc31   : > { %v9192_v43 = vadd.f32 %v4715_v42, %v4638_v44 }
 0xc32   : > { %v4717_v45 = vpop.f32.mrf.mxu1  ;;  %v4646_v55 = vpop.f32.mrf.mxu0 }
 0xc33   : > { %4728 = vst [vmem:[#allocation2 + $0x18] sm:$0xff] %v9192_v43  ;;  %v4718_v48 = vadd.f32 %v4717_v45, %v4640_v39 }
 0xc34   : > { %v4721_v49 = vpop.f32.mrf.mxu1 }
 0xc35   : > { %4729 = vst [vmem:[#allocation2 + $0x10] sm:$0xff] %v4718_v48  ;;  %v9195_v51 = vadd.f32 %v4721_v49, %v4644_v19  ;;  %4737 = sbr.rel (%p5275_p5) target bundleno = 3401 (0xd49), region = 68 }
 0xc36   : > { %v4723_v10 = vpop.f32.mrf.mxu1 }
 0xc37   : > { %4732 = vst [vmem:[#allocation2 + $0x28] sm:$0xff] %v9195_v51  ;;  %v9198_v60 = vadd.f32 %v4723_v10, %v4646_v55 }
 0xc39   : > { %4733 = vst [vmem:[#allocation2 + $0x38] sm:$0xff] %v9198_v60 }
 0xc3a   : > { %v4753_v11 = vld [vmem:[%s9428_s8 + $0x78] sm:$0xff]  ;;  %v4752_v13 = vld [vmem:[%s9428_s8 + $0x70] sm:$0xff]  ;;  %5006 = vmatprep.mubr.f32.mxu0 %v4564_v32  ;;  %5083 = vmatprep.mubr.f32.mxu1 %v4718_v48  ;;  %v4751_v59 = vld [vmem:[%s9428_s8 + $0x68] sm:$0xff] }
 0xc3b   : > { %v4785_v12 = vld [vmem:[%s9428_s8 + $0x178] sm:$0xff]  ;;  %v4833_v14 = vunpack.c.h.bf16 %v4753_v11  ;;  %v4832_v47 = vunpack.c.l.bf16 %v4753_v11  ;;  %v4784_v17 = vld [vmem:[%s9428_s8 + $0x170] sm:$0xff]  ;;  %v4783_v46 = vld [vmem:[%s9428_s8 + $0x168] sm:$0xff]  ;;  %v4831_v15 = vunpack.c.h.bf16 %v4752_v13  ;;  %v4830_v40 = vunpack.c.l.bf16 %v4752_v13 }
 0xc3c   : > { %v4897_v53 = vunpack.c.h.bf16 %v4785_v12  ;;  %v4896_v61 = vunpack.c.l.bf16 %v4785_v12  ;;  %v4895_v6 = vunpack.c.h.bf16 %v4784_v17  ;;  %v4894_v4 = vunpack.c.l.bf16 %v4784_v17  ;;  %v4750_v52 = vld [vmem:[%s9428_s8 + $0x60] sm:$0xff]  ;;  %v4749_v9 = vld [vmem:[%s9428_s8 + $0x58] sm:$0xff]  ;;  %v4748_v23 = vld [vmem:[%s9428_s8 + $0x50] sm:$0xff] }
 0xc3d   : > { %v4782_v22 = vld [vmem:[%s9428_s8 + $0x160] sm:$0xff]  ;;  %4942 = vmatprep.subr.mxu0 %v4833_v14  ;;  %v4829_v3 = vunpack.c.h.bf16 %v4751_v59  ;;  %v4893_v63 = vunpack.c.h.bf16 %v4783_v46  ;;  %v4828_v1 = vunpack.c.l.bf16 %v4751_v59  ;;  %v4892_v29 = vunpack.c.l.bf16 %v4783_v46  ;;  %v4781_v5 = vld [vmem:[%s9428_s8 + $0x158] sm:$0xff]  ;;  %v4780_v56 = vld [vmem:[%s9428_s8 + $0x150] sm:$0xff] }
 0xc3e   : > { %5019 = vmatprep.subr.mxu1 %v4897_v53  ;;  %4943 = vmatpush1.msra.mxu0 %v4832_v47  ;;  %v4827_v28 = vunpack.c.h.bf16 %v4750_v52  ;;  %v4891_v7 = vunpack.c.h.bf16 %v4782_v22  ;;  %v4826_v0 = vunpack.c.l.bf16 %v4750_v52  ;;  %v4890_v8 = vunpack.c.l.bf16 %v4782_v22  ;;  %v4747_v50 = vld [vmem:[%s9428_s8 + $0x48] sm:$0xff]  ;;  %v4746_v34 = vld [vmem:[%s9428_s8 + $0x40] sm:$0xff]  ;;  %v4745_v32 = vld [vmem:[%s9428_s8 + $0x38] sm:$0xff] }
 0xc3f   : > { %5020 = vmatpush1.msra.mxu1 %v4896_v61  ;;  %4944 = vmatprep.subr.mxu0 %v4831_v15  ;;  %v4825_v18 = vunpack.c.h.bf16 %v4749_v9  ;;  %v4889_v16 = vunpack.c.h.bf16 %v4781_v5  ;;  %v4824_v41 = vunpack.c.l.bf16 %v4749_v9  ;;  %v4888_v20 = vunpack.c.l.bf16 %v4781_v5  ;;  %v4779_v2 = vld [vmem:[%s9428_s8 + $0x148] sm:$0xff]  ;;  %v4778_v27 = vld [vmem:[%s9428_s8 + $0x140] sm:$0xff]  ;;  %v4777_v36 = vld [vmem:[%s9428_s8 + $0x138] sm:$0xff] }
 0xc40   : > { %5021 = vmatprep.subr.mxu1 %v4895_v6  ;;  %4945 = vmatpush1.msra.mxu0 %v4830_v40  ;;  %v4823_v21 = vunpack.c.h.bf16 %v4748_v23  ;;  %v4887_v24 = vunpack.c.h.bf16 %v4780_v56  ;;  %v4822_v25 = vunpack.c.l.bf16 %v4748_v23  ;;  %v4886_v26 = vunpack.c.l.bf16 %v4780_v56  ;;  %v4744_v39 = vld [vmem:[%s9428_s8 + $0x30] sm:$0xff]  ;;  %v4743_v55 = vld [vmem:[%s9428_s8 + $0x28] sm:$0xff]  ;;  %v4742_v53 = vld [vmem:[%s9428_s8 + $0x20] sm:$0xff] }
 0xc41   : > { %5022 = vmatpush1.msra.mxu1 %v4894_v4  ;;  %4946 = vmatprep.subr.mxu0 %v4829_v3  ;;  %v4821_v57 = vunpack.c.h.bf16 %v4747_v50  ;;  %v4885_v58 = vunpack.c.h.bf16 %v4779_v2  ;;  %v4820_v30 = vunpack.c.l.bf16 %v4747_v50  ;;  %v4884_v31 = vunpack.c.l.bf16 %v4779_v2  ;;  %v4776_v42 = vld [vmem:[%s9428_s8 + $0x130] sm:$0xff]  ;;  %v4775_v10 = vld [vmem:[%s9428_s8 + $0x128] sm:$0xff]  ;;  %v4774_v47 = vld [vmem:[%s9428_s8 + $0x120] sm:$0xff] }
 0xc42   : > { %5023 = vmatprep.subr.mxu1 %v4893_v63  ;;  %4947 = vmatpush1.msra.mxu0 %v4828_v1  ;;  %v4819_v37 = vunpack.c.h.bf16 %v4746_v34  ;;  %v4883_v54 = vunpack.c.h.bf16 %v4778_v27  ;;  %v4818_v62 = vunpack.c.l.bf16 %v4746_v34  ;;  %v4882_v44 = vunpack.c.l.bf16 %v4778_v27  ;;  %v4741_v15 = vld [vmem:[%s9428_s8 + $0x18] sm:$0xff]  ;;  %v4740_v3 = vld [vmem:[%s9428_s8 + $0x10] sm:$0xff] }
 0xc43   : > { %5024 = vmatpush1.msra.mxu1 %v4892_v29  ;;  %4948 = vmatprep.subr.mxu0 %v4827_v28  ;;  %v4817_v19 = vunpack.c.h.bf16 %v4745_v32  ;;  %v4881_v45 = vunpack.c.h.bf16 %v4777_v36  ;;  %v4816_v48 = vunpack.c.l.bf16 %v4745_v32  ;;  %v4880_v49 = vunpack.c.l.bf16 %v4777_v36  ;;  %v4773_v6 = vld [vmem:[%s9428_s8 + $0x118] sm:$0xff]  ;;  %v4772_v63 = vld [vmem:[%s9428_s8 + $0x110] sm:$0xff]  ;;  %v4739_v28 = vld [vmem:[%s9428_s8 + $0x8] sm:$0xff] }
 0xc44   : > { %5025 = vmatprep.subr.mxu1 %v4891_v7  ;;  %4949 = vmatpush1.msra.mxu0 %v4826_v0  ;;  %v4815_v11 = vunpack.c.h.bf16 %v4744_v39  ;;  %v4879_v12 = vunpack.c.h.bf16 %v4776_v42  ;;  %v4814_v13 = vunpack.c.l.bf16 %v4744_v39  ;;  %v4878_v14 = vunpack.c.l.bf16 %v4776_v42  ;;  %v4771_v7 = vld [vmem:[%s9428_s8 + $0x108] sm:$0xff] }
 0xc45   : > { %5026 = vmatpush1.msra.mxu1 %v4890_v8  ;;  %4950 = vmatprep.subr.mxu0 %v4825_v18  ;;  %v4813_v61 = vunpack.c.h.bf16 %v4743_v55  ;;  %v4877_v17 = vunpack.c.h.bf16 %v4775_v10  ;;  %v4812_v59 = vunpack.c.l.bf16 %v4743_v55  ;;  %v4876_v46 = vunpack.c.l.bf16 %v4775_v10  ;;  %v4738_v18 = vld [vmem:[%s9428_s8] sm:$0xff] }
 0xc46   : > { %5027 = vmatprep.subr.mxu1 %v4889_v16  ;;  %4951 = vmatpush1.msra.mxu0 %v4824_v41  ;;  %v4811_v40 = vunpack.c.h.bf16 %v4742_v53  ;;  %v4875_v4 = vunpack.c.h.bf16 %v4774_v47  ;;  %v4810_v52 = vunpack.c.l.bf16 %v4742_v53  ;;  %v4874_v22 = vunpack.c.l.bf16 %v4774_v47  ;;  %v4770_v16 = vld [vmem:[%s9428_s8 + $0x100] sm:$0xff] }
 0xc47   : > { %5028 = vmatpush1.msra.mxu1 %v4888_v20  ;;  %4952 = vmatprep.subr.mxu0 %v4823_v21  ;;  %v4809_v1 = vunpack.c.h.bf16 %v4741_v15  ;;  %v4873_v29 = vunpack.c.h.bf16 %v4773_v6  ;;  %v4808_v9 = vunpack.c.l.bf16 %v4741_v15  ;;  %v4872_v5 = vunpack.c.l.bf16 %v4773_v6  ;;  %v4769_v21 = vld [vmem:[%s9428_s8 + $0xf8] sm:$0xff] }
 0xc48   : > { %5029 = vmatprep.subr.mxu1 %v4887_v24  ;;  %4953 = vmatpush1.msra.mxu0 %v4822_v25  ;;  %v4807_v0 = vunpack.c.h.bf16 %v4740_v3  ;;  %v4871_v8 = vunpack.c.h.bf16 %v4772_v63  ;;  %v4806_v23 = vunpack.c.l.bf16 %v4740_v3  ;;  %v4870_v56 = vunpack.c.l.bf16 %v4772_v63  ;;  %v4801_v24 = vld [vmem:[%s9428_s8 + $0x1f8] sm:$0xff] }
 0xc49   : > { %5030 = vmatpush1.msra.mxu1 %v4886_v26  ;;  %4954 = vmatprep.subr.mxu0 %v4821_v57  ;;  %v4805_v41 = vunpack.c.h.bf16 %v4739_v28  ;;  %v4869_v20 = vunpack.c.h.bf16 %v4771_v7  ;;  %v4804_v50 = vunpack.c.l.bf16 %v4739_v28  ;;  %v4868_v2 = vunpack.c.l.bf16 %v4771_v7  ;;  %v4768_v57 = vld [vmem:[%s9428_s8 + $0xf0] sm:$0xff] }
 0xc4a   : > { %5031 = vmatprep.subr.mxu1 %v4885_v58  ;;  %4955 = vmatpush1.msra.mxu0 %v4820_v30  ;;  %v4803_v25 = vunpack.c.h.bf16 %v4738_v18  ;;  %v4867_v26 = vunpack.c.h.bf16 %v4770_v16  ;;  %v4802_v34 = vunpack.c.l.bf16 %v4738_v18  ;;  %v4866_v27 = vunpack.c.l.bf16 %v4770_v16  ;;  %v4800_v58 = vld [vmem:[%s9428_s8 + $0x1f0] sm:$0xff] }
 0xc4b   : > { %5032 = vmatpush1.msra.mxu1 %v4884_v31  ;;  %4956 = vmatprep.subr.mxu0 %v4819_v37  ;;  %v4865_v30 = vunpack.c.h.bf16 %v4769_v21  ;;  %v4929_v31 = vunpack.c.h.bf16 %v4801_v24  ;;  %v4864_v32 = vunpack.c.l.bf16 %v4769_v21  ;;  %v4928_v36 = vunpack.c.l.bf16 %v4801_v24  ;;  %v4767_v37 = vld [vmem:[%s9428_s8 + $0xe8] sm:$0xff] }
 0xc4c   : > { %5033 = vmatprep.subr.mxu1 %v4883_v54  ;;  %4957 = vmatpush1.msra.mxu0 %v4818_v62  ;;  %v4799_v54 = vld [vmem:[%s9428_s8 + $0x1e8] sm:$0xff]  ;;  %v4863_v62 = vunpack.c.h.bf16 %v4768_v57  ;;  %v4862_v39 = vunpack.c.l.bf16 %v4768_v57  ;;  %v4926_v42 = vunpack.c.l.bf16 %v4800_v58  ;;  %v4860_v55 = vunpack.c.l.bf16 %v4767_v37 }
 0xc4d   : > { %5034 = vmatpush1.msra.mxu1 %v4882_v44  ;;  %4958 = vmatprep.subr.mxu0 %v4817_v19  ;;  %v4927_v44 = vunpack.c.h.bf16 %v4800_v58  ;;  %v4766_v19 = vld [vmem:[%s9428_s8 + $0xe0] sm:$0xff]  ;;  %v4924_v10 = vunpack.c.l.bf16 %v4799_v54 }
 0xc4e   : > { %5035 = vmatprep.subr.mxu1 %v4881_v45  ;;  %4959 = vmatpush1.msra.mxu0 %v4816_v48  ;;  %v4798_v45 = vld [vmem:[%s9428_s8 + $0x1e0] sm:$0xff]  ;;  %v4861_v48 = vunpack.c.h.bf16 %v4767_v37  ;;  %v4858_v53 = vunpack.c.l.bf16 %v4766_v19 }
 0xc4f   : > { %5036 = vmatpush1.msra.mxu1 %v4880_v49  ;;  %4960 = vmatprep.subr.mxu0 %v4815_v11  ;;  %v4925_v49 = vunpack.c.h.bf16 %v4799_v54  ;;  %v4765_v11 = vld [vmem:[%s9428_s8 + $0xd8] sm:$0xff]  ;;  %v4922_v47 = vunpack.c.l.bf16 %v4798_v45 }
 0xc50   : > { %5037 = vmatprep.subr.mxu1 %v4879_v12  ;;  %4961 = vmatpush1.msra.mxu0 %v4814_v13  ;;  %v4797_v12 = vld [vmem:[%s9428_s8 + $0x1d8] sm:$0xff]  ;;  %v4859_v13 = vunpack.c.h.bf16 %v4766_v19  ;;  %v4856_v15 = vunpack.c.l.bf16 %v4765_v11 }
 0xc51   : > { %5038 = vmatpush1.msra.mxu1 %v4878_v14  ;;  %4962 = vmatprep.subr.mxu0 %v4813_v61  ;;  %v4923_v14 = vunpack.c.h.bf16 %v4798_v45  ;;  %v4764_v61 = vld [vmem:[%s9428_s8 + $0xd0] sm:$0xff]  ;;  %v4920_v6 = vunpack.c.l.bf16 %v4797_v12 }
 0xc52   : > { %5039 = vmatprep.subr.mxu1 %v4877_v17  ;;  %4963 = vmatpush1.msra.mxu0 %v4812_v59  ;;  %v4796_v17 = vld [vmem:[%s9428_s8 + $0x1d0] sm:$0xff]  ;;  %v4857_v59 = vunpack.c.h.bf16 %v4765_v11  ;;  %v4854_v3 = vunpack.c.l.bf16 %v4764_v61 }
 0xc53   : > { %5040 = vmatpush1.msra.mxu1 %v4876_v46  ;;  %4964 = vmatprep.subr.mxu0 %v4811_v40  ;;  %v4921_v46 = vunpack.c.h.bf16 %v4797_v12  ;;  %v4763_v40 = vld [vmem:[%s9428_s8 + $0xc8] sm:$0xff]  ;;  %v4918_v63 = vunpack.c.l.bf16 %v4796_v17 }
 0xc54   : > { %5041 = vmatprep.subr.mxu1 %v4875_v4  ;;  %4965 = vmatpush1.msra.mxu0 %v4810_v52  ;;  %v4795_v4 = vld [vmem:[%s9428_s8 + $0x1c8] sm:$0xff]  ;;  %v4855_v52 = vunpack.c.h.bf16 %v4764_v61  ;;  %v4852_v28 = vunpack.c.l.bf16 %v4763_v40 }
 0xc55   : > { %5042 = vmatpush1.msra.mxu1 %v4874_v22  ;;  %4966 = vmatprep.subr.mxu0 %v4809_v1  ;;  %v4919_v22 = vunpack.c.h.bf16 %v4796_v17  ;;  %v4762_v1 = vld [vmem:[%s9428_s8 + $0xc0] sm:$0xff]  ;;  %v4916_v7 = vunpack.c.l.bf16 %v4795_v4 }
 0xc56   : > { %5043 = vmatprep.subr.mxu1 %v4873_v29  ;;  %4967 = vmatpush1.msra.mxu0 %v4808_v9  ;;  %v4794_v29 = vld [vmem:[%s9428_s8 + $0x1c0] sm:$0xff]  ;;  %v4853_v9 = vunpack.c.h.bf16 %v4763_v40  ;;  %v4850_v18 = vunpack.c.l.bf16 %v4762_v1 }
 0xc57   : > { %5044 = vmatpush1.msra.mxu1 %v4872_v5  ;;  %4968 = vmatprep.subr.mxu0 %v4807_v0  ;;  %v4917_v5 = vunpack.c.h.bf16 %v4795_v4  ;;  %v4761_v0 = vld [vmem:[%s9428_s8 + $0xb8] sm:$0xff]  ;;  %v4914_v16 = vunpack.c.l.bf16 %v4794_v29 }
 0xc58   : > { %5045 = vmatprep.subr.mxu1 %v4871_v8  ;;  %4969 = vmatpush1.msra.mxu0 %v4806_v23  ;;  %v4793_v8 = vld [vmem:[%s9428_s8 + $0x1b8] sm:$0xff]  ;;  %v4851_v23 = vunpack.c.h.bf16 %v4762_v1  ;;  %v4848_v21 = vunpack.c.l.bf16 %v4761_v0  ;;  %v4930_v1 = vld [vmem:[%s9429_s9] sm:$0x3] }
 0xc59   : > { %5046 = vmatpush1.msra.mxu1 %v4870_v56  ;;  %4970 = vmatprep.subr.mxu0 %v4805_v41  ;;  %v4915_v56 = vunpack.c.h.bf16 %v4794_v29  ;;  %v4760_v41 = vld [vmem:[%s9428_s8 + $0xb0] sm:$0xff]  ;;  %v4912_v24 = vunpack.c.l.bf16 %v4793_v8 }
 0xc5a   : > { %5047 = vmatprep.subr.mxu1 %v4869_v20  ;;  %4971 = vmatpush1.msra.mxu0 %v4804_v50  ;;  %v4792_v20 = vld [vmem:[%s9428_s8 + $0x1b0] sm:$0xff]  ;;  %v4849_v50 = vunpack.c.h.bf16 %v4761_v0  ;;  %v4846_v57 = vunpack.c.l.bf16 %v4760_v41 }
 0xc5b   : > { %5048 = vmatpush1.msra.mxu1 %v4868_v2  ;;  %4972 = vmatprep.subr.mxu0 %v4803_v25  ;;  %v4913_v2 = vunpack.c.h.bf16 %v4793_v8  ;;  %v4759_v25 = vld [vmem:[%s9428_s8 + $0xa8] sm:$0xff]  ;;  %v4910_v58 = vunpack.c.l.bf16 %v4792_v20  ;;  %v11555_v29 = vld [vmem:[#allocation365_spill] sm:$0xff] }
 0xc5c   : > { %5049 = vmatprep.subr.mxu1 %v4867_v26  ;;  %4973 = vmatpush1.msra.mxu0 %v4802_v34  ;;  %v4791_v26 = vld [vmem:[%s9428_s8 + $0x1a8] sm:$0xff]  ;;  %v4847_v34 = vunpack.c.h.bf16 %v4760_v41  ;;  %v4844_v37 = vunpack.c.l.bf16 %v4759_v25 }
 0xc5d   : > { %5050 = vmatpush1.msra.mxu1 %v4866_v27  ;;  %4974 = vmatprep.subr.mxu0 %v4865_v30  ;;  %v4911_v27 = vunpack.c.h.bf16 %v4792_v20  ;;  %v4758_v30 = vld [vmem:[%s9428_s8 + $0xa0] sm:$0xff]  ;;  %v4908_v54 = vunpack.c.l.bf16 %v4791_v26 }
 0xc5e   : > { %5051 = vmatprep.subr.mxu1 %v4929_v31  ;;  %4975 = vmatpush2.msra.mxu0 %v4864_v32  ;;  %v4790_v31 = vld [vmem:[%s9428_s8 + $0x1a0] sm:$0xff]  ;;  %v4845_v32 = vunpack.c.h.bf16 %v4759_v25  ;;  %v4842_v19 = vunpack.c.l.bf16 %v4758_v30 }
 0xc5f   : > { %5052 = vmatpush2.msra.mxu1 %v4928_v36  ;;  %4976 = vmatprep.subr.mxu0 %v4863_v62  ;;  %v4909_v36 = vunpack.c.h.bf16 %v4791_v26  ;;  %v4757_v62 = vld [vmem:[%s9428_s8 + $0x98] sm:$0xff]  ;;  %v4906_v45 = vunpack.c.l.bf16 %v4790_v31 }
 0xc60   : > { %5053 = vmatprep.subr.mxu1 %v4927_v44  ;;  %4977 = vmatpush2.msra.mxu0 %v4862_v39  ;;  %v4789_v44 = vld [vmem:[%s9428_s8 + $0x198] sm:$0xff]  ;;  %v4843_v39 = vunpack.c.h.bf16 %v4758_v30  ;;  %v4840_v11 = vunpack.c.l.bf16 %v4757_v62 }
 0xc61   : > { %5054 = vmatpush2.msra.mxu1 %v4926_v42  ;;  %4978 = vmatprep.subr.mxu0 %v4861_v48  ;;  %v4907_v42 = vunpack.c.h.bf16 %v4790_v31  ;;  %v4756_v48 = vld [vmem:[%s9428_s8 + $0x90] sm:$0xff]  ;;  %v4904_v12 = vunpack.c.l.bf16 %v4789_v44 }
 0xc62   : > { %5055 = vmatprep.subr.mxu1 %v4925_v49  ;;  %4979 = vmatpush2.msra.mxu0 %v4860_v55  ;;  %v4788_v49 = vld [vmem:[%s9428_s8 + $0x190] sm:$0xff]  ;;  %v4841_v55 = vunpack.c.h.bf16 %v4757_v62  ;;  %v4838_v61 = vunpack.c.l.bf16 %v4756_v48 }
 0xc63   : > { %5056 = vmatpush2.msra.mxu1 %v4924_v10  ;;  %4980 = vmatprep.subr.mxu0 %v4859_v13  ;;  %v4905_v10 = vunpack.c.h.bf16 %v4789_v44  ;;  %v4755_v13 = vld [vmem:[%s9428_s8 + $0x88] sm:$0xff]  ;;  %v4902_v17 = vunpack.c.l.bf16 %v4788_v49 }
 0xc64   : > { %5057 = vmatprep.subr.mxu1 %v4923_v14  ;;  %4981 = vmatpush2.msra.mxu0 %v4858_v53  ;;  %v4787_v14 = vld [vmem:[%s9428_s8 + $0x188] sm:$0xff]  ;;  %v4839_v53 = vunpack.c.h.bf16 %v4756_v48  ;;  %v4836_v40 = vunpack.c.l.bf16 %v4755_v13 }
 0xc65   : > { %5058 = vmatpush2.msra.mxu1 %v4922_v47  ;;  %4982 = vmatprep.subr.mxu0 %v4857_v59  ;;  %v4903_v47 = vunpack.c.h.bf16 %v4788_v49  ;;  %v4754_v59 = vld [vmem:[%s9428_s8 + $0x80] sm:$0xff]  ;;  %v4900_v4 = vunpack.c.l.bf16 %v4787_v14 }
 0xc66   : > { %5059 = vmatprep.subr.mxu1 %v4921_v46  ;;  %4983 = vmatpush2.msra.mxu0 %v4856_v15  ;;  %v4786_v46 = vld [vmem:[%s9428_s8 + $0x180] sm:$0xff]  ;;  %v4837_v15 = vunpack.c.h.bf16 %v4755_v13 }
 0xc67   : > { %5060 = vmatpush2.msra.mxu1 %v4920_v6  ;;  %4984 = vmatprep.subr.mxu0 %v4855_v52  ;;  %v4901_v6 = vunpack.c.h.bf16 %v4787_v14  ;;  %v4835_v52 = vunpack.c.h.bf16 %v4754_v59 }
 0xc68   : > { %5061 = vmatprep.subr.mxu1 %v4919_v22  ;;  %4985 = vmatpush2.msra.mxu0 %v4854_v3  ;;  %v4899_v22 = vunpack.c.h.bf16 %v4786_v46  ;;  %v4834_v3 = vunpack.c.l.bf16 %v4754_v59 }
 0xc69   : > { %5062 = vmatpush2.msra.mxu1 %v4918_v63  ;;  %4986 = vmatprep.subr.mxu0 %v4853_v9  ;;  %v4898_v63 = vunpack.c.l.bf16 %v4786_v46  ;;  %v4935_v9 = vrot.slane %v4930_v1, %v11555_v29 }
 0xc6a   : > { %5063 = vmatprep.subr.mxu1 %v4917_v5  ;;  %4987 = vmatpush2.msra.mxu0 %v4852_v28  ;;  %v11556_v5 = vld [vmem:[#allocation235_spill] sm:$0xff] }
 0xc6b   : > { %5064 = vmatpush2.msra.mxu1 %v4916_v7  ;;  %4988 = vmatprep.subr.mxu0 %v4851_v23  ;;  %v4939_v28 = vrot.slane %v4930_v1, %v11556_v5 }
 0xc6c   : > { %5065 = vmatprep.subr.mxu1 %v4915_v56  ;;  %4989 = vmatpush2.msra.mxu0 %v4850_v18 }
 0xc6d   : > { %5066 = vmatpush2.msra.mxu1 %v4914_v16  ;;  %4990 = vmatprep.subr.mxu0 %v4849_v50 }
 0xc6e   : > { %5067 = vmatprep.subr.mxu1 %v4913_v2  ;;  %4991 = vmatpush2.msra.mxu0 %v4848_v21 }
 0xc6f   : > { %5068 = vmatpush2.msra.mxu1 %v4912_v24  ;;  %4992 = vmatprep.subr.mxu0 %v4847_v34 }
 0xc70   : > { %5069 = vmatprep.subr.mxu1 %v4911_v27  ;;  %4993 = vmatpush2.msra.mxu0 %v4846_v57 }
 0xc71   : > { %5070 = vmatpush2.msra.mxu1 %v4910_v58  ;;  %4994 = vmatprep.subr.mxu0 %v4845_v32 }
 0xc72   : > { %5071 = vmatprep.subr.mxu1 %v4909_v36  ;;  %4995 = vmatpush2.msra.mxu0 %v4844_v37 }
 0xc73   : > { %5072 = vmatpush2.msra.mxu1 %v4908_v54  ;;  %4996 = vmatprep.subr.mxu0 %v4843_v39 }
 0xc74   : > { %5073 = vmatprep.subr.mxu1 %v4907_v42  ;;  %4997 = vmatpush2.msra.mxu0 %v4842_v19 }
 0xc75   : > { %5074 = vmatpush2.msra.mxu1 %v4906_v45  ;;  %4998 = vmatprep.subr.mxu0 %v4841_v55 }
 0xc76   : > { %5075 = vmatprep.subr.mxu1 %v4905_v10  ;;  %4999 = vmatpush2.msra.mxu0 %v4840_v11 }
 0xc77   : > { %5076 = vmatpush2.msra.mxu1 %v4904_v12  ;;  %5000 = vmatprep.subr.mxu0 %v4839_v53 }
 0xc78   : > { %5077 = vmatprep.subr.mxu1 %v4903_v47  ;;  %5001 = vmatpush2.msra.mxu0 %v4838_v61 }
 0xc79   : > { %5078 = vmatpush2.msra.mxu1 %v4902_v17  ;;  %5002 = vmatprep.subr.mxu0 %v4837_v15 }
 0xc7a   : > { %5079 = vmatprep.subr.mxu1 %v4901_v6  ;;  %5003 = vmatpush2.msra.mxu0 %v4836_v40 }
 0xc7b   : > { %5080 = vmatpush2.msra.mxu1 %v4900_v4  ;;  %5004 = vmatprep.subr.mxu0 %v4835_v52 }
 0xc7c   : > { %5081 = vmatprep.subr.mxu1 %v4899_v22  ;;  %5005 = vmatpush2.msra.mxu0 %v4834_v3 }
 0xc7d   : > { %5082 = vmatpush2.msra.mxu1 %v4898_v63  ;;  %5007 = vmatmul.mubr.f32.vlgmr.msra.gmra.mxu0 %v9183_v35 }
 0xc7e   : > { %5084 = vmatmul.mubr.f32.vlgmr.msra.gmra.mxu1 %v9192_v43  ;;  %5012 = vmatprep.mubr.f32.mxu0 %v9189_v33 }
 0xc7f   : > { %5089 = vmatprep.mubr.f32.mxu1 %v9198_v60 }
 0xc81   : > { %5013 = vmatmul.mubr.f32.gmra.mxu0 %v9186_v38 }
 0xc82   : > { %5090 = vmatmul.mubr.f32.gmra.mxu1 %v9195_v51 }
 0xd3d   : > { %v5008_v7 = vpop.f32.mrf.mxu0 }
 0xd3e   : > { %v5085_v35 = vpop.f32.mrf.mxu1  ;;  %v5009_v0 = vadd.f32 %v5008_v7, %v4935_v9 }
 0xd3f   : > { %v5010_v43 = vpop.f32.mrf.mxu0 }
 0xd40   : > { %v5087_v8 = vpop.f32.mrf.mxu1  ;;  %v5086_v33 = vadd.f32 %v5085_v35, %v5009_v0  ;;  %v5011_v23 = vadd.f32 %v5010_v43, %v4939_v28 }
 0xd41   : > { %v5014_v60 = vpop.f32.mrf.mxu0 }
 0xd42   : > { %v5091_v56 = vpop.f32.mrf.mxu1  ;;  %5096 = vst [vmem:[#allocation4] sm:$0xff] %v5086_v33  ;;  %v5088_v38 = vadd.f32 %v5087_v8, %v5011_v23  ;;  %v5015_v51 = vadd.f32 %v5014_v60, %v4935_v9 }
 0xd43   : > { %v5016_v18 = vpop.f32.mrf.mxu0 }
 0xd44   : > { %5097 = vst [vmem:[#allocation4 + $0x8] sm:$0xff] %v5088_v38  ;;  %v5092_v16 = vadd.f32 %v5091_v56, %v5015_v51  ;;  %v5017_v41 = vadd.f32 %v5016_v18, %v4939_v28  ;;  %v5093_v20 = vpop.f32.mrf.mxu1 }
 0xd46   : > { %5098 = vst [vmem:[#allocation4 + $0x10] sm:$0xff] %v5092_v16  ;;  %v5094_v50 = vadd.f32 %v5093_v20, %v5017_v41 }
 0xd48   : > { %5099 = vst [vmem:[#allocation4 + $0x18] sm:$0xff] %v5094_v50 }
 0xd49 PF: > { %p5462_p6 = scmp.eq.s32.totalorder %s5669_s14, 1  ;;  %s5605_s23 = smov [#allocation4]  }
 0xd4a   : > { %s5106_s26 = sshll.u32 %s5605_s23, 4  ;;  %s5107_s26 = int_to_ptr.vmem [resolvable:$true] %s5106_s26 }
 0xd4b   : > { %s5568_s29 = scalar_lea.vmem %s5107_s26, 512  ;;  %p5575_p10 = scmp.lt.s32.totalorder %s5107_s26, %s5107_s26 }
 0xd4c   : > { %p5569_p7 = scmp.ne.s32.totalorder %s5107_s26, %s5568_s29  ;;  %p5576_p11 = scmp.lt.s32.totalorder %s5568_s29, %s5568_s29 }
 0xd4e   : > { %p5570_p8 = pnand %p5569_p7, %p5462_p6  ;;  %p5577_p12 = por %p5576_p11, %p5575_p10 }
 0xd50   : > { %p5571_p9 = pneg %p5570_p8 }
 0xd52   : > { %p5578_p13 = pnand %p5577_p12, %p5571_p9 }
 0xd54   : > { %5581 = shalt.err (!%p5578_p13)
}
 0xd55   : > { %s5606_s12 = smov 256   ;;  %s5607_s15 = smov 16  }
 0xd56   : > { %5459 = dma.vmem_to_hbm [thread:$0]  (%p5462_p6), %s5107_s26, 512, %s9430_s10, [#allocation5], %s5606_s12, %s5606_s12, %s5607_s15  }
 0xd57   : > { %5597 = dma.done.wait (%p5462_p6), [#allocation5], 512  }
 0xd58   : > { %5599 = vsyncadd (%p5462_p6), [#allocation5], 4294966784 }
 0xd59 PF: > { %s21_s13 = sadd.s32 1, %s5602_s13  }
 0xd5a   : > { %p18_p0 = scmp.ge.s32.totalorder %s21_s13, 4  }
 0xd5c   :  { %20 = sbr.rel (!%p18_p0) target bundleno = 1 (0x1), region = 104 }
 0xd61   :  { %5122 = vsyncpa [#allocation5], 1 }
 0xd62   :  { %5124 = vsyncpa [#allocation5 + $0x1], 1 }

</bundles_post_ra>
